<compile_context>
chip_gen: v7x
topology: tpu7x:2x2x1
jax: 0.10.0
libtpu: 0.0.40
codegen_flags: <defaults>
</compile_context>

<pallas_src>
import functools

import jax
import jax.numpy as jnp
from jax.experimental import pallas as pl
from jax.experimental.pallas import tpu as pltpu

_LANE = 128


def _round_up(x, m):
    return (x + m - 1) // m * m


def _pick_tile_h(H):
    # Largest of 32/16/8 rows that divides H while still giving >= 2 tiles
    # (so the pipeline has something to overlap); otherwise a single tile.
    for th in (32, 16, 8):
        if H % th == 0 and H // th >= 2:
            return th
    return H


@functools.cache
def _roll_left_shift():
    """One-time probe of pltpu.roll's direction on the sublane axis.

    Returns s such that pltpu.roll(y, shift=s % m, axis=0)[i] == y[i-1]
    (+1 for jnp.roll semantics, -1 if reversed), or None if roll can't be
    used (then the kernel falls back to slice+concatenate shifts)."""
    try:
        def k(x_ref, o_ref):
            o_ref[...] = pltpu.roll(x_ref[...], shift=1, axis=0)

        x = jnp.arange(8 * 128, dtype=jnp.float32).reshape(8, 128)
        out = jax.device_get(pl.pallas_call(
            k, out_shape=jax.ShapeDtypeStruct((8, 128), jnp.float32))(x))
        if out[1, 0] == 0.0 and out[0, 0] == 7 * 128.0:
            return 1          # out[i] = x[i - shift]  (jnp.roll semantics)
        if out[0, 0] == 128.0 and out[1, 0] == 2 * 128.0:
            return -1         # out[i] = x[i + shift]
    except Exception:
        pass
    return None


def _make_kernel(TH, W, cin_p, cout_p, has_down, roll_shift):
    R2 = TH + 2  # rows of conv1 output == rows of conv2's im2col input

    def kernel(*refs):
        if has_down:
            (x_ref, halo_ref, s1_ref, b1_ref, w1_ref, s2_ref, b2_ref, w2_ref,
             wd_ref, sd_ref, bd_ref, o_ref, pad_ref) = refs
        else:
            (x_ref, halo_ref, s1_ref, b1_ref, w1_ref, s2_ref, b2_ref, w2_ref,
             o_ref, pad_ref) = refs

        is_top = pl.program_id(1) == 0
        is_bot = pl.program_id(1) == pl.num_programs(1) - 1

        def bn_relu(v, s_ref, b_ref):
            # folded (eval-mode) BN + ReLU in f32.
            return jnp.maximum(v.astype(jnp.float32) * s_ref[...] + b_ref[...],
                               0.0)

        def write_im2col(y, c, row0):
            # y: (m, c) f32, flattened (rows*W, c).  Writes the 3-wide-W
            # im2col into pad_ref rows [row0*W, row0*W + m): lane block dx
            # holds y shifted by dx-1 along W (zeros at the W borders).
            m = y.shape[0]
            if roll_shift is not None:
                # XLU roll + border mask: all three stores stay full & aligned.
                wp = jax.lax.broadcasted_iota(jnp.int32, (m, 1), 0) % W
                y_l = jnp.where(wp > 0,
                                pltpu.roll(y, shift=roll_shift % m, axis=0),
                                0.0)
                y_r = jnp.where(wp < W - 1,
                                pltpu.roll(y, shift=(-roll_shift) % m, axis=0),
                                0.0)
            else:
                # Fallback: slice + concatenate along W.
                y3 = y.reshape(m // W, W, c)
                z = jnp.zeros((m // W, 1, c), y.dtype)
                y_l = jnp.concatenate([z, y3[:, :W - 1]], axis=1).reshape(m, c)
                y_r = jnp.concatenate([y3[:, 1:], z], axis=1).reshape(m, c)
            base = row0 * W
            pad_ref[base:base + m, 0:c] = y_l.astype(jnp.bfloat16)
            pad_ref[base:base + m, c:2 * c] = y.astype(jnp.bfloat16)
            pad_ref[base:base + m, 2 * c:3 * c] = y_r.astype(jnp.bfloat16)

        def conv3x3(w_ref, c, out_rows):
            # 3 deep MXU dots (K = 3*c); the dy shift is a sublane offset
            # (multiple of W) into the shared pad scratch.
            m = out_rows * W
            acc = jnp.zeros((m, cout_p), jnp.float32)
            for dy in range(3):
                patch = pad_ref[dy * W:dy * W + m, 0:3 * c]
                acc = acc + jnp.dot(patch, w_ref[dy],
                                    preferred_element_type=jnp.float32)
            return acc

        # ---- bn1 + relu1 on the tile and its 2-row H halo; im2col for conv1.
        # Out-of-image halo rows must be zero in y1-space (that is exactly the
        # conv's zero padding), hence the is_top / is_bot masking.
        halo = halo_ref[0, 0].reshape(4 * W, cin_p)            # bf16
        y1_top = jnp.where(is_top, 0.0, bn_relu(halo[0:2 * W], s1_ref, b1_ref))
        y1_bot = jnp.where(is_bot, 0.0, bn_relu(halo[2 * W:], s1_ref, b1_ref))
        write_im2col(y1_top, cin_p, 0)
        write_im2col(bn_relu(x_ref[0].reshape(TH * W, cin_p), s1_ref, b1_ref),
                     cin_p, 2)
        write_im2col(y1_bot, cin_p, 2 + TH)

        # ---- conv1 over the tile plus a 1-row halo (needed by conv2).
        acc1 = conv3x3(w1_ref, cin_p, R2)                      # (R2*W, Cout)

        # ---- bn2 + relu2; zero the rows that are conv2's zero padding at the
        # true image borders; im2col for conv2 (reusing the same scratch).
        y2 = bn_relu(acc1, s2_ref, b2_ref)
        s_idx = jax.lax.broadcasted_iota(jnp.int32, (R2 * W, 1), 0)
        keep = jnp.logical_and(
            jnp.logical_or(jnp.logical_not(is_top), s_idx >= W),
            jnp.logical_or(jnp.logical_not(is_bot), s_idx < (R2 - 1) * W))
        y2 = jnp.where(keep, y2, 0.0)
        write_im2col(y2, cout_p, 0)

        acc2 = conv3x3(w2_ref, cout_p, TH)                     # (TH*W, Cout)

        # ---- residual.  x is re-read here (not held live across both convs)
        # to keep peak live VMEM / spills down.
        if has_down:
            ident = jnp.dot(x_ref[0].reshape(TH * W, cin_p), wd_ref[...],
                            preferred_element_type=jnp.float32)
            ident = ident * sd_ref[...] + bd_ref[...]
        else:
            ident = x_ref[0].reshape(TH * W, cin_p).astype(jnp.float32)

        o_ref[0] = (acc2 + ident).reshape(TH, W, cout_p).astype(o_ref.dtype)

    return kernel


def _fold_bn(bn, c_pad, eps=1e-5):
    gamma, beta, mean, var = (jnp.asarray(v, jnp.float32) for v in bn)
    scale = gamma / jnp.sqrt(var + eps)
    shift = beta - mean * scale
    c = scale.shape[0]
    scale = jnp.pad(scale, (0, c_pad - c)).reshape(1, c_pad)
    shift = jnp.pad(shift, (0, c_pad - c)).reshape(1, c_pad)
    return scale, shift


def _prep_conv3x3(w, cin_p, cout_p):
    # PyTorch (Cout, Cin, 3, 3) -> (3, 3*cin_p, cout_p); K laid out as
    # (dx, channel) to match the in-kernel im2col.  bf16 for the MXU.
    w = jnp.transpose(jnp.asarray(w, jnp.float32), (2, 3, 1, 0))  # (kh,kw,Ci,Co)
    cin, cout = w.shape[2], w.shape[3]
    w = jnp.pad(w, ((0, 0), (0, 0), (0, cin_p - cin), (0, cout_p - cout)))
    return w.reshape(3, 3 * cin_p, cout_p).astype(jnp.bfloat16)


def _build_halo(x, TH):
    """x: (N, H, W, C).  Returns (N, nh, 4, W, C) holding rows
    [h*TH-2, h*TH-1, h*TH+TH, h*TH+TH+1] of x (zeros outside the image)."""
    N, H, W, C = x.shape
    nh = H // TH
    if nh == 1:
        return jnp.zeros((N, 1, 4, W, C), x.dtype)
    xr = x.reshape(N, nh, TH, W, C)
    z2 = jnp.zeros((N, 1, 2, W, C), x.dtype)
    top = jnp.concatenate([z2, xr[:, :-1, TH - 2:TH]], axis=1)
    bot = jnp.concatenate([xr[:, 1:, 0:2], z2], axis=1)
    return jnp.concatenate([top, bot], axis=2)


def utr_res_block_nhwc(x, params, *, stride=1, dilation=1, tile_h=None):
    """UtrResBlock forward, eval-mode BN.

    x: (N, H, W, Cin_pad) with channels zero-padded to a multiple of 128
    (bf16 or f32; cast to bf16 at the HBM boundary).  Returns
    (N, H, W, Cout_pad) bf16.  Use this entry point to chain blocks without
    NCHW<->NHWC round trips."""
    # TODO(synk): stride > 1 and dilation > 1 are not implemented.
    assert stride == 1 and dilation == 1

    N, H, W, cin_p = x.shape
    Cout, Cin = params['conv1'].shape[0], params['conv1'].shape[1]
    has_down = 'down_conv' in params
    cout_p = _round_up(Cout, _LANE)
    cmax_p = max(cin_p, cout_p)
    assert cin_p % _LANE == 0 and cin_p >= Cin
    if not has_down:
        assert Cin == Cout and cin_p == cout_p  # identity shortcut

    TH = tile_h if tile_h is not None else _pick_tile_h(H)
    assert H % TH == 0, (H, TH)
    nh = H // TH

    x = x.astype(jnp.bfloat16)
    halo = _build_halo(x, TH)

    s1, b1 = _fold_bn(params['bn1'], cin_p)
    s2, b2 = _fold_bn(params['bn2'], cout_p)
    w1 = _prep_conv3x3(params['conv1'], cin_p, cout_p)
    w2 = _prep_conv3x3(params['conv2'], cout_p, cout_p)

    args = [x, halo, s1, b1, w1, s2, b2, w2]
    if has_down:
        wd = jnp.transpose(
            jnp.asarray(params['down_conv'], jnp.float32)[:, :, 0, 0], (1, 0))
        wd = jnp.pad(wd, ((0, cin_p - Cin),
                          (0, cout_p - Cout))).astype(jnp.bfloat16)
        sd, bd = _fold_bn(params['down_bn'], cout_p)
        args += [wd, sd, bd]

    flops = 2 * N * H * W * (9 * cin_p * cout_p + 9 * cout_p * cout_p
                             + (cin_p * cout_p if has_down else 0))
    bytes_accessed = (x.size * 2 + halo.size * 2 + N * H * W * cout_p * 2
                      + w1.size * 2 + w2.size * 2
                      + (cin_p * cout_p * 2 if has_down else 0))

    # Explicit VMEM budget: double-buffered activation blocks + weights
    # (counted double-buffered for headroom even if Buffered(1) applies) +
    # shared im2col scratch + f32 temporaries, plus slack.
    act = 2 * 2 * (TH * W * cin_p + 4 * W * cin_p + TH * W * cout_p)
    wts = 2 * 2 * (9 * cin_p * cout_p + 9 * cout_p * cout_p
                   + (cin_p * cout_p if has_down else 0))
    pad_scratch = (TH + 4) * W * 3 * cmax_p * 2
    temps = 4 * ((TH + 4) * W * cmax_p * 4) + 2 * ((TH + 2) * W * cout_p * 4)
    vmem_limit = min(128 << 20,
                     int(1.25 * (act + wts + pad_scratch + temps)) + (8 << 20))

    roll_shift = _roll_left_shift()
    kernel = _make_kernel(TH, W, cin_p, cout_p, has_down, roll_shift)
    out_shape = jax.ShapeDtypeStruct((N, H, W, cout_p), jnp.bfloat16)

    def call(single_buffer_consts):
        # Grid-invariant operands (weights, folded BN vectors) are
        # single-buffered; activations keep default double buffering.
        const_kw = ({'pipeline_mode': pl.Buffered(1)}
                    if single_buffer_consts else {})
        vec = lambda c: pl.BlockSpec((1, c), lambda n, h: (0, 0), **const_kw)
        in_specs = [
            pl.BlockSpec((1, TH, W, cin_p), lambda n, h: (n, h, 0, 0)),       # x
            pl.BlockSpec((1, 1, 4, W, cin_p), lambda n, h: (n, h, 0, 0, 0)),  # halo
            vec(cin_p), vec(cin_p),                                           # bn1
            pl.BlockSpec((3, 3 * cin_p, cout_p),
                         lambda n, h: (0, 0, 0), **const_kw),                 # w1
            vec(cout_p), vec(cout_p),                                         # bn2
            pl.BlockSpec((3, 3 * cout_p, cout_p),
                         lambda n, h: (0, 0, 0), **const_kw),                 # w2
        ]
        if has_down:
            in_specs += [pl.BlockSpec((cin_p, cout_p),
                                      lambda n, h: (0, 0), **const_kw),
                         vec(cout_p), vec(cout_p)]
        return pl.pallas_call(
            kernel,
            out_shape=out_shape,
            grid_spec=pltpu.PrefetchScalarGridSpec(
                num_scalar_prefetch=0,
                grid=(N, nh),
                in_specs=in_specs,
                out_specs=pl.BlockSpec((1, TH, W, cout_p),
                                       lambda n, h: (n, h, 0, 0)),
                scratch_shapes=[
                    pltpu.VMEM(((TH + 4) * W, 3 * cmax_p), jnp.bfloat16)]),
            compiler_params=pltpu.CompilerParams(
                dimension_semantics=("parallel", "parallel"),
                vmem_limit_bytes=vmem_limit),
            cost_estimate=pl.CostEstimate(flops=flops, transcendentals=0,
                                          bytes_accessed=bytes_accessed),
        )(*args)

    try:
        out = call(True)
        out = jax.block_until_ready(out)
    except Exception:
        # pipeline_mode=pl.Buffered(1) not supported by this Pallas build:
        # fall back to default double buffering (correctness unchanged).
        out = call(False)
    return out


def utr_res_block(x_nchw, params, *, stride=1, dilation=1, tile_h=None):
    """NCHW convenience wrapper matching the PyTorch interface.

    NOTE: in a real network keep activations NHWC / lane-padded / bf16 end to
    end and call utr_res_block_nhwc directly; the transposes below are a full
    extra HBM round trip that exists only to match the NCHW interface."""
    N, Cin, H, W = x_nchw.shape
    Cout = params['conv1'].shape[0]
    cin_p = _round_up(Cin, _LANE)
    x = jnp.transpose(x_nchw, (0, 2, 3, 1)).astype(jnp.bfloat16)
    x = jnp.pad(x, ((0, 0), (0, 0), (0, 0), (0, cin_p - Cin)))
    out = utr_res_block_nhwc(x, params, stride=stride, dilation=dilation,
                             tile_h=tile_h)
    out = out[:, :, :, :Cout]                       # drop lane padding
    return jnp.transpose(out, (0, 3, 1, 2))         # back to NCHW (bf16)


if __name__ == "__main__":
    eps = 1e-5

    def bn_params(k, C):
        k1, k2, k3, k4 = jax.random.split(k, 4)
        gamma = 1.0 + 0.1 * jax.random.normal(k1, (C,), jnp.float32)
        beta = 0.1 * jax.random.normal(k2, (C,), jnp.float32)
        mean = 0.1 * jax.random.normal(k3, (C,), jnp.float32)
        var = 0.5 + jax.random.uniform(k4, (C,), jnp.float32)
        return (gamma, beta, mean, var)

    def reference(x, params):
        def bn(v, p):
            g, b, m, var = p
            inv = g / jnp.sqrt(var + eps)
            return ((v - m[None, :, None, None]) * inv[None, :, None, None]
                    + b[None, :, None, None])

        def conv(v, w):
            pad = w.shape[2] // 2
            return jax.lax.conv_general_dilated(
                v, w, (1, 1), [(pad, pad), (pad, pad)],
                dimension_numbers=('NCHW', 'OIHW', 'NCHW'))

        out = jnp.maximum(bn(x, params['bn1']), 0.0)
        out = conv(out, params['conv1'])
        out = jnp.maximum(bn(out, params['bn2']), 0.0)
        out = conv(out, params['conv2'])
        if 'down_conv' in params:
            ident = bn(conv(x, params['down_conv']), params['down_bn'])
        else:
            ident = x
        return out + ident

    def check(out, ref, shape):
        assert out.shape == shape, out.shape
        assert bool(jnp.all(jnp.isfinite(out)))
        err = float(jnp.max(jnp.abs(out.astype(jnp.float32) - ref)))
        tol = 0.1 + 0.05 * float(jnp.max(jnp.abs(ref)))  # bf16 in/out + MXU
        assert err < tol, (err, tol)

    N, H, W = 2, 16, 16

    # Case 1: Cin != Cout -> downsample (1x1 conv + BN) shortcut; default
    # H-tile (8 rows -> 2 tiles) exercises the halo path.
    Cin, Cout = 4, 8
    ks = jax.random.split(jax.random.PRNGKey(0), 8)
    x = jax.random.normal(ks[0], (N, Cin, H, W), jnp.float32)
    params = {
        'bn1': bn_params(ks[1], Cin),
        'conv1': 0.1 * jax.random.normal(ks[2], (Cout, Cin, 3, 3), jnp.float32),
        'bn2': bn_params(ks[3], Cout),
        'conv2': 0.1 * jax.random.normal(ks[4], (Cout, Cout, 3, 3), jnp.float32),
        'down_conv': 0.1 * jax.random.normal(ks[5], (Cout, Cin, 1, 1),
                                             jnp.float32),
        'down_bn': bn_params(ks[6], Cout),
    }
    out = jax.block_until_ready(utr_res_block(x, params))
    check(out, reference(x, params), (N, Cout, H, W))

    # Case 2: Cin == Cout -> identity shortcut, multi-tile (default tile).
    C = 8
    ks2 = jax.random.split(jax.random.PRNGKey(1), 6)
    x2 = jax.random.normal(ks2[0], (N, C, H, W), jnp.float32)
    params2 = {
        'bn1': bn_params(ks2[1], C),
        'conv1': 0.1 * jax.random.normal(ks2[2], (C, C, 3, 3), jnp.float32),
        'bn2': bn_params(ks2[3], C),
        'conv2': 0.1 * jax.random.normal(ks2[4], (C, C, 3, 3), jnp.float32),
    }
    ref2 = reference(x2, params2)
    out2 = jax.block_until_ready(utr_res_block(x2, params2))
    check(out2, ref2, (N, C, H, W))

    # Case 3: same inputs, single H tile (tile_h = H) -> exercises the
    # both-borders-in-one-tile path.
    out3 = jax.block_until_ready(utr_res_block(x2, params2, tile_h=H))
    check(out3, ref2, (N, C, H, W))

    print("KERNEL_OK")
</pallas_src>

<mosaic_0001>
module attributes {stable_mosaic.version = 11 : i64} {
  func.func @k(%arg0: memref<8x128xf32, #tpu.memory_space<vmem>>, %arg1: memref<8x128xf32, #tpu.memory_space<vmem>>) attributes {dimension_semantics = [], scalar_prefetch = 0 : i64, scratch_operands = 0 : i64, tpu.core_type = #tpu.core_type<tc>} {
    %c0 = arith.constant 0 : index
    %c0_0 = arith.constant 0 : index
    %0 = vector.load %arg0[%c0, %c0_0] : memref<8x128xf32, #tpu.memory_space<vmem>>, vector<8x128xf32>
    %c1_i32 = arith.constant 1 : i32
    %1 = tpu.dynamic_rotate %0 by %c1_i32 dim 0 : vector<8x128xf32>, i32 -> vector<8x128xf32>
    %c0_1 = arith.constant 0 : index
    %c0_2 = arith.constant 0 : index
    %2 = vector.load %arg1[%c0_1, %c0_2] : memref<8x128xf32, #tpu.memory_space<vmem>>, vector<8x128xf32>
    tpu.vector_store %arg1[%c0_1, %c0_2], %1 {strides = array<i32>} : memref<8x128xf32, #tpu.memory_space<vmem>>, vector<8x128xf32>,
    return
  }
}

module attributes {stable_mosaic.version = 11 : i64} {
  func.func @kernel(%arg0: i32, %arg1: i32, %arg2: memref<1x8x16x128xbf16, #tpu.memory_space<vmem>>, %arg3: memref<1x1x4x16x128xbf16, #tpu.memory_space<vmem>>, %arg4: memref<1x128xf32, #tpu.memory_space<vmem>>, %arg5: memref<1x128xf32, #tpu.memory_space<vmem>>, %arg6: memref<3x384x128xbf16, #tpu.memory_space<vmem>>, %arg7: memref<1x128xf32, #tpu.memory_space<vmem>>, %arg8: memref<1x128xf32, #tpu.memory_space<vmem>>, %arg9: memref<3x384x128xbf16, #tpu.memory_space<vmem>>, %arg10: memref<128x128xbf16, #tpu.memory_space<vmem>>, %arg11: memref<1x128xf32, #tpu.memory_space<vmem>>, %arg12: memref<1x128xf32, #tpu.memory_space<vmem>>, %arg13: memref<1x8x16x128xbf16, #tpu.memory_space<vmem>>, %arg14: memref<192x384xbf16, #tpu.memory_space<vmem>>) attributes {dimension_semantics = [#tpu.dimension_semantics<parallel>, #tpu.dimension_semantics<parallel>], iteration_bounds = array<i64: 2, 2>, scalar_prefetch = 0 : i64, scratch_operands = 1 : i64, tpu.core_type = #tpu.core_type<tc>, window_params = [{transform_indices = @transform_0, window_bounds = array<i64: 1, 8, 16, 128>}, {transform_indices = @transform_1, window_bounds = array<i64: 1, 1, 4, 16, 128>}, {pipeline_mode = #tpu.pipeline_mode<synchronous>, transform_indices = @transform_2, window_bounds = array<i64: 1, 128>}, {pipeline_mode = #tpu.pipeline_mode<synchronous>, transform_indices = @transform_3, window_bounds = array<i64: 1, 128>}, {pipeline_mode = #tpu.pipeline_mode<synchronous>, transform_indices = @transform_4, window_bounds = array<i64: 3, 384, 128>}, {pipeline_mode = #tpu.pipeline_mode<synchronous>, transform_indices = @transform_5, window_bounds = array<i64: 1, 128>}, {pipeline_mode = #tpu.pipeline_mode<synchronous>, transform_indices = @transform_6, window_bounds = array<i64: 1, 128>}, {pipeline_mode = #tpu.pipeline_mode<synchronous>, transform_indices = @transform_7, window_bounds = array<i64: 3, 384, 128>}, {pipeline_mode = #tpu.pipeline_mode<synchronous>, transform_indices = @transform_8, window_bounds = array<i64: 128, 128>}, {pipeline_mode = #tpu.pipeline_mode<synchronous>, transform_indices = @transform_9, window_bounds = array<i64: 1, 128>}, {pipeline_mode = #tpu.pipeline_mode<synchronous>, transform_indices = @transform_10, window_bounds = array<i64: 1, 128>}, {transform_indices = @transform_11, window_bounds = array<i64: 1, 8, 16, 128>}]} {
    %c0_i32 = arith.constant 0 : i32
    %0 = arith.cmpi eq, %arg1, %c0_i32 : i32
    %c1_i32 = arith.constant 1 : i32
    %1 = arith.cmpi eq, %arg1, %c1_i32 : i32
    %c0 = arith.constant 0 : index
    %c0_0 = arith.constant 0 : index
    %c0_1 = arith.constant 0 : index
    %c0_2 = arith.constant 0 : index
    %c0_3 = arith.constant 0 : index
    %2 = vector.load %arg3[%c0, %c0_0, %c0_1, %c0_2, %c0_3] : memref<1x1x4x16x128xbf16, #tpu.memory_space<vmem>>, vector<1x1x4x16x128xbf16>
    %3 = vector.shape_cast %2 : vector<1x1x4x16x128xbf16> to vector<4x16x128xbf16>
    %4 = vector.shape_cast %3 : vector<4x16x128xbf16> to vector<64x128xbf16>
    %5 = vector.extract_strided_slice %4 {offsets = [0, 0], sizes = [32, 128], strides = [1, 1]} : vector<64x128xbf16> to vector<32x128xbf16>
    %6 = arith.extf %5 : vector<32x128xbf16> to vector<32x128xf32>
    %c0_4 = arith.constant 0 : index
    %c0_5 = arith.constant 0 : index
    %7 = vector.load %arg4[%c0_4, %c0_5] : memref<1x128xf32, #tpu.memory_space<vmem>>, vector<1x128xf32>
    %8 = vector.broadcast %7 : vector<1x128xf32> to vector<32x128xf32>
    %9 = arith.mulf %6, %8 : vector<32x128xf32>
    %c0_6 = arith.constant 0 : index
    %c0_7 = arith.constant 0 : index
    %10 = vector.load %arg5[%c0_6, %c0_7] : memref<1x128xf32, #tpu.memory_space<vmem>>, vector<1x128xf32>
    %11 = vector.broadcast %10 : vector<1x128xf32> to vector<32x128xf32>
    %12 = arith.addf %9, %11 : vector<32x128xf32>
    %cst = arith.constant 0.000000e+00 : f32
    %13 = vector.broadcast %cst : f32 to vector<32x128xf32>
    %14 = arith.maximumf %12, %13 : vector<32x128xf32>
    %cst_8 = arith.constant 0.000000e+00 : f32
    %15 = vector.broadcast %cst_8 : f32 to vector<32x128xf32>
    %16 = arith.select %0, %15, %14 : vector<32x128xf32>
    %17 = vector.extract_strided_slice %4 {offsets = [32, 0], sizes = [32, 128], strides = [1, 1]} : vector<64x128xbf16> to vector<32x128xbf16>
    %18 = arith.extf %17 : vector<32x128xbf16> to vector<32x128xf32>
    %c0_9 = arith.constant 0 : index
    %c0_10 = arith.constant 0 : index
    %19 = vector.load %arg4[%c0_9, %c0_10] : memref<1x128xf32, #tpu.memory_space<vmem>>, vector<1x128xf32>
    %20 = vector.broadcast %19 : vector<1x128xf32> to vector<32x128xf32>
    %21 = arith.mulf %18, %20 : vector<32x128xf32>
    %c0_11 = arith.constant 0 : index
    %c0_12 = arith.constant 0 : index
    %22 = vector.load %arg5[%c0_11, %c0_12] : memref<1x128xf32, #tpu.memory_space<vmem>>, vector<1x128xf32>
    %23 = vector.broadcast %22 : vector<1x128xf32> to vector<32x128xf32>
    %24 = arith.addf %21, %23 : vector<32x128xf32>
    %cst_13 = arith.constant 0.000000e+00 : f32
    %25 = vector.broadcast %cst_13 : f32 to vector<32x128xf32>
    %26 = arith.maximumf %24, %25 : vector<32x128xf32>
    %cst_14 = arith.constant 0.000000e+00 : f32
    %27 = vector.broadcast %cst_14 : f32 to vector<32x128xf32>
    %28 = arith.select %1, %27, %26 : vector<32x128xf32>
    %29 = vector.shape_cast %16 : vector<32x128xf32> to vector<2x16x128xf32>
    %cst_15 = arith.constant 0.000000e+00 : f32
    %30 = vector.broadcast %cst_15 : f32 to vector<2x1x128xf32>
    %31 = vector.extract_strided_slice %29 {offsets = [0, 0, 0], sizes = [2, 15, 128], strides = [1, 1, 1]} : vector<2x16x128xf32> to vector<2x15x128xf32>
    %32 = tpu.concatenate %30, %31 in 1 : vector<2x1x128xf32>, vector<2x15x128xf32> -> vector<2x16x128xf32>
    %33 = vector.shape_cast %32 : vector<2x16x128xf32> to vector<32x128xf32>
    %34 = vector.extract_strided_slice %29 {offsets = [0, 1, 0], sizes = [2, 15, 128], strides = [1, 1, 1]} : vector<2x16x128xf32> to vector<2x15x128xf32>
    %35 = tpu.concatenate %34, %30 in 1 : vector<2x15x128xf32>, vector<2x1x128xf32> -> vector<2x16x128xf32>
    %36 = vector.shape_cast %35 : vector<2x16x128xf32> to vector<32x128xf32>
    %37 = arith.truncf %33 : vector<32x128xf32> to vector<32x128xbf16>
    %c0_16 = arith.constant 0 : index
    %c0_17 = arith.constant 0 : index
    %38 = vector.load %arg14[%c0_16, %c0_17] : memref<192x384xbf16, #tpu.memory_space<vmem>>, vector<32x128xbf16>
    tpu.vector_store %arg14[%c0_16, %c0_17], %37 {strides = array<i32>} : memref<192x384xbf16, #tpu.memory_space<vmem>>, vector<32x128xbf16>,
    %39 = arith.truncf %16 : vector<32x128xf32> to vector<32x128xbf16>
    %c0_18 = arith.constant 0 : index
    %c128 = arith.constant 128 : index
    %40 = vector.load %arg14[%c0_18, %c128] : memref<192x384xbf16, #tpu.memory_space<vmem>>, vector<32x128xbf16>
    tpu.vector_store %arg14[%c0_18, %c128], %39 {strides = array<i32>} : memref<192x384xbf16, #tpu.memory_space<vmem>>, vector<32x128xbf16>,
    %41 = arith.truncf %36 : vector<32x128xf32> to vector<32x128xbf16>
    %c0_19 = arith.constant 0 : index
    %c256 = arith.constant 256 : index
    %42 = vector.load %arg14[%c0_19, %c256] : memref<192x384xbf16, #tpu.memory_space<vmem>>, vector<32x128xbf16>
    tpu.vector_store %arg14[%c0_19, %c256], %41 {strides = array<i32>} : memref<192x384xbf16, #tpu.memory_space<vmem>>, vector<32x128xbf16>,
    %c0_20 = arith.constant 0 : index
    %c0_21 = arith.constant 0 : index
    %c0_22 = arith.constant 0 : index
    %c0_23 = arith.constant 0 : index
    %43 = vector.load %arg2[%c0_20, %c0_21, %c0_22, %c0_23] : memref<1x8x16x128xbf16, #tpu.memory_space<vmem>>, vector<1x8x16x128xbf16>
    %44 = vector.shape_cast %43 : vector<1x8x16x128xbf16> to vector<8x16x128xbf16>
    %45 = vector.shape_cast %44 : vector<8x16x128xbf16> to vector<128x128xbf16>
    %46 = arith.extf %45 : vector<128x128xbf16> to vector<128x128xf32>
    %c0_24 = arith.constant 0 : index
    %c0_25 = arith.constant 0 : index
    %47 = vector.load %arg4[%c0_24, %c0_25] : memref<1x128xf32, #tpu.memory_space<vmem>>, vector<1x128xf32>
    %48 = vector.broadcast %47 : vector<1x128xf32> to vector<128x128xf32>
    %49 = arith.mulf %46, %48 : vector<128x128xf32>
    %c0_26 = arith.constant 0 : index
    %c0_27 = arith.constant 0 : index
    %50 = vector.load %arg5[%c0_26, %c0_27] : memref<1x128xf32, #tpu.memory_space<vmem>>, vector<1x128xf32>
    %51 = vector.broadcast %50 : vector<1x128xf32> to vector<128x128xf32>
    %52 = arith.addf %49, %51 : vector<128x128xf32>
    %cst_28 = arith.constant 0.000000e+00 : f32
    %53 = vector.broadcast %cst_28 : f32 to vector<128x128xf32>
    %54 = arith.maximumf %52, %53 : vector<128x128xf32>
    %55 = vector.shape_cast %54 : vector<128x128xf32> to vector<8x16x128xf32>
    %cst_29 = arith.constant 0.000000e+00 : f32
    %56 = vector.broadcast %cst_29 : f32 to vector<8x1x128xf32>
    %57 = vector.extract_strided_slice %55 {offsets = [0, 0, 0], sizes = [8, 15, 128], strides = [1, 1, 1]} : vector<8x16x128xf32> to vector<8x15x128xf32>
    %58 = tpu.concatenate %56, %57 in 1 : vector<8x1x128xf32>, vector<8x15x128xf32> -> vector<8x16x128xf32>
    %59 = vector.shape_cast %58 : vector<8x16x128xf32> to vector<128x128xf32>
    %60 = vector.extract_strided_slice %55 {offsets = [0, 1, 0], sizes = [8, 15, 128], strides = [1, 1, 1]} : vector<8x16x128xf32> to vector<8x15x128xf32>
    %61 = tpu.concatenate %60, %56 in 1 : vector<8x15x128xf32>, vector<8x1x128xf32> -> vector<8x16x128xf32>
    %62 = vector.shape_cast %61 : vector<8x16x128xf32> to vector<128x128xf32>
    %63 = arith.truncf %59 : vector<128x128xf32> to vector<128x128xbf16>
    %c32 = arith.constant 32 : index
    %c0_30 = arith.constant 0 : index
    %64 = vector.load %arg14[%c32, %c0_30] : memref<192x384xbf16, #tpu.memory_space<vmem>>, vector<128x128xbf16>
    tpu.vector_store %arg14[%c32, %c0_30], %63 {strides = array<i32>} : memref<192x384xbf16, #tpu.memory_space<vmem>>, vector<128x128xbf16>,
    %65 = arith.truncf %54 : vector<128x128xf32> to vector<128x128xbf16>
    %c32_31 = arith.constant 32 : index
    %c128_32 = arith.constant 128 : index
    %66 = vector.load %arg14[%c32_31, %c128_32] : memref<192x384xbf16, #tpu.memory_space<vmem>>, vector<128x128xbf16>
    tpu.vector_store %arg14[%c32_31, %c128_32], %65 {strides = array<i32>} : memref<192x384xbf16, #tpu.memory_space<vmem>>, vector<128x128xbf16>,
    %67 = arith.truncf %62 : vector<128x128xf32> to vector<128x128xbf16>
    %c32_33 = arith.constant 32 : index
    %c256_34 = arith.constant 256 : index
    %68 = vector.load %arg14[%c32_33, %c256_34] : memref<192x384xbf16, #tpu.memory_space<vmem>>, vector<128x128xbf16>
    tpu.vector_store %arg14[%c32_33, %c256_34], %67 {strides = array<i32>} : memref<192x384xbf16, #tpu.memory_space<vmem>>, vector<128x128xbf16>,
    %69 = vector.shape_cast %28 : vector<32x128xf32> to vector<2x16x128xf32>
    %cst_35 = arith.constant 0.000000e+00 : f32
    %70 = vector.broadcast %cst_35 : f32 to vector<2x1x128xf32>
    %71 = vector.extract_strided_slice %69 {offsets = [0, 0, 0], sizes = [2, 15, 128], strides = [1, 1, 1]} : vector<2x16x128xf32> to vector<2x15x128xf32>
    %72 = tpu.concatenate %70, %71 in 1 : vector<2x1x128xf32>, vector<2x15x128xf32> -> vector<2x16x128xf32>
    %73 = vector.shape_cast %72 : vector<2x16x128xf32> to vector<32x128xf32>
    %74 = vector.extract_strided_slice %69 {offsets = [0, 1, 0], sizes = [2, 15, 128], strides = [1, 1, 1]} : vector<2x16x128xf32> to vector<2x15x128xf32>
    %75 = tpu.concatenate %74, %70 in 1 : vector<2x15x128xf32>, vector<2x1x128xf32> -> vector<2x16x128xf32>
    %76 = vector.shape_cast %75 : vector<2x16x128xf32> to vector<32x128xf32>
    %77 = arith.truncf %73 : vector<32x128xf32> to vector<32x128xbf16>
    %c160 = arith.constant 160 : index
    %c0_36 = arith.constant 0 : index
    %78 = vector.load %arg14[%c160, %c0_36] : memref<192x384xbf16, #tpu.memory_space<vmem>>, vector<32x128xbf16>
    tpu.vector_store %arg14[%c160, %c0_36], %77 {strides = array<i32>} : memref<192x384xbf16, #tpu.memory_space<vmem>>, vector<32x128xbf16>,
    %79 = arith.truncf %28 : vector<32x128xf32> to vector<32x128xbf16>
    %c160_37 = arith.constant 160 : index
    %c128_38 = arith.constant 128 : index
    %80 = vector.load %arg14[%c160_37, %c128_38] : memref<192x384xbf16, #tpu.memory_space<vmem>>, vector<32x128xbf16>
    tpu.vector_store %arg14[%c160_37, %c128_38], %79 {strides = array<i32>} : memref<192x384xbf16, #tpu.memory_space<vmem>>, vector<32x128xbf16>,
    %81 = arith.truncf %76 : vector<32x128xf32> to vector<32x128xbf16>
    %c160_39 = arith.constant 160 : index
    %c256_40 = arith.constant 256 : index
    %82 = vector.load %arg14[%c160_39, %c256_40] : memref<192x384xbf16, #tpu.memory_space<vmem>>, vector<32x128xbf16>
    tpu.vector_store %arg14[%c160_39, %c256_40], %81 {strides = array<i32>} : memref<192x384xbf16, #tpu.memory_space<vmem>>, vector<32x128xbf16>,
    %cst_41 = arith.constant 0.000000e+00 : f32
    %83 = vector.broadcast %cst_41 : f32 to vector<160x128xf32>
    %c0_42 = arith.constant 0 : index
    %c0_43 = arith.constant 0 : index
    %84 = vector.load %arg14[%c0_42, %c0_43] : memref<192x384xbf16, #tpu.memory_space<vmem>>, vector<160x384xbf16>
    %c0_44 = arith.constant 0 : index
    %c0_45 = arith.constant 0 : index
    %c0_46 = arith.constant 0 : index
    %85 = vector.load %arg6[%c0_44, %c0_45, %c0_46] : memref<3x384x128xbf16, #tpu.memory_space<vmem>>, vector<1x384x128xbf16>
    %86 = vector.shape_cast %85 : vector<1x384x128xbf16> to vector<384x128xbf16>
    %cst_47 = arith.constant dense<0.000000e+00> : vector<160x128xf32>
    %87 = tpu.matmul %84, %86, %cst_47 {dimension_numbers = #tpu.dot_dimension_numbers<[1], [0], [0], [1], [0, 0, 1, 1], [], []>} : vector<160x384xbf16>, vector<384x128xbf16>, vector<160x128xf32> -> vector<160x128xf32>
    %88 = arith.addf %83, %87 : vector<160x128xf32>
    %c16 = arith.constant 16 : index
    %c0_48 = arith.constant 0 : index
    %89 = vector.load %arg14[%c16, %c0_48] : memref<192x384xbf16, #tpu.memory_space<vmem>>, vector<160x384xbf16>
    %c1 = arith.constant 1 : index
    %c0_49 = arith.constant 0 : index
    %c0_50 = arith.constant 0 : index
    %90 = vector.load %arg6[%c1, %c0_49, %c0_50] : memref<3x384x128xbf16, #tpu.memory_space<vmem>>, vector<1x384x128xbf16>
    %91 = vector.shape_cast %90 : vector<1x384x128xbf16> to vector<384x128xbf16>
    %cst_51 = arith.constant dense<0.000000e+00> : vector<160x128xf32>
    %92 = tpu.matmul %89, %91, %cst_51 {dimension_numbers = #tpu.dot_dimension_numbers<[1], [0], [0], [1], [0, 0, 1, 1], [], []>} : vector<160x384xbf16>, vector<384x128xbf16>, vector<160x128xf32> -> vector<160x128xf32>
    %93 = arith.addf %88, %92 : vector<160x128xf32>
    %c32_52 = arith.constant 32 : index
    %c0_53 = arith.constant 0 : index
    %94 = vector.load %arg14[%c32_52, %c0_53] : memref<192x384xbf16, #tpu.memory_space<vmem>>, vector<160x384xbf16>
    %c2 = arith.constant 2 : index
    %c0_54 = arith.constant 0 : index
    %c0_55 = arith.constant 0 : index
    %95 = vector.load %arg6[%c2, %c0_54, %c0_55] : memref<3x384x128xbf16, #tpu.memory_space<vmem>>, vector<1x384x128xbf16>
    %96 = vector.shape_cast %95 : vector<1x384x128xbf16> to vector<384x128xbf16>
    %cst_56 = arith.constant dense<0.000000e+00> : vector<160x128xf32>
    %97 = tpu.matmul %94, %96, %cst_56 {dimension_numbers = #tpu.dot_dimension_numbers<[1], [0], [0], [1], [0, 0, 1, 1], [], []>} : vector<160x384xbf16>, vector<384x128xbf16>, vector<160x128xf32> -> vector<160x128xf32>
    %98 = arith.addf %93, %97 : vector<160x128xf32>
    %c0_57 = arith.constant 0 : index
    %c0_58 = arith.constant 0 : index
    %99 = vector.load %arg7[%c0_57, %c0_58] : memref<1x128xf32, #tpu.memory_space<vmem>>, vector<1x128xf32>
    %100 = vector.broadcast %99 : vector<1x128xf32> to vector<160x128xf32>
    %101 = arith.mulf %98, %100 : vector<160x128xf32>
    %c0_59 = arith.constant 0 : index
    %c0_60 = arith.constant 0 : index
    %102 = vector.load %arg8[%c0_59, %c0_60] : memref<1x128xf32, #tpu.memory_space<vmem>>, vector<1x128xf32>
    %103 = vector.broadcast %102 : vector<1x128xf32> to vector<160x128xf32>
    %104 = arith.addf %101, %103 : vector<160x128xf32>
    %cst_61 = arith.constant 0.000000e+00 : f32
    %105 = vector.broadcast %cst_61 : f32 to vector<160x128xf32>
    %106 = arith.maximumf %104, %105 : vector<160x128xf32>
    %107 = tpu.iota {dimensions = array<i32: 0>} : vector<160x1xi32>
    %true = arith.constant true
    %108 = arith.xori %0, %true : i1
    %c16_i32 = arith.constant 16 : i32
    %109 = vector.broadcast %c16_i32 : i32 to vector<160x1xi32>
    %110 = arith.cmpi sge, %107, %109 : vector<160x1xi32>
    %111 = vector.broadcast %108 : i1 to vector<160x1xi1>
    %112 = arith.ori %111, %110 : vector<160x1xi1>
    %true_62 = arith.constant true
    %113 = arith.xori %1, %true_62 : i1
    %c144_i32 = arith.constant 144 : i32
    %114 = vector.broadcast %c144_i32 : i32 to vector<160x1xi32>
    %115 = arith.cmpi slt, %107, %114 : vector<160x1xi32>
    %116 = vector.broadcast %113 : i1 to vector<160x1xi1>
    %117 = arith.ori %116, %115 : vector<160x1xi1>
    %118 = arith.andi %112, %117 : vector<160x1xi1>
    %cst_63 = arith.constant 0.000000e+00 : f32
    %119 = vector.shape_cast %118 : vector<160x1xi1> to vector<160x1xi1>
    %120 = vector.broadcast %119 : vector<160x1xi1> to vector<160x128xi1>
    %121 = vector.broadcast %cst_63 : f32 to vector<160x128xf32>
    %122 = arith.select %120, %106, %121 : vector<160x128xi1>, vector<160x128xf32>
    %123 = vector.shape_cast %122 : vector<160x128xf32> to vector<10x16x128xf32>
    %cst_64 = arith.constant 0.000000e+00 : f32
    %124 = vector.broadcast %cst_64 : f32 to vector<10x1x128xf32>
    %125 = vector.extract_strided_slice %123 {offsets = [0, 0, 0], sizes = [10, 15, 128], strides = [1, 1, 1]} : vector<10x16x128xf32> to vector<10x15x128xf32>
    %126 = tpu.concatenate %124, %125 in 1 : vector<10x1x128xf32>, vector<10x15x128xf32> -> vector<10x16x128xf32>
    %127 = vector.shape_cast %126 : vector<10x16x128xf32> to vector<160x128xf32>
    %128 = vector.extract_strided_slice %123 {offsets = [0, 1, 0], sizes = [10, 15, 128], strides = [1, 1, 1]} : vector<10x16x128xf32> to vector<10x15x128xf32>
    %129 = tpu.concatenate %128, %124 in 1 : vector<10x15x128xf32>, vector<10x1x128xf32> -> vector<10x16x128xf32>
    %130 = vector.shape_cast %129 : vector<10x16x128xf32> to vector<160x128xf32>
    %131 = arith.truncf %127 : vector<160x128xf32> to vector<160x128xbf16>
    %c0_65 = arith.constant 0 : index
    %c0_66 = arith.constant 0 : index
    %132 = vector.load %arg14[%c0_65, %c0_66] : memref<192x384xbf16, #tpu.memory_space<vmem>>, vector<160x128xbf16>
    tpu.vector_store %arg14[%c0_65, %c0_66], %131 {strides = array<i32>} : memref<192x384xbf16, #tpu.memory_space<vmem>>, vector<160x128xbf16>,
    %133 = arith.truncf %122 : vector<160x128xf32> to vector<160x128xbf16>
    %c0_67 = arith.constant 0 : index
    %c128_68 = arith.constant 128 : index
    %134 = vector.load %arg14[%c0_67, %c128_68] : memref<192x384xbf16, #tpu.memory_space<vmem>>, vector<160x128xbf16>
    tpu.vector_store %arg14[%c0_67, %c128_68], %133 {strides = array<i32>} : memref<192x384xbf16, #tpu.memory_space<vmem>>, vector<160x128xbf16>,
    %135 = arith.truncf %130 : vector<160x128xf32> to vector<160x128xbf16>
    %c0_69 = arith.constant 0 : index
    %c256_70 = arith.constant 256 : index
    %136 = vector.load %arg14[%c0_69, %c256_70] : memref<192x384xbf16, #tpu.memory_space<vmem>>, vector<160x128xbf16>
    tpu.vector_store %arg14[%c0_69, %c256_70], %135 {strides = array<i32>} : memref<192x384xbf16, #tpu.memory_space<vmem>>, vector<160x128xbf16>,
    %cst_71 = arith.constant 0.000000e+00 : f32
    %137 = vector.broadcast %cst_71 : f32 to vector<128x128xf32>
    %c0_72 = arith.constant 0 : index
    %c0_73 = arith.constant 0 : index
    %138 = vector.load %arg14[%c0_72, %c0_73] : memref<192x384xbf16, #tpu.memory_space<vmem>>, vector<128x384xbf16>
    %c0_74 = arith.constant 0 : index
    %c0_75 = arith.constant 0 : index
    %c0_76 = arith.constant 0 : index
    %139 = vector.load %arg9[%c0_74, %c0_75, %c0_76] : memref<3x384x128xbf16, #tpu.memory_space<vmem>>, vector<1x384x128xbf16>
    %140 = vector.shape_cast %139 : vector<1x384x128xbf16> to vector<384x128xbf16>
    %cst_77 = arith.constant dense<0.000000e+00> : vector<128x128xf32>
    %141 = tpu.matmul %138, %140, %cst_77 {dimension_numbers = #tpu.dot_dimension_numbers<[1], [0], [0], [1], [0, 0, 1, 1], [], []>} : vector<128x384xbf16>, vector<384x128xbf16>, vector<128x128xf32> -> vector<128x128xf32>
    %142 = arith.addf %137, %141 : vector<128x128xf32>
    %c16_78 = arith.constant 16 : index
    %c0_79 = arith.constant 0 : index
    %143 = vector.load %arg14[%c16_78, %c0_79] : memref<192x384xbf16, #tpu.memory_space<vmem>>, vector<128x384xbf16>
    %c1_80 = arith.constant 1 : index
    %c0_81 = arith.constant 0 : index
    %c0_82 = arith.constant 0 : index
    %144 = vector.load %arg9[%c1_80, %c0_81, %c0_82] : memref<3x384x128xbf16, #tpu.memory_space<vmem>>, vector<1x384x128xbf16>
    %145 = vector.shape_cast %144 : vector<1x384x128xbf16> to vector<384x128xbf16>
    %cst_83 = arith.constant dense<0.000000e+00> : vector<128x128xf32>
    %146 = tpu.matmul %143, %145, %cst_83 {dimension_numbers = #tpu.dot_dimension_numbers<[1], [0], [0], [1], [0, 0, 1, 1], [], []>} : vector<128x384xbf16>, vector<384x128xbf16>, vector<128x128xf32> -> vector<128x128xf32>
    %147 = arith.addf %142, %146 : vector<128x128xf32>
    %c32_84 = arith.constant 32 : index
    %c0_85 = arith.constant 0 : index
    %148 = vector.load %arg14[%c32_84, %c0_85] : memref<192x384xbf16, #tpu.memory_space<vmem>>, vector<128x384xbf16>
    %c2_86 = arith.constant 2 : index
    %c0_87 = arith.constant 0 : index
    %c0_88 = arith.constant 0 : index
    %149 = vector.load %arg9[%c2_86, %c0_87, %c0_88] : memref<3x384x128xbf16, #tpu.memory_space<vmem>>, vector<1x384x128xbf16>
    %150 = vector.shape_cast %149 : vector<1x384x128xbf16> to vector<384x128xbf16>
    %cst_89 = arith.constant dense<0.000000e+00> : vector<128x128xf32>
    %151 = tpu.matmul %148, %150, %cst_89 {dimension_numbers = #tpu.dot_dimension_numbers<[1], [0], [0], [1], [0, 0, 1, 1], [], []>} : vector<128x384xbf16>, vector<384x128xbf16>, vector<128x128xf32> -> vector<128x128xf32>
    %152 = arith.addf %147, %151 : vector<128x128xf32>
    %c0_90 = arith.constant 0 : index
    %c0_91 = arith.constant 0 : index
    %c0_92 = arith.constant 0 : index
    %c0_93 = arith.constant 0 : index
    %153 = vector.load %arg2[%c0_90, %c0_91, %c0_92, %c0_93] : memref<1x8x16x128xbf16, #tpu.memory_space<vmem>>, vector<1x8x16x128xbf16>
    %154 = vector.shape_cast %153 : vector<1x8x16x128xbf16> to vector<8x16x128xbf16>
    %155 = vector.shape_cast %154 : vector<8x16x128xbf16> to vector<128x128xbf16>
    %c0_94 = arith.constant 0 : index
    %c0_95 = arith.constant 0 : index
    %156 = vector.load %arg10[%c0_94, %c0_95] : memref<128x128xbf16, #tpu.memory_space<vmem>>, vector<128x128xbf16>
    %cst_96 = arith.constant dense<0.000000e+00> : vector<128x128xf32>
    %157 = tpu.matmul %155, %156, %cst_96 {dimension_numbers = #tpu.dot_dimension_numbers<[1], [0], [0], [1], [0, 0, 1, 1], [], []>} : vector<128x128xbf16>, vector<128x128xbf16>, vector<128x128xf32> -> vector<128x128xf32>
    %c0_97 = arith.constant 0 : index
    %c0_98 = arith.constant 0 : index
    %158 = vector.load %arg11[%c0_97, %c0_98] : memref<1x128xf32, #tpu.memory_space<vmem>>, vector<1x128xf32>
    %159 = vector.broadcast %158 : vector<1x128xf32> to vector<128x128xf32>
    %160 = arith.mulf %157, %159 : vector<128x128xf32>
    %c0_99 = arith.constant 0 : index
    %c0_100 = arith.constant 0 : index
    %161 = vector.load %arg12[%c0_99, %c0_100] : memref<1x128xf32, #tpu.memory_space<vmem>>, vector<1x128xf32>
    %162 = vector.broadcast %161 : vector<1x128xf32> to vector<128x128xf32>
    %163 = arith.addf %160, %162 : vector<128x128xf32>
    %164 = arith.addf %152, %163 : vector<128x128xf32>
    %165 = vector.shape_cast %164 : vector<128x128xf32> to vector<8x16x128xf32>
    %166 = arith.truncf %165 : vector<8x16x128xf32> to vector<8x16x128xbf16>
    %c0_101 = arith.constant 0 : index
    %c0_102 = arith.constant 0 : index
    %c0_103 = arith.constant 0 : index
    %c0_104 = arith.constant 0 : index
    %167 = vector.load %arg13[%c0_101, %c0_102, %c0_103, %c0_104] : memref<1x8x16x128xbf16, #tpu.memory_space<vmem>>, vector<1x8x16x128xbf16>
    %168 = vector.shape_cast %167 : vector<1x8x16x128xbf16> to vector<8x16x128xbf16>
    %169 = vector.shape_cast %166 : vector<8x16x128xbf16> to vector<1x8x16x128xbf16>
    tpu.vector_store %arg13[%c0_101, %c0_102, %c0_103, %c0_104], %169 {strides = array<i32>} : memref<1x8x16x128xbf16, #tpu.memory_space<vmem>>, vector<1x8x16x128xbf16>,
    return
  }
  func.func @transform_0(%arg0: i32, %arg1: i32) -> (i32, i32, i32, i32) {
    %c0_i32 = arith.constant 0 : i32
    %c0_i32_0 = arith.constant 0 : i32
    %c0_i32_1 = arith.constant 0 : i32
    return %arg0, %arg1, %c0_i32, %c0_i32_0 : i32, i32, i32, i32
  }
  func.func @transform_1(%arg0: i32, %arg1: i32) -> (i32, i32, i32, i32, i32) {
    %c0_i32 = arith.constant 0 : i32
    %c0_i32_0 = arith.constant 0 : i32
    %c0_i32_1 = arith.constant 0 : i32
    %c0_i32_2 = arith.constant 0 : i32
    return %arg0, %arg1, %c0_i32, %c0_i32_0, %c0_i32_1 : i32, i32, i32, i32, i32
  }
  func.func @transform_2(%arg0: i32, %arg1: i32) -> (i32, i32) {
    %c0_i32 = arith.constant 0 : i32
    %c0_i32_0 = arith.constant 0 : i32
    %c0_i32_1 = arith.constant 0 : i32
    return %c0_i32, %c0_i32_0 : i32, i32
  }
  func.func @transform_3(%arg0: i32, %arg1: i32) -> (i32, i32) {
    %c0_i32 = arith.constant 0 : i32
    %c0_i32_0 = arith.constant 0 : i32
    %c0_i32_1 = arith.constant 0 : i32
    return %c0_i32, %c0_i32_0 : i32, i32
  }
  func.func @transform_4(%arg0: i32, %arg1: i32) -> (i32, i32, i32) {
    %c0_i32 = arith.constant 0 : i32
    %c0_i32_0 = arith.constant 0 : i32
    %c0_i32_1 = arith.constant 0 : i32
    %c0_i32_2 = arith.constant 0 : i32
    return %c0_i32, %c0_i32_0, %c0_i32_1 : i32, i32, i32
  }
  func.func @transform_5(%arg0: i32, %arg1: i32) -> (i32, i32) {
    %c0_i32 = arith.constant 0 : i32
    %c0_i32_0 = arith.constant 0 : i32
    %c0_i32_1 = arith.constant 0 : i32
    return %c0_i32, %c0_i32_0 : i32, i32
  }
  func.func @transform_6(%arg0: i32, %arg1: i32) -> (i32, i32) {
    %c0_i32 = arith.constant 0 : i32
    %c0_i32_0 = arith.constant 0 : i32
    %c0_i32_1 = arith.constant 0 : i32
    return %c0_i32, %c0_i32_0 : i32, i32
  }
  func.func @transform_7(%arg0: i32, %arg1: i32) -> (i32, i32, i32) {
    %c0_i32 = arith.constant 0 : i32
    %c0_i32_0 = arith.constant 0 : i32
    %c0_i32_1 = arith.constant 0 : i32
    %c0_i32_2 = arith.constant 0 : i32
    return %c0_i32, %c0_i32_0, %c0_i32_1 : i32, i32, i32
  }
  func.func @transform_8(%arg0: i32, %arg1: i32) -> (i32, i32) {
    %c0_i32 = arith.constant 0 : i32
    %c0_i32_0 = arith.constant 0 : i32
    %c0_i32_1 = arith.constant 0 : i32
    return %c0_i32, %c0_i32_0 : i32, i32
  }
  func.func @transform_9(%arg0: i32, %arg1: i32) -> (i32, i32) {
    %c0_i32 = arith.constant 0 : i32
    %c0_i32_0 = arith.constant 0 : i32
    %c0_i32_1 = arith.constant 0 : i32
    return %c0_i32, %c0_i32_0 : i32, i32
  }
  func.func @transform_10(%arg0: i32, %arg1: i32) -> (i32, i32) {
    %c0_i32 = arith.constant 0 : i32
    %c0_i32_0 = arith.constant 0 : i32
    %c0_i32_1 = arith.constant 0 : i32
    return %c0_i32, %c0_i32_0 : i32, i32
  }
  func.func @transform_11(%arg0: i32, %arg1: i32) -> (i32, i32, i32, i32) {
    %c0_i32 = arith.constant 0 : i32
    %c0_i32_0 = arith.constant 0 : i32
    %c0_i32_1 = arith.constant 0 : i32
    return %arg0, %arg1, %c0_i32, %c0_i32_0 : i32, i32, i32, i32
  }
}

module attributes {stable_mosaic.version = 11 : i64} {
  func.func @kernel(%arg0: i32, %arg1: i32, %arg2: memref<1x8x16x128xbf16, #tpu.memory_space<vmem>>, %arg3: memref<1x1x4x16x128xbf16, #tpu.memory_space<vmem>>, %arg4: memref<1x128xf32, #tpu.memory_space<vmem>>, %arg5: memref<1x128xf32, #tpu.memory_space<vmem>>, %arg6: memref<3x384x128xbf16, #tpu.memory_space<vmem>>, %arg7: memref<1x128xf32, #tpu.memory_space<vmem>>, %arg8: memref<1x128xf32, #tpu.memory_space<vmem>>, %arg9: memref<3x384x128xbf16, #tpu.memory_space<vmem>>, %arg10: memref<128x128xbf16, #tpu.memory_space<vmem>>, %arg11: memref<1x128xf32, #tpu.memory_space<vmem>>, %arg12: memref<1x128xf32, #tpu.memory_space<vmem>>, %arg13: memref<1x8x16x128xbf16, #tpu.memory_space<vmem>>, %arg14: memref<192x384xbf16, #tpu.memory_space<vmem>>) attributes {dimension_semantics = [#tpu.dimension_semantics<parallel>, #tpu.dimension_semantics<parallel>], iteration_bounds = array<i64: 2, 2>, scalar_prefetch = 0 : i64, scratch_operands = 1 : i64, tpu.core_type = #tpu.core_type<tc>, window_params = [{transform_indices = @transform_0, window_bounds = array<i64: 1, 8, 16, 128>}, {transform_indices = @transform_1, window_bounds = array<i64: 1, 1, 4, 16, 128>}, {pipeline_mode = #tpu.pipeline_mode<synchronous>, transform_indices = @transform_2, window_bounds = array<i64: 1, 128>}, {pipeline_mode = #tpu.pipeline_mode<synchronous>, transform_indices = @transform_3, window_bounds = array<i64: 1, 128>}, {pipeline_mode = #tpu.pipeline_mode<synchronous>, transform_indices = @transform_4, window_bounds = array<i64: 3, 384, 128>}, {pipeline_mode = #tpu.pipeline_mode<synchronous>, transform_indices = @transform_5, window_bounds = array<i64: 1, 128>}, {pipeline_mode = #tpu.pipeline_mode<synchronous>, transform_indices = @transform_6, window_bounds = array<i64: 1, 128>}, {pipeline_mode = #tpu.pipeline_mode<synchronous>, transform_indices = @transform_7, window_bounds = array<i64: 3, 384, 128>}, {pipeline_mode = #tpu.pipeline_mode<synchronous>, transform_indices = @transform_8, window_bounds = array<i64: 128, 128>}, {pipeline_mode = #tpu.pipeline_mode<synchronous>, transform_indices = @transform_9, window_bounds = array<i64: 1, 128>}, {pipeline_mode = #tpu.pipeline_mode<synchronous>, transform_indices = @transform_10, window_bounds = array<i64: 1, 128>}, {transform_indices = @transform_11, window_bounds = array<i64: 1, 8, 16, 128>}]} {
    %c0_i32 = arith.constant 0 : i32
    %0 = arith.cmpi eq, %arg1, %c0_i32 : i32
    %c1_i32 = arith.constant 1 : i32
    %1 = arith.cmpi eq, %arg1, %c1_i32 : i32
    %c0 = arith.constant 0 : index
    %c0_0 = arith.constant 0 : index
    %c0_1 = arith.constant 0 : index
    %c0_2 = arith.constant 0 : index
    %c0_3 = arith.constant 0 : index
    %2 = vector.load %arg3[%c0, %c0_0, %c0_1, %c0_2, %c0_3] : memref<1x1x4x16x128xbf16, #tpu.memory_space<vmem>>, vector<1x1x4x16x128xbf16>
    %3 = vector.shape_cast %2 : vector<1x1x4x16x128xbf16> to vector<4x16x128xbf16>
    %4 = vector.shape_cast %3 : vector<4x16x128xbf16> to vector<64x128xbf16>
    %5 = vector.extract_strided_slice %4 {offsets = [0, 0], sizes = [32, 128], strides = [1, 1]} : vector<64x128xbf16> to vector<32x128xbf16>
    %6 = arith.extf %5 : vector<32x128xbf16> to vector<32x128xf32>
    %c0_4 = arith.constant 0 : index
    %c0_5 = arith.constant 0 : index
    %7 = vector.load %arg4[%c0_4, %c0_5] : memref<1x128xf32, #tpu.memory_space<vmem>>, vector<1x128xf32>
    %8 = vector.broadcast %7 : vector<1x128xf32> to vector<32x128xf32>
    %9 = arith.mulf %6, %8 : vector<32x128xf32>
    %c0_6 = arith.constant 0 : index
    %c0_7 = arith.constant 0 : index
    %10 = vector.load %arg5[%c0_6, %c0_7] : memref<1x128xf32, #tpu.memory_space<vmem>>, vector<1x128xf32>
    %11 = vector.broadcast %10 : vector<1x128xf32> to vector<32x128xf32>
    %12 = arith.addf %9, %11 : vector<32x128xf32>
    %cst = arith.constant 0.000000e+00 : f32
    %13 = vector.broadcast %cst : f32 to vector<32x128xf32>
    %14 = arith.maximumf %12, %13 : vector<32x128xf32>
    %cst_8 = arith.constant 0.000000e+00 : f32
    %15 = vector.broadcast %cst_8 : f32 to vector<32x128xf32>
    %16 = arith.select %0, %15, %14 : vector<32x128xf32>
    %17 = vector.extract_strided_slice %4 {offsets = [32, 0], sizes = [32, 128], strides = [1, 1]} : vector<64x128xbf16> to vector<32x128xbf16>
    %18 = arith.extf %17 : vector<32x128xbf16> to vector<32x128xf32>
    %c0_9 = arith.constant 0 : index
    %c0_10 = arith.constant 0 : index
    %19 = vector.load %arg4[%c0_9, %c0_10] : memref<1x128xf32, #tpu.memory_space<vmem>>, vector<1x128xf32>
    %20 = vector.broadcast %19 : vector<1x128xf32> to vector<32x128xf32>
    %21 = arith.mulf %18, %20 : vector<32x128xf32>
    %c0_11 = arith.constant 0 : index
    %c0_12 = arith.constant 0 : index
    %22 = vector.load %arg5[%c0_11, %c0_12] : memref<1x128xf32, #tpu.memory_space<vmem>>, vector<1x128xf32>
    %23 = vector.broadcast %22 : vector<1x128xf32> to vector<32x128xf32>
    %24 = arith.addf %21, %23 : vector<32x128xf32>
    %cst_13 = arith.constant 0.000000e+00 : f32
    %25 = vector.broadcast %cst_13 : f32 to vector<32x128xf32>
    %26 = arith.maximumf %24, %25 : vector<32x128xf32>
    %cst_14 = arith.constant 0.000000e+00 : f32
    %27 = vector.broadcast %cst_14 : f32 to vector<32x128xf32>
    %28 = arith.select %1, %27, %26 : vector<32x128xf32>
    %29 = vector.shape_cast %16 : vector<32x128xf32> to vector<2x16x128xf32>
    %cst_15 = arith.constant 0.000000e+00 : f32
    %30 = vector.broadcast %cst_15 : f32 to vector<2x1x128xf32>
    %31 = vector.extract_strided_slice %29 {offsets = [0, 0, 0], sizes = [2, 15, 128], strides = [1, 1, 1]} : vector<2x16x128xf32> to vector<2x15x128xf32>
    %32 = tpu.concatenate %30, %31 in 1 : vector<2x1x128xf32>, vector<2x15x128xf32> -> vector<2x16x128xf32>
    %33 = vector.shape_cast %32 : vector<2x16x128xf32> to vector<32x128xf32>
    %34 = vector.extract_strided_slice %29 {offsets = [0, 1, 0], sizes = [2, 15, 128], strides = [1, 1, 1]} : vector<2x16x128xf32> to vector<2x15x128xf32>
    %35 = tpu.concatenate %34, %30 in 1 : vector<2x15x128xf32>, vector<2x1x128xf32> -> vector<2x16x128xf32>
    %36 = vector.shape_cast %35 : vector<2x16x128xf32> to vector<32x128xf32>
    %37 = arith.truncf %33 : vector<32x128xf32> to vector<32x128xbf16>
    %c0_16 = arith.constant 0 : index
    %c0_17 = arith.constant 0 : index
    %38 = vector.load %arg14[%c0_16, %c0_17] : memref<192x384xbf16, #tpu.memory_space<vmem>>, vector<32x128xbf16>
    tpu.vector_store %arg14[%c0_16, %c0_17], %37 {strides = array<i32>} : memref<192x384xbf16, #tpu.memory_space<vmem>>, vector<32x128xbf16>,
    %39 = arith.truncf %16 : vector<32x128xf32> to vector<32x128xbf16>
    %c0_18 = arith.constant 0 : index
    %c128 = arith.constant 128 : index
    %40 = vector.load %arg14[%c0_18, %c128] : memref<192x384xbf16, #tpu.memory_space<vmem>>, vector<32x128xbf16>
    tpu.vector_store %arg14[%c0_18, %c128], %39 {strides = array<i32>} : memref<192x384xbf16, #tpu.memory_space<vmem>>, vector<32x128xbf16>,
    %41 = arith.truncf %36 : vector<32x128xf32> to vector<32x128xbf16>
    %c0_19 = arith.constant 0 : index
    %c256 = arith.constant 256 : index
    %42 = vector.load %arg14[%c0_19, %c256] : memref<192x384xbf16, #tpu.memory_space<vmem>>, vector<32x128xbf16>
    tpu.vector_store %arg14[%c0_19, %c256], %41 {strides = array<i32>} : memref<192x384xbf16, #tpu.memory_space<vmem>>, vector<32x128xbf16>,
    %c0_20 = arith.constant 0 : index
    %c0_21 = arith.constant 0 : index
    %c0_22 = arith.constant 0 : index
    %c0_23 = arith.constant 0 : index
    %43 = vector.load %arg2[%c0_20, %c0_21, %c0_22, %c0_23] : memref<1x8x16x128xbf16, #tpu.memory_space<vmem>>, vector<1x8x16x128xbf16>
    %44 = vector.shape_cast %43 : vector<1x8x16x128xbf16> to vector<8x16x128xbf16>
    %45 = vector.shape_cast %44 : vector<8x16x128xbf16> to vector<128x128xbf16>
    %46 = arith.extf %45 : vector<128x128xbf16> to vector<128x128xf32>
    %c0_24 = arith.constant 0 : index
    %c0_25 = arith.constant 0 : index
    %47 = vector.load %arg4[%c0_24, %c0_25] : memref<1x128xf32, #tpu.memory_space<vmem>>, vector<1x128xf32>
    %48 = vector.broadcast %47 : vector<1x128xf32> to vector<128x128xf32>
    %49 = arith.mulf %46, %48 : vector<128x128xf32>
    %c0_26 = arith.constant 0 : index
    %c0_27 = arith.constant 0 : index
    %50 = vector.load %arg5[%c0_26, %c0_27] : memref<1x128xf32, #tpu.memory_space<vmem>>, vector<1x128xf32>
    %51 = vector.broadcast %50 : vector<1x128xf32> to vector<128x128xf32>
    %52 = arith.addf %49, %51 : vector<128x128xf32>
    %cst_28 = arith.constant 0.000000e+00 : f32
    %53 = vector.broadcast %cst_28 : f32 to vector<128x128xf32>
    %54 = arith.maximumf %52, %53 : vector<128x128xf32>
    %55 = vector.shape_cast %54 : vector<128x128xf32> to vector<8x16x128xf32>
    %cst_29 = arith.constant 0.000000e+00 : f32
    %56 = vector.broadcast %cst_29 : f32 to vector<8x1x128xf32>
    %57 = vector.extract_strided_slice %55 {offsets = [0, 0, 0], sizes = [8, 15, 128], strides = [1, 1, 1]} : vector<8x16x128xf32> to vector<8x15x128xf32>
    %58 = tpu.concatenate %56, %57 in 1 : vector<8x1x128xf32>, vector<8x15x128xf32> -> vector<8x16x128xf32>
    %59 = vector.shape_cast %58 : vector<8x16x128xf32> to vector<128x128xf32>
    %60 = vector.extract_strided_slice %55 {offsets = [0, 1, 0], sizes = [8, 15, 128], strides = [1, 1, 1]} : vector<8x16x128xf32> to vector<8x15x128xf32>
    %61 = tpu.concatenate %60, %56 in 1 : vector<8x15x128xf32>, vector<8x1x128xf32> -> vector<8x16x128xf32>
    %62 = vector.shape_cast %61 : vector<8x16x128xf32> to vector<128x128xf32>
    %63 = arith.truncf %59 : vector<128x128xf32> to vector<128x128xbf16>
    %c32 = arith.constant 32 : index
    %c0_30 = arith.constant 0 : index
    %64 = vector.load %arg14[%c32, %c0_30] : memref<192x384xbf16, #tpu.memory_space<vmem>>, vector<128x128xbf16>
    tpu.vector_store %arg14[%c32, %c0_30], %63 {strides = array<i32>} : memref<192x384xbf16, #tpu.memory_space<vmem>>, vector<128x128xbf16>,
    %65 = arith.truncf %54 : vector<128x128xf32> to vector<128x128xbf16>
    %c32_31 = arith.constant 32 : index
    %c128_32 = arith.constant 128 : index
    %66 = vector.load %arg14[%c32_31, %c128_32] : memref<192x384xbf16, #tpu.memory_space<vmem>>, vector<128x128xbf16>
    tpu.vector_store %arg14[%c32_31, %c128_32], %65 {strides = array<i32>} : memref<192x384xbf16, #tpu.memory_space<vmem>>, vector<128x128xbf16>,
    %67 = arith.truncf %62 : vector<128x128xf32> to vector<128x128xbf16>
    %c32_33 = arith.constant 32 : index
    %c256_34 = arith.constant 256 : index
    %68 = vector.load %arg14[%c32_33, %c256_34] : memref<192x384xbf16, #tpu.memory_space<vmem>>, vector<128x128xbf16>
    tpu.vector_store %arg14[%c32_33, %c256_34], %67 {strides = array<i32>} : memref<192x384xbf16, #tpu.memory_space<vmem>>, vector<128x128xbf16>,
    %69 = vector.shape_cast %28 : vector<32x128xf32> to vector<2x16x128xf32>
    %cst_35 = arith.constant 0.000000e+00 : f32
    %70 = vector.broadcast %cst_35 : f32 to vector<2x1x128xf32>
    %71 = vector.extract_strided_slice %69 {offsets = [0, 0, 0], sizes = [2, 15, 128], strides = [1, 1, 1]} : vector<2x16x128xf32> to vector<2x15x128xf32>
    %72 = tpu.concatenate %70, %71 in 1 : vector<2x1x128xf32>, vector<2x15x128xf32> -> vector<2x16x128xf32>
    %73 = vector.shape_cast %72 : vector<2x16x128xf32> to vector<32x128xf32>
    %74 = vector.extract_strided_slice %69 {offsets = [0, 1, 0], sizes = [2, 15, 128], strides = [1, 1, 1]} : vector<2x16x128xf32> to vector<2x15x128xf32>
    %75 = tpu.concatenate %74, %70 in 1 : vector<2x15x128xf32>, vector<2x1x128xf32> -> vector<2x16x128xf32>
    %76 = vector.shape_cast %75 : vector<2x16x128xf32> to vector<32x128xf32>
    %77 = arith.truncf %73 : vector<32x128xf32> to vector<32x128xbf16>
    %c160 = arith.constant 160 : index
    %c0_36 = arith.constant 0 : index
    %78 = vector.load %arg14[%c160, %c0_36] : memref<192x384xbf16, #tpu.memory_space<vmem>>, vector<32x128xbf16>
    tpu.vector_store %arg14[%c160, %c0_36], %77 {strides = array<i32>} : memref<192x384xbf16, #tpu.memory_space<vmem>>, vector<32x128xbf16>,
    %79 = arith.truncf %28 : vector<32x128xf32> to vector<32x128xbf16>
    %c160_37 = arith.constant 160 : index
    %c128_38 = arith.constant 128 : index
    %80 = vector.load %arg14[%c160_37, %c128_38] : memref<192x384xbf16, #tpu.memory_space<vmem>>, vector<32x128xbf16>
    tpu.vector_store %arg14[%c160_37, %c128_38], %79 {strides = array<i32>} : memref<192x384xbf16, #tpu.memory_space<vmem>>, vector<32x128xbf16>,
    %81 = arith.truncf %76 : vector<32x128xf32> to vector<32x128xbf16>
    %c160_39 = arith.constant 160 : index
    %c256_40 = arith.constant 256 : index
    %82 = vector.load %arg14[%c160_39, %c256_40] : memref<192x384xbf16, #tpu.memory_space<vmem>>, vector<32x128xbf16>
    tpu.vector_store %arg14[%c160_39, %c256_40], %81 {strides = array<i32>} : memref<192x384xbf16, #tpu.memory_space<vmem>>, vector<32x128xbf16>,
    %cst_41 = arith.constant 0.000000e+00 : f32
    %83 = vector.broadcast %cst_41 : f32 to vector<160x128xf32>
    %c0_42 = arith.constant 0 : index
    %c0_43 = arith.constant 0 : index
    %84 = vector.load %arg14[%c0_42, %c0_43] : memref<192x384xbf16, #tpu.memory_space<vmem>>, vector<160x384xbf16>
    %c0_44 = arith.constant 0 : index
    %c0_45 = arith.constant 0 : index
    %c0_46 = arith.constant 0 : index
    %85 = vector.load %arg6[%c0_44, %c0_45, %c0_46] : memref<3x384x128xbf16, #tpu.memory_space<vmem>>, vector<1x384x128xbf16>
    %86 = vector.shape_cast %85 : vector<1x384x128xbf16> to vector<384x128xbf16>
    %cst_47 = arith.constant dense<0.000000e+00> : vector<160x128xf32>
    %87 = tpu.matmul %84, %86, %cst_47 {dimension_numbers = #tpu.dot_dimension_numbers<[1], [0], [0], [1], [0, 0, 1, 1], [], []>} : vector<160x384xbf16>, vector<384x128xbf16>, vector<160x128xf32> -> vector<160x128xf32>
    %88 = arith.addf %83, %87 : vector<160x128xf32>
    %c16 = arith.constant 16 : index
    %c0_48 = arith.constant 0 : index
    %89 = vector.load %arg14[%c16, %c0_48] : memref<192x384xbf16, #tpu.memory_space<vmem>>, vector<160x384xbf16>
    %c1 = arith.constant 1 : index
    %c0_49 = arith.constant 0 : index
    %c0_50 = arith.constant 0 : index
    %90 = vector.load %arg6[%c1, %c0_49, %c0_50] : memref<3x384x128xbf16, #tpu.memory_space<vmem>>, vector<1x384x128xbf16>
    %91 = vector.shape_cast %90 : vector<1x384x128xbf16> to vector<384x128xbf16>
    %cst_51 = arith.constant dense<0.000000e+00> : vector<160x128xf32>
    %92 = tpu.matmul %89, %91, %cst_51 {dimension_numbers = #tpu.dot_dimension_numbers<[1], [0], [0], [1], [0, 0, 1, 1], [], []>} : vector<160x384xbf16>, vector<384x128xbf16>, vector<160x128xf32> -> vector<160x128xf32>
    %93 = arith.addf %88, %92 : vector<160x128xf32>
    %c32_52 = arith.constant 32 : index
    %c0_53 = arith.constant 0 : index
    %94 = vector.load %arg14[%c32_52, %c0_53] : memref<192x384xbf16, #tpu.memory_space<vmem>>, vector<160x384xbf16>
    %c2 = arith.constant 2 : index
    %c0_54 = arith.constant 0 : index
    %c0_55 = arith.constant 0 : index
    %95 = vector.load %arg6[%c2, %c0_54, %c0_55] : memref<3x384x128xbf16, #tpu.memory_space<vmem>>, vector<1x384x128xbf16>
    %96 = vector.shape_cast %95 : vector<1x384x128xbf16> to vector<384x128xbf16>
    %cst_56 = arith.constant dense<0.000000e+00> : vector<160x128xf32>
    %97 = tpu.matmul %94, %96, %cst_56 {dimension_numbers = #tpu.dot_dimension_numbers<[1], [0], [0], [1], [0, 0, 1, 1], [], []>} : vector<160x384xbf16>, vector<384x128xbf16>, vector<160x128xf32> -> vector<160x128xf32>
    %98 = arith.addf %93, %97 : vector<160x128xf32>
    %c0_57 = arith.constant 0 : index
    %c0_58 = arith.constant 0 : index
    %99 = vector.load %arg7[%c0_57, %c0_58] : memref<1x128xf32, #tpu.memory_space<vmem>>, vector<1x128xf32>
    %100 = vector.broadcast %99 : vector<1x128xf32> to vector<160x128xf32>
    %101 = arith.mulf %98, %100 : vector<160x128xf32>
    %c0_59 = arith.constant 0 : index
    %c0_60 = arith.constant 0 : index
    %102 = vector.load %arg8[%c0_59, %c0_60] : memref<1x128xf32, #tpu.memory_space<vmem>>, vector<1x128xf32>
    %103 = vector.broadcast %102 : vector<1x128xf32> to vector<160x128xf32>
    %104 = arith.addf %101, %103 : vector<160x128xf32>
    %cst_61 = arith.constant 0.000000e+00 : f32
    %105 = vector.broadcast %cst_61 : f32 to vector<160x128xf32>
    %106 = arith.maximumf %104, %105 : vector<160x128xf32>
    %107 = tpu.iota {dimensions = array<i32: 0>} : vector<160x1xi32>
    %true = arith.constant true
    %108 = arith.xori %0, %true : i1
    %c16_i32 = arith.constant 16 : i32
    %109 = vector.broadcast %c16_i32 : i32 to vector<160x1xi32>
    %110 = arith.cmpi sge, %107, %109 : vector<160x1xi32>
    %111 = vector.broadcast %108 : i1 to vector<160x1xi1>
    %112 = arith.ori %111, %110 : vector<160x1xi1>
    %true_62 = arith.constant true
    %113 = arith.xori %1, %true_62 : i1
    %c144_i32 = arith.constant 144 : i32
    %114 = vector.broadcast %c144_i32 : i32 to vector<160x1xi32>
    %115 = arith.cmpi slt, %107, %114 : vector<160x1xi32>
    %116 = vector.broadcast %113 : i1 to vector<160x1xi1>
    %117 = arith.ori %116, %115 : vector<160x1xi1>
    %118 = arith.andi %112, %117 : vector<160x1xi1>
    %cst_63 = arith.constant 0.000000e+00 : f32
    %119 = vector.shape_cast %118 : vector<160x1xi1> to vector<160x1xi1>
    %120 = vector.broadcast %119 : vector<160x1xi1> to vector<160x128xi1>
    %121 = vector.broadcast %cst_63 : f32 to vector<160x128xf32>
    %122 = arith.select %120, %106, %121 : vector<160x128xi1>, vector<160x128xf32>
    %123 = vector.shape_cast %122 : vector<160x128xf32> to vector<10x16x128xf32>
    %cst_64 = arith.constant 0.000000e+00 : f32
    %124 = vector.broadcast %cst_64 : f32 to vector<10x1x128xf32>
    %125 = vector.extract_strided_slice %123 {offsets = [0, 0, 0], sizes = [10, 15, 128], strides = [1, 1, 1]} : vector<10x16x128xf32> to vector<10x15x128xf32>
    %126 = tpu.concatenate %124, %125 in 1 : vector<10x1x128xf32>, vector<10x15x128xf32> -> vector<10x16x128xf32>
    %127 = vector.shape_cast %126 : vector<10x16x128xf32> to vector<160x128xf32>
    %128 = vector.extract_strided_slice %123 {offsets = [0, 1, 0], sizes = [10, 15, 128], strides = [1, 1, 1]} : vector<10x16x128xf32> to vector<10x15x128xf32>
    %129 = tpu.concatenate %128, %124 in 1 : vector<10x15x128xf32>, vector<10x1x128xf32> -> vector<10x16x128xf32>
    %130 = vector.shape_cast %129 : vector<10x16x128xf32> to vector<160x128xf32>
    %131 = arith.truncf %127 : vector<160x128xf32> to vector<160x128xbf16>
    %c0_65 = arith.constant 0 : index
    %c0_66 = arith.constant 0 : index
    %132 = vector.load %arg14[%c0_65, %c0_66] : memref<192x384xbf16, #tpu.memory_space<vmem>>, vector<160x128xbf16>
    tpu.vector_store %arg14[%c0_65, %c0_66], %131 {strides = array<i32>} : memref<192x384xbf16, #tpu.memory_space<vmem>>, vector<160x128xbf16>,
    %133 = arith.truncf %122 : vector<160x128xf32> to vector<160x128xbf16>
    %c0_67 = arith.constant 0 : index
    %c128_68 = arith.constant 128 : index
    %134 = vector.load %arg14[%c0_67, %c128_68] : memref<192x384xbf16, #tpu.memory_space<vmem>>, vector<160x128xbf16>
    tpu.vector_store %arg14[%c0_67, %c128_68], %133 {strides = array<i32>} : memref<192x384xbf16, #tpu.memory_space<vmem>>, vector<160x128xbf16>,
    %135 = arith.truncf %130 : vector<160x128xf32> to vector<160x128xbf16>
    %c0_69 = arith.constant 0 : index
    %c256_70 = arith.constant 256 : index
    %136 = vector.load %arg14[%c0_69, %c256_70] : memref<192x384xbf16, #tpu.memory_space<vmem>>, vector<160x128xbf16>
    tpu.vector_store %arg14[%c0_69, %c256_70], %135 {strides = array<i32>} : memref<192x384xbf16, #tpu.memory_space<vmem>>, vector<160x128xbf16>,
    %cst_71 = arith.constant 0.000000e+00 : f32
    %137 = vector.broadcast %cst_71 : f32 to vector<128x128xf32>
    %c0_72 = arith.constant 0 : index
    %c0_73 = arith.constant 0 : index
    %138 = vector.load %arg14[%c0_72, %c0_73] : memref<192x384xbf16, #tpu.memory_space<vmem>>, vector<128x384xbf16>
    %c0_74 = arith.constant 0 : index
    %c0_75 = arith.constant 0 : index
    %c0_76 = arith.constant 0 : index
    %139 = vector.load %arg9[%c0_74, %c0_75, %c0_76] : memref<3x384x128xbf16, #tpu.memory_space<vmem>>, vector<1x384x128xbf16>
    %140 = vector.shape_cast %139 : vector<1x384x128xbf16> to vector<384x128xbf16>
    %cst_77 = arith.constant dense<0.000000e+00> : vector<128x128xf32>
    %141 = tpu.matmul %138, %140, %cst_77 {dimension_numbers = #tpu.dot_dimension_numbers<[1], [0], [0], [1], [0, 0, 1, 1], [], []>} : vector<128x384xbf16>, vector<384x128xbf16>, vector<128x128xf32> -> vector<128x128xf32>
    %142 = arith.addf %137, %141 : vector<128x128xf32>
    %c16_78 = arith.constant 16 : index
    %c0_79 = arith.constant 0 : index
    %143 = vector.load %arg14[%c16_78, %c0_79] : memref<192x384xbf16, #tpu.memory_space<vmem>>, vector<128x384xbf16>
    %c1_80 = arith.constant 1 : index
    %c0_81 = arith.constant 0 : index
    %c0_82 = arith.constant 0 : index
    %144 = vector.load %arg9[%c1_80, %c0_81, %c0_82] : memref<3x384x128xbf16, #tpu.memory_space<vmem>>, vector<1x384x128xbf16>
    %145 = vector.shape_cast %144 : vector<1x384x128xbf16> to vector<384x128xbf16>
    %cst_83 = arith.constant dense<0.000000e+00> : vector<128x128xf32>
    %146 = tpu.matmul %143, %145, %cst_83 {dimension_numbers = #tpu.dot_dimension_numbers<[1], [0], [0], [1], [0, 0, 1, 1], [], []>} : vector<128x384xbf16>, vector<384x128xbf16>, vector<128x128xf32> -> vector<128x128xf32>
    %147 = arith.addf %142, %146 : vector<128x128xf32>
    %c32_84 = arith.constant 32 : index
    %c0_85 = arith.constant 0 : index
    %148 = vector.load %arg14[%c32_84, %c0_85] : memref<192x384xbf16, #tpu.memory_space<vmem>>, vector<128x384xbf16>
    %c2_86 = arith.constant 2 : index
    %c0_87 = arith.constant 0 : index
    %c0_88 = arith.constant 0 : index
    %149 = vector.load %arg9[%c2_86, %c0_87, %c0_88] : memref<3x384x128xbf16, #tpu.memory_space<vmem>>, vector<1x384x128xbf16>
    %150 = vector.shape_cast %149 : vector<1x384x128xbf16> to vector<384x128xbf16>
    %cst_89 = arith.constant dense<0.000000e+00> : vector<128x128xf32>
    %151 = tpu.matmul %148, %150, %cst_89 {dimension_numbers = #tpu.dot_dimension_numbers<[1], [0], [0], [1], [0, 0, 1, 1], [], []>} : vector<128x384xbf16>, vector<384x128xbf16>, vector<128x128xf32> -> vector<128x128xf32>
    %152 = arith.addf %147, %151 : vector<128x128xf32>
    %c0_90 = arith.constant 0 : index
    %c0_91 = arith.constant 0 : index
    %c0_92 = arith.constant 0 : index
    %c0_93 = arith.constant 0 : index
    %153 = vector.load %arg2[%c0_90, %c0_91, %c0_92, %c0_93] : memref<1x8x16x128xbf16, #tpu.memory_space<vmem>>, vector<1x8x16x128xbf16>
    %154 = vector.shape_cast %153 : vector<1x8x16x128xbf16> to vector<8x16x128xbf16>
    %155 = vector.shape_cast %154 : vector<8x16x128xbf16> to vector<128x128xbf16>
    %c0_94 = arith.constant 0 : index
    %c0_95 = arith.constant 0 : index
    %156 = vector.load %arg10[%c0_94, %c0_95] : memref<128x128xbf16, #tpu.memory_space<vmem>>, vector<128x128xbf16>
    %cst_96 = arith.constant dense<0.000000e+00> : vector<128x128xf32>
    %157 = tpu.matmul %155, %156, %cst_96 {dimension_numbers = #tpu.dot_dimension_numbers<[1], [0], [0], [1], [0, 0, 1, 1], [], []>} : vector<128x128xbf16>, vector<128x128xbf16>, vector<128x128xf32> -> vector<128x128xf32>
    %c0_97 = arith.constant 0 : index
    %c0_98 = arith.constant 0 : index
    %158 = vector.load %arg11[%c0_97, %c0_98] : memref<1x128xf32, #tpu.memory_space<vmem>>, vector<1x128xf32>
    %159 = vector.broadcast %158 : vector<1x128xf32> to vector<128x128xf32>
    %160 = arith.mulf %157, %159 : vector<128x128xf32>
    %c0_99 = arith.constant 0 : index
    %c0_100 = arith.constant 0 : index
    %161 = vector.load %arg12[%c0_99, %c0_100] : memref<1x128xf32, #tpu.memory_space<vmem>>, vector<1x128xf32>
    %162 = vector.broadcast %161 : vector<1x128xf32> to vector<128x128xf32>
    %163 = arith.addf %160, %162 : vector<128x128xf32>
    %164 = arith.addf %152, %163 : vector<128x128xf32>
    %165 = vector.shape_cast %164 : vector<128x128xf32> to vector<8x16x128xf32>
    %166 = arith.truncf %165 : vector<8x16x128xf32> to vector<8x16x128xbf16>
    %c0_101 = arith.constant 0 : index
    %c0_102 = arith.constant 0 : index
    %c0_103 = arith.constant 0 : index
    %c0_104 = arith.constant 0 : index
    %167 = vector.load %arg13[%c0_101, %c0_102, %c0_103, %c0_104] : memref<1x8x16x128xbf16, #tpu.memory_space<vmem>>, vector<1x8x16x128xbf16>
    %168 = vector.shape_cast %167 : vector<1x8x16x128xbf16> to vector<8x16x128xbf16>
    %169 = vector.shape_cast %166 : vector<8x16x128xbf16> to vector<1x8x16x128xbf16>
    tpu.vector_store %arg13[%c0_101, %c0_102, %c0_103, %c0_104], %169 {strides = array<i32>} : memref<1x8x16x128xbf16, #tpu.memory_space<vmem>>, vector<1x8x16x128xbf16>,
    return
  }
  func.func @transform_0(%arg0: i32, %arg1: i32) -> (i32, i32, i32, i32) {
    %c0_i32 = arith.constant 0 : i32
    %c0_i32_0 = arith.constant 0 : i32
    %c0_i32_1 = arith.constant 0 : i32
    return %arg0, %arg1, %c0_i32, %c0_i32_0 : i32, i32, i32, i32
  }
  func.func @transform_1(%arg0: i32, %arg1: i32) -> (i32, i32, i32, i32, i32) {
    %c0_i32 = arith.constant 0 : i32
    %c0_i32_0 = arith.constant 0 : i32
    %c0_i32_1 = arith.constant 0 : i32
    %c0_i32_2 = arith.constant 0 : i32
    return %arg0, %arg1, %c0_i32, %c0_i32_0, %c0_i32_1 : i32, i32, i32, i32, i32
  }
  func.func @transform_2(%arg0: i32, %arg1: i32) -> (i32, i32) {
    %c0_i32 = arith.constant 0 : i32
    %c0_i32_0 = arith.constant 0 : i32
    %c0_i32_1 = arith.constant 0 : i32
    return %c0_i32, %c0_i32_0 : i32, i32
  }
  func.func @transform_3(%arg0: i32, %arg1: i32) -> (i32, i32) {
    %c0_i32 = arith.constant 0 : i32
    %c0_i32_0 = arith.constant 0 : i32
    %c0_i32_1 = arith.constant 0 : i32
    return %c0_i32, %c0_i32_0 : i32, i32
  }
  func.func @transform_4(%arg0: i32, %arg1: i32) -> (i32, i32, i32) {
    %c0_i32 = arith.constant 0 : i32
    %c0_i32_0 = arith.constant 0 : i32
    %c0_i32_1 = arith.constant 0 : i32
    %c0_i32_2 = arith.constant 0 : i32
    return %c0_i32, %c0_i32_0, %c0_i32_1 : i32, i32, i32
  }
  func.func @transform_5(%arg0: i32, %arg1: i32) -> (i32, i32) {
    %c0_i32 = arith.constant 0 : i32
    %c0_i32_0 = arith.constant 0 : i32
    %c0_i32_1 = arith.constant 0 : i32
    return %c0_i32, %c0_i32_0 : i32, i32
  }
  func.func @transform_6(%arg0: i32, %arg1: i32) -> (i32, i32) {
    %c0_i32 = arith.constant 0 : i32
    %c0_i32_0 = arith.constant 0 : i32
    %c0_i32_1 = arith.constant 0 : i32
    return %c0_i32, %c0_i32_0 : i32, i32
  }
  func.func @transform_7(%arg0: i32, %arg1: i32) -> (i32, i32, i32) {
    %c0_i32 = arith.constant 0 : i32
    %c0_i32_0 = arith.constant 0 : i32
    %c0_i32_1 = arith.constant 0 : i32
    %c0_i32_2 = arith.constant 0 : i32
    return %c0_i32, %c0_i32_0, %c0_i32_1 : i32, i32, i32
  }
  func.func @transform_8(%arg0: i32, %arg1: i32) -> (i32, i32) {
    %c0_i32 = arith.constant 0 : i32
    %c0_i32_0 = arith.constant 0 : i32
    %c0_i32_1 = arith.constant 0 : i32
    return %c0_i32, %c0_i32_0 : i32, i32
  }
  func.func @transform_9(%arg0: i32, %arg1: i32) -> (i32, i32) {
    %c0_i32 = arith.constant 0 : i32
    %c0_i32_0 = arith.constant 0 : i32
    %c0_i32_1 = arith.constant 0 : i32
    return %c0_i32, %c0_i32_0 : i32, i32
  }
  func.func @transform_10(%arg0: i32, %arg1: i32) -> (i32, i32) {
    %c0_i32 = arith.constant 0 : i32
    %c0_i32_0 = arith.constant 0 : i32
    %c0_i32_1 = arith.constant 0 : i32
    return %c0_i32, %c0_i32_0 : i32, i32
  }
  func.func @transform_11(%arg0: i32, %arg1: i32) -> (i32, i32, i32, i32) {
    %c0_i32 = arith.constant 0 : i32
    %c0_i32_0 = arith.constant 0 : i32
    %c0_i32_1 = arith.constant 0 : i32
    return %arg0, %arg1, %c0_i32, %c0_i32_0 : i32, i32, i32, i32
  }
}

</mosaic_0001>

<bundles_post_ra>
// kernel: tpu_custom_call.1
= control target key start
LH: loop header
LB: loop body
LE: loop exit
PB: predicated region body
PF: predicated region fallthrough
CT: control target
= control target key end

     0   :  { %6 = vsyncpa [#allocation3], 0  ;;  %s125_s0 = inlined_call_operand.hbm [shape: f32[8,128], index: 0, kind: input, shape index: {}]   ;;  %s126_s1 = inlined_call_operand.hbm [shape: f32[8,128], index: 1, kind: output, shape index: {}]  }
   0x1   :  { %7 = vsyncpa [#allocation4], 0  ;;  %s89_s6 = smov [#allocation2]   ;;  %s41_s10 = scalar_lea.hbm %s125_s0, 128 }
   0x2   :  { %s14_s7 = sshll.u32 %s89_s6, 4  ;;  %p42_p0 = scmp.ne.s32.totalorder %s125_s0, %s41_s10  ;;  %s15_s7 = int_to_ptr.vmem [resolvable:$true] %s14_s7 }
   0x3   :  { %p45_p1 = scmp.lt.u32.totalorder %s41_s10, %s125_s0 }
   0x5   :  { %p47_p2 = pnand %p45_p1, %p42_p0 }
   0x7   :  { %50 = shalt.err (!%p47_p2)
}
   0x8   :  { %s51_s15 = scalar_lea.vmem %s15_s7, 128  ;;  %p56_p4 = scmp.lt.s32.totalorder %s15_s7, %s15_s7 }
   0x9   :  { %p52_p3 = scmp.ne.s32.totalorder %s15_s7, %s51_s15  ;;  %p57_p5 = scmp.lt.s32.totalorder %s51_s15, %s51_s15 }
   0xb   :  { %p58_p6 = por %p57_p5, %p56_p4 }
   0xd   :  { %p59_p7 = pnand %p58_p6, %p52_p3 }
   0xf   :  { %62 = shalt.err (!%p59_p7)
}
  0x10   :  { %17 = dma.hbm_to_vmem [thread:$0]  %s125_s0, 128, %s15_s7, [#allocation3]  }
  0x11   :  { %85 = dma.done.wait [#allocation3], 128  }
  0x12   :  { %86 = vsyncadd [#allocation3], 4294967168  ;;  %s90_s18 = smov [#allocation5]   ;;  %v21_v0 = vld [vmem:[#allocation2] sm:$0xff] }
  0x13   :  { %s30_s19 = sshll.u32 %s90_s18, 4  ;;  %v22_v1 = vrot.slane %v21_v0, 7  ;;  %s31_s19 = int_to_ptr.vmem [resolvable:$true] %s30_s19 }
  0x14   :  { %s63_s20 = scalar_lea.vmem %s31_s19, 128  ;;  %p68_p9 = scmp.lt.s32.totalorder %s31_s19, %s31_s19 }
  0x15   :  { %23 = vst [vmem:[#allocation5] sm:$0xff] %v22_v1  ;;  %p64_p8 = scmp.ne.s32.totalorder %s31_s19, %s63_s20  ;;  %p69_p10 = scmp.lt.s32.totalorder %s63_s20, %s63_s20 }
  0x17   :  { %p70_p11 = por %p69_p10, %p68_p9 }
  0x19   :  { %p71_p12 = pnand %p70_p11, %p64_p8 }
  0x1b   :  { %74 = shalt.err (!%p71_p12)
}
  0x1c   :  { %s75_s23 = scalar_lea.hbm %s126_s1, 128 }
  0x1d   :  { %p76_p13 = scmp.ne.s32.totalorder %s126_s1, %s75_s23  ;;  %p79_p0 = scmp.lt.u32.totalorder %s75_s23, %s126_s1 }
  0x1f   :  { %p81_p1 = pnand %p79_p0, %p76_p13 }
  0x21   :  { %84 = shalt.err (!%p81_p1)
}
  0x22   :  { %33 = dma.vmem_to_hbm [thread:$0]  %s31_s19, 128, %s126_s1, [#allocation4]  }
  0x23   :  { %87 = dma.done.wait [#allocation4], 128  }
  0x24   :  { %88 = vsyncadd [#allocation4], 4294967168 }
  0x25   :  { %37 = vsyncpa [#allocation3], 1 }
  0x26   :  { %38 = vsyncpa [#allocation4], 1 }

// kernel: tpu_custom_call.1
= control target key start
LH: loop header
LB: loop body
LE: loop exit
PB: predicated region body
PF: predicated region fallthrough
CT: control target
= control target key end

     0   :  { %s8499_s0 = inlined_call_operand.hbm [shape: bf16[2,16,16,128], index: 0, kind: input, shape index: {}]   ;;  %s8500_s1 = inlined_call_operand.hbm [shape: bf16[2,2,4,16,128], index: 1, kind: input, shape index: {}]   ;;  %s8501_s2 = inlined_call_operand.vmem [shape: f32[1,128], index: 2, kind: input, shape index: {}]   ;;  %s8502_s3 = inlined_call_operand.vmem [shape: f32[1,128], index: 3, kind: input, shape index: {}]   ;;  %s8503_s4 = inlined_call_operand.hbm [shape: bf16[3,384,128], index: 4, kind: input, shape index: {}]   ;;  %s8504_s5 = inlined_call_operand.vmem [shape: f32[1,128], index: 5, kind: input, shape index: {}]   ;;  %s8505_s6 = inlined_call_operand.vmem [shape: f32[1,128], index: 6, kind: input, shape index: {}]   ;;  %s8506_s7 = inlined_call_operand.hbm [shape: bf16[3,384,128], index: 7, kind: input, shape index: {}]   ;;  %s8507_s8 = inlined_call_operand.hbm [shape: bf16[128,128], index: 8, kind: input, shape index: {}]   ;;  %s8508_s9 = inlined_call_operand.vmem [shape: f32[1,128], index: 9, kind: input, shape index: {}]   ;;  %s8509_s10 = inlined_call_operand.vmem [shape: f32[1,128], index: 10, kind: input, shape index: {}]   ;;  %s8510_s11 = inlined_call_operand.hbm [shape: bf16[2,16,16,128], index: 11, kind: output, shape index: {}]  }
   0x1   :  { %8523 = sst [smem:[#allocation23_spill]] %s8499_s0 }
   0x2   :  { %8524 = sst [smem:[#allocation24_spill]] %s8502_s3 }
   0x3   :  { %8525 = sst [smem:[#allocation25_spill]] %s8503_s4 }
   0x4   :  { %8526 = sst [smem:[#allocation26_spill]] %s8504_s5 }
   0x5   :  { %8527 = sst [smem:[#allocation27_spill]] %s8505_s6 }
   0x6   :  { %8528 = sst [smem:[#allocation28_spill]] %s8506_s7 }
   0x7   :  { %8529 = sst [smem:[#allocation29_spill]] %s8507_s8 }
   0x8   :  { %8530 = sst [smem:[#allocation30_spill]] %s8508_s9 }
   0x9   :  { %8531 = sst [smem:[#allocation31_spill]] %s8509_s10 }
   0xa   :  { %8532 = sst [smem:[#allocation32_spill]] %s8510_s11 }
   0xb   :  { %16 = vsyncpa [#allocation4], 0 }
   0xc   :  { %18 = vsyncpa [#allocation4 + $0x1], 0 }
   0xd   :  { %19 = vsyncpa [#allocation7], 0 }
   0xe   :  { %21 = vsyncpa [#allocation7 + $0x1], 0 }
   0xf   :  { %22 = vsyncpa [#allocation10], 0 }
  0x10   :  { %23 = vsyncpa [#allocation5], 0 }
  0x11   :  { %25 = vsyncpa [#allocation5 + $0x1], 0  ;;  %s6804_s17 = smov 0   ;;  %s6806_s18 = smov 0  }
  0x12   :  { %s6808_s19 = smov 0   ;;  %s6810_s20 = smov 0  }
  0x13   :  { %s6812_s21 = smov 0   ;;  %s6814_s22 = smov 0  }
  0x14   :  { %s6816_s23 = smov 0   ;;  %s6818_s24 = smov 0  }
  0x15 LB: > { %8533 = sst [smem:[#allocation18_spill]] %s6703_s17  ;;  %s6845_s25 = sadd.s32 4294967295, %s6731_s24   ;;  %s6731_s24 = sphi %s6818_s24, %s31_s24   ;;  %s6727_s23 = sphi %s6816_s23, %s8597_s23   ;;  %s6723_s22 = sphi %s6814_s22, %s8596_s22   ;;  %s6719_s21 = sphi %s6812_s21, %s8595_s21   ;;  %s6715_s20 = sphi %s6810_s20, %s8594_s20   ;;  %s6711_s19 = sphi %s6808_s19, %s8593_s19   ;;  %s6707_s18 = sphi %s6806_s18, %s8592_s18   ;;  %s6703_s17 = sphi %s6804_s17, %s8591_s17  }
  0x16   : > { %8534 = sst [smem:[#allocation19_spill]] %s6719_s21  ;;  %s4478_s26 = sadd.s32 4294967294, %s6731_s24  }
  0x17   : > { %p65_p0 = scmp.ne.s32.totalorder %s6707_s18, %s6703_s17  ;;  %p8514_p1 = scmp.eq.s32.totalorder %s6845_s25, 0 }
  0x18   : > { %p314_p3 = scmp.eq.s32.totalorder %s4478_s26, 3  ;;  %p4479_p5 = scmp.ge.s32.totalorder %s6731_s24, 1 }
  0x19   : > { %p6854_p4 = por %p8514_p1, %p65_p0  ;;  %p321_p7 = scmp.lt.s32.totalorder %s6731_s24, 5 }
  0x1a   : > { %p6859_p6 = por %p314_p3, %p65_p0  ;;  %s6733_s30 = smov [#allocation8]  }
  0x1b   : > { %s8535_s27 = scalar_select %p6854_p4, 1, 0 }
  0x1c   : > { %s8536_s28 = scalar_select %p6859_p6, 1, 0 }
  0x1d   : > { %p6864_p8 = pnand %p4479_p5, %p321_p7  ;;  %s339_s12 = sshll.u32 %s6733_s30, 4  ;;  %s6868_s12 = int_to_ptr.vmem [resolvable:$true] %s339_s12 }
  0x1e   : > { %8537 = sst [smem:[#allocation20_spill]] %s8536_s28  ;;  %s6734_s14 = smov [#allocation9]  }
  0x1f   : > { %s8538_s29 = scalar_select %p6864_p8, 1, 0 }
  0x20   : > { %p6216_p9 = pneg %p6864_p8  ;;  %s358_s15 = sshll.u32 %s6734_s14, 4  ;;  %s6878_s15 = int_to_ptr.vmem [resolvable:$true] %s358_s15 }
  0x21   : > { %s6735_s16 = smov [#allocation11]   ;;  %s8540_s4 = sld [smem:[#allocation25_spill]] }
  0x22   : > { %p6874_p10 = pnand %p6216_p9, %p8514_p1  ;;  %s6880_s26 = sshll.u32 %s6735_s16, 4  ;;  %s372_s26 = int_to_ptr.vmem [resolvable:$true] %s6880_s26 }
  0x24   : > { %p6890_p12 = pneg %p6874_p10 }
  0x27   : > { %s6477_s30 = scalar_lea.hbm %s8540_s4, 9216 }
  0x28   : > { %p6478_p11 = scmp.ne.s32.totalorder %s8540_s4, %s6477_s30  ;;  %p6484_p3 = scmp.lt.u32.totalorder %s6477_s30, %s8540_s4 }
  0x2a   : > { %p6480_p13 = pnand %p6890_p12, %p6478_p11 }
  0x2c   : > { %p6481_p0 = pneg %p6480_p13 }
  0x2e   : > { %p6486_p5 = pnand %p6484_p3, %p6481_p0 }
  0x30   : > { %6489 = shalt.err (!%p6486_p5)
}
  0x31   : > { %s6490_s11 = scalar_lea.vmem %s6868_s12, 9216  ;;  %p6498_p2 = scmp.lt.s32.totalorder %s6868_s12, %s6868_s12 }
  0x32   : > { %p6491_p7 = scmp.ne.s32.totalorder %s6868_s12, %s6490_s11  ;;  %p6499_p6 = scmp.lt.s32.totalorder %s6490_s11, %s6490_s11 }
  0x34   : > { %p6493_p9 = pnand %p6491_p7, %p6890_p12  ;;  %p6500_p11 = por %p6499_p6, %p6498_p2 }
  0x36   : > { %p6494_p1 = pneg %p6493_p9 }
  0x38   : > { %p6501_p13 = pnand %p6500_p11, %p6494_p1 }
  0x3a   : > { %6504 = shalt.err (!%p6501_p13)
}
  0x3b   : > { %s8517_s17 = smov 64   ;;  %s8519_s21 = smov 4  }
  0x3c   : > { %6219 = dma.hbm_to_vmem [thread:$0]  (!%p6874_p10), %s8540_s4, 9216, %s6868_s12, [#allocation7], %s8517_s17, %s8517_s17, %s8519_s21  }
  0x3d   : > { %s8542_s7 = sld [smem:[#allocation28_spill]] }
  0x43   : > { %s6505_s11 = scalar_lea.hbm %s8542_s7, 9216 }
  0x44   : > { %p6506_p1 = scmp.ne.s32.totalorder %s8542_s7, %s6505_s11  ;;  %p6512_p0 = scmp.lt.u32.totalorder %s6505_s11, %s8542_s7 }
  0x46   : > { %p6508_p2 = pnand %p6506_p1, %p6890_p12 }
  0x48   : > { %p6509_p6 = pneg %p6508_p2 }
  0x4a   : > { %p6514_p3 = pnand %p6512_p0, %p6509_p6 }
  0x4c   : > { %6517 = shalt.err (!%p6514_p3)
}
  0x4d   : > { %s6518_s12 = scalar_lea.vmem %s6878_s15, 9216  ;;  %p6526_p11 = scmp.lt.s32.totalorder %s6878_s15, %s6878_s15 }
  0x4e   : > { %p6519_p5 = scmp.ne.s32.totalorder %s6878_s15, %s6518_s12  ;;  %p6527_p13 = scmp.lt.s32.totalorder %s6518_s12, %s6518_s12 }
  0x50   : > { %p6521_p7 = pnand %p6519_p5, %p6890_p12  ;;  %p6528_p1 = por %p6527_p13, %p6526_p11 }
  0x52   : > { %p6522_p9 = pneg %p6521_p7 }
  0x54   : > { %p6529_p2 = pnand %p6528_p1, %p6522_p9 }
  0x56   : > { %6532 = shalt.err (!%p6529_p2)
}
  0x57   : > { %6222 = dma.hbm_to_vmem [thread:$0]  (!%p6874_p10), %s8542_s7, 9216, %s6878_s15, [#allocation10], %s8517_s17, %s8517_s17, %s8519_s21  }
  0x58   : > { %s8543_s8 = sld [smem:[#allocation29_spill]] }
  0x5e   : > { %s6533_s28 = scalar_lea.hbm %s8543_s8, 1024 }
  0x5f   : > { %p6534_p6 = scmp.ne.s32.totalorder %s8543_s8, %s6533_s28  ;;  %p6540_p5 = scmp.lt.u32.totalorder %s6533_s28, %s8543_s8 }
  0x61   : > { %p6536_p0 = pnand %p6534_p6, %p6890_p12 }
  0x63   : > { %p6537_p3 = pneg %p6536_p0 }
  0x65   : > { %p6542_p7 = pnand %p6540_p5, %p6537_p3 }
  0x67   : > { %6545 = shalt.err (!%p6542_p7)
}
  0x68   : > { %s6546_s12 = scalar_lea.vmem %s372_s26, 1024  ;;  %p6554_p1 = scmp.lt.s32.totalorder %s372_s26, %s372_s26 }
  0x69   : > { %p6547_p9 = scmp.ne.s32.totalorder %s372_s26, %s6546_s12  ;;  %p6555_p2 = scmp.lt.s32.totalorder %s6546_s12, %s6546_s12 }
  0x6b   : > { %p6549_p11 = pnand %p6547_p9, %p6890_p12  ;;  %p6556_p4 = por %p6555_p2, %p6554_p1 }
  0x6d   : > { %p6550_p13 = pneg %p6549_p11 }
  0x6f   : > { %p6557_p8 = pnand %p6556_p4, %p6550_p13 }
  0x71   : > { %6560 = shalt.err (!%p6557_p8)
}
  0x72   : > { %6225 = dma.hbm_to_vmem [thread:$0]  (!%p6874_p10), %s8543_s8, 1024, %s372_s26, [#allocation10], %s8517_s17, %s8517_s17, %s8519_s21  }
  0x73   : > { %s40_s10 = sadd.s32 1, %s6723_s22  ;;  %s43_s13 = sadd.s32 1, %s6727_s23 }
  0x74   : > { %p41_p4 = scmp.ge.s32.totalorder %s40_s10, 2  ;;  %s52_s5 = sadd.s32 1, %s6711_s19 }
  0x75   : > { %p59_p8 = scmp.ne.s32.totalorder %s6711_s19, %s6707_s18  ;;  %p60_p12 = scmp.eq.s32.totalorder %s6731_s24, 0 }
  0x76   : > { %s8599_s10 = smov (%p41_p4, %s40_s10), 0  ;;  %s8601_s13 = smov (!%p41_p4, %s43_s13), %s6727_s23 }
  0x77   : > { %8544 = sst [smem:[#allocation21_spill]] %s8599_s10  ;;  %s48_s6 = ssub.s32 %s6723_s22, %s8599_s10 }
  0x78   : > { %p45_p6 = scmp.ge.s32.totalorder %s8601_s13, 2  ;;  %p8545_p0 = scmp.eq.s32.totalorder %s6845_s25, 3 }
  0x79   : > { %p6979_p10 = por %p60_p12, %p59_p8  ;;  %p6240_p5 = scmp.lt.s32.totalorder %s6731_s24, 4 }
  0x7a   : > { %p6975_p3 = por %p8545_p0, %p59_p8  ;;  %s8603_s13 = smov (%p45_p6, %s8601_s13), 0 }
  0x7b   : > { %8548 = sst [smem:[#allocation22_spill]] %s8603_s13  ;;  %s6987_s28 = sand.u32 1, %s6711_s19  }
  0x7c   : > { %s4691_s30 = sshll.u32 %s6723_s22, 4  ;;  %s47_s14 = ssub.s32 %s6727_s23, %s8603_s13 }
  0x7d   : > { %s49_s16 = sor.u32 %s48_s6, %s47_s14  ;;  %s4484_s11 = sshll.u32 %s6987_s28, 6 }
  0x7e   : > { %p50_p7 = scmp.eq.s32.totalorder %s49_s16, 0  ;;  %s4487_s12 = sshll.u32 %s6727_s23, 5 }
  0x7f   : > { %s395_s15 = scalar_lea.vmem [#allocation3], %s4484_s11  ;;  %s402_s21 = sadd.s32 %s4691_s30, %s4487_s12 }
  0x80   : > { %s405_s3 = sshll.u32 %s395_s15, 4  ;;  %s4488_s4 = sshll.u32 %s402_s21, 6  ;;  %s6997_s3 = int_to_ptr.vmem [resolvable:$true] %s405_s3 }
  0x81   : > { %s6995_s17 = scalar_select %p50_p7, %s6711_s19, %s52_s5  }
  0x82   : > { %p7003_p9 = pnand %p6240_p5, %p6979_p10  ;;  %s8550_s0 = sld [smem:[#allocation23_spill]] }
  0x83   : > { %s392_s30 = scalar_lea.sflag [#allocation4], %s6987_s28 }
  0x84   : > { %p6563_p13 = pneg %p7003_p9 }
  0x88   : > { %s7010_s6 = scalar_lea.hbm %s8550_s0, %s4488_s4  ;;  %s6566_s13 = scalar_lea.hbm %s8550_s0, 4096 }
  0x89   : > { %s6561_s21 = scalar_lea.hbm %s7010_s6, 1024  ;;  %p6567_p4 = scmp.lt.u32.totalorder %s7010_s6, %s8550_s0 }
  0x8a   : > { %p6562_p11 = scmp.ne.s32.totalorder %s7010_s6, %s6561_s21  ;;  %p6568_p8 = scmp.lt.u32.totalorder %s6566_s13, %s6561_s21 }
  0x8b   : > { %p6570_p6 = scmp.lt.u32.totalorder %s6561_s21, %s7010_s6 }
  0x8c   : > { %p6564_p1 = pnand %p6563_p13, %p6562_p11  ;;  %p6569_p12 = por %p6568_p8, %p6567_p4 }
  0x8e   : > { %p6565_p2 = pneg %p6564_p1  ;;  %p6571_p0 = por %p6570_p6, %p6569_p12 }
  0x90   : > { %p6572_p10 = pnand %p6571_p0, %p6565_p2 }
  0x92   : > { %6575 = shalt.err (!%p6572_p10)
}
  0x93   : > { %s6576_s16 = scalar_lea.vmem %s6997_s3, 1024  ;;  %s6738_s11 = smov [#allocation3]  }
  0x94   : > { %p6577_p5 = scmp.ne.s32.totalorder %s6997_s3, %s6576_s16  ;;  %s6581_s12 = sshll.u32 %s6738_s11, 4  ;;  %s6582_s12 = int_to_ptr.vmem [resolvable:$false] %s6581_s12 }
  0x95   : > { %s6583_s15 = scalar_lea.vmem %s6582_s12, 2048  ;;  %p6584_p1 = scmp.lt.s32.totalorder %s6997_s3, %s6582_s12 }
  0x96   : > { %p6579_p7 = pnand %p6577_p5, %p6563_p13  ;;  %p6585_p4 = scmp.lt.s32.totalorder %s6583_s15, %s6576_s16 }
  0x98   : > { %p6580_p11 = pneg %p6579_p7  ;;  %p6586_p8 = por %p6585_p4, %p6584_p1 }
  0x9a   : > { %p6587_p12 = pnand %p6586_p8, %p6580_p11 }
  0x9c   : > { %6590 = shalt.err (!%p6587_p12)
}
  0x9d   : > { %s8551_s21 = smov 4   ;;  %s8552_s26 = smov 64  }
  0x9e   : > { %6229 = dma.hbm_to_vmem [thread:$0]  (!%p7003_p9), %s7010_s6, 1024, %s6997_s3, %s392_s30, %s8552_s26, %s8552_s26, %s8551_s21  }
  0x9f   : > { %s4489_s8 = sshll.u32 %s6987_s28, 5  ;;  %s4490_s13 = sshll.u32 %s6723_s22, 3 }
  0xa0   : > { %s4491_s4 = sshll.u32 %s6727_s23, 4  ;;  %s419_s16 = scalar_lea.vmem [#allocation6], %s4489_s8 }
  0xa1   : > { %s425_s14 = sadd.s32 %s4491_s4, %s4490_s13  ;;  %s428_s11 = sshll.u32 %s419_s16, 4  ;;  %s7047_s11 = int_to_ptr.vmem [resolvable:$true] %s428_s11 }
  0xa2   : > { %s4492_s12 = sshll.u32 %s425_s14, 6  ;;  %s8553_s10 = sand.u32 1, %s6731_s24  }
  0xa3   : > { %s7052_s0 = scalar_lea.hbm %s8500_s1, %s4492_s12  ;;  %s7056_s3 = scalar_lea.sflag [#allocation7], %s8553_s10 }
  0xa4   : > { %s6591_s28 = scalar_lea.hbm %s7052_s0, 512  ;;  %s6596_s8 = scalar_lea.hbm %s8500_s1, 2048 }
  0xa5   : > { %p6592_p2 = scmp.ne.s32.totalorder %s7052_s0, %s6591_s28  ;;  %p6597_p10 = scmp.lt.u32.totalorder %s7052_s0, %s8500_s1 }
  0xa6   : > { %p6598_p5 = scmp.lt.u32.totalorder %s6596_s8, %s6591_s28  ;;  %p6600_p11 = scmp.lt.u32.totalorder %s6591_s28, %s7052_s0 }
  0xa7   : > { %p6594_p6 = pnand %p6592_p2, %p6563_p13 }
  0xa8   : > { %p6599_p7 = por %p6598_p5, %p6597_p10 }
  0xa9   : > { %p6595_p0 = pneg %p6594_p6 }
  0xaa   : > { %p6601_p1 = por %p6600_p11, %p6599_p7 }
  0xac   : > { %p6602_p4 = pnand %p6601_p1, %p6595_p0 }
  0xae   : > { %6605 = shalt.err (!%p6602_p4)
}
  0xaf   : > { %s6606_s10 = scalar_lea.vmem %s7047_s11, 512  ;;  %s6739_s4 = smov [#allocation6]  }
  0xb0   : > { %p6607_p8 = scmp.ne.s32.totalorder %s7047_s11, %s6606_s10  ;;  %s6611_s14 = sshll.u32 %s6739_s4, 4  ;;  %s6612_s14 = int_to_ptr.vmem [resolvable:$false] %s6611_s14 }
  0xb1   : > { %s6613_s16 = scalar_lea.vmem %s6612_s14, 1024  ;;  %p6614_p6 = scmp.lt.s32.totalorder %s7047_s11, %s6612_s14 }
  0xb2   : > { %p6609_p12 = pnand %p6607_p8, %p6563_p13  ;;  %p6615_p10 = scmp.lt.s32.totalorder %s6613_s16, %s6606_s10 }
  0xb4   : > { %p6610_p2 = pneg %p6609_p12  ;;  %p6616_p5 = por %p6615_p10, %p6614_p6 }
  0xb6   : > { %p6617_p7 = pnand %p6616_p5, %p6610_p2 }
  0xb8   : > { %6620 = shalt.err (!%p6617_p7)
}
  0xb9   : > { %6232 = dma.hbm_to_vmem [thread:$0]  (!%p7003_p9), %s7052_s0, 512, %s7047_s11, %s7056_s3, %s8552_s26, %s8552_s26, %s8551_s21  }
  0xba   : > { %p8554_p13 = scmp.ne.s32.totalorder %s8538_s29, 0 }
  0xbb   : > { %s7088_s12 = sand.u32 (!%p8554_p13), 1, %s6707_s18   ;;  %p8555_p0 = scmp.ne.s32.totalorder (!%p8554_p13), %s8535_s27, 0 }
  0xbc   : > { %440 = sbr.rel (%p8554_p13) target bundleno = 1025 (0x401), region = 64  ;;  %s4494_s15 = sshll.u32 (!%p8554_p13), %s7088_s12, 6 }
  0xbd   : > { %s443_s28 = scalar_lea.sflag (!%p8554_p13), [#allocation4], %s7088_s12  ;;  %s7094_s7 = scalar_lea.vmem (!%p8554_p13), [#allocation3], %s4494_s15 }
  0xc3   : > { %6682 = dma.done.wait (%p8555_p0), %s443_s28, 1024  }
  0xc4   : > { %6684 = vsyncadd (%p8555_p0), %s443_s28, 4294966272  ;;  %s451_s0 = sand.u32 1, %s6845_s25   ;;  %s4495_s29 = sshll.u32 %s7088_s12, 5 }
  0xc5   : > { %s452_s21 = scalar_lea.sflag [#allocation7], %s451_s0  ;;  %s7102_s26 = scalar_lea.vmem [#allocation6], %s4495_s29 }
  0xc6   : > { %6686 = dma.done.wait (%p8555_p0), %s452_s21, 512  }
  0xc7   : > { %6688 = vsyncadd (%p8555_p0), %s452_s21, 4294966784  ;;  %p8556_p9 = scmp.eq.s32.totalorder %s6845_s25, 0 }
  0xc9   : > { %6690 = dma.done.wait (%p8556_p9), [#allocation7], 9216   ;;  %p8557_p11 = pmov %p8556_p9 }
  0xca   : > { %p8558_p1 = pmov %p8556_p9 }
  0xcb   : > { %6692 = vsyncadd (%p8557_p11), [#allocation7], 4294958080 }
  0xcc   : > { %6694 = dma.done.wait (%p8558_p1), [#allocation10], 10240   ;;  %p8559_p4 = pmov %p8558_p1 }
  0xcd   : > { %v6317_v0 = vld [vmem:[#allocation8 + $0x100] sm:$0xff]   ;;  %v6320_v3 = vld [vmem:[#allocation8 + $0x108] sm:$0xff]   ;;  %v6323_v6 = vld [vmem:[#allocation8 + $0x110] sm:$0xff]   ;;  %p514_p8 = scmp.eq.s32.totalorder %s6715_s20, 0  ;;  %p515_p12 = scmp.eq.s32.totalorder %s6715_s20, 1  ;;  %vm588_vm2 = vcmask 1040384  }
  0xce   : > { %6696 = vsyncadd (%p8559_p4), [#allocation10], 4294957056  ;;  %v7116_v1 = vld [vmem:[#allocation8 + $0x140] sm:$0xff]   ;;  %5228 = vmatprep.subr.bf16.mxu0 %v6317_v0  ;;  %v7120_v4 = vld [vmem:[#allocation8 + $0x148] sm:$0xff]   ;;  %s8562_s30 = sld [smem:[#allocation24_spill]]  ;;  %vm601_vm5 = vcmask 1046528  }
  0xcf   : > { %v6319_v2 = vld [vmem:[#allocation8 + $0xc0] sm:$0xff]   ;;  %6002 = vmatprep.subr.bf16.mxu1 %v7116_v1  ;;  %v6322_v5 = vld [vmem:[#allocation8 + $0xc8] sm:$0xff]   ;;  %v7123_v7 = vld [vmem:[#allocation8 + $0x150] sm:$0xff]   ;;  %s554_s25 = scalar_select %p514_p8, 1, 0  ;;  %vm6740_vm6 = vmmov 1  }
  0xd0   : > { %5229 = vmatpush3.bf16.msra.mxu0 %v6319_v2  ;;  %6010 = vmatpush3.bf16.msra.mxu1 %v7116_v1  ;;  %v6325_v8 = vld [vmem:[#allocation8 + $0xd0] sm:$0xff]   ;;  %v6326_v9 = vld [vmem:[#allocation8 + $0x118] sm:$0xff]   ;;  %v6329_v12 = vld [vmem:[#allocation8 + $0x120] sm:$0xff]   ;;  %s7182_s8 = scalar_select %p515_p12, 1, 0 }
  0xd1   : > { %5230 = vmatprep.subr.bf16.mxu0 %v6320_v3  ;;  %6003 = vmatprep.subr.bf16.mxu1 %v7120_v4  ;;  %v7127_v10 = vld [vmem:[#allocation8 + $0x158] sm:$0xff]   ;;  %v7131_v13 = vld [vmem:[#allocation8 + $0x160] sm:$0xff]   ;;  %v6332_v15 = vld [vmem:[#allocation8 + $0x128] sm:$0xff]   ;;  %v555_v20 = vstv %s554_s25  ;;  %p2354_p2 = scmp.ne.s32.totalorder %s6715_s20, 0  ;;  %s8575_s10 = sld [smem:[#allocation26_spill]] }
  0xd2   : > { %v6328_v11 = vld [vmem:[#allocation8 + $0xd8] sm:$0xff]   ;;  %v6331_v14 = vld [vmem:[#allocation8 + $0xe0] sm:$0xff]   ;;  %v7136_v16 = vld [vmem:[#allocation8 + $0x168] sm:$0xff]   ;;  %vm7152_vm0 = vcmp.eq.s32.totalorder %v555_v20, 1  ;;  %p2398_p6 = scmp.ne.s32.totalorder %s6715_s20, 1  ;;  %s8576_s28 = sld [smem:[#allocation27_spill]] }
  0xd3   : > { %v6334_v17 = vld [vmem:[#allocation8 + $0xe8] sm:$0xff]   ;;  %v6335_v18 = vld [vmem:[#allocation8 + $0x130] sm:$0xff]   ;;  %v6338_v22 = vld [vmem:[#allocation8 + $0x138] sm:$0xff]   ;;  %s2375_s4 = scalar_select %p2354_p2, 1, 0 }
  0xd4   : > { %5231 = vmatpush3.bf16.msra.mxu0 %v6322_v5  ;;  %6011 = vmatpush3.bf16.msra.mxu1 %v7120_v4  ;;  %v7140_v19 = vld [vmem:[#allocation8 + $0x170] sm:$0xff]   ;;  %v4797_v23 = vld [vmem:[%s7102_s26 + $0x8] sm:$0xff]   ;;  %v7147_v24 = vld [vmem:[%s8501_s2] ss:$0 sm:$0xff]  ;;  %v578_v5 = vstv %s7182_s8  ;;  %s7848_s0 = scalar_select %p2398_p6, 1, 0 }
  0xd5   : > { %5232 = vmatprep.subr.bf16.mxu0 %v6323_v6  ;;  %6004 = vmatprep.subr.bf16.mxu1 %v7123_v7  ;;  %v6337_v21 = vld [vmem:[#allocation8 + $0xf0] sm:$0xff]   ;;  %v7150_v25 = vld [vmem:[#allocation8 + $0x178] sm:$0xff]   ;;  %v4715_v26 = vunpack.c.l.bf16 %v4797_v23  ;;  %v4716_v27 = vunpack.c.h.bf16 %v4797_v23  ;;  %v4800_v29 = vld [vmem:[%s7094_s7 + $0x8] sm:$0xff]   ;;  %vm7340_vm9 = vcmp.eq.s32.totalorder %v578_v5, 1  ;;  %s8581_s21 = sld [smem:[#allocation30_spill]]  ;;  %s8582_s27 = sld [smem:[#allocation31_spill]] }
  0xd6   : > { %v4801_v30 = vld [vmem:[%s7094_s7 + $0x10] sm:$0xff]   ;;  %v7162_v31 = vld [vmem:[%s8562_s30] ss:$0 sm:$0xff]  ;;  %v4731_v32 = vunpack.c.l.bf16 %v4800_v29  ;;  %v4732_v33 = vunpack.c.h.bf16 %v4800_v29  ;;  %vm4814_vm1 = vmneg %vm7152_vm0  ;;  %s8397_s11 = scalar_lea.vmem [#allocation12], %s4494_s15  ;;  %s8583_s15 = sld [smem:[#allocation19_spill]] }
  0xd7   : > { %v4735_v34 = vunpack.c.l.bf16 %v4801_v30  ;;  %v4736_v35 = vunpack.c.h.bf16 %v4801_v30  ;;  %v537_v36 = vmul.f32 %v4715_v26, %v7147_v24  ;;  %v538_v37 = vmul.f32 %v4716_v27, %v7147_v24  ;;  %v6340_v38 = vld [vmem:[#allocation8 + $0xf8] sm:$0xff]   ;;  %v6341_v45 = vld [vmem:[#allocation8 + $0x40] sm:$0xff]   ;;  %vm7185_vm3 = vmneg %vm588_vm2  ;;  %s4708_s3 = sshll.u32 %s6715_s20, 4  ;;  %s4333_s20 = sshll.u32 %s8397_s11, 4  ;;  %s8438_s20 = int_to_ptr.vmem [resolvable:$true] %s4333_s20 }
  0xd8   : > { %5233 = vmatpush3.bf16.msra.mxu0 %v6325_v8  ;;  %6012 = vmatpush3.bf16.msra.mxu1 %v7123_v7  ;;  %v667_v39 = vmul.f32 %v4731_v32, %v7147_v24  ;;  %v668_v40 = vmul.f32 %v4732_v33, %v7147_v24  ;;  %v4726_v49 = vld [vmem:[%s7094_s7] sm:$0xff]   ;;  %vm7195_vm4 = vmpackc.low %vm4814_vm1, %vm4814_vm1  ;;  %v4802_v0 = vld [vmem:[%s7094_s7 + $0x18] sm:$0xff]   ;;  %s4317_s14 = scalar_lea.sflag [#allocation5], %s7088_s12  ;;  %s6621_s16 = scalar_lea.vmem %s8438_s20, 1024 }
  0xd9   : > { %5234 = vmatprep.subr.bf16.mxu0 %v6326_v9  ;;  %6005 = vmatprep.subr.bf16.mxu1 %v7127_v10  ;;  %v669_v41 = vmul.f32 %v4735_v34, %v7147_v24  ;;  %v548_v42 = vadd.f32 %v7162_v31, %v537_v36  ;;  %v549_v43 = vadd.f32 %v7162_v31, %v538_v37  ;;  %v4727_v54 = vunpack.c.l.bf16 %v4726_v49  ;;  %vm7229_vm7 = vmpackc.low %vm6740_vm6, %vm7185_vm3  ;;  %v4803_v20 = vld [vmem:[%s7094_s7 + $0x20] sm:$0xff]   ;;  %v4804_v29 = vld [vmem:[%s7094_s7 + $0x28] sm:$0xff]   ;;  %p6622_p10 = scmp.ne.s32.totalorder %s8438_s20, %s6621_s16 }
  0xda   : > { %v670_v44 = vmul.f32 %v4736_v35, %v7147_v24  ;;  %v690_v46 = vadd.f32 %v7162_v31, %v667_v39  ;;  %v691_v47 = vadd.f32 %v7162_v31, %v668_v40  ;;  %v4728_v59 = vunpack.c.h.bf16 %v4726_v49  ;;  %vm7241_vm8 = vmpackc.low %vm601_vm5, %vm6740_vm6  ;;  %v6342_v33 = vld [vmem:[#allocation8] sm:$0xff]   ;;  %v6343_v36 = vld [vmem:[#allocation8 + $0x48] sm:$0xff]  }
  0xdb   : > { %v692_v48 = vadd.f32 %v7162_v31, %v669_v41  ;;  %v552_v50 = vmax.f32 %v548_v42, 0.0  ;;  %v553_v51 = vmax.f32 %v549_v43, 0.0  ;;  %v4740_v27 = vunpack.c.h.bf16 %v4802_v0  ;;  %v6350_v5 = vld [vmem:[#allocation8 + $0x20] sm:$0xff]   ;;  %vm4855_vm10 = vmneg %vm7340_vm9  ;;  %v6476_v9 = vld [vmem:[%s7094_s7 + $0x38] sm:$0xff]   ;;  %p6623_p5 = pnand %p6622_p10, %p6975_p3 }
  0xdc   : > { %5235 = vmatpush3.bf16.msra.mxu0 %v6328_v11  ;;  %6013 = vmatpush3.bf16.msra.mxu1 %v7127_v10  ;;  %v693_v53 = vadd.f32 %v7162_v31, %v670_v44  ;;  %v7199_v56 = vmax.f32 %v690_v46, 0.0  ;;  %v7201_v57 = vmax.f32 %v691_v47, 0.0  ;;  %v4743_v39 = vunpack.c.l.bf16 %v4803_v20  ;;  %v6362_v28 = vld [vmem:[#allocation8 + $0x1c0] sm:$0xff]   ;;  %vm7542_vm11 = vmpackc.low %vm4855_vm10, %vm4855_vm10  ;;  %s4687_s6 = sshll.u32 %s8583_s15, 5 }
  0xdd   : > { %5236 = vmatprep.subr.bf16.mxu0 %v6329_v12  ;;  %6006 = vmatprep.subr.bf16.mxu1 %v7131_v13  ;;  %v7203_v58 = vmax.f32 %v692_v48, 0.0  ;;  %v7207_v60 = vsel %vm7152_vm0, 0.0, %v552_v50  ;;  %v7211_v61 = vsel %vm7152_vm0, 0.0, %v553_v51  ;;  %v7213_v62 = vpack.c.bf16 %v553_v51, %v552_v50  ;;  %s4330_s30 = sadd.s32 %s4708_s3, %s4687_s6  ;;  %p6624_p7 = pneg %p6623_p5 }
  0xde   : > { %v7215_v63 = vmax.f32 %v693_v53, 0.0  ;;  %v592_v2 = vrot.slane %v7207_v60, 7  ;;  %v593_v3 = vrot.slane %v7211_v61, 7  ;;  %v787_v6 = vrot.slane %v7199_v56, 1  ;;  %s4688_s8 = sshll.u32 %s4330_s30, 6 }
  0xdf   : > { %4818 = vmatprep.mubr.msk.bf16.mxu0 %vm7195_vm4, %v7213_v62  ;;  %v788_v8 = vrot.slane %v7201_v57, 1  ;;  %v790_v11 = vrot.slane %v7203_v58, 1  ;;  %v4744_v40 = vunpack.c.h.bf16 %v4803_v20  ;;  %v7266_v43 = vpack.c.bf16 %v7201_v57, %v7199_v56  ;;  %v4805_v20 = vld [vmem:[%s7094_s7 + $0x30] sm:$0xff]  }
  0xe0   : > { %5237 = vmatpush3.bf16.msra.mxu0 %v6331_v14  ;;  %6014 = vmatpush3.bf16.msra.mxu1 %v7131_v13  ;;  %v791_v12 = vrot.slane %v7215_v63, 1  ;;  %v594_v14 = vsel %vm588_vm2, %v592_v2, %v593_v3  ;;  %v4747_v44 = vunpack.c.l.bf16 %v4804_v29  ;;  %v673_v47 = vmul.f32 %v4743_v39, %v7147_v24 }
  0xe1   : > { %5238 = vmatprep.subr.bf16.mxu0 %v6332_v15  ;;  %6007 = vmatprep.subr.bf16.mxu1 %v7136_v16  ;;  %v665_v15 = vmul.f32 %v4727_v54, %v7147_v24  ;;  %v7245_v23 = vpack.c.bf16 %v594_v14, %v592_v2  ;;  %v674_v48 = vmul.f32 %v4744_v40, %v7147_v24  ;;  %v6345_v2 = vld [vmem:[#allocation8 + $0x50] sm:$0xff]   ;;  %v6348_v40 = vld [vmem:[#allocation8 + $0x18] sm:$0xff]  }
  0xe2   : > { %v792_v26 = vsel %vm601_vm5, %v790_v11, %v791_v12  ;;  %v675_v11 = vmul.f32 %v4747_v44, %v7147_v24  ;;  %v4752_v44 = vunpack.c.h.bf16 %v4805_v20 }
  0xe3   : > { %v7251_v32 = vpack.c.bf16 %v791_v12, %v792_v26  ;;  %v688_v34 = vadd.f32 %v7162_v31, %v665_v15 }
  0xe4   : > { %5239 = vmatpush3.bf16.msra.mxu0 %v6334_v17  ;;  %6015 = vmatpush3.bf16.msra.mxu1 %v7136_v16  ;;  %v666_v17 = vmul.f32 %v4728_v59, %v7147_v24 }
  0xe5   : > { %5240 = vmatprep.subr.bf16.mxu0 %v6335_v18  ;;  %6008 = vmatprep.subr.bf16.mxu1 %v7140_v19  ;;  %v4739_v18 = vunpack.c.l.bf16 %v4802_v0  ;;  %v704_v41 = vmax.f32 %v688_v34, 0.0  ;;  %v696_v0 = vadd.f32 %v7162_v31, %v673_v47  ;;  %v698_v34 = vadd.f32 %v7162_v31, %v675_v11 }
  0xe6   : > { %v689_v35 = vadd.f32 %v7162_v31, %v666_v17  ;;  %v742_v11 = vrot.slane %v7203_v58, 7 }
  0xe7   : > { %v671_v37 = vmul.f32 %v4739_v18, %v7147_v24  ;;  %v784_v49 = vrot.slane %v704_v41, 1  ;;  %v736_v52 = vrot.slane %v704_v41, 7  ;;  %v6346_v18 = vld [vmem:[#allocation8 + $0x10] sm:$0xff]   ;;  %v7297_v26 = vmax.f32 %v696_v0, 0.0  ;;  %v6349_v0 = vld [vmem:[#allocation8 + $0x60] sm:$0xff]  }
  0xe8   : > { %5241 = vmatpush3.bf16.msra.mxu0 %v6337_v21  ;;  %6016 = vmatpush3.bf16.msra.mxu1 %v7140_v19  ;;  %v789_v21 = vsel %vm601_vm5, %v787_v6, %v788_v8  ;;  %v705_v42 = vmax.f32 %v689_v35, 0.0  ;;  %v697_v6 = vadd.f32 %v7162_v31, %v674_v48  ;;  %v739_v35 = vrot.slane %v7199_v56, 7 }
  0xe9   : > { %5242 = vmatprep.subr.bf16.mxu0 %v6338_v22  ;;  %6009 = vmatprep.subr.bf16.mxu1 %v7150_v25  ;;  %v7249_v30 = vpack.c.bf16 %v788_v8, %v789_v21  ;;  %v4748_v8 = vunpack.c.h.bf16 %v4804_v29 }
  0xea   : > { %v785_v50 = vrot.slane %v705_v42, 1  ;;  %v7275_v51 = vpack.c.bf16 %v705_v42, %v704_v41  ;;  %v737_v59 = vrot.slane %v705_v42, 7  ;;  %v7315_v42 = vmax.f32 %v698_v34, 0.0 }
  0xeb   : > { %5786 = vmatprep.mubr.msk.bf16.mxu1 %vm7241_vm8, %v7249_v30 }
  0xec   : > { %5243 = vmatpush3.bf16.msra.mxu0 %v6340_v38  ;;  %6017 = vmatpush3.bf16.msra.mxu1 %v7150_v25  ;;  %v672_v38 = vmul.f32 %v4740_v27, %v7147_v24  ;;  %v786_v3 = vsel %vm601_vm5, %v784_v49, %v785_v50  ;;  %v738_v17 = vsel %vm588_vm2, %v736_v52, %v737_v59  ;;  %v7299_v27 = vmax.f32 %v697_v6, 0.0  ;;  %v4798_v49 = vld [vmem:[%s7102_s26 + $0x10] sm:$0xff]  }
  0xed   : > { %5322 = vmatprep.subr.bf16.mxu1 %v6341_v45  ;;  %5766 = vmatprep.subr.bf16.mxu0 %v7116_v1  ;;  %v694_v45 = vadd.f32 %v7162_v31, %v671_v37  ;;  %v7288_v12 = vpack.c.bf16 %v785_v50, %v786_v3  ;;  %v7295_v21 = vpack.c.bf16 %v738_v17, %v736_v52  ;;  %v743_v17 = vrot.slane %v7215_v63, 7 }
  0xee   : > { %v695_v46 = vadd.f32 %v7162_v31, %v672_v38  ;;  %v796_v38 = vrot.slane %v7297_v26, 1  ;;  %v797_v39 = vrot.slane %v7299_v27, 1  ;;  %v678_v59 = vmul.f32 %v4752_v44, %v7147_v24 }
  0xef   : > { %4822 = vmatmul.mubr.msk.bf16.vlgmr.msra.gmra.mrb[0].mxu0 %vm7229_vm7, %v7245_v23  ;;  %5787 = vmatmul.mubr.msk.bf16.vlgmr.msra.gmra.mrb[0].mxu1 %vm7241_vm8, %v7251_v32  ;;  %v7278_v53 = vmax.f32 %v694_v45, 0.0  ;;  %v4806_v45 = vld [vmem:[%s7094_s7 + $0x38] sm:$0xff]  }
  0xf0   : > { %5767 = vmatpush3.bf16.msra.mxu0 %v7116_v1  ;;  %5323 = vmatpush3.bf16.msra.mxu1 %v6342_v33  ;;  %v6344_v1 = vld [vmem:[#allocation8 + $0x8] sm:$0xff]   ;;  %v7280_v54 = vmax.f32 %v695_v46, 0.0  ;;  %v6347_v33 = vld [vmem:[#allocation8 + $0x58] sm:$0xff]   ;;  %v798_v46 = vsel %vm601_vm5, %v796_v38, %v797_v39  ;;  %v4755_v6 = vunpack.c.l.bf16 %v4806_v45 }
  0xf1   : > { %5768 = vmatprep.subr.bf16.mxu0 %v7120_v4  ;;  %5324 = vmatprep.subr.bf16.mxu1 %v6343_v36  ;;  %v793_v14 = vrot.slane %v7278_v53, 1  ;;  %v740_v36 = vrot.slane %v7201_v57, 7  ;;  %v4751_v57 = vunpack.c.l.bf16 %v4805_v20  ;;  %v7333_v50 = vpack.c.bf16 %v797_v39, %v798_v46 }
  0xf2   : > { %1234 = vmatprep.mubr.bf16.mxu0 %v7275_v51  ;;  %v794_v15 = vrot.slane %v7280_v54, 1 }
  0xf3   : > { %v741_v56 = vsel %vm588_vm2, %v739_v35, %v740_v36  ;;  %v677_v52 = vmul.f32 %v4751_v57, %v7147_v24  ;;  %v4710_v36 = vld [vmem:[%s7102_s26] sm:$0xff]  }
  0xf4   : > { %5769 = vmatpush3.bf16.msra.mxu0 %v7120_v4  ;;  %5325 = vmatpush3.bf16.msra.mxu1 %v6344_v1  ;;  %v676_v4 = vmul.f32 %v4748_v8, %v7147_v24  ;;  %v795_v29 = vsel %vm601_vm5, %v793_v14, %v794_v15  ;;  %v7326_v48 = vpack.c.bf16 %v741_v56, %v739_v35  ;;  %v4756_v8 = vunpack.c.h.bf16 %v4806_v45 }
  0xf5   : > { %5770 = vmatprep.subr.bf16.mxu0 %v7123_v7  ;;  %5326 = vmatprep.subr.bf16.mxu1 %v6345_v2  ;;  %v7306_v37 = vpack.c.bf16 %v794_v15, %v795_v29  ;;  %v7330_v1 = vpack.c.bf16 %v7215_v63, %v7203_v58  ;;  %v700_v14 = vadd.f32 %v7162_v31, %v677_v52  ;;  %v4720_v29 = vunpack.c.h.bf16 %v4798_v49  ;;  %v6351_v63 = vld [vmem:[#allocation8 + $0x68] sm:$0xff]  }
  0xf6   : > { %v699_v41 = vadd.f32 %v7162_v31, %v676_v4  ;;  %v701_v15 = vadd.f32 %v7162_v31, %v678_v59  ;;  %v679_v58 = vmul.f32 %v4755_v6, %v7147_v24  ;;  %v680_v4 = vmul.f32 %v4756_v8, %v7147_v24 }
  0xf7   : > { %4826 = vmatmul.mubr.msk.bf16.gmra.mrb[4].mxu0 %vm7229_vm7, %v7295_v21  ;;  %5790 = vmatprep.mubr.msk.bf16.mxu1 %vm7241_vm8, %v7306_v37  ;;  %v7360_v34 = vmax.f32 %v700_v14, 0.0  ;;  %v566_v44 = vmul.f32 %v4720_v29, %v7147_v24  ;;  %v7383_v45 = vpack.c.bf16 %v7280_v54, %v7278_v53  ;;  %v4711_v52 = vunpack.c.l.bf16 %v4710_v36  ;;  %v6354_v29 = vld [vmem:[#allocation8 + $0x30] sm:$0xff]  }
  0xf8   : > { %1242 = vmatprep.mubr.bf16.mxu0 %v7266_v43  ;;  %5771 = vmatpush3.bf16.msra.mxu0 %v7123_v7  ;;  %v7324_v47 = vmax.f32 %v699_v41, 0.0  ;;  %v799_v7 = vrot.slane %v7315_v42, 1  ;;  %v7362_v35 = vmax.f32 %v701_v15, 0.0  ;;  %v702_v38 = vadd.f32 %v7162_v31, %v679_v58 }
  0xf9   : > { %5327 = vmatpush3.bf16.msra.mxu1 %v6346_v18  ;;  %5772 = vmatprep.subr.bf16.mxu0 %v7127_v10  ;;  %v4719_v18 = vunpack.c.l.bf16 %v4798_v49  ;;  %v703_v39 = vadd.f32 %v7162_v31, %v680_v4  ;;  %v802_v56 = vrot.slane %v7360_v34, 1  ;;  %v4712_v6 = vunpack.c.h.bf16 %v4710_v36 }
  0xfa   : > { %5328 = vmatprep.subr.bf16.mxu1 %v6347_v33  ;;  %v800_v3 = vrot.slane %v7324_v47, 1  ;;  %5791 = vmatmul.mubr.msk.bf16.gmra.mrb[4].mxu1 %vm7241_vm8, %v7333_v50  ;;  %v803_v57 = vrot.slane %v7362_v35, 1  ;;  %v7385_v46 = vmax.f32 %v702_v38, 0.0  ;;  %v745_v8 = vrot.slane %v7278_v53, 7  ;;  %v6355_v38 = vld [vmem:[#allocation8 + $0x78] sm:$0xff]  }
  0xfb   : > { %v565_v41 = vmul.f32 %v4719_v18, %v7147_v24  ;;  %v7387_v49 = vmax.f32 %v703_v39, 0.0  ;;  %v535_v18 = vmul.f32 %v4711_v52, %v7147_v24  ;;  %v746_v58 = vrot.slane %v7280_v54, 7 }
  0xfc   : > { %5773 = vmatpush3.bf16.msra.mxu0 %v7127_v10  ;;  %v801_v20 = vsel %vm601_vm5, %v799_v7, %v800_v3  ;;  %v744_v10 = vsel %vm588_vm2, %v742_v11, %v743_v17  ;;  %v804_v59 = vsel %vm601_vm5, %v802_v56, %v803_v57  ;;  %v805_v14 = vrot.slane %v7385_v46, 1 }
  0xfd   : > { %5329 = vmatpush3.bf16.msra.mxu1 %v6348_v40  ;;  %5774 = vmatprep.subr.bf16.mxu0 %v7131_v13  ;;  %v7358_v33 = vpack.c.bf16 %v800_v3, %v801_v20  ;;  %v7371_v40 = vpack.c.bf16 %v744_v10, %v742_v11  ;;  %v7390_v7 = vadd.f32 %v7162_v31, %v565_v41  ;;  %v806_v15 = vrot.slane %v7387_v49, 1 }
  0xfe   : > { %5330 = vmatprep.subr.bf16.mxu1 %v6349_v0  ;;  %v6352_v0 = vld [vmem:[#allocation8 + $0x28] sm:$0xff]   ;;  %v7395_v3 = vadd.f32 %v7162_v31, %v566_v44  ;;  %v7399_v11 = vpack.c.bf16 %v803_v57, %v804_v59  ;;  %v536_v20 = vmul.f32 %v4712_v6, %v7147_v24  ;;  %v546_v36 = vadd.f32 %v7162_v31, %v535_v18  ;;  %v6356_v59 = vld [vmem:[#allocation8 + $0x38] sm:$0xff]  }
  0xff   : > { %4830 = vmatmul.mubr.msk.bf16.gmra.mrb[8].mxu0 %vm7229_vm7, %v7326_v48  ;;  %5794 = vmatprep.mubr.msk.bf16.mxu1 %vm7241_vm8, %v7358_v33  ;;  %v807_v53 = vsel %vm601_vm5, %v805_v14, %v806_v15  ;;  %v747_v56 = vsel %vm588_vm2, %v745_v8, %v746_v58  ;;  %v605_v57 = vrot.slane %v7207_v60, 1  ;;  %v606_v44 = vrot.slane %v7211_v61, 1 }
 0x100   : > { %1250 = vmatprep.mubr.bf16.mxu0 %v7330_v1  ;;  %5775 = vmatpush3.bf16.msra.mxu0 %v7131_v13  ;;  %v573_v13 = vmax.f32 %v7390_v7, 0.0  ;;  %v574_v17 = vmax.f32 %v7395_v3, 0.0  ;;  %v547_v39 = vadd.f32 %v7162_v31, %v536_v20  ;;  %v550_v41 = vmax.f32 %v546_v36, 0.0  ;;  %v6357_v20 = vld [vmem:[#allocation8 + $0x80] sm:$0xff]  }
 0x101   : > { %5331 = vmatpush3.bf16.msra.mxu1 %v6350_v5  ;;  %5776 = vmatprep.subr.bf16.mxu0 %v7136_v16  ;;  %v6353_v5 = vld [vmem:[#allocation8 + $0x70] sm:$0xff]   ;;  %v7452_v18 = vpack.c.bf16 %v747_v56, %v745_v8  ;;  %v7456_v58 = vpack.c.bf16 %v7299_v27, %v7297_v26  ;;  %v751_v56 = vrot.slane %v7315_v42, 7  ;;  %v757_v55 = vrot.slane %v7385_v46, 7 }
 0x102   : > { %5332 = vmatprep.subr.bf16.mxu1 %v6351_v63  ;;  %5795 = vmatmul.mubr.msk.bf16.gmra.mrb[8].mxu1 %vm7241_vm8, %v7399_v11  ;;  %v7416_v4 = vsel %vm7340_vm9, 0.0, %v573_v13  ;;  %v7419_v63 = vpack.c.bf16 %v806_v15, %v807_v53  ;;  %v7425_v54 = vsel %vm7340_vm9, 0.0, %v574_v17  ;;  %v557_v14 = vsel %vm7152_vm0, 0.0, %v550_v41 }
 0x103   : > { %v896_v10 = vrot.slane %v7416_v4, 1  ;;  %v748_v15 = vrot.slane %v7297_v26, 7  ;;  %v589_v61 = vrot.slane %v557_v14, 7  ;;  %v749_v53 = vrot.slane %v7299_v27, 7 }
 0x104   : > { %5777 = vmatpush3.bf16.msra.mxu0 %v7136_v16  ;;  %v897_v16 = vrot.slane %v7425_v54, 1  ;;  %5798 = vmatprep.mubr.msk.bf16.mxu1 %vm7241_vm8, %v7419_v63  ;;  %v602_v8 = vrot.slane %v557_v14, 1  ;;  %v607_v26 = vsel %vm601_vm5, %v605_v57, %v606_v44  ;;  %v752_v57 = vrot.slane %v7324_v47, 7  ;;  %v6360_v14 = vld [vmem:[#allocation8 + $0x98] sm:$0xff]  }
 0x105   : > { %5333 = vmatpush3.bf16.msra.mxu1 %v6352_v0  ;;  %5778 = vmatprep.subr.bf16.mxu0 %v7140_v19  ;;  %v551_v0 = vmax.f32 %v547_v39, 0.0  ;;  %v750_v27 = vsel %vm588_vm2, %v748_v15, %v749_v53 }
 0x106   : > { %5334 = vmatprep.subr.bf16.mxu1 %v6353_v5  ;;  %v898_v52 = vsel %vm601_vm5, %v896_v10, %v897_v16 }
 0x107   : > { %4834 = vmatmul.mubr.msk.bf16.gmra.mrb[12].mxu0 %vm7229_vm7, %v7371_v40  ;;  %v7444_v6 = vpack.c.bf16 %v897_v16, %v898_v52  ;;  %v558_v60 = vsel %vm7152_vm0, 0.0, %v551_v0  ;;  %v4897_v5 = vpack.c.bf16 %v551_v0, %v550_v41  ;;  %v7474_v16 = vpack.c.bf16 %v750_v27, %v748_v15 }
 0x108   : > { %1258 = vmatprep.mubr.bf16.mxu0 %v7383_v45  ;;  %5779 = vmatpush3.bf16.msra.mxu0 %v7140_v19  ;;  %v590_v19 = vrot.slane %v558_v60, 7  ;;  %v603_v36 = vrot.slane %v558_v60, 1  ;;  %v7479_v41 = vpack.c.bf16 %v7324_v47, %v7315_v42  ;;  %v885_v42 = vrot.slane %v7425_v54, 7  ;;  %v6366_v54 = vld [vmem:[#allocation8 + $0x188] sm:$0xff]  }
 0x109   : > { %5335 = vmatpush3.bf16.msra.mxu1 %v6354_v29  ;;  %5780 = vmatprep.subr.bf16.mxu0 %v7150_v25  ;;  %v753_v47 = vsel %vm588_vm2, %v751_v56, %v752_v57  ;;  %v755_v0 = vrot.slane %v7362_v35, 7  ;;  %v7504_v60 = vpack.c.bf16 %v7362_v35, %v7360_v34 }
 0x10a   : > { %5336 = vmatprep.subr.bf16.mxu1 %v6355_v38  ;;  %5799 = vmatmul.mubr.msk.bf16.gmra.mrb[12].mxu1 %vm7241_vm8, %v7444_v6  ;;  %v591_v29 = vsel %vm588_vm2, %v589_v61, %v590_v19  ;;  %v6358_v38 = vld [vmem:[#allocation8 + $0x88] sm:$0xff]   ;;  %v604_v39 = vsel %vm601_vm5, %v602_v8, %v603_v36  ;;  %v7500_v15 = vpack.c.bf16 %v753_v47, %v751_v56  ;;  %v6376_v47 = vld [vmem:[#allocation8 + $0xb8] sm:$0xff]  }
 0x10b   : > { %4898 = vmatprep.mubr.msk.bf16.mxu1 %vm7195_vm4, %v4897_v5  ;;  %v4901_v10 = vpack.c.bf16 %v591_v29, %v589_v61  ;;  %v7483_v52 = vpack.c.bf16 %v603_v36, %v604_v39  ;;  %v884_v61 = vrot.slane %v7416_v4, 7  ;;  %v6361_v5 = vld [vmem:[#allocation8 + $0xa0] sm:$0xff]   ;;  %v6364_v4 = vld [vmem:[#allocation8 + $0xa8] sm:$0xff]  }
 0x10c   : > { %5781 = vmatpush3.bf16.msra.mxu0 %v7150_v25  ;;  %v7472_v25 = vpack.c.bf16 %v606_v44, %v607_v26  ;;  %v6359_v44 = vld [vmem:[#allocation8 + $0x90] sm:$0xff]   ;;  %v7525_v26 = vpack.c.bf16 %v7387_v49, %v7385_v46 }
 0x10d   : > { %5337 = vmatpush3.bf16.msra.mxu1 %v6356_v59  ;;  %5416 = vmatprep.subr.bf16.mxu0 %v6362_v28  ;;  %v754_v59 = vrot.slane %v7360_v34, 7  ;;  %v886_v7 = vsel %vm588_vm2, %v884_v61, %v885_v42  ;;  %v6367_v42 = vld [vmem:[#allocation8 + $0x1d0] sm:$0xff]  }
 0x10e   : > { %5802 = vmatprep.subr.bf16.mxu1 %v6357_v20  ;;  %v7575_v3 = vpack.c.bf16 %v886_v7, %v884_v61  ;;  %v6369_v61 = vld [vmem:[#allocation8 + $0x1d8] sm:$0xff]  }
 0x10f   : > { %4838 = vmatmul.mubr.msk.bf16.gmra.mrb[16].mxu0 %vm7229_vm7, %v7452_v18  ;;  %v756_v34 = vsel %vm588_vm2, %v754_v59, %v755_v0 }
 0x110   : > { %1266 = vmatprep.mubr.bf16.mxu0 %v7456_v58  ;;  %v7521_v8 = vpack.c.bf16 %v756_v34, %v754_v59  ;;  %v6373_v34 = vld [vmem:[#allocation8 + $0x1a0] sm:$0xff]  }
 0x112   : > { %4902 = vmatmul.mubr.msk.bf16.vlgmr.msra.gmra.mrb[16].mxu1 %vm7229_vm7, %v4901_v10 }
 0x113   : > { %5803 = vmatpush3.bf16.msra.mxu1 %v6357_v20  ;;  %4907 = vmatprep.mubr.msk.bf16.mxu1 %vm7195_vm4, %v7213_v62  ;;  %v758_v62 = vrot.slane %v7387_v49, 7  ;;  %v4799_v20 = vld [vmem:[%s7102_s26 + $0x18] sm:$0xff]  }
 0x114   : > { %5804 = vmatprep.subr.bf16.mxu1 %v6358_v38  ;;  %v4723_v19 = vunpack.c.l.bf16 %v4799_v20  ;;  %v4724_v53 = vunpack.c.h.bf16 %v4799_v20  ;;  %v7560_v20 = vpack.c.bf16 %v574_v17, %v573_v13  ;;  %v6363_v13 = vld [vmem:[#allocation8 + $0x180] sm:$0xff]   ;;  %v6365_v17 = vld [vmem:[#allocation8 + $0x1c8] sm:$0xff]  }
 0x116   : > { %v568_v35 = vmul.f32 %v4724_v53, %v7147_v24  ;;  %v6372_v53 = vld [vmem:[#allocation8 + $0x1e0] sm:$0xff]  }
 0x117   : > { %4842 = vmatmul.mubr.msk.bf16.gmra.mrb[20].mxu0 %vm7229_vm7, %v7474_v16  ;;  %5805 = vmatpush3.bf16.msra.mxu1 %v6358_v38 }
 0x118   : > { %1274 = vmatprep.mubr.bf16.mxu0 %v7479_v41  ;;  %5806 = vmatprep.subr.bf16.mxu1 %v6359_v44  ;;  %v572_v29 = vadd.f32 %v7162_v31, %v568_v35  ;;  %v6377_v35 = vld [vmem:[#allocation8 + $0x1f0] sm:$0xff]  }
 0x11a   : > { %4911 = vmatmul.mubr.msk.bf16.gmra.mrb[20].mxu1 %vm7229_vm7, %v7245_v23  ;;  %v567_v23 = vmul.f32 %v4723_v19, %v7147_v24  ;;  %v576_v10 = vmax.f32 %v572_v29, 0.0  ;;  %v6370_v24 = vld [vmem:[#allocation8 + $0xb0] sm:$0xff]   ;;  %v6371_v19 = vld [vmem:[#allocation8 + $0x198] sm:$0xff]  }
 0x11b   : > { %1612 = vmatprep.mubr.bf16.mxu1 %v7275_v51  ;;  %5807 = vmatpush3.bf16.msra.mxu1 %v6359_v44  ;;  %v759_v44 = vsel %vm588_vm2, %v757_v55, %v758_v62  ;;  %v6381_v62 = vld [vmem:[#allocation8 + $0x200] sm:$0xff]   ;;  %v6380_v29 = vld [vmem:[#allocation8 + $0x1b8] sm:$0xff]  }
 0x11c   : > { %5808 = vmatprep.subr.bf16.mxu1 %v6360_v14  ;;  %v571_v28 = vadd.f32 %v7162_v31, %v567_v23  ;;  %v583_v31 = vsel %vm7340_vm9, 0.0, %v576_v10  ;;  %v6374_v23 = vld [vmem:[#allocation8 + $0x1e8] sm:$0xff]  }
 0x11d   : > { %v888_v38 = vrot.slane %v583_v31, 7  ;;  %v900_v57 = vrot.slane %v583_v31, 1 }
 0x11e   : > { %v575_v27 = vmax.f32 %v571_v28, 0.0  ;;  %v6379_v28 = vld [vmem:[#allocation8 + $0x1f8] sm:$0xff]  }
 0x11f   : > { %4846 = vmatmul.mubr.msk.bf16.gmra.mrb[24].mxu0 %vm7229_vm7, %v7500_v15  ;;  %5809 = vmatpush3.bf16.msra.mxu1 %v6360_v14 }
 0x120   : > { %1282 = vmatprep.mubr.bf16.mxu0 %v7504_v60  ;;  %5810 = vmatprep.subr.bf16.mxu1 %v6361_v5  ;;  %v7535_v36 = vpack.c.bf16 %v576_v10, %v575_v27  ;;  %v582_v46 = vsel %vm7340_vm9, 0.0, %v575_v27  ;;  %v6382_v27 = vld [vmem:[#allocation8 + $0x208] sm:$0xff]   ;;  %v6398_v10 = vld [vmem:[#allocation9 + $0xe0] sm:$0xff]  }
 0x121   : > { %v887_v39 = vrot.slane %v582_v46, 7  ;;  %v899_v56 = vrot.slane %v582_v46, 1  ;;  %v6400_v46 = vld [vmem:[#allocation9 + $0x148] sm:$0xff]  }
 0x122   : > { %4915 = vmatmul.mubr.msk.bf16.gmra.mrb[24].mxu1 %vm7229_vm7, %v7295_v21 }
 0x123   : > { %1620 = vmatprep.mubr.bf16.mxu1 %v7266_v43  ;;  %5811 = vmatpush3.bf16.msra.mxu1 %v6361_v5  ;;  %v889_v2 = vsel %vm588_vm2, %v887_v39, %v888_v38  ;;  %v901_v59 = vsel %vm601_vm5, %v899_v56, %v900_v57  ;;  %v7554_v5 = vpack.c.bf16 %v759_v44, %v757_v55  ;;  %v6368_v55 = vld [vmem:[#allocation8 + $0x190] sm:$0xff]  }
 0x124   : > { %5812 = vmatprep.subr.bf16.mxu1 %v6364_v4  ;;  %v7550_v0 = vpack.c.bf16 %v889_v2, %v887_v39  ;;  %v7552_v14 = vpack.c.bf16 %v900_v57, %v901_v59  ;;  %v6401_v57 = vld [vmem:[#allocation9 + $0x128] sm:$0xff]   ;;  %v6403_v59 = vld [vmem:[#allocation9 + $0x150] sm:$0xff]  }
 0x125   : > { %v6402_v2 = vld [vmem:[#allocation9 + $0xe8] sm:$0xff]  }
 0x127   : > { %4850 = vmatmul.mubr.msk.bf16.gmra.mrb[28].mxu0 %vm7229_vm7, %v7521_v8  ;;  %5813 = vmatpush3.bf16.msra.mxu1 %v6364_v4  ;;  %v6378_v4 = vld [vmem:[#allocation8 + $0x1b0] sm:$0xff]  }
 0x128   : > { %1290 = vmatprep.mubr.bf16.mxu0 %v7525_v26  ;;  %5814 = vmatprep.subr.bf16.mxu1 %v6370_v24 }
 0x12a   : > { %4919 = vmatmul.mubr.msk.bf16.gmra.mrb[28].mxu1 %vm7229_vm7, %v7326_v48 }
 0x12b   : > { %1628 = vmatprep.mubr.bf16.mxu1 %v7330_v1  ;;  %5815 = vmatpush3.bf16.msra.mxu1 %v6370_v24  ;;  %v6399_v24 = vld [vmem:[#allocation9 + $0x140] sm:$0xff]  }
 0x12c   : > { %5816 = vmatprep.subr.bf16.mxu1 %v6376_v47 }
 0x12f   : > { %4854 = vmatmul.mubr.msk.bf16.gmra.mrb[32].mxu0 %vm7229_vm7, %v7554_v5  ;;  %5817 = vmatpush3.bf16.msra.mxu1 %v6376_v47 }
 0x130   : > { %4859 = vmatprep.mubr.msk.bf16.mxu0 %vm7542_vm11, %v7560_v20  ;;  %5838 = vmatprep.subr.bf16.mxu1 %v6381_v62 }
 0x132   : > { %4923 = vmatmul.mubr.msk.bf16.gmra.mrb[32].mxu1 %vm7229_vm7, %v7371_v40 }
 0x133   : > { %1636 = vmatprep.mubr.bf16.mxu1 %v7383_v45 }
 0x137   : > { %4863 = vmatmul.mubr.msk.bf16.gmra.mrb[36].mxu0 %vm7229_vm7, %v7575_v3 }
 0x138   : > { %5782 = vmatprep.mubr.msk.bf16.mxu0 %vm7241_vm8, %v7472_v25 }
 0x13a   : > { %4927 = vmatmul.mubr.msk.bf16.gmra.mrb[36].mxu1 %vm7229_vm7, %v7452_v18 }
 0x13b   : > { %1644 = vmatprep.mubr.bf16.mxu1 %v7456_v58 }
 0x13f   : > { %5783 = vmatmul.mubr.msk.bf16.vlgmr.msra.gmra.mrb[40].mxu0 %vm7241_vm8, %v7288_v12 }
 0x140   : > { %5417 = vmatpush3.bf16.msra.mxu0 %v6363_v13  ;;  %2045 = vmatprep.mubr.bf16.mxu0 %v7275_v51  ;;  %v6375_v51 = vld [vmem:[#allocation8 + $0x1a8] sm:$0xff]  }
 0x141   : > { %5418 = vmatprep.subr.bf16.mxu0 %v6365_v17  ;;  %v6404_v17 = vld [vmem:[#allocation9 + $0x158] sm:$0xff]  }
 0x142   : > { %4931 = vmatmul.mubr.msk.bf16.gmra.mrb[40].mxu1 %vm7229_vm7, %v7474_v16 }
 0x143   : > { %1652 = vmatprep.mubr.bf16.mxu1 %v7479_v41 }
 0x144   : > { %5419 = vmatpush3.bf16.msra.mxu0 %v6366_v54 }
 0x145   : > { %5420 = vmatprep.subr.bf16.mxu0 %v6367_v42 }
 0x148   : > { %5421 = vmatpush3.bf16.msra.mxu0 %v6368_v55 }
 0x149   : > { %5422 = vmatprep.subr.bf16.mxu0 %v6369_v61 }
 0x14a   : > { %4935 = vmatmul.mubr.msk.bf16.gmra.mrb[44].mxu1 %vm7229_vm7, %v7500_v15 }
 0x14b   : > { %1660 = vmatprep.mubr.bf16.mxu1 %v7504_v60 }
 0x14c   : > { %5423 = vmatpush3.bf16.msra.mxu0 %v6371_v19  ;;  %v6405_v19 = vld [vmem:[#allocation9 + $0x130] sm:$0xff]  }
 0x14d   : > { %5424 = vmatprep.subr.bf16.mxu0 %v6372_v53  ;;  %v6406_v53 = vld [vmem:[#allocation9 + $0xf0] sm:$0xff]  }
 0x150   : > { %5425 = vmatpush3.bf16.msra.mxu0 %v6373_v34  ;;  %v6407_v34 = vld [vmem:[#allocation9 + $0x160] sm:$0xff]  }
 0x151   : > { %5426 = vmatprep.subr.bf16.mxu0 %v6374_v23 }
 0x152   : > { %4939 = vmatmul.mubr.msk.bf16.gmra.mrb[48].mxu1 %vm7229_vm7, %v7521_v8 }
 0x153   : > { %1668 = vmatprep.mubr.bf16.mxu1 %v7525_v26 }
 0x154   : > { %5427 = vmatpush3.bf16.msra.mxu0 %v6375_v51 }
 0x155   : > { %5428 = vmatprep.subr.bf16.mxu0 %v6377_v35 }
 0x158   : > { %5429 = vmatpush3.bf16.msra.mxu0 %v6378_v4 }
 0x159   : > { %5430 = vmatprep.subr.bf16.mxu0 %v6379_v28 }
 0x15a   : > { %4943 = vmatmul.mubr.msk.bf16.gmra.mrb[52].mxu1 %vm7229_vm7, %v7554_v5 }
 0x15b   : > { %5818 = vmatprep.mubr.msk.bf16.mxu1 %vm7241_vm8, %v7483_v52  ;;  %v6383_v52 = vld [vmem:[#allocation8 + $0x210] sm:$0xff]  }
 0x15c   : > { %5431 = vmatpush3.bf16.msra.mxu0 %v6380_v29 }
 0x15f   : > { %4977 = vmatmul.mubr.msk.bf16.vlgmr.msra.gmra.mrb[44].mxu0 %vm7229_vm7, %v7295_v21  ;;  %v6385_v21 = vld [vmem:[#allocation8 + $0x220] sm:$0xff]  }
 0x160   : > { %2053 = vmatprep.mubr.bf16.mxu0 %v7266_v43  ;;  %v6384_v43 = vld [vmem:[#allocation8 + $0x218] sm:$0xff]  }
 0x162   : > { %5819 = vmatmul.mubr.msk.bf16.vlgmr.msra.gmra.mrb[56].mxu1 %vm7241_vm8, %v7472_v25 }
 0x163   : > { %5839 = vmatpush3.bf16.msra.mxu1 %v6381_v62  ;;  %5822 = vmatprep.mubr.msk.bf16.mxu1 %vm7241_vm8, %v7288_v12 }
 0x164   : > { %5840 = vmatprep.subr.bf16.mxu1 %v6382_v27 }
 0x167   : > { %4981 = vmatmul.mubr.msk.bf16.gmra.mrb[48].mxu0 %vm7229_vm7, %v7326_v48  ;;  %5841 = vmatpush3.bf16.msra.mxu1 %v6382_v27  ;;  %v6386_v48 = vld [vmem:[#allocation8 + $0x228] sm:$0xff]  }
 0x168   : > { %2061 = vmatprep.mubr.bf16.mxu0 %v7330_v1  ;;  %5842 = vmatprep.subr.bf16.mxu1 %v6383_v52  ;;  %v6387_v1 = vld [vmem:[#allocation8 + $0x230] sm:$0xff]  }
 0x16a   : > { %5823 = vmatmul.mubr.msk.bf16.gmra.mrb[0].mxu1 %vm7241_vm8, %v7249_v30 }
 0x16b   : > { %5843 = vmatpush3.bf16.msra.mxu1 %v6383_v52  ;;  %5826 = vmatprep.mubr.msk.bf16.mxu1 %vm7241_vm8, %v7251_v32 }
 0x16c   : > { %5844 = vmatprep.subr.bf16.mxu1 %v6384_v43 }
 0x16f   : > { %4985 = vmatmul.mubr.msk.bf16.gmra.mrb[52].mxu0 %vm7229_vm7, %v7371_v40  ;;  %5845 = vmatpush3.bf16.msra.mxu1 %v6384_v43  ;;  %v6388_v40 = vld [vmem:[#allocation8 + $0x238] sm:$0xff]  }
 0x170   : > { %2069 = vmatprep.mubr.bf16.mxu0 %v7383_v45  ;;  %5846 = vmatprep.subr.bf16.mxu1 %v6385_v21  ;;  %v6395_v45 = vld [vmem:[#allocation9 + $0x118] sm:$0xff]  }
 0x172   : > { %5827 = vmatmul.mubr.msk.bf16.gmra.mrb[4].mxu1 %vm7241_vm8, %v7306_v37 }
 0x173   : > { %5847 = vmatpush3.bf16.msra.mxu1 %v6385_v21  ;;  %5830 = vmatprep.mubr.msk.bf16.mxu1 %vm7241_vm8, %v7333_v50 }
 0x174   : > { %5848 = vmatprep.subr.bf16.mxu1 %v6386_v48 }
 0x177   : > { %4989 = vmatmul.mubr.msk.bf16.gmra.mrb[56].mxu0 %vm7229_vm7, %v7452_v18  ;;  %5849 = vmatpush3.bf16.msra.mxu1 %v6386_v48  ;;  %v6408_v48 = vld [vmem:[#allocation9 + $0x168] sm:$0xff]  }
 0x178   : > { %2077 = vmatprep.mubr.bf16.mxu0 %v7456_v58  ;;  %5850 = vmatprep.subr.bf16.mxu1 %v6387_v1 }
 0x17a   : > { %5831 = vmatmul.mubr.msk.bf16.gmra.mrb[8].mxu1 %vm7241_vm8, %v7358_v33 }
 0x17b   : > { %5834 = vmatprep.mubr.msk.bf16.mxu1 %vm7241_vm8, %v7399_v11  ;;  %5851 = vmatpush3.bf16.msra.mxu1 %v6387_v1  ;;  %v6409_v1 = vld [vmem:[#allocation9 + $0x138] sm:$0xff]  }
 0x17c   : > { %5852 = vmatprep.subr.bf16.mxu1 %v6388_v40 }
 0x17f   : > { %4993 = vmatmul.mubr.msk.bf16.gmra.mrb[60].mxu0 %vm7229_vm7, %v7474_v16  ;;  %5853 = vmatpush3.bf16.msra.mxu1 %v6388_v40 }
 0x180   : > { %2085 = vmatprep.mubr.bf16.mxu0 %v7479_v41  ;;  %5874 = vmatprep.subr.bf16.mxu1 %v6399_v24 }
 0x182   : > { %5835 = vmatmul.mubr.msk.bf16.gmra.mrb[12].mxu1 %vm7241_vm8, %v7419_v63 }
 0x183   : > { %5854 = vmatprep.mubr.msk.bf16.mxu1 %vm7241_vm8, %v7288_v12  ;;  %v6391_v12 = vld [vmem:[#allocation9 + $0x108] sm:$0xff]  }
 0x187   : > { %4997 = vmatmul.mubr.msk.bf16.gmra.mrb[64].mxu0 %vm7229_vm7, %v7500_v15  ;;  %v6397_v15 = vld [vmem:[#allocation9 + $0x120] sm:$0xff]  }
 0x188   : > { %2093 = vmatprep.mubr.bf16.mxu0 %v7504_v60 }
 0x18a   : > { %5855 = vmatmul.mubr.msk.bf16.vlgmr.msra.gmra.mrb[56].mxu1 %vm7241_vm8, %v7249_v30  ;;  %v6389_v30 = vld [vmem:[#allocation9 + $0x100] sm:$0xff]  }
 0x18b   : > { %5858 = vmatprep.mubr.msk.bf16.mxu1 %vm7241_vm8, %v7251_v32  ;;  %5510 = vmatprep.subr.bf16.mxu0 %v6389_v30  ;;  %v6390_v32 = vld [vmem:[#allocation9 + $0xc0] sm:$0xff]   ;;  %v6410_v30 = vld [vmem:[#allocation9 + $0xf8] sm:$0xff]  }
 0x18c   : > { %5511 = vmatpush3.bf16.msra.mxu0 %v6390_v32  ;;  %5875 = vmatpush3.bf16.msra.mxu1 %v6399_v24  ;;  %v6412_v24 = vld [vmem:[#allocation9 + $0x178] sm:$0xff]  }
 0x18d   : > { %5512 = vmatprep.subr.bf16.mxu0 %v6391_v12  ;;  %5876 = vmatprep.subr.bf16.mxu1 %v6400_v46 }
 0x18f   : > { %5001 = vmatmul.mubr.msk.bf16.gmra.mrb[68].mxu0 %vm7229_vm7, %v7521_v8 }
 0x190   : > { %2101 = vmatprep.mubr.bf16.mxu0 %v7525_v26  ;;  %5877 = vmatpush3.bf16.msra.mxu1 %v6400_v46 }
 0x191   : > { %5878 = vmatprep.subr.bf16.mxu1 %v6403_v59 }
 0x192   : > { %5859 = vmatmul.mubr.msk.bf16.gmra.mrb[0].mxu1 %vm7241_vm8, %v7306_v37  ;;  %v6392_v37 = vld [vmem:[#allocation9 + $0xc8] sm:$0xff]  }
 0x193   : > { %5862 = vmatprep.mubr.msk.bf16.mxu1 %vm7241_vm8, %v7333_v50  ;;  %v6393_v50 = vld [vmem:[#allocation9 + $0x110] sm:$0xff]   ;;  %5513 = vmatpush3.bf16.msra.mxu0 %v6392_v37 }
 0x194   : > { %5514 = vmatprep.subr.bf16.mxu0 %v6393_v50  ;;  %5879 = vmatpush3.bf16.msra.mxu1 %v6403_v59 }
 0x195   : > { %5880 = vmatprep.subr.bf16.mxu1 %v6404_v17 }
 0x197   : > { %5005 = vmatmul.mubr.msk.bf16.gmra.mrb[72].mxu0 %vm7229_vm7, %v7554_v5 }
 0x198   : > { %5010 = vmatprep.mubr.msk.bf16.mxu0 %vm7542_vm11, %v7560_v20  ;;  %5881 = vmatpush3.bf16.msra.mxu1 %v6404_v17 }
 0x199   : > { %5882 = vmatprep.subr.bf16.mxu1 %v6407_v34 }
 0x19a   : > { %5863 = vmatmul.mubr.msk.bf16.gmra.mrb[4].mxu1 %vm7241_vm8, %v7358_v33  ;;  %v6394_v33 = vld [vmem:[#allocation9 + $0xd0] sm:$0xff]  }
 0x19b   : > { %5866 = vmatprep.mubr.msk.bf16.mxu1 %vm7241_vm8, %v7399_v11  ;;  %5515 = vmatpush3.bf16.msra.mxu0 %v6394_v33  ;;  %v6396_v11 = vld [vmem:[#allocation9 + $0xd8] sm:$0xff]  }
 0x19c   : > { %5516 = vmatprep.subr.bf16.mxu0 %v6395_v45  ;;  %5883 = vmatpush3.bf16.msra.mxu1 %v6407_v34 }
 0x19d   : > { %5884 = vmatprep.subr.bf16.mxu1 %v6408_v48 }
 0x19f   : > { %5014 = vmatmul.mubr.msk.bf16.gmra.mrb[76].mxu0 %vm7229_vm7, %v7575_v3 }
 0x1a0   : > { %5019 = vmatprep.mubr.msk.bf16.mxu0 %vm7542_vm11, %v7535_v36  ;;  %5517 = vmatpush3.bf16.msra.mxu0 %v6396_v11 }
 0x1a1   : > { %5518 = vmatprep.subr.bf16.mxu0 %v6397_v15  ;;  %5885 = vmatpush3.bf16.msra.mxu1 %v6408_v48 }
 0x1a2   : > { %5867 = vmatmul.mubr.msk.bf16.gmra.mrb[8].mxu1 %vm7241_vm8, %v7419_v63 }
 0x1a3   : > { %5870 = vmatprep.mubr.msk.bf16.mxu1 %vm7241_vm8, %v7444_v6 }
 0x1a4   : > { %5519 = vmatpush3.bf16.msra.mxu0 %v6398_v10 }
 0x1a5   : > { %5520 = vmatprep.subr.bf16.mxu0 %v6401_v57 }
 0x1a7   : > { %5023 = vmatmul.mubr.msk.bf16.gmra.mrb[80].mxu0 %vm7229_vm7, %v7550_v0 }
 0x1a8   : > { %5521 = vmatpush3.bf16.msra.mxu0 %v6402_v2 }
 0x1a9   : > { %5522 = vmatprep.subr.bf16.mxu0 %v6405_v19 }
 0x1aa   : > { %5871 = vmatmul.mubr.msk.bf16.gmra.mrb[12].mxu1 %vm7241_vm8, %v7552_v14 }
 0x1ac   : > { %5523 = vmatpush3.bf16.msra.mxu0 %v6406_v53 }
 0x1ad   : > { %5524 = vmatprep.subr.bf16.mxu0 %v6409_v1 }
 0x1b0   : > { %5525 = vmatpush3.bf16.msra.mxu0 %v6410_v30 }
 0x1c2   : > { %v5244_v63 = vpop.f32.mrb[0].mxu0 }
 0x1c3   : > { %v5245_v6 = vpop.f32.mrb[1].mxu0 }
 0x1c4   : > { %v7713_v18 = vadd.f32 %v5245_v6, %v5244_v63  ;;  %v5247_v58 = vpop.f32.mrb[2].mxu0  ;;  %v6411_v6 = vld [vmem:[#allocation9 + $0x170] sm:$0xff]  }
 0x1c5   : > { %v5248_v25 = vpop.f32.mrb[3].mxu0  ;;  %5886 = vmatprep.subr.bf16.mxu1 %v6411_v6 }
 0x1c6   : > { %v7715_v16 = vadd.f32 %v5248_v25, %v5247_v58  ;;  %5887 = vmatpush3.bf16.msra.mxu1 %v6411_v6 }
 0x1c7   : > { %5888 = vmatprep.subr.bf16.mxu1 %v6412_v24 }
 0x1ca   : > { %v5250_v41 = vpop.f32.mrb[4].mxu0  ;;  %5889 = vmatpush3.bf16.msra.mxu1 %v6412_v24 }
 0x1cb   : > { %v5251_v60 = vpop.f32.mrb[5].mxu0 }
 0x1cc   : > { %v7717_v8 = vadd.f32 %v5251_v60, %v5250_v41  ;;  %v5253_v26 = vpop.f32.mrb[6].mxu0 }
 0x1cd   : > { %v5254_v31 = vpop.f32.mrb[7].mxu0 }
 0x1ce   : > { %v7719_v36 = vadd.f32 %v5254_v31, %v5253_v26 }
 0x1d2   : > { %v5256_v49 = vpop.f32.mrb[8].mxu0 }
 0x1d3   : > { %v5257_v38 = vpop.f32.mrb[9].mxu0 }
 0x1d4   : > { %v7721_v39 = vadd.f32 %v5257_v38, %v5256_v49  ;;  %v5259_v56 = vpop.f32.mrb[10].mxu0 }
 0x1d5   : > { %v5260_v44 = vpop.f32.mrb[11].mxu0 }
 0x1d6   : > { %v7723_v47 = vadd.f32 %v5260_v44, %v5259_v56 }
 0x1da   : > { %v5262_v0 = vpop.f32.mrb[12].mxu0 }
 0x1db   : > { %v5263_v14 = vpop.f32.mrb[13].mxu0 }
 0x1dc   : > { %v7725_v5 = vadd.f32 %v5263_v14, %v5262_v0  ;;  %v5265_v20 = vpop.f32.mrb[14].mxu0  ;;  %v6413_v14 = vld [vmem:[#allocation9 + $0x40] sm:$0xff]  }
 0x1dd   : > { %v5266_v62 = vpop.f32.mrb[15].mxu0  ;;  %5590 = vmatprep.subr.bf16.mxu0 %v6413_v14 }
 0x1de   : > { %v7727_v7 = vadd.f32 %v5266_v62, %v5265_v20  ;;  %v7754_v20 = vld [vmem:[#allocation9 + $0x80] sm:$0xff]  }
 0x1df   : > { %5906 = vmatprep.subr.bf16.mxu1 %v7754_v20 }
 0x1e2   : > { %v5268_v3 = vpop.f32.mrb[16].mxu0 }
 0x1e3   : > { %v5269_v13 = vpop.f32.mrb[17].mxu0 }
 0x1e4   : > { %v7729_v54 = vadd.f32 %v5269_v13, %v5268_v3  ;;  %v5271_v42 = vpop.f32.mrb[18].mxu0 }
 0x1e5   : > { %v5272_v55 = vpop.f32.mrb[19].mxu0  ;;  %v5338_v23 = vpop.f32.mrb[16].mxu1 }
 0x1e6   : > { %v7731_v61 = vadd.f32 %v5272_v55, %v5271_v42  ;;  %v5339_v51 = vpop.f32.mrb[17].mxu1 }
 0x1e7   : > { %v7733_v35 = vadd.f32 %v5339_v51, %v5338_v23  ;;  %v5341_v4 = vpop.f32.mrb[18].mxu1 }
 0x1e8   : > { %v5342_v29 = vpop.f32.mrb[19].mxu1 }
 0x1e9   : > { %v7735_v52 = vadd.f32 %v5342_v29, %v5341_v4 }
 0x1ea   : > { %v5274_v28 = vpop.f32.mrb[20].mxu0 }
 0x1eb   : > { %v5275_v27 = vpop.f32.mrb[21].mxu0 }
 0x1ec   : > { %v7737_v43 = vadd.f32 %v5275_v27, %v5274_v28  ;;  %v5277_v21 = vpop.f32.mrb[22].mxu0 }
 0x1ed   : > { %v5278_v40 = vpop.f32.mrb[23].mxu0  ;;  %v5344_v12 = vpop.f32.mrb[20].mxu1 }
 0x1ee   : > { %v7739_v32 = vadd.f32 %v5278_v40, %v5277_v21  ;;  %v5345_v37 = vpop.f32.mrb[21].mxu1 }
 0x1ef   : > { %v7741_v50 = vadd.f32 %v5345_v37, %v5344_v12  ;;  %v5347_v33 = vpop.f32.mrb[22].mxu1 }
 0x1f0   : > { %v5348_v11 = vpop.f32.mrb[23].mxu1 }
 0x1f1   : > { %v7743_v58 = vadd.f32 %v5348_v11, %v5347_v33 }
 0x1f2   : > { %v5280_v45 = vpop.f32.mrb[24].mxu0 }
 0x1f3   : > { %v5281_v63 = vpop.f32.mrb[25].mxu0 }
 0x1f4   : > { %v7745_v25 = vadd.f32 %v5281_v63, %v5280_v45  ;;  %v5283_v41 = vpop.f32.mrb[26].mxu0 }
 0x1f5   : > { %v5284_v15 = vpop.f32.mrb[27].mxu0  ;;  %v5350_v26 = vpop.f32.mrb[24].mxu1 }
 0x1f6   : > { %v7747_v60 = vadd.f32 %v5284_v15, %v5283_v41  ;;  %v5351_v10 = vpop.f32.mrb[25].mxu1 }
 0x1f7   : > { %v5352_v31 = vadd.f32 %v5351_v10, %v5350_v26  ;;  %v5353_v46 = vpop.f32.mrb[26].mxu1 }
 0x1f8   : > { %v5354_v38 = vpop.f32.mrb[27].mxu1 }
 0x1f9   : > { %v7750_v57 = vadd.f32 %v5352_v31, %v7721_v39  ;;  %v5355_v44 = vadd.f32 %v5354_v38, %v5353_v46 }
 0x1fa   : > { %v5286_v49 = vpop.f32.mrb[28].mxu0 }
 0x1fb   : > { %v5287_v56 = vpop.f32.mrb[29].mxu0  ;;  %v7757_v62 = vadd.f32 %v5355_v44, %v7723_v47 }
 0x1fc   : > { %v7752_v2 = vadd.f32 %v5287_v56, %v5286_v49  ;;  %v5289_v59 = vpop.f32.mrb[30].mxu0 }
 0x1fd   : > { %v5290_v0 = vpop.f32.mrb[31].mxu0  ;;  %v5356_v13 = vpop.f32.mrb[28].mxu1 }
 0x1fe   : > { %v7759_v3 = vadd.f32 %v5290_v0, %v5289_v59  ;;  %v5357_v39 = vpop.f32.mrb[29].mxu1 }
 0x1ff   : > { %v5358_v17 = vadd.f32 %v5357_v39, %v5356_v13  ;;  %v5359_v42 = vpop.f32.mrb[30].mxu1 }
 0x200   : > { %v5360_v19 = vpop.f32.mrb[31].mxu1 }
 0x201   : > { %v7763_v34 = vadd.f32 %v5358_v17, %v7725_v5  ;;  %v5361_v23 = vadd.f32 %v5360_v19, %v5359_v42 }
 0x202   : > { %v5292_v55 = vpop.f32.mrb[32].mxu0 }
 0x203   : > { %v5293_v53 = vpop.f32.mrb[33].mxu0  ;;  %v7766_v28 = vadd.f32 %v5361_v23, %v7727_v7 }
 0x204   : > { %v5294_v51 = vadd.f32 %v5293_v53, %v5292_v55  ;;  %v5295_v4 = vpop.f32.mrb[34].mxu0 }
 0x205   : > { %v5296_v47 = vpop.f32.mrb[35].mxu0  ;;  %v5362_v27 = vpop.f32.mrb[32].mxu1 }
 0x206   : > { %v5297_v29 = vadd.f32 %v5296_v47, %v5295_v4  ;;  %v5363_v21 = vpop.f32.mrb[33].mxu1 }
 0x207   : > { %v5364_v48 = vadd.f32 %v5363_v21, %v5362_v27  ;;  %v5365_v1 = vpop.f32.mrb[34].mxu1 }
 0x208   : > { %v5366_v30 = vpop.f32.mrb[35].mxu1 }
 0x209   : > { %v7769_v37 = vadd.f32 %v5364_v48, %v7729_v54  ;;  %v5367_v5 = vadd.f32 %v5366_v30, %v5365_v1 }
 0x20a   : > { %v5298_v40 = vpop.f32.mrb[36].mxu0 }
 0x20b   : > { %v5299_v12 = vpop.f32.mrb[37].mxu0  ;;  %v7772_v63 = vadd.f32 %v5367_v5, %v7731_v61 }
 0x20c   : > { %v5300_v33 = vadd.f32 %v5299_v12, %v5298_v40  ;;  %v5301_v45 = vpop.f32.mrb[38].mxu0 }
 0x20d   : > { %v5302_v11 = vpop.f32.mrb[39].mxu0  ;;  %v5368_v6 = vpop.f32.mrb[36].mxu1 }
 0x20e   : > { %v5303_v7 = vadd.f32 %v5302_v11, %v5301_v45  ;;  %v5369_v41 = vpop.f32.mrb[37].mxu1 }
 0x20f   : > { %v5370_v15 = vadd.f32 %v5369_v41, %v5368_v6  ;;  %v5371_v26 = vpop.f32.mrb[38].mxu1 }
 0x210   : > { %v5372_v24 = vpop.f32.mrb[39].mxu1 }
 0x211   : > { %v7776_v54 = vadd.f32 %v5370_v15, %v7737_v43  ;;  %v5373_v49 = vadd.f32 %v5372_v24, %v5371_v26 }
 0x212   : > { %v5784_v10 = vpop.f32.mrb[40].mxu0 }
 0x213   : > { %v1350_v31 = vadd.f32 %v5784_v10, %v7717_v8  ;;  %v1341_v46 = vpop.f32.mrb[41].mxu0  ;;  %v7782_v0 = vadd.f32 %v5373_v49, %v7739_v32 }
 0x214   : > { %v1342_v38 = vadd.f32 %v7713_v18, %v1341_v46  ;;  %v5785_v56 = vpop.f32.mrb[42].mxu0 }
 0x215   : > { %v1607_v61 = vadd.f32 %v7741_v50, %v1350_v31  ;;  %v1353_v44 = vadd.f32 %v5785_v56, %v7719_v36  ;;  %v1344_v59 = vpop.f32.mrb[43].mxu0  ;;  %v5374_v43 = vpop.f32.mrb[40].mxu1 }
 0x216   : > { %v1599_v14 = vadd.f32 %v7733_v35, %v1342_v38  ;;  %v1345_v8 = vadd.f32 %v7715_v16, %v1344_v59  ;;  %v5375_v17 = vpop.f32.mrb[41].mxu1 }
 0x217   : > { %v1610_v13 = vadd.f32 %v7743_v58, %v1353_v44  ;;  %v5376_v18 = vadd.f32 %v5375_v17, %v5374_v43  ;;  %v5377_v42 = vpop.f32.mrb[42].mxu1 }
 0x218   : > { %v1602_v39 = vadd.f32 %v7735_v52, %v1345_v8  ;;  %v5378_v55 = vpop.f32.mrb[43].mxu1 }
 0x219   : > { %v7789_v50 = vadd.f32 %v5376_v18, %v7745_v25  ;;  %v5379_v36 = vadd.f32 %v5378_v55, %v5377_v42 }
 0x21b   : > { %v7792_v32 = vadd.f32 %v5379_v36, %v7747_v60 }
 0x21d   : > { %v5380_v19 = vpop.f32.mrb[44].mxu1 }
 0x21e   : > { %v5381_v35 = vpop.f32.mrb[45].mxu1 }
 0x21f   : > { %v5382_v53 = vadd.f32 %v5381_v35, %v5380_v19  ;;  %v5383_v16 = vpop.f32.mrb[46].mxu1 }
 0x220   : > { %v5384_v23 = vpop.f32.mrb[47].mxu1 }
 0x221   : > { %v7795_v58 = vadd.f32 %v5382_v53, %v7752_v2  ;;  %v5385_v52 = vadd.f32 %v5384_v23, %v5383_v16 }
 0x223   : > { %v7798_v4 = vadd.f32 %v5385_v52, %v7759_v3 }
 0x225   : > { %v5386_v47 = vpop.f32.mrb[48].mxu1 }
 0x226   : > { %v5387_v27 = vpop.f32.mrb[49].mxu1 }
 0x227   : > { %v5388_v25 = vadd.f32 %v5387_v27, %v5386_v47  ;;  %v5389_v21 = vpop.f32.mrb[50].mxu1 }
 0x228   : > { %v5390_v48 = vpop.f32.mrb[51].mxu1 }
 0x229   : > { %v7800_v1 = vadd.f32 %v5388_v25, %v5294_v51  ;;  %v5391_v60 = vadd.f32 %v5390_v48, %v5389_v21 }
 0x22b   : > { %v7802_v40 = vadd.f32 %v5391_v60, %v5297_v29 }
 0x22d   : > { %v5392_v30 = vpop.f32.mrb[52].mxu1 }
 0x22e   : > { %v5393_v12 = vpop.f32.mrb[53].mxu1 }
 0x22f   : > { %v5394_v5 = vadd.f32 %v5393_v12, %v5392_v30  ;;  %v5395_v45 = vpop.f32.mrb[54].mxu1 }
 0x230   : > { %v5396_v11 = vpop.f32.mrb[55].mxu1 }
 0x231   : > { %v7804_v41 = vadd.f32 %v5394_v5, %v5300_v33  ;;  %v5397_v3 = vadd.f32 %v5396_v11, %v5395_v45 }
 0x232   : > { %v5432_v2 = vpop.f32.mrb[44].mxu0 }
 0x233   : > { %v5433_v6 = vpop.f32.mrb[45].mxu0  ;;  %v7806_v24 = vadd.f32 %v5397_v3, %v5303_v7  ;;  %v7840_v3 = vld [vmem:[%s8576_s28] ss:$0 sm:$0xff]  ;;  %s6741_s28 = smov [#allocation12]  }
 0x234   : > { %v5434_v15 = vadd.f32 %v5433_v6, %v5432_v2  ;;  %v5435_v26 = vpop.f32.mrb[46].mxu0 }
 0x235   : > { %v5436_v10 = vpop.f32.mrb[47].mxu0 }
 0x236   : > { %v5437_v51 = vadd.f32 %v5436_v10, %v5435_v26  ;;  %v6024_v31 = vadd.f32 %v5434_v15, %v1599_v14 }
 0x238   : > { %v6032_v46 = vadd.f32 %v5437_v51, %v1602_v39 }
 0x23a   : > { %v5438_v29 = vpop.f32.mrb[48].mxu0 }
 0x23b   : > { %v5439_v49 = vpop.f32.mrb[49].mxu0 }
 0x23c   : > { %v5440_v38 = vadd.f32 %v5439_v49, %v5438_v29  ;;  %v5441_v56 = vpop.f32.mrb[50].mxu0 }
 0x23d   : > { %v5442_v44 = vpop.f32.mrb[51].mxu0 }
 0x23e   : > { %v5443_v59 = vadd.f32 %v5442_v44, %v5441_v56  ;;  %v6020_v8 = vadd.f32 %v5440_v38, %v1607_v61  ;;  %v2376_v38 = vstv %s2375_s4 }
 0x23f   : > { %vm7857_vm12 = vcmp.eq.s32.totalorder %v2376_v38, 1 }
 0x240   : > { %v6028_v43 = vadd.f32 %v5443_v59, %v1610_v13  ;;  %vm5110_vm14 = vmpackc.low %vm7857_vm12, %vm7857_vm12 }
 0x242   : > { %v5444_v17 = vpop.f32.mrb[52].mxu0 }
 0x243   : > { %v5445_v33 = vpop.f32.mrb[53].mxu0 }
 0x244   : > { %v5446_v18 = vadd.f32 %v5445_v33, %v5444_v17  ;;  %v5447_v42 = vpop.f32.mrb[54].mxu0 }
 0x245   : > { %v5448_v55 = vpop.f32.mrb[55].mxu0 }
 0x246   : > { %v5449_v36 = vadd.f32 %v5448_v55, %v5447_v42  ;;  %v7809_v7 = vadd.f32 %v7750_v57, %v5446_v18  ;;  %v6448_v55 = vld [vmem:[#allocation9 + $0x1a8] sm:$0xff]  }
 0x248   : > { %v7812_v14 = vadd.f32 %v7757_v62, %v5449_v36 }
 0x24a   : > { %v5450_v39 = vpop.f32.mrb[56].mxu0 }
 0x24b   : > { %v5451_v19 = vpop.f32.mrb[57].mxu0 }
 0x24c   : > { %v5452_v35 = vadd.f32 %v5451_v19, %v5450_v39  ;;  %v5453_v53 = vpop.f32.mrb[58].mxu0 }
 0x24d   : > { %v5454_v16 = vpop.f32.mrb[59].mxu0 }
 0x24e   : > { %v5455_v61 = vadd.f32 %v5454_v16, %v5453_v53  ;;  %v6035_v13 = vadd.f32 %v7763_v34, %v5452_v35 }
 0x250   : > { %v7816_v23 = vadd.f32 %v7766_v28, %v5455_v61 }
 0x252   : > { %v5456_v52 = vpop.f32.mrb[60].mxu0 }
 0x253   : > { %v5457_v47 = vpop.f32.mrb[61].mxu0 }
 0x254   : > { %v5458_v27 = vadd.f32 %v5457_v47, %v5456_v52  ;;  %v5459_v57 = vpop.f32.mrb[62].mxu0  ;;  %v2420_v47 = vstv %s7848_s0  ;;  %s6625_s0 = sshll.u32 %s6741_s28, 4  ;;  %s6626_s0 = int_to_ptr.vmem [resolvable:$false] %s6625_s0 }
 0x255   : > { %v5460_v25 = vpop.f32.mrb[63].mxu0  ;;  %vm8032_vm13 = vcmp.eq.s32.totalorder %v2420_v47, 1  ;;  %p6628_p13 = scmp.lt.s32.totalorder %s8438_s20, %s6626_s0 }
 0x256   : > { %v5461_v21 = vadd.f32 %v5460_v25, %v5459_v57  ;;  %v7819_v62 = vadd.f32 %v7769_v37, %v5458_v27  ;;  %v7831_v37 = vld [vmem:[%s8575_s10] ss:$0 sm:$0xff]  ;;  %vm5197_vm15 = vmpackc.low %vm8032_vm13, %vm8032_vm13  ;;  %s8584_s10 = sld [smem:[#allocation32_spill]] }
 0x258   : > { %v7822_v48 = vadd.f32 %v7772_v63, %v5461_v21 }
 0x25a   : > { %v5462_v60 = vpop.f32.mrb[64].mxu0 }
 0x25b   : > { %v5463_v30 = vpop.f32.mrb[65].mxu0 }
 0x25c   : > { %v5464_v12 = vadd.f32 %v5463_v30, %v5462_v60  ;;  %v5465_v34 = vpop.f32.mrb[66].mxu0  ;;  %s8443_s4 = scalar_lea.hbm %s8584_s10, %s4688_s8 }
 0x25d   : > { %v5466_v28 = vpop.f32.mrb[67].mxu0  ;;  %v5856_v2 = vpop.f32.mrb[56].mxu1 }
 0x25e   : > { %v5467_v5 = vadd.f32 %v5466_v28, %v5465_v34  ;;  %v7826_v45 = vadd.f32 %v7776_v54, %v5464_v12  ;;  %v6021_v11 = vadd.f32 %v6020_v8, %v5856_v2  ;;  %v2160_v6 = vpop.f32.mrb[57].mxu1 }
 0x25f   : > { %v6025_v54 = vadd.f32 %v6024_v31, %v2160_v6  ;;  %v5857_v15 = vpop.f32.mrb[58].mxu1 }
 0x260   : > { %v7834_v63 = vadd.f32 %v7782_v0, %v5467_v5  ;;  %v2268_v10 = vmul.f32 %v6021_v11, %v7831_v37  ;;  %v6029_v51 = vadd.f32 %v6028_v43, %v5857_v15  ;;  %v2163_v29 = vpop.f32.mrb[59].mxu1 }
 0x261   : > { %v2266_v0 = vmul.f32 %v6025_v54, %v7831_v37  ;;  %v6033_v56 = vadd.f32 %v6032_v46, %v2163_v29 }
 0x262   : > { %v5468_v26 = vpop.f32.mrb[68].mxu0  ;;  %v2295_v8 = vadd.f32 %v7840_v3, %v2268_v10  ;;  %v2269_v17 = vmul.f32 %v6029_v51, %v7831_v37 }
 0x263   : > { %v5469_v49 = vpop.f32.mrb[69].mxu0  ;;  %v2293_v31 = vadd.f32 %v7840_v3, %v2266_v0  ;;  %v2267_v43 = vmul.f32 %v6033_v56, %v7831_v37 }
 0x264   : > { %v5470_v44 = vadd.f32 %v5469_v49, %v5468_v26  ;;  %v5471_v59 = vpop.f32.mrb[70].mxu0  ;;  %v7855_v46 = vmax.f32 %v2295_v8, 0.0  ;;  %v2296_v36 = vadd.f32 %v7840_v3, %v2269_v17  ;;  %v6414_v17 = vld [vmem:[#allocation9] sm:$0xff]  }
 0x265   : > { %v5472_v33 = vpop.f32.mrb[71].mxu0  ;;  %v2313_v39 = vmax.f32 %v2293_v31, 0.0  ;;  %v2294_v19 = vadd.f32 %v7840_v3, %v2267_v43  ;;  %v5860_v35 = vpop.f32.mrb[0].mxu1 }
 0x266   : > { %v5473_v18 = vadd.f32 %v5472_v33, %v5471_v59  ;;  %v7853_v42 = vadd.f32 %v7789_v50, %v5470_v44  ;;  %v2545_v16 = vrot.slane %v7855_v46, 7  ;;  %v7867_v61 = vmax.f32 %v2296_v36, 0.0  ;;  %v2176_v52 = vpop.f32.mrb[1].mxu1 }
 0x267   : > { %v6036_v50 = vadd.f32 %v6035_v13, %v5860_v35  ;;  %v2605_v27 = vrot.slane %v7855_v46, 1  ;;  %v7873_v57 = vsel %vm7857_vm12, %v2313_v39, 0.0  ;;  %v2314_v25 = vmax.f32 %v2294_v19, 0.0  ;;  %v5861_v60 = vpop.f32.mrb[2].mxu1 }
 0x268   : > { %v7864_v53 = vadd.f32 %v7792_v32, %v5473_v18  ;;  %v6039_v21 = vadd.f32 %v7809_v7, %v2176_v52  ;;  %v2542_v32 = vrot.slane %v7873_v57, 7  ;;  %v2602_v12 = vrot.slane %v7873_v57, 1  ;;  %v2179_v28 = vpop.f32.mrb[3].mxu1 }
 0x269   : > { %v2546_v34 = vrot.slane %v7867_v61, 7  ;;  %v2272_v13 = vmul.f32 %v6036_v50, %v7831_v37  ;;  %v7882_v2 = vsel %vm7857_vm12, %v2314_v25, 0.0  ;;  %v7884_v11 = vpack.c.bf16 %v2314_v25, %v2313_v39 }
 0x26a   : > { %v5474_v30 = vpop.f32.mrb[72].mxu0  ;;  %v2270_v7 = vmul.f32 %v6039_v21, %v7831_v37  ;;  %v6042_v6 = vadd.f32 %v7816_v23, %v5861_v60  ;;  %v2543_v26 = vrot.slane %v7882_v2, 7  ;;  %v2603_v10 = vrot.slane %v7882_v2, 1 }
 0x26b   : > { %v5475_v5 = vpop.f32.mrb[73].mxu0  ;;  %v2547_v15 = vsel %vm588_vm2, %v2545_v16, %v2546_v34  ;;  %v2299_v51 = vadd.f32 %v7840_v3, %v2272_v13  ;;  %v6045_v56 = vadd.f32 %v7812_v14, %v2179_v28  ;;  %v7902_v59 = vpack.c.bf16 %v7867_v61, %v7855_v46  ;;  %v6417_v14 = vld [vmem:[#allocation9 + $0x48] sm:$0xff]  }
 0x26c   : > { %v5477_v54 = vpop.f32.mrb[74].mxu0  ;;  %v7892_v49 = vpack.c.bf16 %v2547_v15, %v2545_v16  ;;  %v2297_v0 = vadd.f32 %v7840_v3, %v2270_v7  ;;  %v2273_v38 = vmul.f32 %v6042_v6, %v7831_v37  ;;  %v2544_v23 = vsel %vm588_vm2, %v2542_v32, %v2543_v26  ;;  %v6421_v26 = vld [vmem:[#allocation9 + $0x50] sm:$0xff]  }
 0x26d   : > { %v5478_v29 = vpop.f32.mrb[75].mxu0  ;;  %v7898_v44 = vmax.f32 %v2299_v51, 0.0  ;;  %v5476_v8 = vadd.f32 %v5475_v5, %v5474_v30  ;;  %v7904_v33 = vpack.c.bf16 %v2544_v23, %v2542_v32  ;;  %v2271_v18 = vmul.f32 %v6045_v56, %v7831_v37  ;;  %v5864_v36 = vpop.f32.mrb[4].mxu1  ;;  %3022 = vmatprep.mubr.bf16.mxu0 %v7902_v59  ;;  %v6418_v5 = vld [vmem:[#allocation9 + $0x8] sm:$0xff]  }
 0x26e   : > { %v7906_v31 = vmax.f32 %v2297_v0, 0.0  ;;  %v2300_v43 = vadd.f32 %v7840_v3, %v2273_v38  ;;  %v6048_v19 = vadd.f32 %v7826_v45, %v5864_v36  ;;  %v2606_v46 = vrot.slane %v7867_v61, 1  ;;  %v2192_v35 = vpop.f32.mrb[5].mxu1  ;;  %5057 = vmatmul.mubr.msk.bf16.vlgmr.msra.gmra.mrb[84].mxu0 %vm7229_vm7, %v7892_v49 }
 0x26f   : > { %v2611_v39 = vrot.slane %v7898_v44, 1  ;;  %v5479_v16 = vadd.f32 %v5478_v29, %v5477_v54  ;;  %v2298_v25 = vadd.f32 %v7840_v3, %v2271_v18  ;;  %v6051_v21 = vadd.f32 %v7819_v62, %v2192_v35  ;;  %v5865_v60 = vpop.f32.mrb[6].mxu1  ;;  %5591 = vmatpush3.bf16.msra.mxu0 %v6414_v17  ;;  %v6422_v18 = vld [vmem:[#allocation9 + $0x10] sm:$0xff]  }
 0x270   : > { %v2608_v50 = vrot.slane %v7906_v31, 1  ;;  %v7915_v52 = vmax.f32 %v2300_v43, 0.0  ;;  %v2276_v45 = vmul.f32 %v6048_v19, %v7831_v37  ;;  %v2607_v61 = vsel %vm601_vm5, %v2605_v27, %v2606_v46  ;;  %v2195_v34 = vpop.f32.mrb[7].mxu1  ;;  %5592 = vmatprep.subr.bf16.mxu0 %v6417_v14 }
 0x271   : > { %v6054_v32 = vadd.f32 %v7834_v63, %v5865_v60  ;;  %v6059_v28 = vadd.f32 %v7795_v58, %v5476_v8  ;;  %v2318_v6 = vmax.f32 %v2298_v25, 0.0  ;;  %v7927_v54 = vpack.c.bf16 %v2606_v46, %v2607_v61  ;;  %v6425_v25 = vld [vmem:[#allocation9 + $0x58] sm:$0xff]  }
 0x272   : > { %v5480_v30 = vpop.f32.mrb[76].mxu0  ;;  %v2552_v7 = vrot.slane %v7915_v52, 7  ;;  %v2274_v62 = vmul.f32 %v6051_v21, %v7831_v37  ;;  %v2303_v27 = vadd.f32 %v7840_v3, %v2276_v45  ;;  %v6057_v51 = vadd.f32 %v7822_v48, %v2195_v34  ;;  %v6416_v45 = vld [vmem:[#allocation9 + $0x88] sm:$0xff]  }
 0x273   : > { %v5481_v13 = vpop.f32.mrb[77].mxu0  ;;  %v2277_v63 = vmul.f32 %v6054_v32, %v7831_v37  ;;  %v2549_v0 = vrot.slane %v2318_v6, 7  ;;  %v2609_v38 = vrot.slane %v2318_v6, 1  ;;  %5890 = vmatprep.mubr.msk.bf16.mxu1 %vm7241_vm8, %v7927_v54  ;;  %v7940_v23 = vpack.c.bf16 %v2318_v6, %v7906_v31  ;;  %5593 = vmatpush3.bf16.msra.mxu0 %v6418_v5 }
 0x274   : > { %v5483_v15 = vpop.f32.mrb[78].mxu0  ;;  %v7933_v29 = vadd.f32 %v5481_v13, %v5480_v30  ;;  %v2301_v56 = vadd.f32 %v7840_v3, %v2274_v62  ;;  %v7942_v8 = vmax.f32 %v2303_v27, 0.0  ;;  %v2275_v48 = vmul.f32 %v6057_v51, %v7831_v37  ;;  %5594 = vmatprep.subr.bf16.mxu0 %v6421_v26 }
 0x275   : > { %v5484_v58 = vpop.f32.mrb[79].mxu0  ;;  %v2304_v17 = vadd.f32 %v7840_v3, %v2277_v63  ;;  %v2548_v43 = vrot.slane %v7906_v31, 7  ;;  %v2610_v36 = vsel %vm601_vm5, %v2608_v50, %v2609_v38  ;;  %3030 = vmatprep.mubr.bf16.mxu0 %v7940_v23  ;;  %v5868_v19 = vpop.f32.mrb[8].mxu1  ;;  %v6065_v35 = vadd.f32 %v7798_v4, %v5479_v16 }
 0x276   : > { %v7948_v14 = vmax.f32 %v2301_v56, 0.0  ;;  %v7951_v46 = vadd.f32 %v5484_v58, %v5483_v15  ;;  %v7954_v21 = vpack.c.bf16 %v2609_v38, %v2610_v36  ;;  %v2617_v60 = vrot.slane %v7942_v8, 1  ;;  %v2208_v50 = vpop.f32.mrb[9].mxu1  ;;  %v6429_v38 = vld [vmem:[#allocation9 + $0x60] sm:$0xff]  }
 0x277   : > { %v7957_v31 = vmax.f32 %v2304_v17, 0.0  ;;  %v2302_v30 = vadd.f32 %v7840_v3, %v2275_v48  ;;  %v6060_v32 = vadd.f32 %v6059_v28, %v5868_v19  ;;  %v6063_v34 = vadd.f32 %v7853_v42, %v2208_v50  ;;  %v5869_v4 = vpop.f32.mrb[10].mxu1  ;;  %5595 = vmatpush3.bf16.msra.mxu0 %v6422_v18  ;;  %v6426_v28 = vld [vmem:[#allocation9 + $0x18] sm:$0xff]   ;;  %v6419_v18 = vld [vmem:[#allocation9 + $0x90] sm:$0xff]  }
 0x278   : > { %v2614_v61 = vrot.slane %v7948_v14, 1  ;;  %v2550_v13 = vsel %vm588_vm2, %v2548_v43, %v2549_v0  ;;  %5891 = vmatmul.mubr.msk.bf16.vlgmr.msra.gmra.mrb[60].mxu1 %vm7241_vm8, %v7954_v21  ;;  %v6066_v15 = vadd.f32 %v6065_v35, %v5869_v4  ;;  %v2211_v26 = vpop.f32.mrb[11].mxu1  ;;  %v7975_v51 = vpack.c.bf16 %v7915_v52, %v7898_v44  ;;  %5596 = vmatprep.subr.bf16.mxu0 %v6425_v25 }
 0x279   : > { %v2558_v5 = vrot.slane %v7957_v31, 7  ;;  %v7964_v6 = vmax.f32 %v2302_v30, 0.0  ;;  %v7966_v62 = vpack.c.bf16 %v2550_v13, %v2548_v43  ;;  %v2280_v42 = vmul.f32 %v6060_v32, %v7831_v37  ;;  %5907 = vmatpush3.bf16.msra.mxu1 %v7754_v20 }
 0x27a   : > { %v5486_v16 = vpop.f32.mrb[80].mxu0  ;;  %v2278_v63 = vmul.f32 %v6063_v34, %v7831_v37  ;;  %v2612_v58 = vrot.slane %v7915_v52, 1  ;;  %v2281_v17 = vmul.f32 %v6066_v15, %v7831_v37  ;;  %v6069_v48 = vadd.f32 %v7864_v53, %v2211_v26  ;;  %5908 = vmatprep.subr.bf16.mxu1 %v6416_v45  ;;  %v6430_v34 = vld [vmem:[#allocation9 + $0x20] sm:$0xff]  }
 0x27b   : > { %v5487_v27 = vpop.f32.mrb[81].mxu0  ;;  %v2555_v56 = vrot.slane %v7964_v6, 7  ;;  %5061 = vmatmul.mubr.msk.bf16.gmra.mrb[88].mxu0 %vm7229_vm7, %v7966_v62  ;;  %v2307_v19 = vadd.f32 %v7840_v3, %v2280_v42  ;;  %v6074_v25 = vadd.f32 %v7800_v1, %v7933_v29  ;;  %v2615_v1 = vrot.slane %v7964_v6, 1 }
 0x27c   : > { %v5489_v0 = vpop.f32.mrb[82].mxu0  ;;  %v5488_v43 = vadd.f32 %v5487_v27, %v5486_v16  ;;  %v2305_v20 = vadd.f32 %v7840_v3, %v2278_v63  ;;  %3038 = vmatprep.mubr.bf16.mxu0 %v7975_v51  ;;  %v2613_v35 = vsel %vm601_vm5, %v2611_v39, %v2612_v58  ;;  %v2308_v30 = vadd.f32 %v7840_v3, %v2281_v17 }
 0x27d   : > { %v5490_v36 = vpop.f32.mrb[83].mxu0  ;;  %v7994_v53 = vpack.c.bf16 %v2612_v58, %v2613_v35  ;;  %v2279_v50 = vmul.f32 %v6069_v48, %v7831_v37  ;;  %5597 = vmatpush3.bf16.msra.mxu0 %v6426_v28  ;;  %v7998_v13 = vmax.f32 %v2307_v19, 0.0  ;;  %5909 = vmatpush3.bf16.msra.mxu1 %v6416_v45  ;;  %v5872_v16 = vpop.f32.mrb[12].mxu1  ;;  %v2551_v39 = vrot.slane %v7898_v44, 7  ;;  %v6420_v28 = vld [vmem:[#allocation9 + $0x98] sm:$0xff]   ;;  %v6436_v19 = vld [vmem:[#allocation9 + $0x28] sm:$0xff]  }
 0x27e   : > { %v6071_v32 = vadd.f32 %v7804_v41, %v5488_v43  ;;  %v8000_v4 = vmax.f32 %v2305_v20, 0.0  ;;  %5598 = vmatprep.subr.bf16.mxu0 %v6429_v38  ;;  %v8004_v29 = vmax.f32 %v2308_v30, 0.0  ;;  %v2224_v26 = vpop.f32.mrb[13].mxu1  ;;  %5910 = vmatprep.subr.bf16.mxu1 %v6419_v18  ;;  %v5491_v27 = vadd.f32 %v5490_v36, %v5489_v0  ;;  %v6435_v38 = vld [vmem:[#allocation9 + $0x68] sm:$0xff]   ;;  %v6472_v30 = vld [vmem:[%s7094_s7 + $0x18] sm:$0xff]  }
 0x27f   : > { %5894 = vmatprep.mubr.msk.bf16.mxu1 %vm7241_vm8, %v7994_v53  ;;  %v2306_v41 = vadd.f32 %v7840_v3, %v2279_v50  ;;  %v2623_v45 = vrot.slane %v7998_v13, 1  ;;  %v6075_v42 = vadd.f32 %v6074_v25, %v2224_v26  ;;  %v2553_v63 = vsel %vm588_vm2, %v2551_v39, %v2552_v7  ;;  %v5873_v58 = vpop.f32.mrb[14].mxu1  ;;  %v6441_v25 = vld [vmem:[#allocation9 + $0x70] sm:$0xff]  }
 0x280   : > { %v6072_v15 = vadd.f32 %v6071_v32, %v5872_v16  ;;  %v2620_v44 = vrot.slane %v8000_v4, 1  ;;  %v2564_v17 = vrot.slane %v8004_v29, 7  ;;  %v8019_v0 = vpack.c.bf16 %v2553_v63, %v2551_v39  ;;  %v2227_v36 = vpop.f32.mrb[15].mxu1  ;;  %v6445_v63 = vld [vmem:[#allocation9 + $0x78] sm:$0xff]  }
 0x281   : > { %v8016_v48 = vmax.f32 %v2306_v41, 0.0  ;;  %5599 = vmatpush3.bf16.msra.mxu0 %v6430_v34  ;;  %v2282_v20 = vmul.f32 %v6075_v42, %v7831_v37  ;;  %v2616_v52 = vsel %vm601_vm5, %v2614_v61, %v2615_v1  ;;  %v6077_v7 = vadd.f32 %v7806_v24, %v5491_v27  ;;  %5911 = vmatpush3.bf16.msra.mxu1 %v6419_v18  ;;  %v6423_v18 = vld [vmem:[#allocation9 + $0xa0] sm:$0xff]  }
 0x282   : > { %v2284_v43 = vmul.f32 %v6072_v15, %v7831_v37  ;;  %v8028_v35 = vpack.c.bf16 %v7964_v6, %v7948_v14  ;;  %v8043_v24 = vpack.c.bf16 %v2615_v1, %v2616_v52  ;;  %v2618_v61 = vrot.slane %v7957_v31, 1  ;;  %5912 = vmatprep.subr.bf16.mxu1 %v6420_v28  ;;  %5600 = vmatprep.subr.bf16.mxu0 %v6435_v38 }
 0x283   : > { %v2561_v50 = vrot.slane %v8016_v48, 7  ;;  %5065 = vmatmul.mubr.msk.bf16.gmra.mrb[92].mxu0 %vm7229_vm7, %v8019_v0  ;;  %v2309_v47 = vadd.f32 %v7840_v3, %v2282_v20  ;;  %v6078_v34 = vadd.f32 %v6077_v7, %v5873_v58  ;;  %v6080_v16 = vadd.f32 %v7802_v40, %v7951_v46  ;;  %v6442_v40 = vld [vmem:[#allocation9 + $0x30] sm:$0xff]   ;;  %v6447_v7 = vld [vmem:[#allocation9 + $0x38] sm:$0xff]  }
 0x284   : > { %v8038_v32 = vadd.f32 %v7840_v3, %v2284_v43  ;;  %3046 = vmatprep.mubr.bf16.mxu0 %v8028_v35  ;;  %v2554_v39 = vrot.slane %v7948_v14, 7  ;;  %5895 = vmatmul.mubr.msk.bf16.gmra.mrb[64].mxu1 %vm7241_vm8, %v8043_v24  ;;  %v2619_v1 = vsel %vm601_vm5, %v2617_v60, %v2618_v61  ;;  %v2621_v15 = vrot.slane %v8016_v48, 1  ;;  %v6424_v43 = vld [vmem:[#allocation9 + $0xa8] sm:$0xff]  }
 0x285   : > { %v8061_v26 = vpack.c.bf16 %v7957_v31, %v7942_v8  ;;  %5601 = vmatpush3.bf16.msra.mxu0 %v6436_v19  ;;  %v8063_v14 = vmax.f32 %v2309_v47, 0.0  ;;  %v2285_v46 = vmul.f32 %v6078_v34, %v7831_v37  ;;  %v8066_v27 = vpack.c.bf16 %v2618_v61, %v2619_v1  ;;  %5913 = vmatpush3.bf16.msra.mxu1 %v6420_v28  ;;  %v6427_v31 = vld [vmem:[#allocation9 + $0xb0] sm:$0xff]   ;;  %v8111_v47 = vld [vmem:[#allocation11] sm:$0xff]  }
 0x286   : > { %v2331_v41 = vmax.f32 %v8038_v32, 0.0  ;;  %v6081_v42 = vadd.f32 %v6080_v16, %v2227_v36  ;;  %5602 = vmatprep.subr.bf16.mxu0 %v6441_v25  ;;  %v2556_v60 = vsel %vm588_vm2, %v2554_v39, %v2555_v56  ;;  %v2622_v58 = vsel %vm601_vm5, %v2620_v44, %v2621_v15  ;;  %5914 = vmatprep.subr.bf16.mxu1 %v6423_v18 }
 0x287   : > { %v2624_v38 = vrot.slane %v8004_v29, 1  ;;  %v2557_v19 = vrot.slane %v7942_v8, 7  ;;  %v2626_v20 = vrot.slane %v8063_v14, 1  ;;  %v2312_v52 = vadd.f32 %v7840_v3, %v2285_v46  ;;  %5898 = vmatprep.mubr.msk.bf16.mxu1 %vm7241_vm8, %v8066_v27 }
 0x288   : > { %v2283_v6 = vmul.f32 %v6081_v42, %v7831_v37  ;;  %v8080_v28 = vpack.c.bf16 %v2556_v60, %v2554_v39  ;;  %v8082_v56 = vpack.c.bf16 %v2621_v15, %v2622_v58  ;;  %v8090_v36 = vpack.c.bf16 %v8016_v48, %v8000_v4 }
 0x289   : > { %v2625_v44 = vsel %vm601_vm5, %v2623_v45, %v2624_v38  ;;  %v2559_v8 = vsel %vm588_vm2, %v2557_v19, %v2558_v5  ;;  %5603 = vmatpush3.bf16.msra.mxu0 %v6442_v40  ;;  %v2332_v25 = vmax.f32 %v2312_v52, 0.0  ;;  %5915 = vmatpush3.bf16.msra.mxu1 %v6423_v18  ;;  %v2604_v5 = vsel %vm601_vm5, %v2602_v12, %v2603_v10  ;;  %v6432_v52 = vld [vmem:[#allocation9 + $0x180] sm:$0xff]  }
 0x28a   : > { %v2310_v32 = vadd.f32 %v7840_v3, %v2283_v6  ;;  %v8093_v37 = vpack.c.bf16 %v2624_v38, %v2625_v44  ;;  %v8095_v61 = vpack.c.bf16 %v2559_v8, %v2557_v19  ;;  %5604 = vmatprep.subr.bf16.mxu0 %v6445_v63  ;;  %5916 = vmatprep.subr.bf16.mxu1 %v6424_v43  ;;  %v2560_v3 = vrot.slane %v8000_v4, 7  ;;  %v6431_v19 = vld [vmem:[#allocation9 + $0x1c0] sm:$0xff]   ;;  %v6433_v6 = vld [vmem:[#allocation9 + $0x1c8] sm:$0xff]   ;;  %v6437_v8 = vld [vmem:[#allocation9 + $0x1d0] sm:$0xff]  }
 0x28b   : > { %5069 = vmatmul.mubr.msk.bf16.gmra.mrb[96].mxu0 %vm7229_vm7, %v8080_v28  ;;  %v8108_v45 = vpack.c.bf16 %v8004_v29, %v7998_v13  ;;  %v2563_v18 = vrot.slane %v7998_v13, 7  ;;  %v8113_v34 = vpack.c.bf16 %v2332_v25, %v2331_v41  ;;  %v5146_v57 = vpack.c.bf16 %v2603_v10, %v2604_v5  ;;  %v6428_v29 = vld [vmem:[#allocation9 + $0xb8] sm:$0xff]   ;;  %v6434_v44 = vld [vmem:[#allocation9 + $0x188] sm:$0xff]  }
 0x28c   : > { %v2330_v16 = vmax.f32 %v2310_v32, 0.0  ;;  %3054 = vmatprep.mubr.bf16.mxu0 %v8061_v26  ;;  %v2566_v12 = vrot.slane %v8063_v14, 7  ;;  %5899 = vmatmul.mubr.msk.bf16.gmra.mrb[68].mxu1 %vm7241_vm8, %v8082_v56  ;;  %v2562_v13 = vsel %vm588_vm2, %v2560_v3, %v2561_v50  ;;  %v2520_v39 = vsel %vm8032_vm13, %v2331_v41, 0.0  ;;  %v6443_v32 = vld [vmem:[#allocation9 + $0x1e0] sm:$0xff]   ;;  %v6446_v5 = vld [vmem:[#allocation9 + $0x1e8] sm:$0xff]  }
 0x28d   : > { %v2565_v4 = vsel %vm588_vm2, %v2563_v18, %v2564_v17  ;;  %5605 = vmatpush3.bf16.msra.mxu0 %v6447_v7  ;;  %v2521_v2 = vsel %vm8032_vm13, %v2332_v25, 0.0  ;;  %5902 = vmatprep.mubr.msk.bf16.mxu1 %vm7241_vm8, %v8093_v37  ;;  %v8135_v1 = vpack.c.bf16 %v2562_v13, %v2560_v3  ;;  %v2569_v41 = vrot.slane %v2520_v39, 7  ;;  %v6438_v7 = vld [vmem:[#allocation9 + $0x190] sm:$0xff]   ;;  %v6439_v25 = vld [vmem:[#allocation9 + $0x1d8] sm:$0xff]   ;;  %v6454_v13 = vld [vmem:[#allocation9 + $0x200] sm:$0xff]  }
 0x28e   : > { %v2567_v10 = vrot.slane %v2330_v16, 7  ;;  %5917 = vmatpush3.bf16.msra.mxu1 %v6424_v43  ;;  %v2627_v48 = vrot.slane %v2330_v16, 1  ;;  %v8137_v50 = vpack.c.bf16 %v2565_v4, %v2563_v18  ;;  %v8140_v17 = vpack.c.bf16 %v2330_v16, %v8063_v14  ;;  %5970 = vmatprep.subr.bf16.mxu0 %v8111_v47  ;;  %v6449_v3 = vld [vmem:[#allocation9 + $0x1f0] sm:$0xff]   ;;  %v6455_v18 = vld [vmem:[#allocation11 + $0x8] sm:$0xff]  }
 0x28f   : > { %5918 = vmatprep.subr.bf16.mxu1 %v6427_v31  ;;  %v2570_v15 = vrot.slane %v2521_v2, 7  ;;  %v2629_v42 = vrot.slane %v2520_v39, 1  ;;  %v2630_v63 = vrot.slane %v2521_v2, 1  ;;  %v6450_v16 = vld [vmem:[#allocation9 + $0x1b0] sm:$0xff]   ;;  %v6463_v39 = vld [vmem:[#allocation11 + $0x28] sm:$0xff]   ;;  %v6462_v2 = vld [vmem:[#allocation9 + $0x220] sm:$0xff]  }
 0x290   : > { %v2628_v40 = vsel %vm601_vm5, %v2626_v20, %v2627_v48  ;;  %v2568_v46 = vsel %vm588_vm2, %v2566_v12, %v2567_v10  ;;  %v6458_v4 = vld [vmem:[#allocation9 + $0x210] sm:$0xff]   ;;  %v6467_v10 = vld [vmem:[#allocation11 + $0x38] sm:$0xff]  }
 0x291   : > { %v8145_v60 = vpack.c.bf16 %v2627_v48, %v2628_v40  ;;  %v8147_v58 = vpack.c.bf16 %v2568_v46, %v2566_v12  ;;  %v2571_v38 = vsel %vm588_vm2, %v2569_v41, %v2570_v15  ;;  %v2631_v14 = vsel %vm601_vm5, %v2629_v42, %v2630_v63  ;;  %v6452_v12 = vld [vmem:[#allocation9 + $0x1b8] sm:$0xff]  }
 0x292   : > { %5919 = vmatpush3.bf16.msra.mxu1 %v6427_v31  ;;  %v8150_v43 = vpack.c.bf16 %v2571_v38, %v2569_v41  ;;  %v8156_v20 = vpack.c.bf16 %v2630_v63, %v2631_v14  ;;  %v6444_v31 = vld [vmem:[#allocation9 + $0x1a0] sm:$0xff]  }
 0x293   : > { %5073 = vmatmul.mubr.msk.bf16.gmra.mrb[100].mxu0 %vm7229_vm7, %v8095_v61  ;;  %5920 = vmatprep.subr.bf16.mxu1 %v6428_v29 }
 0x294   : > { %3062 = vmatprep.mubr.bf16.mxu0 %v8090_v36  ;;  %5903 = vmatmul.mubr.msk.bf16.gmra.mrb[72].mxu1 %vm7241_vm8, %v8145_v60 }
 0x295   : > { %5922 = vmatprep.mubr.msk.bf16.mxu1 %vm7241_vm8, %v5146_v57  ;;  %v6457_v57 = vld [vmem:[#allocation11 + $0x10] sm:$0xff]  }
 0x296   : > { %5921 = vmatpush3.bf16.msra.mxu1 %v6428_v29 }
 0x297   : > { %5670 = vmatprep.subr.bf16.mxu1 %v6431_v19 }
 0x29b   : > { %5077 = vmatmul.mubr.msk.bf16.gmra.mrb[104].mxu0 %vm7229_vm7, %v8135_v1 }
 0x29c   : > { %3070 = vmatprep.mubr.bf16.mxu0 %v8108_v45  ;;  %5923 = vmatmul.mubr.msk.bf16.vlgmr.msra.gmra.mrb[60].mxu1 %vm7241_vm8, %v7927_v54  ;;  %v6440_v54 = vld [vmem:[#allocation9 + $0x198] sm:$0xff]  }
 0x29d   : > { %5926 = vmatprep.mubr.msk.bf16.mxu1 %vm7241_vm8, %v7954_v21  ;;  %5671 = vmatpush3.bf16.msra.mxu1 %v6432_v52 }
 0x29e   : > { %5672 = vmatprep.subr.bf16.mxu1 %v6433_v6 }
 0x2a1   : > { %5673 = vmatpush3.bf16.msra.mxu1 %v6434_v44 }
 0x2a2   : > { %5674 = vmatprep.subr.bf16.mxu1 %v6437_v8 }
 0x2a3   : > { %5081 = vmatmul.mubr.msk.bf16.gmra.mrb[108].mxu0 %vm7229_vm7, %v8137_v50 }
 0x2a4   : > { %3078 = vmatprep.mubr.bf16.mxu0 %v8140_v17  ;;  %5927 = vmatmul.mubr.msk.bf16.gmra.mrb[64].mxu1 %vm7241_vm8, %v7994_v53 }
 0x2a5   : > { %5930 = vmatprep.mubr.msk.bf16.mxu1 %vm7241_vm8, %v8043_v24  ;;  %5675 = vmatpush3.bf16.msra.mxu1 %v6438_v7 }
 0x2a6   : > { %5676 = vmatprep.subr.bf16.mxu1 %v6439_v25 }
 0x2a9   : > { %5677 = vmatpush3.bf16.msra.mxu1 %v6440_v54 }
 0x2aa   : > { %5678 = vmatprep.subr.bf16.mxu1 %v6443_v32 }
 0x2ab   : > { %5085 = vmatmul.mubr.msk.bf16.gmra.mrb[112].mxu0 %vm7229_vm7, %v8147_v58 }
 0x2ac   : > { %5112 = vmatprep.mubr.msk.bf16.mxu0 %vm5110_vm14, %v7884_v11  ;;  %5931 = vmatmul.mubr.msk.bf16.gmra.mrb[68].mxu1 %vm7241_vm8, %v8066_v27  ;;  %v6451_v11 = vld [vmem:[#allocation9 + $0x1f8] sm:$0xff]  }
 0x2ad   : > { %5934 = vmatprep.mubr.msk.bf16.mxu1 %vm7241_vm8, %v8082_v56  ;;  %5679 = vmatpush3.bf16.msra.mxu1 %v6444_v31 }
 0x2ae   : > { %5680 = vmatprep.subr.bf16.mxu1 %v6446_v5 }
 0x2b1   : > { %5681 = vmatpush3.bf16.msra.mxu1 %v6448_v55 }
 0x2b2   : > { %5682 = vmatprep.subr.bf16.mxu1 %v6449_v3 }
 0x2b3   : > { %5116 = vmatmul.mubr.msk.bf16.vlgmr.msra.gmra.mrb[116].mxu0 %vm7229_vm7, %v7904_v33  ;;  %v6459_v33 = vld [vmem:[#allocation11 + $0x18] sm:$0xff]  }
 0x2b4   : > { %3368 = vmatprep.mubr.bf16.mxu0 %v7902_v59  ;;  %5971 = vmatpush3.bf16.msra.mxu0 %v8111_v47  ;;  %v6456_v59 = vld [vmem:[#allocation9 + $0x208] sm:$0xff]   ;;  %v6461_v47 = vld [vmem:[#allocation11 + $0x20] sm:$0xff]  }
 0x2b5   : > { %5935 = vmatmul.mubr.msk.bf16.gmra.mrb[72].mxu1 %vm7241_vm8, %v8093_v37  ;;  %5972 = vmatprep.subr.bf16.mxu0 %v6455_v18 }
 0x2b6   : > { %5683 = vmatpush3.bf16.msra.mxu1 %v6450_v16  ;;  %3771 = vmatprep.mubr.bf16.mxu1 %v7940_v23 }
 0x2b7   : > { %5684 = vmatprep.subr.bf16.mxu1 %v6451_v11 }
 0x2b8   : > { %5973 = vmatpush3.bf16.msra.mxu0 %v6455_v18 }
 0x2b9   : > { %5974 = vmatprep.subr.bf16.mxu0 %v6457_v57 }
 0x2ba   : > { %5685 = vmatpush3.bf16.msra.mxu1 %v6452_v12 }
 0x2bb   : > { %5120 = vmatmul.mubr.msk.bf16.gmra.mrb[120].mxu0 %vm7229_vm7, %v7892_v49  ;;  %5938 = vmatprep.subr.bf16.mxu1 %v6454_v13  ;;  %v6460_v49 = vld [vmem:[#allocation9 + $0x218] sm:$0xff]  }
 0x2bc   : > { %3376 = vmatprep.mubr.bf16.mxu0 %v7940_v23  ;;  %5975 = vmatpush3.bf16.msra.mxu0 %v6457_v57  ;;  %v6465_v23 = vld [vmem:[#allocation11 + $0x30] sm:$0xff]  }
 0x2bd   : > { %5172 = vmatmul.mubr.msk.bf16.vlgmr.msra.gmra.mrb[76].mxu1 %vm7229_vm7, %v7966_v62  ;;  %5976 = vmatprep.subr.bf16.mxu0 %v6459_v33 }
 0x2be   : > { %3779 = vmatprep.mubr.bf16.mxu1 %v7975_v51  ;;  %5939 = vmatpush3.bf16.msra.mxu1 %v6454_v13 }
 0x2bf   : > { %5940 = vmatprep.subr.bf16.mxu1 %v6456_v59 }
 0x2c0   : > { %5977 = vmatpush3.bf16.msra.mxu0 %v6459_v33 }
 0x2c1   : > { %5978 = vmatprep.subr.bf16.mxu0 %v6461_v47 }
 0x2c2   : > { %5941 = vmatpush3.bf16.msra.mxu1 %v6456_v59 }
 0x2c3   : > { %5124 = vmatmul.mubr.msk.bf16.gmra.mrb[124].mxu0 %vm7229_vm7, %v7966_v62  ;;  %5942 = vmatprep.subr.bf16.mxu1 %v6458_v4  ;;  %v6464_v62 = vld [vmem:[#allocation9 + $0x228] sm:$0xff]  }
 0x2c4   : > { %3384 = vmatprep.mubr.bf16.mxu0 %v7975_v51  ;;  %5979 = vmatpush3.bf16.msra.mxu0 %v6461_v47  ;;  %v6466_v51 = vld [vmem:[#allocation9 + $0x230] sm:$0xff]  }
 0x2c5   : > { %5176 = vmatmul.mubr.msk.bf16.gmra.mrb[80].mxu1 %vm7229_vm7, %v8019_v0  ;;  %5980 = vmatprep.subr.bf16.mxu0 %v6463_v39 }
 0x2c6   : > { %3787 = vmatprep.mubr.bf16.mxu1 %v8028_v35  ;;  %5943 = vmatpush3.bf16.msra.mxu1 %v6458_v4 }
 0x2c7   : > { %5944 = vmatprep.subr.bf16.mxu1 %v6460_v49 }
 0x2c8   : > { %5981 = vmatpush3.bf16.msra.mxu0 %v6463_v39 }
 0x2c9   : > { %5982 = vmatprep.subr.bf16.mxu0 %v6465_v23 }
 0x2ca   : > { %5945 = vmatpush3.bf16.msra.mxu1 %v6460_v49 }
 0x2cb   : > { %5128 = vmatmul.mubr.msk.bf16.gmra.mrb[128].mxu0 %vm7229_vm7, %v8019_v0  ;;  %5946 = vmatprep.subr.bf16.mxu1 %v6462_v2  ;;  %v6468_v0 = vld [vmem:[#allocation9 + $0x238] sm:$0xff]  }
 0x2cc   : > { %3392 = vmatprep.mubr.bf16.mxu0 %v8028_v35  ;;  %5983 = vmatpush3.bf16.msra.mxu0 %v6465_v23  ;;  %v6469_v35 = vld [vmem:[%s7094_s7] sm:$0xff]  }
 0x2cd   : > { %5180 = vmatmul.mubr.msk.bf16.gmra.mrb[84].mxu1 %vm7229_vm7, %v8080_v28  ;;  %5984 = vmatprep.subr.bf16.mxu0 %v6467_v10 }
 0x2ce   : > { %3795 = vmatprep.mubr.bf16.mxu1 %v8061_v26  ;;  %5947 = vmatpush3.bf16.msra.mxu1 %v6462_v2 }
 0x2cf   : > { %5948 = vmatprep.subr.bf16.mxu1 %v6464_v62 }
 0x2d0   : > { %5985 = vmatpush3.bf16.msra.mxu0 %v6467_v10 }
 0x2d2   : > { %5949 = vmatpush3.bf16.msra.mxu1 %v6464_v62 }
 0x2d3   : > { %5132 = vmatmul.mubr.msk.bf16.gmra.mrb[132].mxu0 %vm7229_vm7, %v8080_v28  ;;  %5950 = vmatprep.subr.bf16.mxu1 %v6466_v51  ;;  %v6471_v28 = vld [vmem:[%s7094_s7 + $0x10] sm:$0xff]  }
 0x2d4   : > { %3400 = vmatprep.mubr.bf16.mxu0 %v8061_v26  ;;  %v6470_v26 = vld [vmem:[%s7094_s7 + $0x8] sm:$0xff]  }
 0x2d5   : > { %5184 = vmatmul.mubr.msk.bf16.gmra.mrb[88].mxu1 %vm7229_vm7, %v8095_v61 }
 0x2d6   : > { %3803 = vmatprep.mubr.bf16.mxu1 %v8090_v36  ;;  %5951 = vmatpush3.bf16.msra.mxu1 %v6466_v51 }
 0x2d7   : > { %5952 = vmatprep.subr.bf16.mxu1 %v6468_v0 }
 0x2da   : > { %5953 = vmatpush3.bf16.msra.mxu1 %v6468_v0 }
 0x2db   : > { %5136 = vmatmul.mubr.msk.bf16.gmra.mrb[136].mxu0 %vm7229_vm7, %v8095_v61  ;;  %v6474_v61 = vld [vmem:[%s7094_s7 + $0x28] sm:$0xff]  }
 0x2dc   : > { %3408 = vmatprep.mubr.bf16.mxu0 %v8090_v36  ;;  %v6473_v36 = vld [vmem:[%s7094_s7 + $0x20] sm:$0xff]  }
 0x2dd   : > { %5188 = vmatmul.mubr.msk.bf16.gmra.mrb[92].mxu1 %vm7229_vm7, %v8135_v1 }
 0x2de   : > { %3811 = vmatprep.mubr.bf16.mxu1 %v8108_v45 }
 0x2e3   : > { %5140 = vmatmul.mubr.msk.bf16.gmra.mrb[140].mxu0 %vm7229_vm7, %v8135_v1 }
 0x2e4   : > { %3416 = vmatprep.mubr.bf16.mxu0 %v8108_v45  ;;  %v6475_v45 = vld [vmem:[%s7094_s7 + $0x30] sm:$0xff]   ;;  %s6627_s7 = scalar_lea.vmem %s6626_s0, 2048 }
 0x2e5   : > { %5192 = vmatmul.mubr.msk.bf16.gmra.mrb[96].mxu1 %vm7229_vm7, %v8137_v50  ;;  %p6629_p0 = scmp.lt.s32.totalorder %s6627_s7, %s6621_s16 }
 0x2e6   : > { %3819 = vmatprep.mubr.bf16.mxu1 %v8140_v17 }
 0x2e7   : > { %p6630_p9 = por %p6629_p0, %p6628_p13 }
 0x2e9   : > { %p6631_p11 = pnand %p6630_p9, %p6624_p7 }
 0x2eb   : > { %5144 = vmatmul.mubr.msk.bf16.gmra.mrb[144].mxu0 %vm7229_vm7, %v8137_v50 }
 0x2ec   : > { %5986 = vmatprep.mubr.bf16.mxu0 %v6469_v35 }
 0x2ed   : > { %5196 = vmatmul.mubr.msk.bf16.gmra.mrb[100].mxu1 %vm7229_vm7, %v8147_v58 }
 0x2ee   : > { %5199 = vmatprep.mubr.msk.bf16.mxu1 %vm5197_vm15, %v8113_v34 }
 0x2f3   : > { %5987 = vmatmul.mubr.bf16.vlgmr.msra.gmra.mrb[148].mxu0 %v6470_v26 }
 0x2f4   : > { %5990 = vmatprep.mubr.bf16.mxu0 %v6471_v28 }
 0x2f5   : > { %5203 = vmatmul.mubr.msk.bf16.gmra.mrb[104].mxu1 %vm7229_vm7, %v8150_v43 }
 0x2f6   : > { %5954 = vmatprep.mubr.msk.bf16.mxu1 %vm7241_vm8, %v7954_v21 }
 0x2fb   : > { %5991 = vmatmul.mubr.bf16.gmra.mrb[152].mxu0 %v6472_v30 }
 0x2fc   : > { %5994 = vmatprep.mubr.bf16.mxu0 %v6473_v36 }
 0x2fd   : > { %5955 = vmatmul.mubr.msk.bf16.vlgmr.msra.gmra.mrb[60].mxu1 %vm7241_vm8, %v7994_v53 }
 0x2fe   : > { %5958 = vmatprep.mubr.msk.bf16.mxu1 %vm7241_vm8, %v8043_v24 }
 0x303   : > { %5995 = vmatmul.mubr.bf16.gmra.mrb[156].mxu0 %v6474_v61 }
 0x304   : > { %5998 = vmatprep.mubr.bf16.mxu0 %v6475_v45 }
 0x305   : > { %5959 = vmatmul.mubr.msk.bf16.gmra.mrb[64].mxu1 %vm7241_vm8, %v8066_v27 }
 0x306   : > { %5962 = vmatprep.mubr.msk.bf16.mxu1 %vm7241_vm8, %v8082_v56 }
 0x30b   : > { %5999 = vmatmul.mubr.bf16.gmra.mrb[160].mxu0 %v6476_v9 }
 0x30d   : > { %5963 = vmatmul.mubr.msk.bf16.gmra.mrb[68].mxu1 %vm7241_vm8, %v8093_v37 }
 0x30e   : > { %5966 = vmatprep.mubr.msk.bf16.mxu1 %vm7241_vm8, %v8145_v60 }
 0x315   : > { %5967 = vmatmul.mubr.msk.bf16.gmra.mrb[72].mxu1 %vm7241_vm8, %v8156_v20 }
 0x341   : > { %v5526_v21 = vpop.f32.mrb[84].mxu0 }
 0x342   : > { %v5527_v53 = vpop.f32.mrb[85].mxu0 }
 0x343   : > { %v5528_v24 = vadd.f32 %v5527_v53, %v5526_v21  ;;  %v5529_v27 = vpop.f32.mrb[86].mxu0 }
 0x344   : > { %v5530_v34 = vpop.f32.mrb[87].mxu0 }
 0x345   : > { %v5531_v56 = vadd.f32 %v5530_v34, %v5529_v27 }
 0x34e   : > { %v5532_v48 = vpop.f32.mrb[88].mxu0 }
 0x34f   : > { %v5533_v1 = vpop.f32.mrb[89].mxu0 }
 0x350   : > { %v5534_v50 = vadd.f32 %v5533_v1, %v5532_v48  ;;  %v5535_v29 = vpop.f32.mrb[90].mxu0 }
 0x351   : > { %v5536_v17 = vpop.f32.mrb[91].mxu0 }
 0x352   : > { %v5537_v37 = vadd.f32 %v5536_v17, %v5535_v29 }
 0x356   : > { %v5538_v41 = vpop.f32.mrb[92].mxu0 }
 0x357   : > { %v5539_v15 = vpop.f32.mrb[93].mxu0 }
 0x358   : > { %v8299_v40 = vadd.f32 %v5539_v15, %v5538_v41  ;;  %v5541_v46 = vpop.f32.mrb[94].mxu0 }
 0x359   : > { %v5542_v42 = vpop.f32.mrb[95].mxu0 }
 0x35a   : > { %v8301_v22 = vadd.f32 %v5542_v42, %v5541_v46 }
 0x35e   : > { %v5544_v63 = vpop.f32.mrb[96].mxu0 }
 0x35f   : > { %v5545_v60 = vpop.f32.mrb[97].mxu0 }
 0x360   : > { %v8303_v58 = vadd.f32 %v5545_v60, %v5544_v63  ;;  %v5547_v38 = vpop.f32.mrb[98].mxu0 }
 0x361   : > { %v5548_v43 = vpop.f32.mrb[99].mxu0 }
 0x362   : > { %v8305_v14 = vadd.f32 %v5548_v43, %v5547_v38 }
 0x366   : > { %v5550_v19 = vpop.f32.mrb[100].mxu0 }
 0x367   : > { %v5551_v20 = vpop.f32.mrb[101].mxu0 }
 0x368   : > { %v8307_v52 = vadd.f32 %v5551_v20, %v5550_v19  ;;  %v5553_v6 = vpop.f32.mrb[102].mxu0 }
 0x369   : > { %v5554_v44 = vpop.f32.mrb[103].mxu0 }
 0x36a   : > { %v8309_v8 = vadd.f32 %v5554_v44, %v5553_v6 }
 0x36e   : > { %v5556_v7 = vpop.f32.mrb[104].mxu0 }
 0x36f   : > { %v5557_v25 = vpop.f32.mrb[105].mxu0 }
 0x370   : > { %v8311_v54 = vadd.f32 %v5557_v25, %v5556_v7  ;;  %v5559_v32 = vpop.f32.mrb[106].mxu0 }
 0x371   : > { %v5560_v31 = vpop.f32.mrb[107].mxu0 }
 0x372   : > { %v8313_v5 = vadd.f32 %v5560_v31, %v5559_v32 }
 0x376   : > { %v5562_v55 = vpop.f32.mrb[108].mxu0 }
 0x377   : > { %v5563_v3 = vpop.f32.mrb[109].mxu0 }
 0x378   : > { %v8315_v18 = vadd.f32 %v5563_v3, %v5562_v55  ;;  %v5565_v16 = vpop.f32.mrb[110].mxu0 }
 0x379   : > { %v5566_v11 = vpop.f32.mrb[111].mxu0 }
 0x37a   : > { %v8317_v57 = vadd.f32 %v5566_v11, %v5565_v16 }
 0x37e   : > { %v5568_v12 = vpop.f32.mrb[112].mxu0 }
 0x37f   : > { %v5569_v13 = vpop.f32.mrb[113].mxu0 }
 0x380   : > { %v8319_v33 = vadd.f32 %v5569_v13, %v5568_v12  ;;  %v5571_v59 = vpop.f32.mrb[114].mxu0 }
 0x381   : > { %v5572_v47 = vpop.f32.mrb[115].mxu0 }
 0x382   : > { %v8321_v4 = vadd.f32 %v5572_v47, %v5571_v59 }
 0x386   : > { %v5606_v39 = vpop.f32.mrb[116].mxu0 }
 0x387   : > { %v5607_v49 = vpop.f32.mrb[117].mxu0 }
 0x388   : > { %v5608_v23 = vadd.f32 %v5607_v49, %v5606_v39  ;;  %v5609_v2 = vpop.f32.mrb[118].mxu0 }
 0x389   : > { %v5610_v10 = vpop.f32.mrb[119].mxu0 }
 0x38a   : > { %v6085_v62 = vadd.f32 %v5608_v23, %v5528_v24  ;;  %v5611_v51 = vadd.f32 %v5610_v10, %v5609_v2 }
 0x38c   : > { %v6091_v0 = vadd.f32 %v5611_v51, %v5531_v56 }
 0x38e   : > { %v5612_v35 = vpop.f32.mrb[120].mxu0 }
 0x38f   : > { %v5613_v26 = vpop.f32.mrb[121].mxu0 }
 0x390   : > { %v5686_v28 = vpop.f32.mrb[76].mxu1  ;;  %v5614_v30 = vadd.f32 %v5613_v26, %v5612_v35  ;;  %v5615_v36 = vpop.f32.mrb[122].mxu0 }
 0x391   : > { %v5687_v61 = vpop.f32.mrb[77].mxu1  ;;  %v5616_v45 = vpop.f32.mrb[123].mxu0 }
 0x392   : > { %v6082_v9 = vadd.f32 %v5614_v30, %v5534_v50  ;;  %v5688_v21 = vadd.f32 %v5687_v61, %v5686_v28  ;;  %v5689_v53 = vpop.f32.mrb[78].mxu1  ;;  %v5617_v27 = vadd.f32 %v5616_v45, %v5615_v36 }
 0x393   : > { %v5690_v34 = vpop.f32.mrb[79].mxu1 }
 0x394   : > { %v6088_v48 = vadd.f32 %v5617_v27, %v5537_v37  ;;  %v5691_v1 = vadd.f32 %v5690_v34, %v5689_v53  ;;  %v8323_v29 = vadd.f32 %v6085_v62, %v5688_v21 }
 0x396   : > { %v5618_v17 = vpop.f32.mrb[124].mxu0  ;;  %v8325_v24 = vadd.f32 %v6091_v0, %v5691_v1 }
 0x397   : > { %v5619_v56 = vpop.f32.mrb[125].mxu0 }
 0x398   : > { %v5692_v41 = vpop.f32.mrb[80].mxu1  ;;  %v5620_v15 = vadd.f32 %v5619_v56, %v5618_v17  ;;  %v5621_v46 = vpop.f32.mrb[126].mxu0 }
 0x399   : > { %v5693_v42 = vpop.f32.mrb[81].mxu1  ;;  %v5622_v63 = vpop.f32.mrb[127].mxu0 }
 0x39a   : > { %v6097_v60 = vadd.f32 %v5620_v15, %v8299_v40  ;;  %v5694_v50 = vadd.f32 %v5693_v42, %v5692_v41  ;;  %v5695_v38 = vpop.f32.mrb[82].mxu1  ;;  %v5623_v43 = vadd.f32 %v5622_v63, %v5621_v46 }
 0x39b   : > { %v5696_v19 = vpop.f32.mrb[83].mxu1 }
 0x39c   : > { %v6103_v37 = vadd.f32 %v5623_v43, %v8301_v22  ;;  %v5697_v20 = vadd.f32 %v5696_v19, %v5695_v38  ;;  %v8329_v6 = vadd.f32 %v6082_v9, %v5694_v50 }
 0x39e   : > { %v5624_v44 = vpop.f32.mrb[128].mxu0  ;;  %v8331_v7 = vadd.f32 %v6088_v48, %v5697_v20 }
 0x39f   : > { %v5625_v25 = vpop.f32.mrb[129].mxu0 }
 0x3a0   : > { %v5698_v32 = vpop.f32.mrb[84].mxu1  ;;  %v5626_v31 = vadd.f32 %v5625_v25, %v5624_v44  ;;  %v5627_v55 = vpop.f32.mrb[130].mxu0 }
 0x3a1   : > { %v5699_v3 = vpop.f32.mrb[85].mxu1  ;;  %v5628_v16 = vpop.f32.mrb[131].mxu0 }
 0x3a2   : > { %v6094_v40 = vadd.f32 %v5626_v31, %v8303_v58  ;;  %v5700_v11 = vadd.f32 %v5699_v3, %v5698_v32  ;;  %v5701_v12 = vpop.f32.mrb[86].mxu1  ;;  %v5629_v13 = vadd.f32 %v5628_v16, %v5627_v55 }
 0x3a3   : > { %v5702_v59 = vpop.f32.mrb[87].mxu1 }
 0x3a4   : > { %v6100_v22 = vadd.f32 %v5629_v13, %v8305_v14  ;;  %v5703_v47 = vadd.f32 %v5702_v59, %v5701_v12  ;;  %v8335_v39 = vadd.f32 %v6097_v60, %v5700_v11 }
 0x3a6   : > { %v5630_v49 = vpop.f32.mrb[132].mxu0  ;;  %v8337_v23 = vadd.f32 %v6103_v37, %v5703_v47 }
 0x3a7   : > { %v5631_v2 = vpop.f32.mrb[133].mxu0 }
 0x3a8   : > { %v5704_v10 = vpop.f32.mrb[88].mxu1  ;;  %v5632_v62 = vadd.f32 %v5631_v2, %v5630_v49  ;;  %v5633_v51 = vpop.f32.mrb[134].mxu0 }
 0x3a9   : > { %v5705_v0 = vpop.f32.mrb[89].mxu1  ;;  %v5634_v35 = vpop.f32.mrb[135].mxu0 }
 0x3aa   : > { %v6109_v58 = vadd.f32 %v5632_v62, %v8307_v52  ;;  %v5706_v26 = vadd.f32 %v5705_v0, %v5704_v10  ;;  %v5707_v28 = vpop.f32.mrb[90].mxu1  ;;  %v5635_v30 = vadd.f32 %v5634_v35, %v5633_v51 }
 0x3ab   : > { %v5708_v36 = vpop.f32.mrb[91].mxu1 }
 0x3ac   : > { %v6115_v14 = vadd.f32 %v5635_v30, %v8309_v8  ;;  %v5709_v61 = vadd.f32 %v5708_v36, %v5707_v28  ;;  %v8341_v45 = vadd.f32 %v6094_v40, %v5706_v26  ;;  %v8366_v36 = vld [vmem:[%s8581_s21] ss:$0 sm:$0xff] }
 0x3ae   : > { %v5636_v9 = vpop.f32.mrb[136].mxu0  ;;  %v8343_v21 = vadd.f32 %v6100_v22, %v5709_v61 }
 0x3af   : > { %v5637_v53 = vpop.f32.mrb[137].mxu0 }
 0x3b0   : > { %v5710_v27 = vpop.f32.mrb[92].mxu1  ;;  %v5638_v34 = vadd.f32 %v5637_v53, %v5636_v9  ;;  %v5639_v48 = vpop.f32.mrb[138].mxu0 }
 0x3b1   : > { %v5711_v1 = vpop.f32.mrb[93].mxu1  ;;  %v5640_v17 = vpop.f32.mrb[139].mxu0 }
 0x3b2   : > { %v6106_v52 = vadd.f32 %v5638_v34, %v8311_v54  ;;  %v5712_v56 = vadd.f32 %v5711_v1, %v5710_v27  ;;  %v5713_v41 = vpop.f32.mrb[94].mxu1  ;;  %v5641_v15 = vadd.f32 %v5640_v17, %v5639_v48  ;;  %v8372_v48 = vld [vmem:[%s8582_s27] ss:$0 sm:$0xff] }
 0x3b3   : > { %v5714_v46 = vpop.f32.mrb[95].mxu1 }
 0x3b4   : > { %v6112_v8 = vadd.f32 %v5641_v15, %v8313_v5  ;;  %v5715_v42 = vadd.f32 %v5714_v46, %v5713_v41  ;;  %v8347_v63 = vadd.f32 %v6109_v58, %v5712_v56 }
 0x3b6   : > { %v5642_v60 = vpop.f32.mrb[140].mxu0  ;;  %v8349_v50 = vadd.f32 %v6115_v14, %v5715_v42 }
 0x3b7   : > { %v5643_v38 = vpop.f32.mrb[141].mxu0 }
 0x3b8   : > { %v5716_v43 = vpop.f32.mrb[96].mxu1  ;;  %v5644_v19 = vadd.f32 %v5643_v38, %v5642_v60  ;;  %v5645_v37 = vpop.f32.mrb[142].mxu0 }
 0x3b9   : > { %v5717_v20 = vpop.f32.mrb[97].mxu1  ;;  %v5646_v44 = vpop.f32.mrb[143].mxu0 }
 0x3ba   : > { %v6121_v54 = vadd.f32 %v5644_v19, %v8315_v18  ;;  %v5718_v25 = vadd.f32 %v5717_v20, %v5716_v43  ;;  %v5719_v32 = vpop.f32.mrb[98].mxu1  ;;  %v5647_v31 = vadd.f32 %v5646_v44, %v5645_v37 }
 0x3bb   : > { %v5720_v55 = vpop.f32.mrb[99].mxu1 }
 0x3bc   : > { %v6127_v5 = vadd.f32 %v5647_v31, %v8317_v57  ;;  %v5721_v3 = vadd.f32 %v5720_v55, %v5719_v32  ;;  %v8353_v16 = vadd.f32 %v6106_v52, %v5718_v25 }
 0x3be   : > { %v5648_v40 = vpop.f32.mrb[144].mxu0  ;;  %v8355_v11 = vadd.f32 %v6112_v8, %v5721_v3 }
 0x3bf   : > { %v5649_v12 = vpop.f32.mrb[145].mxu0 }
 0x3c0   : > { %v5722_v13 = vpop.f32.mrb[100].mxu1  ;;  %v5650_v59 = vadd.f32 %v5649_v12, %v5648_v40  ;;  %v5651_v22 = vpop.f32.mrb[146].mxu0 }
 0x3c1   : > { %v5723_v47 = vpop.f32.mrb[101].mxu1  ;;  %v5652_v49 = vpop.f32.mrb[147].mxu0 }
 0x3c2   : > { %v6118_v18 = vadd.f32 %v5650_v59, %v8319_v33  ;;  %v5724_v2 = vadd.f32 %v5723_v47, %v5722_v13  ;;  %v5725_v10 = vpop.f32.mrb[102].mxu1  ;;  %v5653_v62 = vadd.f32 %v5652_v49, %v5651_v22 }
 0x3c3   : > { %v5726_v51 = vpop.f32.mrb[103].mxu1 }
 0x3c4   : > { %v6124_v57 = vadd.f32 %v5653_v62, %v8321_v4  ;;  %v5727_v0 = vadd.f32 %v5726_v51, %v5725_v10  ;;  %v8359_v35 = vadd.f32 %v6121_v54, %v5724_v2 }
 0x3c6   : > { %v5988_v58 = vpop.f32.mrb[148].mxu0  ;;  %v8361_v26 = vadd.f32 %v6127_v5, %v5727_v0 }
 0x3c7   : > { %v4111_v28 = vpop.f32.mrb[149].mxu0  ;;  %v4183_v4 = vmul.f32 %v5988_v58, %v8366_v36 }
 0x3c8   : > { %v5728_v30 = vpop.f32.mrb[104].mxu1  ;;  %v5989_v33 = vpop.f32.mrb[150].mxu0  ;;  %v4181_v1 = vmul.f32 %v8366_v36, %v4111_v28 }
 0x3c9   : > { %v5729_v14 = vpop.f32.mrb[105].mxu1  ;;  %v4114_v61 = vpop.f32.mrb[151].mxu0  ;;  %v4206_v41 = vadd.f32 %v8372_v48, %v4183_v4  ;;  %v4184_v15 = vmul.f32 %v5989_v33, %v8366_v36 }
 0x3ca   : > { %v5730_v9 = vadd.f32 %v5729_v14, %v5728_v30  ;;  %v5731_v53 = vpop.f32.mrb[106].mxu1  ;;  %v4204_v8 = vadd.f32 %v8372_v48, %v4181_v1  ;;  %v4182_v42 = vmul.f32 %v8366_v36, %v4114_v61 }
 0x3cb   : > { %v5732_v27 = vpop.f32.mrb[107].mxu1  ;;  %v4207_v54 = vadd.f32 %v8372_v48, %v4184_v15 }
 0x3cc   : > { %v5733_v34 = vadd.f32 %v5732_v27, %v5731_v53  ;;  %v8375_v17 = vadd.f32 %v6118_v18, %v5730_v9  ;;  %v4205_v5 = vadd.f32 %v8372_v48, %v4182_v42 }
 0x3ce   : > { %v5992_v52 = vpop.f32.mrb[152].mxu0  ;;  %v8377_v56 = vadd.f32 %v6124_v57, %v5733_v34 }
 0x3cf   : > { %v4127_v46 = vpop.f32.mrb[153].mxu0  ;;  %v4187_v55 = vmul.f32 %v5992_v52, %v8366_v36 }
 0x3d0   : > { %v5956_v60 = vpop.f32.mrb[60].mxu1  ;;  %v5993_v38 = vpop.f32.mrb[154].mxu0 }
 0x3d1   : > { %v6084_v43 = vadd.f32 %v8329_v6, %v5956_v60  ;;  %v3870_v19 = vpop.f32.mrb[61].mxu1  ;;  %v4130_v37 = vpop.f32.mrb[155].mxu0  ;;  %v4185_v6 = vmul.f32 %v8366_v36, %v4127_v46  ;;  %v4210_v22 = vadd.f32 %v8372_v48, %v4187_v55  ;;  %v4188_v47 = vmul.f32 %v5993_v38, %v8366_v36 }
 0x3d2   : > { %v6087_v20 = vadd.f32 %v8323_v29, %v3870_v19  ;;  %v5957_v44 = vpop.f32.mrb[62].mxu1  ;;  %v4186_v2 = vmul.f32 %v8366_v36, %v4130_v37 }
 0x3d3   : > { %v4222_v25 = vadd.f32 %v6084_v43, %v4206_v41  ;;  %v6090_v32 = vadd.f32 %v8331_v7, %v5957_v44  ;;  %v3873_v31 = vpop.f32.mrb[63].mxu1  ;;  %v4208_v18 = vadd.f32 %v8372_v48, %v4185_v6  ;;  %v4211_v28 = vadd.f32 %v8372_v48, %v4188_v47 }
 0x3d4   : > { %v4220_v3 = vadd.f32 %v6087_v20, %v4204_v8  ;;  %v6093_v40 = vadd.f32 %v8325_v24, %v3873_v31  ;;  %v4209_v9 = vadd.f32 %v8372_v48, %v4186_v2 }
 0x3d5   : > { %v4223_v12 = vadd.f32 %v6090_v32, %v4207_v54 }
 0x3d6   : > { %v4221_v13 = vadd.f32 %v6093_v40, %v4205_v5  ;;  %v5996_v29 = vpop.f32.mrb[156].mxu0 }
 0x3d7   : > { %v4765_v59 = vpack.c.bf16 %v4223_v12, %v4222_v25  ;;  %v4143_v7 = vpop.f32.mrb[157].mxu0  ;;  %v4191_v61 = vmul.f32 %v5996_v29, %v8366_v36 }
 0x3d8   : > { %v4760_v49 = vpack.c.bf16 %v4221_v13, %v4220_v3  ;;  %v5960_v10 = vpop.f32.mrb[64].mxu1  ;;  %v5997_v62 = vpop.f32.mrb[158].mxu0  ;;  %v4189_v27 = vmul.f32 %v8366_v36, %v4143_v7 }
 0x3d9   : > { %4807 = vst [vmem:[%s8397_s11 + $0x8] sm:$0xff] %v4765_v59   ;;  %v6096_v24 = vadd.f32 %v8341_v45, %v5960_v10  ;;  %v3886_v51 = vpop.f32.mrb[65].mxu1  ;;  %v4146_v57 = vpop.f32.mrb[159].mxu0  ;;  %v4214_v52 = vadd.f32 %v8372_v48, %v4191_v61 }
 0x3da   : > { %4761 = vst [vmem:[%s8397_s11] sm:$0xff] %v4760_v49   ;;  %v6099_v0 = vadd.f32 %v8335_v39, %v3886_v51  ;;  %v5961_v58 = vpop.f32.mrb[66].mxu1  ;;  %v4212_v46 = vadd.f32 %v8372_v48, %v4189_v27  ;;  %v4190_v8 = vmul.f32 %v8366_v36, %v4146_v57 }
 0x3db   : > { %v4226_v30 = vadd.f32 %v6096_v24, %v4210_v22  ;;  %v6102_v33 = vadd.f32 %v8343_v21, %v5961_v58  ;;  %v3889_v14 = vpop.f32.mrb[67].mxu1  ;;  %v4192_v21 = vmul.f32 %v5997_v62, %v8366_v36 }
 0x3dc   : > { %v4224_v53 = vadd.f32 %v6099_v0, %v4208_v18  ;;  %v6105_v45 = vadd.f32 %v8337_v23, %v3889_v14  ;;  %v4213_v31 = vadd.f32 %v8372_v48, %v4190_v8 }
 0x3dd   : > { %v4227_v4 = vadd.f32 %v6102_v33, %v4211_v28  ;;  %v4215_v20 = vadd.f32 %v8372_v48, %v4192_v21 }
 0x3de   : > { %v4225_v39 = vadd.f32 %v6105_v45, %v4209_v9  ;;  %v6000_v34 = vpop.f32.mrb[160].mxu0 }
 0x3df   : > { %v4775_v1 = vpack.c.bf16 %v4227_v4, %v4226_v30  ;;  %v4159_v41 = vpop.f32.mrb[161].mxu0  ;;  %v4195_v32 = vmul.f32 %v6000_v34, %v8366_v36 }
 0x3e0   : > { %v4770_v15 = vpack.c.bf16 %v4225_v39, %v4224_v53  ;;  %v5964_v42 = vpop.f32.mrb[68].mxu1  ;;  %v6001_v60 = vpop.f32.mrb[162].mxu0 }
 0x3e1   : > { %4809 = vst [vmem:[%s8397_s11 + $0x18] sm:$0xff] %v4775_v1   ;;  %v6108_v23 = vadd.f32 %v8353_v16, %v5964_v42  ;;  %v3902_v38 = vpop.f32.mrb[69].mxu1  ;;  %v4162_v43 = vpop.f32.mrb[163].mxu0  ;;  %v4218_v6 = vadd.f32 %v8372_v48, %v4195_v32  ;;  %v4196_v12 = vmul.f32 %v6001_v60, %v8366_v36 }
 0x3e2   : > { %4808 = vst [vmem:[%s8397_s11 + $0x10] sm:$0xff] %v4770_v15   ;;  %v6111_v19 = vadd.f32 %v8347_v63, %v3902_v38  ;;  %v5965_v37 = vpop.f32.mrb[70].mxu1  ;;  %v4193_v63 = vmul.f32 %v8366_v36, %v4159_v41  ;;  %v4194_v29 = vmul.f32 %v8366_v36, %v4162_v43 }
 0x3e3   : > { %v4230_v44 = vadd.f32 %v6108_v23, %v4214_v52  ;;  %v6114_v54 = vadd.f32 %v8355_v11, %v5965_v37  ;;  %v3905_v25 = vpop.f32.mrb[71].mxu1  ;;  %v4219_v49 = vadd.f32 %v8372_v48, %v4196_v12 }
 0x3e4   : > { %v4228_v16 = vadd.f32 %v6111_v19, %v4212_v46  ;;  %v6117_v55 = vadd.f32 %v8349_v50, %v3905_v25  ;;  %v4216_v13 = vadd.f32 %v8372_v48, %v4193_v63  ;;  %v4217_v10 = vadd.f32 %v8372_v48, %v4194_v29 }
 0x3e5   : > { %v4231_v5 = vadd.f32 %v6114_v54, %v4215_v20 }
 0x3e6   : > { %v4229_v3 = vadd.f32 %v6117_v55, %v4213_v31 }
 0x3e7   : > { %v4785_v40 = vpack.c.bf16 %v4231_v5, %v4230_v44 }
 0x3e8   : > { %v4780_v11 = vpack.c.bf16 %v4229_v3, %v4228_v16  ;;  %v5968_v59 = vpop.f32.mrb[72].mxu1 }
 0x3e9   : > { %4811 = vst [vmem:[%s8397_s11 + $0x28] sm:$0xff] %v4785_v40   ;;  %v6120_v50 = vadd.f32 %v8375_v17, %v5968_v59  ;;  %v3918_v22 = vpop.f32.mrb[73].mxu1 }
 0x3ea   : > { %4810 = vst [vmem:[%s8397_s11 + $0x20] sm:$0xff] %v4780_v11   ;;  %v6123_v47 = vadd.f32 %v8359_v35, %v3918_v22  ;;  %v5969_v7 = vpop.f32.mrb[74].mxu1 }
 0x3eb   : > { %v4234_v18 = vadd.f32 %v6120_v50, %v4218_v6  ;;  %v6126_v2 = vadd.f32 %v8377_v56, %v5969_v7  ;;  %v3921_v36 = vpop.f32.mrb[75].mxu1 }
 0x3ec   : > { %v4232_v62 = vadd.f32 %v6123_v47, %v4216_v13  ;;  %v6129_v17 = vadd.f32 %v8361_v26, %v3921_v36 }
 0x3ed   : > { %v4235_v24 = vadd.f32 %v6126_v2, %v4219_v49 }
 0x3ee   : > { %v4233_v35 = vadd.f32 %v6129_v17, %v4217_v10 }
 0x3ef   : > { %v4795_v51 = vpack.c.bf16 %v4235_v24, %v4234_v18 }
 0x3f0   : > { %v4790_v57 = vpack.c.bf16 %v4233_v35, %v4232_v62 }
 0x3f1   : > { %4813 = vst [vmem:[%s8397_s11 + $0x38] sm:$0xff] %v4795_v51  }
 0x3f2   : > { %4812 = vst [vmem:[%s8397_s11 + $0x30] sm:$0xff] %v4790_v57  }
 0x3f3   : > { %6634 = shalt.err (!%p6631_p11)
}
 0x3f4   : > { %s6635_s29 = scalar_lea.hbm %s8443_s4, 1024  ;;  %s6639_s25 = scalar_lea.hbm %s8584_s10, 4096 }
 0x3f5   : > { %p6636_p1 = scmp.ne.s32.totalorder %s8443_s4, %s6635_s29  ;;  %p6640_p12 = scmp.lt.u32.totalorder %s8443_s4, %s8584_s10 }
 0x3f6   : > { %p6641_p2 = scmp.lt.u32.totalorder %s6639_s25, %s6635_s29  ;;  %p6643_p10 = scmp.lt.u32.totalorder %s6635_s29, %s8443_s4 }
 0x3f7   : > { %p6637_p4 = pnand %p6636_p1, %p6975_p3 }
 0x3f8   : > { %p6642_p6 = por %p6641_p2, %p6640_p12 }
 0x3f9   : > { %p6638_p8 = pneg %p6637_p4 }
 0x3fa   : > { %p6644_p5 = por %p6643_p10, %p6642_p6 }
 0x3fc   : > { %p6645_p7 = pnand %p6644_p5, %p6638_p8 }
 0x3fe   : > { %6648 = shalt.err (!%p6645_p7)
}
 0x3ff   : > { %s6742_s15 = smov 64   ;;  %s6743_s3 = smov 4  }
 0x400   : > { %6214 = dma.vmem_to_hbm [thread:$0]  (%p6975_p3), %s8438_s20, 1024, %s8443_s4, %s4317_s14, %s6742_s15, %s6742_s15, %s6743_s3  }
 0x401 PF: > { %s8585_s6 = sld [smem:[#allocation18_spill]]  ;;  %s8586_s30 = sld [smem:[#allocation20_spill]] }
 0x402   : > { %p6244_p13 = scmp.ge.s32.totalorder %s6731_s24, 2 }
 0x407   : > { %s4348_s8 = sand.u32 1, %s8585_s6   ;;  %p8587_p0 = scmp.ne.s32.totalorder %s8586_s30, 0 }
 0x408   : > { %s4349_s5 = scalar_lea.sflag [#allocation5], %s4348_s8 }
 0x409   : > { %p6234_p9 = pnand %p6244_p13, %p8587_p0 }
 0x40b   : > { %6698 = dma.done.wait (!%p6234_p9), %s4349_s5, 1024  }
 0x40c   : > { %6700 = vsyncadd (!%p6234_p9), %s4349_s5, 4294966272  ;;  %s31_s24 = sadd.s32 1, %s6731_s24   ;;  %s8588_s13 = smov %s6995_s17 }
 0x40d   : > { %p28_p11 = scmp.ge.s32.totalorder %s31_s24, 6   ;;  %s8589_s9 = sld [smem:[#allocation21_spill]] }
 0x40e   : > { %s8590_s12 = sld [smem:[#allocation22_spill]]  ;;  %s8591_s17 = smov %s6707_s18 }
 0x40f   : > { %s8592_s18 = smov %s6711_s19  ;;  %s8593_s19 = smov %s8588_s13 }
 0x410   : > { %s8594_s20 = smov %s6723_s22  ;;  %s8595_s21 = smov %s6727_s23 }
 0x411   :  { %30 = sbr.rel (!%p28_p11) target bundleno = 21 (0x15), region = 138 }
 0x413   : > { %s8596_s22 = smov %s8589_s9 }
 0x414   : > { %s8597_s23 = smov %s8590_s12 }
 0x418   :  { %4354 = vsyncpa [#allocation4], 1 }
 0x419   :  { %4356 = vsyncpa [#allocation4 + $0x1], 1 }
 0x41a   :  { %4357 = vsyncpa [#allocation7], 1 }
 0x41b   :  { %4359 = vsyncpa [#allocation7 + $0x1], 1 }
 0x41c   :  { %4360 = vsyncpa [#allocation10], 1 }
 0x41d   :  { %4361 = vsyncpa [#allocation5], 1 }
 0x41e   :  { %4363 = vsyncpa [#allocation5 + $0x1], 1 }

// kernel: tpu_custom_call.1
= control target key start
LH: loop header
LB: loop body
LE: loop exit
PB: predicated region body
PF: predicated region fallthrough
CT: control target
= control target key end

     0   :  { %s8499_s0 = inlined_call_operand.hbm [shape: bf16[2,16,16,128], index: 0, kind: input, shape index: {}]   ;;  %s8500_s1 = inlined_call_operand.hbm [shape: bf16[2,2,4,16,128], index: 1, kind: input, shape index: {}]   ;;  %s8501_s2 = inlined_call_operand.vmem [shape: f32[1,128], index: 2, kind: input, shape index: {}]   ;;  %s8502_s3 = inlined_call_operand.vmem [shape: f32[1,128], index: 3, kind: input, shape index: {}]   ;;  %s8503_s4 = inlined_call_operand.hbm [shape: bf16[3,384,128], index: 4, kind: input, shape index: {}]   ;;  %s8504_s5 = inlined_call_operand.vmem [shape: f32[1,128], index: 5, kind: input, shape index: {}]   ;;  %s8505_s6 = inlined_call_operand.vmem [shape: f32[1,128], index: 6, kind: input, shape index: {}]   ;;  %s8506_s7 = inlined_call_operand.hbm [shape: bf16[3,384,128], index: 7, kind: input, shape index: {}]   ;;  %s8507_s8 = inlined_call_operand.hbm [shape: bf16[128,128], index: 8, kind: input, shape index: {}]   ;;  %s8508_s9 = inlined_call_operand.vmem [shape: f32[1,128], index: 9, kind: input, shape index: {}]   ;;  %s8509_s10 = inlined_call_operand.vmem [shape: f32[1,128], index: 10, kind: input, shape index: {}]   ;;  %s8510_s11 = inlined_call_operand.hbm [shape: bf16[2,16,16,128], index: 11, kind: output, shape index: {}]  }
   0x1   :  { %8523 = sst [smem:[#allocation23_spill]] %s8499_s0 }
   0x2   :  { %8524 = sst [smem:[#allocation24_spill]] %s8502_s3 }
   0x3   :  { %8525 = sst [smem:[#allocation25_spill]] %s8503_s4 }
   0x4   :  { %8526 = sst [smem:[#allocation26_spill]] %s8504_s5 }
   0x5   :  { %8527 = sst [smem:[#allocation27_spill]] %s8505_s6 }
   0x6   :  { %8528 = sst [smem:[#allocation28_spill]] %s8506_s7 }
   0x7   :  { %8529 = sst [smem:[#allocation29_spill]] %s8507_s8 }
   0x8   :  { %8530 = sst [smem:[#allocation30_spill]] %s8508_s9 }
   0x9   :  { %8531 = sst [smem:[#allocation31_spill]] %s8509_s10 }
   0xa   :  { %8532 = sst [smem:[#allocation32_spill]] %s8510_s11 }
   0xb   :  { %16 = vsyncpa [#allocation4], 0 }
   0xc   :  { %18 = vsyncpa [#allocation4 + $0x1], 0 }
   0xd   :  { %19 = vsyncpa [#allocation7], 0 }
   0xe   :  { %21 = vsyncpa [#allocation7 + $0x1], 0 }
   0xf   :  { %22 = vsyncpa [#allocation10], 0 }
  0x10   :  { %23 = vsyncpa [#allocation5], 0 }
  0x11   :  { %25 = vsyncpa [#allocation5 + $0x1], 0  ;;  %s6804_s17 = smov 0   ;;  %s6806_s18 = smov 0  }
  0x12   :  { %s6808_s19 = smov 0   ;;  %s6810_s20 = smov 0  }
  0x13   :  { %s6812_s21 = smov 0   ;;  %s6814_s22 = smov 0  }
  0x14   :  { %s6816_s23 = smov 0   ;;  %s6818_s24 = smov 0  }
  0x15 LB: > { %8533 = sst [smem:[#allocation18_spill]] %s6703_s17  ;;  %s6845_s25 = sadd.s32 4294967295, %s6731_s24   ;;  %s6731_s24 = sphi %s6818_s24, %s31_s24   ;;  %s6727_s23 = sphi %s6816_s23, %s8597_s23   ;;  %s6723_s22 = sphi %s6814_s22, %s8596_s22   ;;  %s6719_s21 = sphi %s6812_s21, %s8595_s21   ;;  %s6715_s20 = sphi %s6810_s20, %s8594_s20   ;;  %s6711_s19 = sphi %s6808_s19, %s8593_s19   ;;  %s6707_s18 = sphi %s6806_s18, %s8592_s18   ;;  %s6703_s17 = sphi %s6804_s17, %s8591_s17  }
  0x16   : > { %8534 = sst [smem:[#allocation19_spill]] %s6719_s21  ;;  %s4478_s26 = sadd.s32 4294967294, %s6731_s24  }
  0x17   : > { %p65_p0 = scmp.ne.s32.totalorder %s6707_s18, %s6703_s17  ;;  %p8514_p1 = scmp.eq.s32.totalorder %s6845_s25, 0 }
  0x18   : > { %p314_p3 = scmp.eq.s32.totalorder %s4478_s26, 3  ;;  %p4479_p5 = scmp.ge.s32.totalorder %s6731_s24, 1 }
  0x19   : > { %p6854_p4 = por %p8514_p1, %p65_p0  ;;  %p321_p7 = scmp.lt.s32.totalorder %s6731_s24, 5 }
  0x1a   : > { %p6859_p6 = por %p314_p3, %p65_p0  ;;  %s6733_s30 = smov [#allocation8]  }
  0x1b   : > { %s8535_s27 = scalar_select %p6854_p4, 1, 0 }
  0x1c   : > { %s8536_s28 = scalar_select %p6859_p6, 1, 0 }
  0x1d   : > { %p6864_p8 = pnand %p4479_p5, %p321_p7  ;;  %s339_s12 = sshll.u32 %s6733_s30, 4  ;;  %s6868_s12 = int_to_ptr.vmem [resolvable:$true] %s339_s12 }
  0x1e   : > { %8537 = sst [smem:[#allocation20_spill]] %s8536_s28  ;;  %s6734_s14 = smov [#allocation9]  }
  0x1f   : > { %s8538_s29 = scalar_select %p6864_p8, 1, 0 }
  0x20   : > { %p6216_p9 = pneg %p6864_p8  ;;  %s358_s15 = sshll.u32 %s6734_s14, 4  ;;  %s6878_s15 = int_to_ptr.vmem [resolvable:$true] %s358_s15 }
  0x21   : > { %s6735_s16 = smov [#allocation11]   ;;  %s8540_s4 = sld [smem:[#allocation25_spill]] }
  0x22   : > { %p6874_p10 = pnand %p6216_p9, %p8514_p1  ;;  %s6880_s26 = sshll.u32 %s6735_s16, 4  ;;  %s372_s26 = int_to_ptr.vmem [resolvable:$true] %s6880_s26 }
  0x24   : > { %p6890_p12 = pneg %p6874_p10 }
  0x27   : > { %s6477_s30 = scalar_lea.hbm %s8540_s4, 9216 }
  0x28   : > { %p6478_p11 = scmp.ne.s32.totalorder %s8540_s4, %s6477_s30  ;;  %p6484_p3 = scmp.lt.u32.totalorder %s6477_s30, %s8540_s4 }
  0x2a   : > { %p6480_p13 = pnand %p6890_p12, %p6478_p11 }
  0x2c   : > { %p6481_p0 = pneg %p6480_p13 }
  0x2e   : > { %p6486_p5 = pnand %p6484_p3, %p6481_p0 }
  0x30   : > { %6489 = shalt.err (!%p6486_p5)
}
  0x31   : > { %s6490_s11 = scalar_lea.vmem %s6868_s12, 9216  ;;  %p6498_p2 = scmp.lt.s32.totalorder %s6868_s12, %s6868_s12 }
  0x32   : > { %p6491_p7 = scmp.ne.s32.totalorder %s6868_s12, %s6490_s11  ;;  %p6499_p6 = scmp.lt.s32.totalorder %s6490_s11, %s6490_s11 }
  0x34   : > { %p6493_p9 = pnand %p6491_p7, %p6890_p12  ;;  %p6500_p11 = por %p6499_p6, %p6498_p2 }
  0x36   : > { %p6494_p1 = pneg %p6493_p9 }
  0x38   : > { %p6501_p13 = pnand %p6500_p11, %p6494_p1 }
  0x3a   : > { %6504 = shalt.err (!%p6501_p13)
}
  0x3b   : > { %s8517_s17 = smov 64   ;;  %s8519_s21 = smov 4  }
  0x3c   : > { %6219 = dma.hbm_to_vmem [thread:$0]  (!%p6874_p10), %s8540_s4, 9216, %s6868_s12, [#allocation7], %s8517_s17, %s8517_s17, %s8519_s21  }
  0x3d   : > { %s8542_s7 = sld [smem:[#allocation28_spill]] }
  0x43   : > { %s6505_s11 = scalar_lea.hbm %s8542_s7, 9216 }
  0x44   : > { %p6506_p1 = scmp.ne.s32.totalorder %s8542_s7, %s6505_s11  ;;  %p6512_p0 = scmp.lt.u32.totalorder %s6505_s11, %s8542_s7 }
  0x46   : > { %p6508_p2 = pnand %p6506_p1, %p6890_p12 }
  0x48   : > { %p6509_p6 = pneg %p6508_p2 }
  0x4a   : > { %p6514_p3 = pnand %p6512_p0, %p6509_p6 }
  0x4c   : > { %6517 = shalt.err (!%p6514_p3)
}
  0x4d   : > { %s6518_s12 = scalar_lea.vmem %s6878_s15, 9216  ;;  %p6526_p11 = scmp.lt.s32.totalorder %s6878_s15, %s6878_s15 }
  0x4e   : > { %p6519_p5 = scmp.ne.s32.totalorder %s6878_s15, %s6518_s12  ;;  %p6527_p13 = scmp.lt.s32.totalorder %s6518_s12, %s6518_s12 }
  0x50   : > { %p6521_p7 = pnand %p6519_p5, %p6890_p12  ;;  %p6528_p1 = por %p6527_p13, %p6526_p11 }
  0x52   : > { %p6522_p9 = pneg %p6521_p7 }
  0x54   : > { %p6529_p2 = pnand %p6528_p1, %p6522_p9 }
  0x56   : > { %6532 = shalt.err (!%p6529_p2)
}
  0x57   : > { %6222 = dma.hbm_to_vmem [thread:$0]  (!%p6874_p10), %s8542_s7, 9216, %s6878_s15, [#allocation10], %s8517_s17, %s8517_s17, %s8519_s21  }
  0x58   : > { %s8543_s8 = sld [smem:[#allocation29_spill]] }
  0x5e   : > { %s6533_s28 = scalar_lea.hbm %s8543_s8, 1024 }
  0x5f   : > { %p6534_p6 = scmp.ne.s32.totalorder %s8543_s8, %s6533_s28  ;;  %p6540_p5 = scmp.lt.u32.totalorder %s6533_s28, %s8543_s8 }
  0x61   : > { %p6536_p0 = pnand %p6534_p6, %p6890_p12 }
  0x63   : > { %p6537_p3 = pneg %p6536_p0 }
  0x65   : > { %p6542_p7 = pnand %p6540_p5, %p6537_p3 }
  0x67   : > { %6545 = shalt.err (!%p6542_p7)
}
  0x68   : > { %s6546_s12 = scalar_lea.vmem %s372_s26, 1024  ;;  %p6554_p1 = scmp.lt.s32.totalorder %s372_s26, %s372_s26 }
  0x69   : > { %p6547_p9 = scmp.ne.s32.totalorder %s372_s26, %s6546_s12  ;;  %p6555_p2 = scmp.lt.s32.totalorder %s6546_s12, %s6546_s12 }
  0x6b   : > { %p6549_p11 = pnand %p6547_p9, %p6890_p12  ;;  %p6556_p4 = por %p6555_p2, %p6554_p1 }
  0x6d   : > { %p6550_p13 = pneg %p6549_p11 }
  0x6f   : > { %p6557_p8 = pnand %p6556_p4, %p6550_p13 }
  0x71   : > { %6560 = shalt.err (!%p6557_p8)
}
  0x72   : > { %6225 = dma.hbm_to_vmem [thread:$0]  (!%p6874_p10), %s8543_s8, 1024, %s372_s26, [#allocation10], %s8517_s17, %s8517_s17, %s8519_s21  }
  0x73   : > { %s40_s10 = sadd.s32 1, %s6723_s22  ;;  %s43_s13 = sadd.s32 1, %s6727_s23 }
  0x74   : > { %p41_p4 = scmp.ge.s32.totalorder %s40_s10, 2  ;;  %s52_s5 = sadd.s32 1, %s6711_s19 }
  0x75   : > { %p59_p8 = scmp.ne.s32.totalorder %s6711_s19, %s6707_s18  ;;  %p60_p12 = scmp.eq.s32.totalorder %s6731_s24, 0 }
  0x76   : > { %s8599_s10 = smov (%p41_p4, %s40_s10), 0  ;;  %s8601_s13 = smov (!%p41_p4, %s43_s13), %s6727_s23 }
  0x77   : > { %8544 = sst [smem:[#allocation21_spill]] %s8599_s10  ;;  %s48_s6 = ssub.s32 %s6723_s22, %s8599_s10 }
  0x78   : > { %p45_p6 = scmp.ge.s32.totalorder %s8601_s13, 2  ;;  %p8545_p0 = scmp.eq.s32.totalorder %s6845_s25, 3 }
  0x79   : > { %p6979_p10 = por %p60_p12, %p59_p8  ;;  %p6240_p5 = scmp.lt.s32.totalorder %s6731_s24, 4 }
  0x7a   : > { %p6975_p3 = por %p8545_p0, %p59_p8  ;;  %s8603_s13 = smov (%p45_p6, %s8601_s13), 0 }
  0x7b   : > { %8548 = sst [smem:[#allocation22_spill]] %s8603_s13  ;;  %s6987_s28 = sand.u32 1, %s6711_s19  }
  0x7c   : > { %s4691_s30 = sshll.u32 %s6723_s22, 4  ;;  %s47_s14 = ssub.s32 %s6727_s23, %s8603_s13 }
  0x7d   : > { %s49_s16 = sor.u32 %s48_s6, %s47_s14  ;;  %s4484_s11 = sshll.u32 %s6987_s28, 6 }
  0x7e   : > { %p50_p7 = scmp.eq.s32.totalorder %s49_s16, 0  ;;  %s4487_s12 = sshll.u32 %s6727_s23, 5 }
  0x7f   : > { %s395_s15 = scalar_lea.vmem [#allocation3], %s4484_s11  ;;  %s402_s21 = sadd.s32 %s4691_s30, %s4487_s12 }
  0x80   : > { %s405_s3 = sshll.u32 %s395_s15, 4  ;;  %s4488_s4 = sshll.u32 %s402_s21, 6  ;;  %s6997_s3 = int_to_ptr.vmem [resolvable:$true] %s405_s3 }
  0x81   : > { %s6995_s17 = scalar_select %p50_p7, %s6711_s19, %s52_s5  }
  0x82   : > { %p7003_p9 = pnand %p6240_p5, %p6979_p10  ;;  %s8550_s0 = sld [smem:[#allocation23_spill]] }
  0x83   : > { %s392_s30 = scalar_lea.sflag [#allocation4], %s6987_s28 }
  0x84   : > { %p6563_p13 = pneg %p7003_p9 }
  0x88   : > { %s7010_s6 = scalar_lea.hbm %s8550_s0, %s4488_s4  ;;  %s6566_s13 = scalar_lea.hbm %s8550_s0, 4096 }
  0x89   : > { %s6561_s21 = scalar_lea.hbm %s7010_s6, 1024  ;;  %p6567_p4 = scmp.lt.u32.totalorder %s7010_s6, %s8550_s0 }
  0x8a   : > { %p6562_p11 = scmp.ne.s32.totalorder %s7010_s6, %s6561_s21  ;;  %p6568_p8 = scmp.lt.u32.totalorder %s6566_s13, %s6561_s21 }
  0x8b   : > { %p6570_p6 = scmp.lt.u32.totalorder %s6561_s21, %s7010_s6 }
  0x8c   : > { %p6564_p1 = pnand %p6563_p13, %p6562_p11  ;;  %p6569_p12 = por %p6568_p8, %p6567_p4 }
  0x8e   : > { %p6565_p2 = pneg %p6564_p1  ;;  %p6571_p0 = por %p6570_p6, %p6569_p12 }
  0x90   : > { %p6572_p10 = pnand %p6571_p0, %p6565_p2 }
  0x92   : > { %6575 = shalt.err (!%p6572_p10)
}
  0x93   : > { %s6576_s16 = scalar_lea.vmem %s6997_s3, 1024  ;;  %s6738_s11 = smov [#allocation3]  }
  0x94   : > { %p6577_p5 = scmp.ne.s32.totalorder %s6997_s3, %s6576_s16  ;;  %s6581_s12 = sshll.u32 %s6738_s11, 4  ;;  %s6582_s12 = int_to_ptr.vmem [resolvable:$false] %s6581_s12 }
  0x95   : > { %s6583_s15 = scalar_lea.vmem %s6582_s12, 2048  ;;  %p6584_p1 = scmp.lt.s32.totalorder %s6997_s3, %s6582_s12 }
  0x96   : > { %p6579_p7 = pnand %p6577_p5, %p6563_p13  ;;  %p6585_p4 = scmp.lt.s32.totalorder %s6583_s15, %s6576_s16 }
  0x98   : > { %p6580_p11 = pneg %p6579_p7  ;;  %p6586_p8 = por %p6585_p4, %p6584_p1 }
  0x9a   : > { %p6587_p12 = pnand %p6586_p8, %p6580_p11 }
  0x9c   : > { %6590 = shalt.err (!%p6587_p12)
}
  0x9d   : > { %s8551_s21 = smov 4   ;;  %s8552_s26 = smov 64  }
  0x9e   : > { %6229 = dma.hbm_to_vmem [thread:$0]  (!%p7003_p9), %s7010_s6, 1024, %s6997_s3, %s392_s30, %s8552_s26, %s8552_s26, %s8551_s21  }
  0x9f   : > { %s4489_s8 = sshll.u32 %s6987_s28, 5  ;;  %s4490_s13 = sshll.u32 %s6723_s22, 3 }
  0xa0   : > { %s4491_s4 = sshll.u32 %s6727_s23, 4  ;;  %s419_s16 = scalar_lea.vmem [#allocation6], %s4489_s8 }
  0xa1   : > { %s425_s14 = sadd.s32 %s4491_s4, %s4490_s13  ;;  %s428_s11 = sshll.u32 %s419_s16, 4  ;;  %s7047_s11 = int_to_ptr.vmem [resolvable:$true] %s428_s11 }
  0xa2   : > { %s4492_s12 = sshll.u32 %s425_s14, 6  ;;  %s8553_s10 = sand.u32 1, %s6731_s24  }
  0xa3   : > { %s7052_s0 = scalar_lea.hbm %s8500_s1, %s4492_s12  ;;  %s7056_s3 = scalar_lea.sflag [#allocation7], %s8553_s10 }
  0xa4   : > { %s6591_s28 = scalar_lea.hbm %s7052_s0, 512  ;;  %s6596_s8 = scalar_lea.hbm %s8500_s1, 2048 }
  0xa5   : > { %p6592_p2 = scmp.ne.s32.totalorder %s7052_s0, %s6591_s28  ;;  %p6597_p10 = scmp.lt.u32.totalorder %s7052_s0, %s8500_s1 }
  0xa6   : > { %p6598_p5 = scmp.lt.u32.totalorder %s6596_s8, %s6591_s28  ;;  %p6600_p11 = scmp.lt.u32.totalorder %s6591_s28, %s7052_s0 }
  0xa7   : > { %p6594_p6 = pnand %p6592_p2, %p6563_p13 }
  0xa8   : > { %p6599_p7 = por %p6598_p5, %p6597_p10 }
  0xa9   : > { %p6595_p0 = pneg %p6594_p6 }
  0xaa   : > { %p6601_p1 = por %p6600_p11, %p6599_p7 }
  0xac   : > { %p6602_p4 = pnand %p6601_p1, %p6595_p0 }
  0xae   : > { %6605 = shalt.err (!%p6602_p4)
}
  0xaf   : > { %s6606_s10 = scalar_lea.vmem %s7047_s11, 512  ;;  %s6739_s4 = smov [#allocation6]  }
  0xb0   : > { %p6607_p8 = scmp.ne.s32.totalorder %s7047_s11, %s6606_s10  ;;  %s6611_s14 = sshll.u32 %s6739_s4, 4  ;;  %s6612_s14 = int_to_ptr.vmem [resolvable:$false] %s6611_s14 }
  0xb1   : > { %s6613_s16 = scalar_lea.vmem %s6612_s14, 1024  ;;  %p6614_p6 = scmp.lt.s32.totalorder %s7047_s11, %s6612_s14 }
  0xb2   : > { %p6609_p12 = pnand %p6607_p8, %p6563_p13  ;;  %p6615_p10 = scmp.lt.s32.totalorder %s6613_s16, %s6606_s10 }
  0xb4   : > { %p6610_p2 = pneg %p6609_p12  ;;  %p6616_p5 = por %p6615_p10, %p6614_p6 }
  0xb6   : > { %p6617_p7 = pnand %p6616_p5, %p6610_p2 }
  0xb8   : > { %6620 = shalt.err (!%p6617_p7)
}
  0xb9   : > { %6232 = dma.hbm_to_vmem [thread:$0]  (!%p7003_p9), %s7052_s0, 512, %s7047_s11, %s7056_s3, %s8552_s26, %s8552_s26, %s8551_s21  }
  0xba   : > { %p8554_p13 = scmp.ne.s32.totalorder %s8538_s29, 0 }
  0xbb   : > { %s7088_s12 = sand.u32 (!%p8554_p13), 1, %s6707_s18   ;;  %p8555_p0 = scmp.ne.s32.totalorder (!%p8554_p13), %s8535_s27, 0 }
  0xbc   : > { %440 = sbr.rel (%p8554_p13) target bundleno = 1025 (0x401), region = 64  ;;  %s4494_s15 = sshll.u32 (!%p8554_p13), %s7088_s12, 6 }
  0xbd   : > { %s443_s28 = scalar_lea.sflag (!%p8554_p13), [#allocation4], %s7088_s12  ;;  %s7094_s7 = scalar_lea.vmem (!%p8554_p13), [#allocation3], %s4494_s15 }
  0xc3   : > { %6682 = dma.done.wait (%p8555_p0), %s443_s28, 1024  }
  0xc4   : > { %6684 = vsyncadd (%p8555_p0), %s443_s28, 4294966272  ;;  %s451_s0 = sand.u32 1, %s6845_s25   ;;  %s4495_s29 = sshll.u32 %s7088_s12, 5 }
  0xc5   : > { %s452_s21 = scalar_lea.sflag [#allocation7], %s451_s0  ;;  %s7102_s26 = scalar_lea.vmem [#allocation6], %s4495_s29 }
  0xc6   : > { %6686 = dma.done.wait (%p8555_p0), %s452_s21, 512  }
  0xc7   : > { %6688 = vsyncadd (%p8555_p0), %s452_s21, 4294966784  ;;  %p8556_p9 = scmp.eq.s32.totalorder %s6845_s25, 0 }
  0xc9   : > { %6690 = dma.done.wait (%p8556_p9), [#allocation7], 9216   ;;  %p8557_p11 = pmov %p8556_p9 }
  0xca   : > { %p8558_p1 = pmov %p8556_p9 }
  0xcb   : > { %6692 = vsyncadd (%p8557_p11), [#allocation7], 4294958080 }
  0xcc   : > { %6694 = dma.done.wait (%p8558_p1), [#allocation10], 10240   ;;  %p8559_p4 = pmov %p8558_p1 }
  0xcd   : > { %v6317_v0 = vld [vmem:[#allocation8 + $0x100] sm:$0xff]   ;;  %v6320_v3 = vld [vmem:[#allocation8 + $0x108] sm:$0xff]   ;;  %v6323_v6 = vld [vmem:[#allocation8 + $0x110] sm:$0xff]   ;;  %p514_p8 = scmp.eq.s32.totalorder %s6715_s20, 0  ;;  %p515_p12 = scmp.eq.s32.totalorder %s6715_s20, 1  ;;  %vm588_vm2 = vcmask 1040384  }
  0xce   : > { %6696 = vsyncadd (%p8559_p4), [#allocation10], 4294957056  ;;  %v7116_v1 = vld [vmem:[#allocation8 + $0x140] sm:$0xff]   ;;  %5228 = vmatprep.subr.bf16.mxu0 %v6317_v0  ;;  %v7120_v4 = vld [vmem:[#allocation8 + $0x148] sm:$0xff]   ;;  %s8562_s30 = sld [smem:[#allocation24_spill]]  ;;  %vm601_vm5 = vcmask 1046528  }
  0xcf   : > { %v6319_v2 = vld [vmem:[#allocation8 + $0xc0] sm:$0xff]   ;;  %6002 = vmatprep.subr.bf16.mxu1 %v7116_v1  ;;  %v6322_v5 = vld [vmem:[#allocation8 + $0xc8] sm:$0xff]   ;;  %v7123_v7 = vld [vmem:[#allocation8 + $0x150] sm:$0xff]   ;;  %s554_s25 = scalar_select %p514_p8, 1, 0  ;;  %vm6740_vm6 = vmmov 1  }
  0xd0   : > { %5229 = vmatpush3.bf16.msra.mxu0 %v6319_v2  ;;  %6010 = vmatpush3.bf16.msra.mxu1 %v7116_v1  ;;  %v6325_v8 = vld [vmem:[#allocation8 + $0xd0] sm:$0xff]   ;;  %v6326_v9 = vld [vmem:[#allocation8 + $0x118] sm:$0xff]   ;;  %v6329_v12 = vld [vmem:[#allocation8 + $0x120] sm:$0xff]   ;;  %s7182_s8 = scalar_select %p515_p12, 1, 0 }
  0xd1   : > { %5230 = vmatprep.subr.bf16.mxu0 %v6320_v3  ;;  %6003 = vmatprep.subr.bf16.mxu1 %v7120_v4  ;;  %v7127_v10 = vld [vmem:[#allocation8 + $0x158] sm:$0xff]   ;;  %v7131_v13 = vld [vmem:[#allocation8 + $0x160] sm:$0xff]   ;;  %v6332_v15 = vld [vmem:[#allocation8 + $0x128] sm:$0xff]   ;;  %v555_v20 = vstv %s554_s25  ;;  %p2354_p2 = scmp.ne.s32.totalorder %s6715_s20, 0  ;;  %s8575_s10 = sld [smem:[#allocation26_spill]] }
  0xd2   : > { %v6328_v11 = vld [vmem:[#allocation8 + $0xd8] sm:$0xff]   ;;  %v6331_v14 = vld [vmem:[#allocation8 + $0xe0] sm:$0xff]   ;;  %v7136_v16 = vld [vmem:[#allocation8 + $0x168] sm:$0xff]   ;;  %vm7152_vm0 = vcmp.eq.s32.totalorder %v555_v20, 1  ;;  %p2398_p6 = scmp.ne.s32.totalorder %s6715_s20, 1  ;;  %s8576_s28 = sld [smem:[#allocation27_spill]] }
  0xd3   : > { %v6334_v17 = vld [vmem:[#allocation8 + $0xe8] sm:$0xff]   ;;  %v6335_v18 = vld [vmem:[#allocation8 + $0x130] sm:$0xff]   ;;  %v6338_v22 = vld [vmem:[#allocation8 + $0x138] sm:$0xff]   ;;  %s2375_s4 = scalar_select %p2354_p2, 1, 0 }
  0xd4   : > { %5231 = vmatpush3.bf16.msra.mxu0 %v6322_v5  ;;  %6011 = vmatpush3.bf16.msra.mxu1 %v7120_v4  ;;  %v7140_v19 = vld [vmem:[#allocation8 + $0x170] sm:$0xff]   ;;  %v4797_v23 = vld [vmem:[%s7102_s26 + $0x8] sm:$0xff]   ;;  %v7147_v24 = vld [vmem:[%s8501_s2] ss:$0 sm:$0xff]  ;;  %v578_v5 = vstv %s7182_s8  ;;  %s7848_s0 = scalar_select %p2398_p6, 1, 0 }
  0xd5   : > { %5232 = vmatprep.subr.bf16.mxu0 %v6323_v6  ;;  %6004 = vmatprep.subr.bf16.mxu1 %v7123_v7  ;;  %v6337_v21 = vld [vmem:[#allocation8 + $0xf0] sm:$0xff]   ;;  %v7150_v25 = vld [vmem:[#allocation8 + $0x178] sm:$0xff]   ;;  %v4715_v26 = vunpack.c.l.bf16 %v4797_v23  ;;  %v4716_v27 = vunpack.c.h.bf16 %v4797_v23  ;;  %v4800_v29 = vld [vmem:[%s7094_s7 + $0x8] sm:$0xff]   ;;  %vm7340_vm9 = vcmp.eq.s32.totalorder %v578_v5, 1  ;;  %s8581_s21 = sld [smem:[#allocation30_spill]]  ;;  %s8582_s27 = sld [smem:[#allocation31_spill]] }
  0xd6   : > { %v4801_v30 = vld [vmem:[%s7094_s7 + $0x10] sm:$0xff]   ;;  %v7162_v31 = vld [vmem:[%s8562_s30] ss:$0 sm:$0xff]  ;;  %v4731_v32 = vunpack.c.l.bf16 %v4800_v29  ;;  %v4732_v33 = vunpack.c.h.bf16 %v4800_v29  ;;  %vm4814_vm1 = vmneg %vm7152_vm0  ;;  %s8397_s11 = scalar_lea.vmem [#allocation12], %s4494_s15  ;;  %s8583_s15 = sld [smem:[#allocation19_spill]] }
  0xd7   : > { %v4735_v34 = vunpack.c.l.bf16 %v4801_v30  ;;  %v4736_v35 = vunpack.c.h.bf16 %v4801_v30  ;;  %v537_v36 = vmul.f32 %v4715_v26, %v7147_v24  ;;  %v538_v37 = vmul.f32 %v4716_v27, %v7147_v24  ;;  %v6340_v38 = vld [vmem:[#allocation8 + $0xf8] sm:$0xff]   ;;  %v6341_v45 = vld [vmem:[#allocation8 + $0x40] sm:$0xff]   ;;  %vm7185_vm3 = vmneg %vm588_vm2  ;;  %s4708_s3 = sshll.u32 %s6715_s20, 4  ;;  %s4333_s20 = sshll.u32 %s8397_s11, 4  ;;  %s8438_s20 = int_to_ptr.vmem [resolvable:$true] %s4333_s20 }
  0xd8   : > { %5233 = vmatpush3.bf16.msra.mxu0 %v6325_v8  ;;  %6012 = vmatpush3.bf16.msra.mxu1 %v7123_v7  ;;  %v667_v39 = vmul.f32 %v4731_v32, %v7147_v24  ;;  %v668_v40 = vmul.f32 %v4732_v33, %v7147_v24  ;;  %v4726_v49 = vld [vmem:[%s7094_s7] sm:$0xff]   ;;  %vm7195_vm4 = vmpackc.low %vm4814_vm1, %vm4814_vm1  ;;  %v4802_v0 = vld [vmem:[%s7094_s7 + $0x18] sm:$0xff]   ;;  %s4317_s14 = scalar_lea.sflag [#allocation5], %s7088_s12  ;;  %s6621_s16 = scalar_lea.vmem %s8438_s20, 1024 }
  0xd9   : > { %5234 = vmatprep.subr.bf16.mxu0 %v6326_v9  ;;  %6005 = vmatprep.subr.bf16.mxu1 %v7127_v10  ;;  %v669_v41 = vmul.f32 %v4735_v34, %v7147_v24  ;;  %v548_v42 = vadd.f32 %v7162_v31, %v537_v36  ;;  %v549_v43 = vadd.f32 %v7162_v31, %v538_v37  ;;  %v4727_v54 = vunpack.c.l.bf16 %v4726_v49  ;;  %vm7229_vm7 = vmpackc.low %vm6740_vm6, %vm7185_vm3  ;;  %v4803_v20 = vld [vmem:[%s7094_s7 + $0x20] sm:$0xff]   ;;  %v4804_v29 = vld [vmem:[%s7094_s7 + $0x28] sm:$0xff]   ;;  %p6622_p10 = scmp.ne.s32.totalorder %s8438_s20, %s6621_s16 }
  0xda   : > { %v670_v44 = vmul.f32 %v4736_v35, %v7147_v24  ;;  %v690_v46 = vadd.f32 %v7162_v31, %v667_v39  ;;  %v691_v47 = vadd.f32 %v7162_v31, %v668_v40  ;;  %v4728_v59 = vunpack.c.h.bf16 %v4726_v49  ;;  %vm7241_vm8 = vmpackc.low %vm601_vm5, %vm6740_vm6  ;;  %v6342_v33 = vld [vmem:[#allocation8] sm:$0xff]   ;;  %v6343_v36 = vld [vmem:[#allocation8 + $0x48] sm:$0xff]  }
  0xdb   : > { %v692_v48 = vadd.f32 %v7162_v31, %v669_v41  ;;  %v552_v50 = vmax.f32 %v548_v42, 0.0  ;;  %v553_v51 = vmax.f32 %v549_v43, 0.0  ;;  %v4740_v27 = vunpack.c.h.bf16 %v4802_v0  ;;  %v6350_v5 = vld [vmem:[#allocation8 + $0x20] sm:$0xff]   ;;  %vm4855_vm10 = vmneg %vm7340_vm9  ;;  %v6476_v9 = vld [vmem:[%s7094_s7 + $0x38] sm:$0xff]   ;;  %p6623_p5 = pnand %p6622_p10, %p6975_p3 }
  0xdc   : > { %5235 = vmatpush3.bf16.msra.mxu0 %v6328_v11  ;;  %6013 = vmatpush3.bf16.msra.mxu1 %v7127_v10  ;;  %v693_v53 = vadd.f32 %v7162_v31, %v670_v44  ;;  %v7199_v56 = vmax.f32 %v690_v46, 0.0  ;;  %v7201_v57 = vmax.f32 %v691_v47, 0.0  ;;  %v4743_v39 = vunpack.c.l.bf16 %v4803_v20  ;;  %v6362_v28 = vld [vmem:[#allocation8 + $0x1c0] sm:$0xff]   ;;  %vm7542_vm11 = vmpackc.low %vm4855_vm10, %vm4855_vm10  ;;  %s4687_s6 = sshll.u32 %s8583_s15, 5 }
  0xdd   : > { %5236 = vmatprep.subr.bf16.mxu0 %v6329_v12  ;;  %6006 = vmatprep.subr.bf16.mxu1 %v7131_v13  ;;  %v7203_v58 = vmax.f32 %v692_v48, 0.0  ;;  %v7207_v60 = vsel %vm7152_vm0, 0.0, %v552_v50  ;;  %v7211_v61 = vsel %vm7152_vm0, 0.0, %v553_v51  ;;  %v7213_v62 = vpack.c.bf16 %v553_v51, %v552_v50  ;;  %s4330_s30 = sadd.s32 %s4708_s3, %s4687_s6  ;;  %p6624_p7 = pneg %p6623_p5 }
  0xde   : > { %v7215_v63 = vmax.f32 %v693_v53, 0.0  ;;  %v592_v2 = vrot.slane %v7207_v60, 7  ;;  %v593_v3 = vrot.slane %v7211_v61, 7  ;;  %v787_v6 = vrot.slane %v7199_v56, 1  ;;  %s4688_s8 = sshll.u32 %s4330_s30, 6 }
  0xdf   : > { %4818 = vmatprep.mubr.msk.bf16.mxu0 %vm7195_vm4, %v7213_v62  ;;  %v788_v8 = vrot.slane %v7201_v57, 1  ;;  %v790_v11 = vrot.slane %v7203_v58, 1  ;;  %v4744_v40 = vunpack.c.h.bf16 %v4803_v20  ;;  %v7266_v43 = vpack.c.bf16 %v7201_v57, %v7199_v56  ;;  %v4805_v20 = vld [vmem:[%s7094_s7 + $0x30] sm:$0xff]  }
  0xe0   : > { %5237 = vmatpush3.bf16.msra.mxu0 %v6331_v14  ;;  %6014 = vmatpush3.bf16.msra.mxu1 %v7131_v13  ;;  %v791_v12 = vrot.slane %v7215_v63, 1  ;;  %v594_v14 = vsel %vm588_vm2, %v592_v2, %v593_v3  ;;  %v4747_v44 = vunpack.c.l.bf16 %v4804_v29  ;;  %v673_v47 = vmul.f32 %v4743_v39, %v7147_v24 }
  0xe1   : > { %5238 = vmatprep.subr.bf16.mxu0 %v6332_v15  ;;  %6007 = vmatprep.subr.bf16.mxu1 %v7136_v16  ;;  %v665_v15 = vmul.f32 %v4727_v54, %v7147_v24  ;;  %v7245_v23 = vpack.c.bf16 %v594_v14, %v592_v2  ;;  %v674_v48 = vmul.f32 %v4744_v40, %v7147_v24  ;;  %v6345_v2 = vld [vmem:[#allocation8 + $0x50] sm:$0xff]   ;;  %v6348_v40 = vld [vmem:[#allocation8 + $0x18] sm:$0xff]  }
  0xe2   : > { %v792_v26 = vsel %vm601_vm5, %v790_v11, %v791_v12  ;;  %v675_v11 = vmul.f32 %v4747_v44, %v7147_v24  ;;  %v4752_v44 = vunpack.c.h.bf16 %v4805_v20 }
  0xe3   : > { %v7251_v32 = vpack.c.bf16 %v791_v12, %v792_v26  ;;  %v688_v34 = vadd.f32 %v7162_v31, %v665_v15 }
  0xe4   : > { %5239 = vmatpush3.bf16.msra.mxu0 %v6334_v17  ;;  %6015 = vmatpush3.bf16.msra.mxu1 %v7136_v16  ;;  %v666_v17 = vmul.f32 %v4728_v59, %v7147_v24 }
  0xe5   : > { %5240 = vmatprep.subr.bf16.mxu0 %v6335_v18  ;;  %6008 = vmatprep.subr.bf16.mxu1 %v7140_v19  ;;  %v4739_v18 = vunpack.c.l.bf16 %v4802_v0  ;;  %v704_v41 = vmax.f32 %v688_v34, 0.0  ;;  %v696_v0 = vadd.f32 %v7162_v31, %v673_v47  ;;  %v698_v34 = vadd.f32 %v7162_v31, %v675_v11 }
  0xe6   : > { %v689_v35 = vadd.f32 %v7162_v31, %v666_v17  ;;  %v742_v11 = vrot.slane %v7203_v58, 7 }
  0xe7   : > { %v671_v37 = vmul.f32 %v4739_v18, %v7147_v24  ;;  %v784_v49 = vrot.slane %v704_v41, 1  ;;  %v736_v52 = vrot.slane %v704_v41, 7  ;;  %v6346_v18 = vld [vmem:[#allocation8 + $0x10] sm:$0xff]   ;;  %v7297_v26 = vmax.f32 %v696_v0, 0.0  ;;  %v6349_v0 = vld [vmem:[#allocation8 + $0x60] sm:$0xff]  }
  0xe8   : > { %5241 = vmatpush3.bf16.msra.mxu0 %v6337_v21  ;;  %6016 = vmatpush3.bf16.msra.mxu1 %v7140_v19  ;;  %v789_v21 = vsel %vm601_vm5, %v787_v6, %v788_v8  ;;  %v705_v42 = vmax.f32 %v689_v35, 0.0  ;;  %v697_v6 = vadd.f32 %v7162_v31, %v674_v48  ;;  %v739_v35 = vrot.slane %v7199_v56, 7 }
  0xe9   : > { %5242 = vmatprep.subr.bf16.mxu0 %v6338_v22  ;;  %6009 = vmatprep.subr.bf16.mxu1 %v7150_v25  ;;  %v7249_v30 = vpack.c.bf16 %v788_v8, %v789_v21  ;;  %v4748_v8 = vunpack.c.h.bf16 %v4804_v29 }
  0xea   : > { %v785_v50 = vrot.slane %v705_v42, 1  ;;  %v7275_v51 = vpack.c.bf16 %v705_v42, %v704_v41  ;;  %v737_v59 = vrot.slane %v705_v42, 7  ;;  %v7315_v42 = vmax.f32 %v698_v34, 0.0 }
  0xeb   : > { %5786 = vmatprep.mubr.msk.bf16.mxu1 %vm7241_vm8, %v7249_v30 }
  0xec   : > { %5243 = vmatpush3.bf16.msra.mxu0 %v6340_v38  ;;  %6017 = vmatpush3.bf16.msra.mxu1 %v7150_v25  ;;  %v672_v38 = vmul.f32 %v4740_v27, %v7147_v24  ;;  %v786_v3 = vsel %vm601_vm5, %v784_v49, %v785_v50  ;;  %v738_v17 = vsel %vm588_vm2, %v736_v52, %v737_v59  ;;  %v7299_v27 = vmax.f32 %v697_v6, 0.0  ;;  %v4798_v49 = vld [vmem:[%s7102_s26 + $0x10] sm:$0xff]  }
  0xed   : > { %5322 = vmatprep.subr.bf16.mxu1 %v6341_v45  ;;  %5766 = vmatprep.subr.bf16.mxu0 %v7116_v1  ;;  %v694_v45 = vadd.f32 %v7162_v31, %v671_v37  ;;  %v7288_v12 = vpack.c.bf16 %v785_v50, %v786_v3  ;;  %v7295_v21 = vpack.c.bf16 %v738_v17, %v736_v52  ;;  %v743_v17 = vrot.slane %v7215_v63, 7 }
  0xee   : > { %v695_v46 = vadd.f32 %v7162_v31, %v672_v38  ;;  %v796_v38 = vrot.slane %v7297_v26, 1  ;;  %v797_v39 = vrot.slane %v7299_v27, 1  ;;  %v678_v59 = vmul.f32 %v4752_v44, %v7147_v24 }
  0xef   : > { %4822 = vmatmul.mubr.msk.bf16.vlgmr.msra.gmra.mrb[0].mxu0 %vm7229_vm7, %v7245_v23  ;;  %5787 = vmatmul.mubr.msk.bf16.vlgmr.msra.gmra.mrb[0].mxu1 %vm7241_vm8, %v7251_v32  ;;  %v7278_v53 = vmax.f32 %v694_v45, 0.0  ;;  %v4806_v45 = vld [vmem:[%s7094_s7 + $0x38] sm:$0xff]  }
  0xf0   : > { %5767 = vmatpush3.bf16.msra.mxu0 %v7116_v1  ;;  %5323 = vmatpush3.bf16.msra.mxu1 %v6342_v33  ;;  %v6344_v1 = vld [vmem:[#allocation8 + $0x8] sm:$0xff]   ;;  %v7280_v54 = vmax.f32 %v695_v46, 0.0  ;;  %v6347_v33 = vld [vmem:[#allocation8 + $0x58] sm:$0xff]   ;;  %v798_v46 = vsel %vm601_vm5, %v796_v38, %v797_v39  ;;  %v4755_v6 = vunpack.c.l.bf16 %v4806_v45 }
  0xf1   : > { %5768 = vmatprep.subr.bf16.mxu0 %v7120_v4  ;;  %5324 = vmatprep.subr.bf16.mxu1 %v6343_v36  ;;  %v793_v14 = vrot.slane %v7278_v53, 1  ;;  %v740_v36 = vrot.slane %v7201_v57, 7  ;;  %v4751_v57 = vunpack.c.l.bf16 %v4805_v20  ;;  %v7333_v50 = vpack.c.bf16 %v797_v39, %v798_v46 }
  0xf2   : > { %1234 = vmatprep.mubr.bf16.mxu0 %v7275_v51  ;;  %v794_v15 = vrot.slane %v7280_v54, 1 }
  0xf3   : > { %v741_v56 = vsel %vm588_vm2, %v739_v35, %v740_v36  ;;  %v677_v52 = vmul.f32 %v4751_v57, %v7147_v24  ;;  %v4710_v36 = vld [vmem:[%s7102_s26] sm:$0xff]  }
  0xf4   : > { %5769 = vmatpush3.bf16.msra.mxu0 %v7120_v4  ;;  %5325 = vmatpush3.bf16.msra.mxu1 %v6344_v1  ;;  %v676_v4 = vmul.f32 %v4748_v8, %v7147_v24  ;;  %v795_v29 = vsel %vm601_vm5, %v793_v14, %v794_v15  ;;  %v7326_v48 = vpack.c.bf16 %v741_v56, %v739_v35  ;;  %v4756_v8 = vunpack.c.h.bf16 %v4806_v45 }
  0xf5   : > { %5770 = vmatprep.subr.bf16.mxu0 %v7123_v7  ;;  %5326 = vmatprep.subr.bf16.mxu1 %v6345_v2  ;;  %v7306_v37 = vpack.c.bf16 %v794_v15, %v795_v29  ;;  %v7330_v1 = vpack.c.bf16 %v7215_v63, %v7203_v58  ;;  %v700_v14 = vadd.f32 %v7162_v31, %v677_v52  ;;  %v4720_v29 = vunpack.c.h.bf16 %v4798_v49  ;;  %v6351_v63 = vld [vmem:[#allocation8 + $0x68] sm:$0xff]  }
  0xf6   : > { %v699_v41 = vadd.f32 %v7162_v31, %v676_v4  ;;  %v701_v15 = vadd.f32 %v7162_v31, %v678_v59  ;;  %v679_v58 = vmul.f32 %v4755_v6, %v7147_v24  ;;  %v680_v4 = vmul.f32 %v4756_v8, %v7147_v24 }
  0xf7   : > { %4826 = vmatmul.mubr.msk.bf16.gmra.mrb[4].mxu0 %vm7229_vm7, %v7295_v21  ;;  %5790 = vmatprep.mubr.msk.bf16.mxu1 %vm7241_vm8, %v7306_v37  ;;  %v7360_v34 = vmax.f32 %v700_v14, 0.0  ;;  %v566_v44 = vmul.f32 %v4720_v29, %v7147_v24  ;;  %v7383_v45 = vpack.c.bf16 %v7280_v54, %v7278_v53  ;;  %v4711_v52 = vunpack.c.l.bf16 %v4710_v36  ;;  %v6354_v29 = vld [vmem:[#allocation8 + $0x30] sm:$0xff]  }
  0xf8   : > { %1242 = vmatprep.mubr.bf16.mxu0 %v7266_v43  ;;  %5771 = vmatpush3.bf16.msra.mxu0 %v7123_v7  ;;  %v7324_v47 = vmax.f32 %v699_v41, 0.0  ;;  %v799_v7 = vrot.slane %v7315_v42, 1  ;;  %v7362_v35 = vmax.f32 %v701_v15, 0.0  ;;  %v702_v38 = vadd.f32 %v7162_v31, %v679_v58 }
  0xf9   : > { %5327 = vmatpush3.bf16.msra.mxu1 %v6346_v18  ;;  %5772 = vmatprep.subr.bf16.mxu0 %v7127_v10  ;;  %v4719_v18 = vunpack.c.l.bf16 %v4798_v49  ;;  %v703_v39 = vadd.f32 %v7162_v31, %v680_v4  ;;  %v802_v56 = vrot.slane %v7360_v34, 1  ;;  %v4712_v6 = vunpack.c.h.bf16 %v4710_v36 }
  0xfa   : > { %5328 = vmatprep.subr.bf16.mxu1 %v6347_v33  ;;  %v800_v3 = vrot.slane %v7324_v47, 1  ;;  %5791 = vmatmul.mubr.msk.bf16.gmra.mrb[4].mxu1 %vm7241_vm8, %v7333_v50  ;;  %v803_v57 = vrot.slane %v7362_v35, 1  ;;  %v7385_v46 = vmax.f32 %v702_v38, 0.0  ;;  %v745_v8 = vrot.slane %v7278_v53, 7  ;;  %v6355_v38 = vld [vmem:[#allocation8 + $0x78] sm:$0xff]  }
  0xfb   : > { %v565_v41 = vmul.f32 %v4719_v18, %v7147_v24  ;;  %v7387_v49 = vmax.f32 %v703_v39, 0.0  ;;  %v535_v18 = vmul.f32 %v4711_v52, %v7147_v24  ;;  %v746_v58 = vrot.slane %v7280_v54, 7 }
  0xfc   : > { %5773 = vmatpush3.bf16.msra.mxu0 %v7127_v10  ;;  %v801_v20 = vsel %vm601_vm5, %v799_v7, %v800_v3  ;;  %v744_v10 = vsel %vm588_vm2, %v742_v11, %v743_v17  ;;  %v804_v59 = vsel %vm601_vm5, %v802_v56, %v803_v57  ;;  %v805_v14 = vrot.slane %v7385_v46, 1 }
  0xfd   : > { %5329 = vmatpush3.bf16.msra.mxu1 %v6348_v40  ;;  %5774 = vmatprep.subr.bf16.mxu0 %v7131_v13  ;;  %v7358_v33 = vpack.c.bf16 %v800_v3, %v801_v20  ;;  %v7371_v40 = vpack.c.bf16 %v744_v10, %v742_v11  ;;  %v7390_v7 = vadd.f32 %v7162_v31, %v565_v41  ;;  %v806_v15 = vrot.slane %v7387_v49, 1 }
  0xfe   : > { %5330 = vmatprep.subr.bf16.mxu1 %v6349_v0  ;;  %v6352_v0 = vld [vmem:[#allocation8 + $0x28] sm:$0xff]   ;;  %v7395_v3 = vadd.f32 %v7162_v31, %v566_v44  ;;  %v7399_v11 = vpack.c.bf16 %v803_v57, %v804_v59  ;;  %v536_v20 = vmul.f32 %v4712_v6, %v7147_v24  ;;  %v546_v36 = vadd.f32 %v7162_v31, %v535_v18  ;;  %v6356_v59 = vld [vmem:[#allocation8 + $0x38] sm:$0xff]  }
  0xff   : > { %4830 = vmatmul.mubr.msk.bf16.gmra.mrb[8].mxu0 %vm7229_vm7, %v7326_v48  ;;  %5794 = vmatprep.mubr.msk.bf16.mxu1 %vm7241_vm8, %v7358_v33  ;;  %v807_v53 = vsel %vm601_vm5, %v805_v14, %v806_v15  ;;  %v747_v56 = vsel %vm588_vm2, %v745_v8, %v746_v58  ;;  %v605_v57 = vrot.slane %v7207_v60, 1  ;;  %v606_v44 = vrot.slane %v7211_v61, 1 }
 0x100   : > { %1250 = vmatprep.mubr.bf16.mxu0 %v7330_v1  ;;  %5775 = vmatpush3.bf16.msra.mxu0 %v7131_v13  ;;  %v573_v13 = vmax.f32 %v7390_v7, 0.0  ;;  %v574_v17 = vmax.f32 %v7395_v3, 0.0  ;;  %v547_v39 = vadd.f32 %v7162_v31, %v536_v20  ;;  %v550_v41 = vmax.f32 %v546_v36, 0.0  ;;  %v6357_v20 = vld [vmem:[#allocation8 + $0x80] sm:$0xff]  }
 0x101   : > { %5331 = vmatpush3.bf16.msra.mxu1 %v6350_v5  ;;  %5776 = vmatprep.subr.bf16.mxu0 %v7136_v16  ;;  %v6353_v5 = vld [vmem:[#allocation8 + $0x70] sm:$0xff]   ;;  %v7452_v18 = vpack.c.bf16 %v747_v56, %v745_v8  ;;  %v7456_v58 = vpack.c.bf16 %v7299_v27, %v7297_v26  ;;  %v751_v56 = vrot.slane %v7315_v42, 7  ;;  %v757_v55 = vrot.slane %v7385_v46, 7 }
 0x102   : > { %5332 = vmatprep.subr.bf16.mxu1 %v6351_v63  ;;  %5795 = vmatmul.mubr.msk.bf16.gmra.mrb[8].mxu1 %vm7241_vm8, %v7399_v11  ;;  %v7416_v4 = vsel %vm7340_vm9, 0.0, %v573_v13  ;;  %v7419_v63 = vpack.c.bf16 %v806_v15, %v807_v53  ;;  %v7425_v54 = vsel %vm7340_vm9, 0.0, %v574_v17  ;;  %v557_v14 = vsel %vm7152_vm0, 0.0, %v550_v41 }
 0x103   : > { %v896_v10 = vrot.slane %v7416_v4, 1  ;;  %v748_v15 = vrot.slane %v7297_v26, 7  ;;  %v589_v61 = vrot.slane %v557_v14, 7  ;;  %v749_v53 = vrot.slane %v7299_v27, 7 }
 0x104   : > { %5777 = vmatpush3.bf16.msra.mxu0 %v7136_v16  ;;  %v897_v16 = vrot.slane %v7425_v54, 1  ;;  %5798 = vmatprep.mubr.msk.bf16.mxu1 %vm7241_vm8, %v7419_v63  ;;  %v602_v8 = vrot.slane %v557_v14, 1  ;;  %v607_v26 = vsel %vm601_vm5, %v605_v57, %v606_v44  ;;  %v752_v57 = vrot.slane %v7324_v47, 7  ;;  %v6360_v14 = vld [vmem:[#allocation8 + $0x98] sm:$0xff]  }
 0x105   : > { %5333 = vmatpush3.bf16.msra.mxu1 %v6352_v0  ;;  %5778 = vmatprep.subr.bf16.mxu0 %v7140_v19  ;;  %v551_v0 = vmax.f32 %v547_v39, 0.0  ;;  %v750_v27 = vsel %vm588_vm2, %v748_v15, %v749_v53 }
 0x106   : > { %5334 = vmatprep.subr.bf16.mxu1 %v6353_v5  ;;  %v898_v52 = vsel %vm601_vm5, %v896_v10, %v897_v16 }
 0x107   : > { %4834 = vmatmul.mubr.msk.bf16.gmra.mrb[12].mxu0 %vm7229_vm7, %v7371_v40  ;;  %v7444_v6 = vpack.c.bf16 %v897_v16, %v898_v52  ;;  %v558_v60 = vsel %vm7152_vm0, 0.0, %v551_v0  ;;  %v4897_v5 = vpack.c.bf16 %v551_v0, %v550_v41  ;;  %v7474_v16 = vpack.c.bf16 %v750_v27, %v748_v15 }
 0x108   : > { %1258 = vmatprep.mubr.bf16.mxu0 %v7383_v45  ;;  %5779 = vmatpush3.bf16.msra.mxu0 %v7140_v19  ;;  %v590_v19 = vrot.slane %v558_v60, 7  ;;  %v603_v36 = vrot.slane %v558_v60, 1  ;;  %v7479_v41 = vpack.c.bf16 %v7324_v47, %v7315_v42  ;;  %v885_v42 = vrot.slane %v7425_v54, 7  ;;  %v6366_v54 = vld [vmem:[#allocation8 + $0x188] sm:$0xff]  }
 0x109   : > { %5335 = vmatpush3.bf16.msra.mxu1 %v6354_v29  ;;  %5780 = vmatprep.subr.bf16.mxu0 %v7150_v25  ;;  %v753_v47 = vsel %vm588_vm2, %v751_v56, %v752_v57  ;;  %v755_v0 = vrot.slane %v7362_v35, 7  ;;  %v7504_v60 = vpack.c.bf16 %v7362_v35, %v7360_v34 }
 0x10a   : > { %5336 = vmatprep.subr.bf16.mxu1 %v6355_v38  ;;  %5799 = vmatmul.mubr.msk.bf16.gmra.mrb[12].mxu1 %vm7241_vm8, %v7444_v6  ;;  %v591_v29 = vsel %vm588_vm2, %v589_v61, %v590_v19  ;;  %v6358_v38 = vld [vmem:[#allocation8 + $0x88] sm:$0xff]   ;;  %v604_v39 = vsel %vm601_vm5, %v602_v8, %v603_v36  ;;  %v7500_v15 = vpack.c.bf16 %v753_v47, %v751_v56  ;;  %v6376_v47 = vld [vmem:[#allocation8 + $0xb8] sm:$0xff]  }
 0x10b   : > { %4898 = vmatprep.mubr.msk.bf16.mxu1 %vm7195_vm4, %v4897_v5  ;;  %v4901_v10 = vpack.c.bf16 %v591_v29, %v589_v61  ;;  %v7483_v52 = vpack.c.bf16 %v603_v36, %v604_v39  ;;  %v884_v61 = vrot.slane %v7416_v4, 7  ;;  %v6361_v5 = vld [vmem:[#allocation8 + $0xa0] sm:$0xff]   ;;  %v6364_v4 = vld [vmem:[#allocation8 + $0xa8] sm:$0xff]  }
 0x10c   : > { %5781 = vmatpush3.bf16.msra.mxu0 %v7150_v25  ;;  %v7472_v25 = vpack.c.bf16 %v606_v44, %v607_v26  ;;  %v6359_v44 = vld [vmem:[#allocation8 + $0x90] sm:$0xff]   ;;  %v7525_v26 = vpack.c.bf16 %v7387_v49, %v7385_v46 }
 0x10d   : > { %5337 = vmatpush3.bf16.msra.mxu1 %v6356_v59  ;;  %5416 = vmatprep.subr.bf16.mxu0 %v6362_v28  ;;  %v754_v59 = vrot.slane %v7360_v34, 7  ;;  %v886_v7 = vsel %vm588_vm2, %v884_v61, %v885_v42  ;;  %v6367_v42 = vld [vmem:[#allocation8 + $0x1d0] sm:$0xff]  }
 0x10e   : > { %5802 = vmatprep.subr.bf16.mxu1 %v6357_v20  ;;  %v7575_v3 = vpack.c.bf16 %v886_v7, %v884_v61  ;;  %v6369_v61 = vld [vmem:[#allocation8 + $0x1d8] sm:$0xff]  }
 0x10f   : > { %4838 = vmatmul.mubr.msk.bf16.gmra.mrb[16].mxu0 %vm7229_vm7, %v7452_v18  ;;  %v756_v34 = vsel %vm588_vm2, %v754_v59, %v755_v0 }
 0x110   : > { %1266 = vmatprep.mubr.bf16.mxu0 %v7456_v58  ;;  %v7521_v8 = vpack.c.bf16 %v756_v34, %v754_v59  ;;  %v6373_v34 = vld [vmem:[#allocation8 + $0x1a0] sm:$0xff]  }
 0x112   : > { %4902 = vmatmul.mubr.msk.bf16.vlgmr.msra.gmra.mrb[16].mxu1 %vm7229_vm7, %v4901_v10 }
 0x113   : > { %5803 = vmatpush3.bf16.msra.mxu1 %v6357_v20  ;;  %4907 = vmatprep.mubr.msk.bf16.mxu1 %vm7195_vm4, %v7213_v62  ;;  %v758_v62 = vrot.slane %v7387_v49, 7  ;;  %v4799_v20 = vld [vmem:[%s7102_s26 + $0x18] sm:$0xff]  }
 0x114   : > { %5804 = vmatprep.subr.bf16.mxu1 %v6358_v38  ;;  %v4723_v19 = vunpack.c.l.bf16 %v4799_v20  ;;  %v4724_v53 = vunpack.c.h.bf16 %v4799_v20  ;;  %v7560_v20 = vpack.c.bf16 %v574_v17, %v573_v13  ;;  %v6363_v13 = vld [vmem:[#allocation8 + $0x180] sm:$0xff]   ;;  %v6365_v17 = vld [vmem:[#allocation8 + $0x1c8] sm:$0xff]  }
 0x116   : > { %v568_v35 = vmul.f32 %v4724_v53, %v7147_v24  ;;  %v6372_v53 = vld [vmem:[#allocation8 + $0x1e0] sm:$0xff]  }
 0x117   : > { %4842 = vmatmul.mubr.msk.bf16.gmra.mrb[20].mxu0 %vm7229_vm7, %v7474_v16  ;;  %5805 = vmatpush3.bf16.msra.mxu1 %v6358_v38 }
 0x118   : > { %1274 = vmatprep.mubr.bf16.mxu0 %v7479_v41  ;;  %5806 = vmatprep.subr.bf16.mxu1 %v6359_v44  ;;  %v572_v29 = vadd.f32 %v7162_v31, %v568_v35  ;;  %v6377_v35 = vld [vmem:[#allocation8 + $0x1f0] sm:$0xff]  }
 0x11a   : > { %4911 = vmatmul.mubr.msk.bf16.gmra.mrb[20].mxu1 %vm7229_vm7, %v7245_v23  ;;  %v567_v23 = vmul.f32 %v4723_v19, %v7147_v24  ;;  %v576_v10 = vmax.f32 %v572_v29, 0.0  ;;  %v6370_v24 = vld [vmem:[#allocation8 + $0xb0] sm:$0xff]   ;;  %v6371_v19 = vld [vmem:[#allocation8 + $0x198] sm:$0xff]  }
 0x11b   : > { %1612 = vmatprep.mubr.bf16.mxu1 %v7275_v51  ;;  %5807 = vmatpush3.bf16.msra.mxu1 %v6359_v44  ;;  %v759_v44 = vsel %vm588_vm2, %v757_v55, %v758_v62  ;;  %v6381_v62 = vld [vmem:[#allocation8 + $0x200] sm:$0xff]   ;;  %v6380_v29 = vld [vmem:[#allocation8 + $0x1b8] sm:$0xff]  }
 0x11c   : > { %5808 = vmatprep.subr.bf16.mxu1 %v6360_v14  ;;  %v571_v28 = vadd.f32 %v7162_v31, %v567_v23  ;;  %v583_v31 = vsel %vm7340_vm9, 0.0, %v576_v10  ;;  %v6374_v23 = vld [vmem:[#allocation8 + $0x1e8] sm:$0xff]  }
 0x11d   : > { %v888_v38 = vrot.slane %v583_v31, 7  ;;  %v900_v57 = vrot.slane %v583_v31, 1 }
 0x11e   : > { %v575_v27 = vmax.f32 %v571_v28, 0.0  ;;  %v6379_v28 = vld [vmem:[#allocation8 + $0x1f8] sm:$0xff]  }
 0x11f   : > { %4846 = vmatmul.mubr.msk.bf16.gmra.mrb[24].mxu0 %vm7229_vm7, %v7500_v15  ;;  %5809 = vmatpush3.bf16.msra.mxu1 %v6360_v14 }
 0x120   : > { %1282 = vmatprep.mubr.bf16.mxu0 %v7504_v60  ;;  %5810 = vmatprep.subr.bf16.mxu1 %v6361_v5  ;;  %v7535_v36 = vpack.c.bf16 %v576_v10, %v575_v27  ;;  %v582_v46 = vsel %vm7340_vm9, 0.0, %v575_v27  ;;  %v6382_v27 = vld [vmem:[#allocation8 + $0x208] sm:$0xff]   ;;  %v6398_v10 = vld [vmem:[#allocation9 + $0xe0] sm:$0xff]  }
 0x121   : > { %v887_v39 = vrot.slane %v582_v46, 7  ;;  %v899_v56 = vrot.slane %v582_v46, 1  ;;  %v6400_v46 = vld [vmem:[#allocation9 + $0x148] sm:$0xff]  }
 0x122   : > { %4915 = vmatmul.mubr.msk.bf16.gmra.mrb[24].mxu1 %vm7229_vm7, %v7295_v21 }
 0x123   : > { %1620 = vmatprep.mubr.bf16.mxu1 %v7266_v43  ;;  %5811 = vmatpush3.bf16.msra.mxu1 %v6361_v5  ;;  %v889_v2 = vsel %vm588_vm2, %v887_v39, %v888_v38  ;;  %v901_v59 = vsel %vm601_vm5, %v899_v56, %v900_v57  ;;  %v7554_v5 = vpack.c.bf16 %v759_v44, %v757_v55  ;;  %v6368_v55 = vld [vmem:[#allocation8 + $0x190] sm:$0xff]  }
 0x124   : > { %5812 = vmatprep.subr.bf16.mxu1 %v6364_v4  ;;  %v7550_v0 = vpack.c.bf16 %v889_v2, %v887_v39  ;;  %v7552_v14 = vpack.c.bf16 %v900_v57, %v901_v59  ;;  %v6401_v57 = vld [vmem:[#allocation9 + $0x128] sm:$0xff]   ;;  %v6403_v59 = vld [vmem:[#allocation9 + $0x150] sm:$0xff]  }
 0x125   : > { %v6402_v2 = vld [vmem:[#allocation9 + $0xe8] sm:$0xff]  }
 0x127   : > { %4850 = vmatmul.mubr.msk.bf16.gmra.mrb[28].mxu0 %vm7229_vm7, %v7521_v8  ;;  %5813 = vmatpush3.bf16.msra.mxu1 %v6364_v4  ;;  %v6378_v4 = vld [vmem:[#allocation8 + $0x1b0] sm:$0xff]  }
 0x128   : > { %1290 = vmatprep.mubr.bf16.mxu0 %v7525_v26  ;;  %5814 = vmatprep.subr.bf16.mxu1 %v6370_v24 }
 0x12a   : > { %4919 = vmatmul.mubr.msk.bf16.gmra.mrb[28].mxu1 %vm7229_vm7, %v7326_v48 }
 0x12b   : > { %1628 = vmatprep.mubr.bf16.mxu1 %v7330_v1  ;;  %5815 = vmatpush3.bf16.msra.mxu1 %v6370_v24  ;;  %v6399_v24 = vld [vmem:[#allocation9 + $0x140] sm:$0xff]  }
 0x12c   : > { %5816 = vmatprep.subr.bf16.mxu1 %v6376_v47 }
 0x12f   : > { %4854 = vmatmul.mubr.msk.bf16.gmra.mrb[32].mxu0 %vm7229_vm7, %v7554_v5  ;;  %5817 = vmatpush3.bf16.msra.mxu1 %v6376_v47 }
 0x130   : > { %4859 = vmatprep.mubr.msk.bf16.mxu0 %vm7542_vm11, %v7560_v20  ;;  %5838 = vmatprep.subr.bf16.mxu1 %v6381_v62 }
 0x132   : > { %4923 = vmatmul.mubr.msk.bf16.gmra.mrb[32].mxu1 %vm7229_vm7, %v7371_v40 }
 0x133   : > { %1636 = vmatprep.mubr.bf16.mxu1 %v7383_v45 }
 0x137   : > { %4863 = vmatmul.mubr.msk.bf16.gmra.mrb[36].mxu0 %vm7229_vm7, %v7575_v3 }
 0x138   : > { %5782 = vmatprep.mubr.msk.bf16.mxu0 %vm7241_vm8, %v7472_v25 }
 0x13a   : > { %4927 = vmatmul.mubr.msk.bf16.gmra.mrb[36].mxu1 %vm7229_vm7, %v7452_v18 }
 0x13b   : > { %1644 = vmatprep.mubr.bf16.mxu1 %v7456_v58 }
 0x13f   : > { %5783 = vmatmul.mubr.msk.bf16.vlgmr.msra.gmra.mrb[40].mxu0 %vm7241_vm8, %v7288_v12 }
 0x140   : > { %5417 = vmatpush3.bf16.msra.mxu0 %v6363_v13  ;;  %2045 = vmatprep.mubr.bf16.mxu0 %v7275_v51  ;;  %v6375_v51 = vld [vmem:[#allocation8 + $0x1a8] sm:$0xff]  }
 0x141   : > { %5418 = vmatprep.subr.bf16.mxu0 %v6365_v17  ;;  %v6404_v17 = vld [vmem:[#allocation9 + $0x158] sm:$0xff]  }
 0x142   : > { %4931 = vmatmul.mubr.msk.bf16.gmra.mrb[40].mxu1 %vm7229_vm7, %v7474_v16 }
 0x143   : > { %1652 = vmatprep.mubr.bf16.mxu1 %v7479_v41 }
 0x144   : > { %5419 = vmatpush3.bf16.msra.mxu0 %v6366_v54 }
 0x145   : > { %5420 = vmatprep.subr.bf16.mxu0 %v6367_v42 }
 0x148   : > { %5421 = vmatpush3.bf16.msra.mxu0 %v6368_v55 }
 0x149   : > { %5422 = vmatprep.subr.bf16.mxu0 %v6369_v61 }
 0x14a   : > { %4935 = vmatmul.mubr.msk.bf16.gmra.mrb[44].mxu1 %vm7229_vm7, %v7500_v15 }
 0x14b   : > { %1660 = vmatprep.mubr.bf16.mxu1 %v7504_v60 }
 0x14c   : > { %5423 = vmatpush3.bf16.msra.mxu0 %v6371_v19  ;;  %v6405_v19 = vld [vmem:[#allocation9 + $0x130] sm:$0xff]  }
 0x14d   : > { %5424 = vmatprep.subr.bf16.mxu0 %v6372_v53  ;;  %v6406_v53 = vld [vmem:[#allocation9 + $0xf0] sm:$0xff]  }
 0x150   : > { %5425 = vmatpush3.bf16.msra.mxu0 %v6373_v34  ;;  %v6407_v34 = vld [vmem:[#allocation9 + $0x160] sm:$0xff]  }
 0x151   : > { %5426 = vmatprep.subr.bf16.mxu0 %v6374_v23 }
 0x152   : > { %4939 = vmatmul.mubr.msk.bf16.gmra.mrb[48].mxu1 %vm7229_vm7, %v7521_v8 }
 0x153   : > { %1668 = vmatprep.mubr.bf16.mxu1 %v7525_v26 }
 0x154   : > { %5427 = vmatpush3.bf16.msra.mxu0 %v6375_v51 }
 0x155   : > { %5428 = vmatprep.subr.bf16.mxu0 %v6377_v35 }
 0x158   : > { %5429 = vmatpush3.bf16.msra.mxu0 %v6378_v4 }
 0x159   : > { %5430 = vmatprep.subr.bf16.mxu0 %v6379_v28 }
 0x15a   : > { %4943 = vmatmul.mubr.msk.bf16.gmra.mrb[52].mxu1 %vm7229_vm7, %v7554_v5 }
 0x15b   : > { %5818 = vmatprep.mubr.msk.bf16.mxu1 %vm7241_vm8, %v7483_v52  ;;  %v6383_v52 = vld [vmem:[#allocation8 + $0x210] sm:$0xff]  }
 0x15c   : > { %5431 = vmatpush3.bf16.msra.mxu0 %v6380_v29 }
 0x15f   : > { %4977 = vmatmul.mubr.msk.bf16.vlgmr.msra.gmra.mrb[44].mxu0 %vm7229_vm7, %v7295_v21  ;;  %v6385_v21 = vld [vmem:[#allocation8 + $0x220] sm:$0xff]  }
 0x160   : > { %2053 = vmatprep.mubr.bf16.mxu0 %v7266_v43  ;;  %v6384_v43 = vld [vmem:[#allocation8 + $0x218] sm:$0xff]  }
 0x162   : > { %5819 = vmatmul.mubr.msk.bf16.vlgmr.msra.gmra.mrb[56].mxu1 %vm7241_vm8, %v7472_v25 }
 0x163   : > { %5839 = vmatpush3.bf16.msra.mxu1 %v6381_v62  ;;  %5822 = vmatprep.mubr.msk.bf16.mxu1 %vm7241_vm8, %v7288_v12 }
 0x164   : > { %5840 = vmatprep.subr.bf16.mxu1 %v6382_v27 }
 0x167   : > { %4981 = vmatmul.mubr.msk.bf16.gmra.mrb[48].mxu0 %vm7229_vm7, %v7326_v48  ;;  %5841 = vmatpush3.bf16.msra.mxu1 %v6382_v27  ;;  %v6386_v48 = vld [vmem:[#allocation8 + $0x228] sm:$0xff]  }
 0x168   : > { %2061 = vmatprep.mubr.bf16.mxu0 %v7330_v1  ;;  %5842 = vmatprep.subr.bf16.mxu1 %v6383_v52  ;;  %v6387_v1 = vld [vmem:[#allocation8 + $0x230] sm:$0xff]  }
 0x16a   : > { %5823 = vmatmul.mubr.msk.bf16.gmra.mrb[0].mxu1 %vm7241_vm8, %v7249_v30 }
 0x16b   : > { %5843 = vmatpush3.bf16.msra.mxu1 %v6383_v52  ;;  %5826 = vmatprep.mubr.msk.bf16.mxu1 %vm7241_vm8, %v7251_v32 }
 0x16c   : > { %5844 = vmatprep.subr.bf16.mxu1 %v6384_v43 }
 0x16f   : > { %4985 = vmatmul.mubr.msk.bf16.gmra.mrb[52].mxu0 %vm7229_vm7, %v7371_v40  ;;  %5845 = vmatpush3.bf16.msra.mxu1 %v6384_v43  ;;  %v6388_v40 = vld [vmem:[#allocation8 + $0x238] sm:$0xff]  }
 0x170   : > { %2069 = vmatprep.mubr.bf16.mxu0 %v7383_v45  ;;  %5846 = vmatprep.subr.bf16.mxu1 %v6385_v21  ;;  %v6395_v45 = vld [vmem:[#allocation9 + $0x118] sm:$0xff]  }
 0x172   : > { %5827 = vmatmul.mubr.msk.bf16.gmra.mrb[4].mxu1 %vm7241_vm8, %v7306_v37 }
 0x173   : > { %5847 = vmatpush3.bf16.msra.mxu1 %v6385_v21  ;;  %5830 = vmatprep.mubr.msk.bf16.mxu1 %vm7241_vm8, %v7333_v50 }
 0x174   : > { %5848 = vmatprep.subr.bf16.mxu1 %v6386_v48 }
 0x177   : > { %4989 = vmatmul.mubr.msk.bf16.gmra.mrb[56].mxu0 %vm7229_vm7, %v7452_v18  ;;  %5849 = vmatpush3.bf16.msra.mxu1 %v6386_v48  ;;  %v6408_v48 = vld [vmem:[#allocation9 + $0x168] sm:$0xff]  }
 0x178   : > { %2077 = vmatprep.mubr.bf16.mxu0 %v7456_v58  ;;  %5850 = vmatprep.subr.bf16.mxu1 %v6387_v1 }
 0x17a   : > { %5831 = vmatmul.mubr.msk.bf16.gmra.mrb[8].mxu1 %vm7241_vm8, %v7358_v33 }
 0x17b   : > { %5834 = vmatprep.mubr.msk.bf16.mxu1 %vm7241_vm8, %v7399_v11  ;;  %5851 = vmatpush3.bf16.msra.mxu1 %v6387_v1  ;;  %v6409_v1 = vld [vmem:[#allocation9 + $0x138] sm:$0xff]  }
 0x17c   : > { %5852 = vmatprep.subr.bf16.mxu1 %v6388_v40 }
 0x17f   : > { %4993 = vmatmul.mubr.msk.bf16.gmra.mrb[60].mxu0 %vm7229_vm7, %v7474_v16  ;;  %5853 = vmatpush3.bf16.msra.mxu1 %v6388_v40 }
 0x180   : > { %2085 = vmatprep.mubr.bf16.mxu0 %v7479_v41  ;;  %5874 = vmatprep.subr.bf16.mxu1 %v6399_v24 }
 0x182   : > { %5835 = vmatmul.mubr.msk.bf16.gmra.mrb[12].mxu1 %vm7241_vm8, %v7419_v63 }
 0x183   : > { %5854 = vmatprep.mubr.msk.bf16.mxu1 %vm7241_vm8, %v7288_v12  ;;  %v6391_v12 = vld [vmem:[#allocation9 + $0x108] sm:$0xff]  }
 0x187   : > { %4997 = vmatmul.mubr.msk.bf16.gmra.mrb[64].mxu0 %vm7229_vm7, %v7500_v15  ;;  %v6397_v15 = vld [vmem:[#allocation9 + $0x120] sm:$0xff]  }
 0x188   : > { %2093 = vmatprep.mubr.bf16.mxu0 %v7504_v60 }
 0x18a   : > { %5855 = vmatmul.mubr.msk.bf16.vlgmr.msra.gmra.mrb[56].mxu1 %vm7241_vm8, %v7249_v30  ;;  %v6389_v30 = vld [vmem:[#allocation9 + $0x100] sm:$0xff]  }
 0x18b   : > { %5858 = vmatprep.mubr.msk.bf16.mxu1 %vm7241_vm8, %v7251_v32  ;;  %5510 = vmatprep.subr.bf16.mxu0 %v6389_v30  ;;  %v6390_v32 = vld [vmem:[#allocation9 + $0xc0] sm:$0xff]   ;;  %v6410_v30 = vld [vmem:[#allocation9 + $0xf8] sm:$0xff]  }
 0x18c   : > { %5511 = vmatpush3.bf16.msra.mxu0 %v6390_v32  ;;  %5875 = vmatpush3.bf16.msra.mxu1 %v6399_v24  ;;  %v6412_v24 = vld [vmem:[#allocation9 + $0x178] sm:$0xff]  }
 0x18d   : > { %5512 = vmatprep.subr.bf16.mxu0 %v6391_v12  ;;  %5876 = vmatprep.subr.bf16.mxu1 %v6400_v46 }
 0x18f   : > { %5001 = vmatmul.mubr.msk.bf16.gmra.mrb[68].mxu0 %vm7229_vm7, %v7521_v8 }
 0x190   : > { %2101 = vmatprep.mubr.bf16.mxu0 %v7525_v26  ;;  %5877 = vmatpush3.bf16.msra.mxu1 %v6400_v46 }
 0x191   : > { %5878 = vmatprep.subr.bf16.mxu1 %v6403_v59 }
 0x192   : > { %5859 = vmatmul.mubr.msk.bf16.gmra.mrb[0].mxu1 %vm7241_vm8, %v7306_v37  ;;  %v6392_v37 = vld [vmem:[#allocation9 + $0xc8] sm:$0xff]  }
 0x193   : > { %5862 = vmatprep.mubr.msk.bf16.mxu1 %vm7241_vm8, %v7333_v50  ;;  %v6393_v50 = vld [vmem:[#allocation9 + $0x110] sm:$0xff]   ;;  %5513 = vmatpush3.bf16.msra.mxu0 %v6392_v37 }
 0x194   : > { %5514 = vmatprep.subr.bf16.mxu0 %v6393_v50  ;;  %5879 = vmatpush3.bf16.msra.mxu1 %v6403_v59 }
 0x195   : > { %5880 = vmatprep.subr.bf16.mxu1 %v6404_v17 }
 0x197   : > { %5005 = vmatmul.mubr.msk.bf16.gmra.mrb[72].mxu0 %vm7229_vm7, %v7554_v5 }
 0x198   : > { %5010 = vmatprep.mubr.msk.bf16.mxu0 %vm7542_vm11, %v7560_v20  ;;  %5881 = vmatpush3.bf16.msra.mxu1 %v6404_v17 }
 0x199   : > { %5882 = vmatprep.subr.bf16.mxu1 %v6407_v34 }
 0x19a   : > { %5863 = vmatmul.mubr.msk.bf16.gmra.mrb[4].mxu1 %vm7241_vm8, %v7358_v33  ;;  %v6394_v33 = vld [vmem:[#allocation9 + $0xd0] sm:$0xff]  }
 0x19b   : > { %5866 = vmatprep.mubr.msk.bf16.mxu1 %vm7241_vm8, %v7399_v11  ;;  %5515 = vmatpush3.bf16.msra.mxu0 %v6394_v33  ;;  %v6396_v11 = vld [vmem:[#allocation9 + $0xd8] sm:$0xff]  }
 0x19c   : > { %5516 = vmatprep.subr.bf16.mxu0 %v6395_v45  ;;  %5883 = vmatpush3.bf16.msra.mxu1 %v6407_v34 }
 0x19d   : > { %5884 = vmatprep.subr.bf16.mxu1 %v6408_v48 }
 0x19f   : > { %5014 = vmatmul.mubr.msk.bf16.gmra.mrb[76].mxu0 %vm7229_vm7, %v7575_v3 }
 0x1a0   : > { %5019 = vmatprep.mubr.msk.bf16.mxu0 %vm7542_vm11, %v7535_v36  ;;  %5517 = vmatpush3.bf16.msra.mxu0 %v6396_v11 }
 0x1a1   : > { %5518 = vmatprep.subr.bf16.mxu0 %v6397_v15  ;;  %5885 = vmatpush3.bf16.msra.mxu1 %v6408_v48 }
 0x1a2   : > { %5867 = vmatmul.mubr.msk.bf16.gmra.mrb[8].mxu1 %vm7241_vm8, %v7419_v63 }
 0x1a3   : > { %5870 = vmatprep.mubr.msk.bf16.mxu1 %vm7241_vm8, %v7444_v6 }
 0x1a4   : > { %5519 = vmatpush3.bf16.msra.mxu0 %v6398_v10 }
 0x1a5   : > { %5520 = vmatprep.subr.bf16.mxu0 %v6401_v57 }
 0x1a7   : > { %5023 = vmatmul.mubr.msk.bf16.gmra.mrb[80].mxu0 %vm7229_vm7, %v7550_v0 }
 0x1a8   : > { %5521 = vmatpush3.bf16.msra.mxu0 %v6402_v2 }
 0x1a9   : > { %5522 = vmatprep.subr.bf16.mxu0 %v6405_v19 }
 0x1aa   : > { %5871 = vmatmul.mubr.msk.bf16.gmra.mrb[12].mxu1 %vm7241_vm8, %v7552_v14 }
 0x1ac   : > { %5523 = vmatpush3.bf16.msra.mxu0 %v6406_v53 }
 0x1ad   : > { %5524 = vmatprep.subr.bf16.mxu0 %v6409_v1 }
 0x1b0   : > { %5525 = vmatpush3.bf16.msra.mxu0 %v6410_v30 }
 0x1c2   : > { %v5244_v63 = vpop.f32.mrb[0].mxu0 }
 0x1c3   : > { %v5245_v6 = vpop.f32.mrb[1].mxu0 }
 0x1c4   : > { %v7713_v18 = vadd.f32 %v5245_v6, %v5244_v63  ;;  %v5247_v58 = vpop.f32.mrb[2].mxu0  ;;  %v6411_v6 = vld [vmem:[#allocation9 + $0x170] sm:$0xff]  }
 0x1c5   : > { %v5248_v25 = vpop.f32.mrb[3].mxu0  ;;  %5886 = vmatprep.subr.bf16.mxu1 %v6411_v6 }
 0x1c6   : > { %v7715_v16 = vadd.f32 %v5248_v25, %v5247_v58  ;;  %5887 = vmatpush3.bf16.msra.mxu1 %v6411_v6 }
 0x1c7   : > { %5888 = vmatprep.subr.bf16.mxu1 %v6412_v24 }
 0x1ca   : > { %v5250_v41 = vpop.f32.mrb[4].mxu0  ;;  %5889 = vmatpush3.bf16.msra.mxu1 %v6412_v24 }
 0x1cb   : > { %v5251_v60 = vpop.f32.mrb[5].mxu0 }
 0x1cc   : > { %v7717_v8 = vadd.f32 %v5251_v60, %v5250_v41  ;;  %v5253_v26 = vpop.f32.mrb[6].mxu0 }
 0x1cd   : > { %v5254_v31 = vpop.f32.mrb[7].mxu0 }
 0x1ce   : > { %v7719_v36 = vadd.f32 %v5254_v31, %v5253_v26 }
 0x1d2   : > { %v5256_v49 = vpop.f32.mrb[8].mxu0 }
 0x1d3   : > { %v5257_v38 = vpop.f32.mrb[9].mxu0 }
 0x1d4   : > { %v7721_v39 = vadd.f32 %v5257_v38, %v5256_v49  ;;  %v5259_v56 = vpop.f32.mrb[10].mxu0 }
 0x1d5   : > { %v5260_v44 = vpop.f32.mrb[11].mxu0 }
 0x1d6   : > { %v7723_v47 = vadd.f32 %v5260_v44, %v5259_v56 }
 0x1da   : > { %v5262_v0 = vpop.f32.mrb[12].mxu0 }
 0x1db   : > { %v5263_v14 = vpop.f32.mrb[13].mxu0 }
 0x1dc   : > { %v7725_v5 = vadd.f32 %v5263_v14, %v5262_v0  ;;  %v5265_v20 = vpop.f32.mrb[14].mxu0  ;;  %v6413_v14 = vld [vmem:[#allocation9 + $0x40] sm:$0xff]  }
 0x1dd   : > { %v5266_v62 = vpop.f32.mrb[15].mxu0  ;;  %5590 = vmatprep.subr.bf16.mxu0 %v6413_v14 }
 0x1de   : > { %v7727_v7 = vadd.f32 %v5266_v62, %v5265_v20  ;;  %v7754_v20 = vld [vmem:[#allocation9 + $0x80] sm:$0xff]  }
 0x1df   : > { %5906 = vmatprep.subr.bf16.mxu1 %v7754_v20 }
 0x1e2   : > { %v5268_v3 = vpop.f32.mrb[16].mxu0 }
 0x1e3   : > { %v5269_v13 = vpop.f32.mrb[17].mxu0 }
 0x1e4   : > { %v7729_v54 = vadd.f32 %v5269_v13, %v5268_v3  ;;  %v5271_v42 = vpop.f32.mrb[18].mxu0 }
 0x1e5   : > { %v5272_v55 = vpop.f32.mrb[19].mxu0  ;;  %v5338_v23 = vpop.f32.mrb[16].mxu1 }
 0x1e6   : > { %v7731_v61 = vadd.f32 %v5272_v55, %v5271_v42  ;;  %v5339_v51 = vpop.f32.mrb[17].mxu1 }
 0x1e7   : > { %v7733_v35 = vadd.f32 %v5339_v51, %v5338_v23  ;;  %v5341_v4 = vpop.f32.mrb[18].mxu1 }
 0x1e8   : > { %v5342_v29 = vpop.f32.mrb[19].mxu1 }
 0x1e9   : > { %v7735_v52 = vadd.f32 %v5342_v29, %v5341_v4 }
 0x1ea   : > { %v5274_v28 = vpop.f32.mrb[20].mxu0 }
 0x1eb   : > { %v5275_v27 = vpop.f32.mrb[21].mxu0 }
 0x1ec   : > { %v7737_v43 = vadd.f32 %v5275_v27, %v5274_v28  ;;  %v5277_v21 = vpop.f32.mrb[22].mxu0 }
 0x1ed   : > { %v5278_v40 = vpop.f32.mrb[23].mxu0  ;;  %v5344_v12 = vpop.f32.mrb[20].mxu1 }
 0x1ee   : > { %v7739_v32 = vadd.f32 %v5278_v40, %v5277_v21  ;;  %v5345_v37 = vpop.f32.mrb[21].mxu1 }
 0x1ef   : > { %v7741_v50 = vadd.f32 %v5345_v37, %v5344_v12  ;;  %v5347_v33 = vpop.f32.mrb[22].mxu1 }
 0x1f0   : > { %v5348_v11 = vpop.f32.mrb[23].mxu1 }
 0x1f1   : > { %v7743_v58 = vadd.f32 %v5348_v11, %v5347_v33 }
 0x1f2   : > { %v5280_v45 = vpop.f32.mrb[24].mxu0 }
 0x1f3   : > { %v5281_v63 = vpop.f32.mrb[25].mxu0 }
 0x1f4   : > { %v7745_v25 = vadd.f32 %v5281_v63, %v5280_v45  ;;  %v5283_v41 = vpop.f32.mrb[26].mxu0 }
 0x1f5   : > { %v5284_v15 = vpop.f32.mrb[27].mxu0  ;;  %v5350_v26 = vpop.f32.mrb[24].mxu1 }
 0x1f6   : > { %v7747_v60 = vadd.f32 %v5284_v15, %v5283_v41  ;;  %v5351_v10 = vpop.f32.mrb[25].mxu1 }
 0x1f7   : > { %v5352_v31 = vadd.f32 %v5351_v10, %v5350_v26  ;;  %v5353_v46 = vpop.f32.mrb[26].mxu1 }
 0x1f8   : > { %v5354_v38 = vpop.f32.mrb[27].mxu1 }
 0x1f9   : > { %v7750_v57 = vadd.f32 %v5352_v31, %v7721_v39  ;;  %v5355_v44 = vadd.f32 %v5354_v38, %v5353_v46 }
 0x1fa   : > { %v5286_v49 = vpop.f32.mrb[28].mxu0 }
 0x1fb   : > { %v5287_v56 = vpop.f32.mrb[29].mxu0  ;;  %v7757_v62 = vadd.f32 %v5355_v44, %v7723_v47 }
 0x1fc   : > { %v7752_v2 = vadd.f32 %v5287_v56, %v5286_v49  ;;  %v5289_v59 = vpop.f32.mrb[30].mxu0 }
 0x1fd   : > { %v5290_v0 = vpop.f32.mrb[31].mxu0  ;;  %v5356_v13 = vpop.f32.mrb[28].mxu1 }
 0x1fe   : > { %v7759_v3 = vadd.f32 %v5290_v0, %v5289_v59  ;;  %v5357_v39 = vpop.f32.mrb[29].mxu1 }
 0x1ff   : > { %v5358_v17 = vadd.f32 %v5357_v39, %v5356_v13  ;;  %v5359_v42 = vpop.f32.mrb[30].mxu1 }
 0x200   : > { %v5360_v19 = vpop.f32.mrb[31].mxu1 }
 0x201   : > { %v7763_v34 = vadd.f32 %v5358_v17, %v7725_v5  ;;  %v5361_v23 = vadd.f32 %v5360_v19, %v5359_v42 }
 0x202   : > { %v5292_v55 = vpop.f32.mrb[32].mxu0 }
 0x203   : > { %v5293_v53 = vpop.f32.mrb[33].mxu0  ;;  %v7766_v28 = vadd.f32 %v5361_v23, %v7727_v7 }
 0x204   : > { %v5294_v51 = vadd.f32 %v5293_v53, %v5292_v55  ;;  %v5295_v4 = vpop.f32.mrb[34].mxu0 }
 0x205   : > { %v5296_v47 = vpop.f32.mrb[35].mxu0  ;;  %v5362_v27 = vpop.f32.mrb[32].mxu1 }
 0x206   : > { %v5297_v29 = vadd.f32 %v5296_v47, %v5295_v4  ;;  %v5363_v21 = vpop.f32.mrb[33].mxu1 }
 0x207   : > { %v5364_v48 = vadd.f32 %v5363_v21, %v5362_v27  ;;  %v5365_v1 = vpop.f32.mrb[34].mxu1 }
 0x208   : > { %v5366_v30 = vpop.f32.mrb[35].mxu1 }
 0x209   : > { %v7769_v37 = vadd.f32 %v5364_v48, %v7729_v54  ;;  %v5367_v5 = vadd.f32 %v5366_v30, %v5365_v1 }
 0x20a   : > { %v5298_v40 = vpop.f32.mrb[36].mxu0 }
 0x20b   : > { %v5299_v12 = vpop.f32.mrb[37].mxu0  ;;  %v7772_v63 = vadd.f32 %v5367_v5, %v7731_v61 }
 0x20c   : > { %v5300_v33 = vadd.f32 %v5299_v12, %v5298_v40  ;;  %v5301_v45 = vpop.f32.mrb[38].mxu0 }
 0x20d   : > { %v5302_v11 = vpop.f32.mrb[39].mxu0  ;;  %v5368_v6 = vpop.f32.mrb[36].mxu1 }
 0x20e   : > { %v5303_v7 = vadd.f32 %v5302_v11, %v5301_v45  ;;  %v5369_v41 = vpop.f32.mrb[37].mxu1 }
 0x20f   : > { %v5370_v15 = vadd.f32 %v5369_v41, %v5368_v6  ;;  %v5371_v26 = vpop.f32.mrb[38].mxu1 }
 0x210   : > { %v5372_v24 = vpop.f32.mrb[39].mxu1 }
 0x211   : > { %v7776_v54 = vadd.f32 %v5370_v15, %v7737_v43  ;;  %v5373_v49 = vadd.f32 %v5372_v24, %v5371_v26 }
 0x212   : > { %v5784_v10 = vpop.f32.mrb[40].mxu0 }
 0x213   : > { %v1350_v31 = vadd.f32 %v5784_v10, %v7717_v8  ;;  %v1341_v46 = vpop.f32.mrb[41].mxu0  ;;  %v7782_v0 = vadd.f32 %v5373_v49, %v7739_v32 }
 0x214   : > { %v1342_v38 = vadd.f32 %v7713_v18, %v1341_v46  ;;  %v5785_v56 = vpop.f32.mrb[42].mxu0 }
 0x215   : > { %v1607_v61 = vadd.f32 %v7741_v50, %v1350_v31  ;;  %v1353_v44 = vadd.f32 %v5785_v56, %v7719_v36  ;;  %v1344_v59 = vpop.f32.mrb[43].mxu0  ;;  %v5374_v43 = vpop.f32.mrb[40].mxu1 }
 0x216   : > { %v1599_v14 = vadd.f32 %v7733_v35, %v1342_v38  ;;  %v1345_v8 = vadd.f32 %v7715_v16, %v1344_v59  ;;  %v5375_v17 = vpop.f32.mrb[41].mxu1 }
 0x217   : > { %v1610_v13 = vadd.f32 %v7743_v58, %v1353_v44  ;;  %v5376_v18 = vadd.f32 %v5375_v17, %v5374_v43  ;;  %v5377_v42 = vpop.f32.mrb[42].mxu1 }
 0x218   : > { %v1602_v39 = vadd.f32 %v7735_v52, %v1345_v8  ;;  %v5378_v55 = vpop.f32.mrb[43].mxu1 }
 0x219   : > { %v7789_v50 = vadd.f32 %v5376_v18, %v7745_v25  ;;  %v5379_v36 = vadd.f32 %v5378_v55, %v5377_v42 }
 0x21b   : > { %v7792_v32 = vadd.f32 %v5379_v36, %v7747_v60 }
 0x21d   : > { %v5380_v19 = vpop.f32.mrb[44].mxu1 }
 0x21e   : > { %v5381_v35 = vpop.f32.mrb[45].mxu1 }
 0x21f   : > { %v5382_v53 = vadd.f32 %v5381_v35, %v5380_v19  ;;  %v5383_v16 = vpop.f32.mrb[46].mxu1 }
 0x220   : > { %v5384_v23 = vpop.f32.mrb[47].mxu1 }
 0x221   : > { %v7795_v58 = vadd.f32 %v5382_v53, %v7752_v2  ;;  %v5385_v52 = vadd.f32 %v5384_v23, %v5383_v16 }
 0x223   : > { %v7798_v4 = vadd.f32 %v5385_v52, %v7759_v3 }
 0x225   : > { %v5386_v47 = vpop.f32.mrb[48].mxu1 }
 0x226   : > { %v5387_v27 = vpop.f32.mrb[49].mxu1 }
 0x227   : > { %v5388_v25 = vadd.f32 %v5387_v27, %v5386_v47  ;;  %v5389_v21 = vpop.f32.mrb[50].mxu1 }
 0x228   : > { %v5390_v48 = vpop.f32.mrb[51].mxu1 }
 0x229   : > { %v7800_v1 = vadd.f32 %v5388_v25, %v5294_v51  ;;  %v5391_v60 = vadd.f32 %v5390_v48, %v5389_v21 }
 0x22b   : > { %v7802_v40 = vadd.f32 %v5391_v60, %v5297_v29 }
 0x22d   : > { %v5392_v30 = vpop.f32.mrb[52].mxu1 }
 0x22e   : > { %v5393_v12 = vpop.f32.mrb[53].mxu1 }
 0x22f   : > { %v5394_v5 = vadd.f32 %v5393_v12, %v5392_v30  ;;  %v5395_v45 = vpop.f32.mrb[54].mxu1 }
 0x230   : > { %v5396_v11 = vpop.f32.mrb[55].mxu1 }
 0x231   : > { %v7804_v41 = vadd.f32 %v5394_v5, %v5300_v33  ;;  %v5397_v3 = vadd.f32 %v5396_v11, %v5395_v45 }
 0x232   : > { %v5432_v2 = vpop.f32.mrb[44].mxu0 }
 0x233   : > { %v5433_v6 = vpop.f32.mrb[45].mxu0  ;;  %v7806_v24 = vadd.f32 %v5397_v3, %v5303_v7  ;;  %v7840_v3 = vld [vmem:[%s8576_s28] ss:$0 sm:$0xff]  ;;  %s6741_s28 = smov [#allocation12]  }
 0x234   : > { %v5434_v15 = vadd.f32 %v5433_v6, %v5432_v2  ;;  %v5435_v26 = vpop.f32.mrb[46].mxu0 }
 0x235   : > { %v5436_v10 = vpop.f32.mrb[47].mxu0 }
 0x236   : > { %v5437_v51 = vadd.f32 %v5436_v10, %v5435_v26  ;;  %v6024_v31 = vadd.f32 %v5434_v15, %v1599_v14 }
 0x238   : > { %v6032_v46 = vadd.f32 %v5437_v51, %v1602_v39 }
 0x23a   : > { %v5438_v29 = vpop.f32.mrb[48].mxu0 }
 0x23b   : > { %v5439_v49 = vpop.f32.mrb[49].mxu0 }
 0x23c   : > { %v5440_v38 = vadd.f32 %v5439_v49, %v5438_v29  ;;  %v5441_v56 = vpop.f32.mrb[50].mxu0 }
 0x23d   : > { %v5442_v44 = vpop.f32.mrb[51].mxu0 }
 0x23e   : > { %v5443_v59 = vadd.f32 %v5442_v44, %v5441_v56  ;;  %v6020_v8 = vadd.f32 %v5440_v38, %v1607_v61  ;;  %v2376_v38 = vstv %s2375_s4 }
 0x23f   : > { %vm7857_vm12 = vcmp.eq.s32.totalorder %v2376_v38, 1 }
 0x240   : > { %v6028_v43 = vadd.f32 %v5443_v59, %v1610_v13  ;;  %vm5110_vm14 = vmpackc.low %vm7857_vm12, %vm7857_vm12 }
 0x242   : > { %v5444_v17 = vpop.f32.mrb[52].mxu0 }
 0x243   : > { %v5445_v33 = vpop.f32.mrb[53].mxu0 }
 0x244   : > { %v5446_v18 = vadd.f32 %v5445_v33, %v5444_v17  ;;  %v5447_v42 = vpop.f32.mrb[54].mxu0 }
 0x245   : > { %v5448_v55 = vpop.f32.mrb[55].mxu0 }
 0x246   : > { %v5449_v36 = vadd.f32 %v5448_v55, %v5447_v42  ;;  %v7809_v7 = vadd.f32 %v7750_v57, %v5446_v18  ;;  %v6448_v55 = vld [vmem:[#allocation9 + $0x1a8] sm:$0xff]  }
 0x248   : > { %v7812_v14 = vadd.f32 %v7757_v62, %v5449_v36 }
 0x24a   : > { %v5450_v39 = vpop.f32.mrb[56].mxu0 }
 0x24b   : > { %v5451_v19 = vpop.f32.mrb[57].mxu0 }
 0x24c   : > { %v5452_v35 = vadd.f32 %v5451_v19, %v5450_v39  ;;  %v5453_v53 = vpop.f32.mrb[58].mxu0 }
 0x24d   : > { %v5454_v16 = vpop.f32.mrb[59].mxu0 }
 0x24e   : > { %v5455_v61 = vadd.f32 %v5454_v16, %v5453_v53  ;;  %v6035_v13 = vadd.f32 %v7763_v34, %v5452_v35 }
 0x250   : > { %v7816_v23 = vadd.f32 %v7766_v28, %v5455_v61 }
 0x252   : > { %v5456_v52 = vpop.f32.mrb[60].mxu0 }
 0x253   : > { %v5457_v47 = vpop.f32.mrb[61].mxu0 }
 0x254   : > { %v5458_v27 = vadd.f32 %v5457_v47, %v5456_v52  ;;  %v5459_v57 = vpop.f32.mrb[62].mxu0  ;;  %v2420_v47 = vstv %s7848_s0  ;;  %s6625_s0 = sshll.u32 %s6741_s28, 4  ;;  %s6626_s0 = int_to_ptr.vmem [resolvable:$false] %s6625_s0 }
 0x255   : > { %v5460_v25 = vpop.f32.mrb[63].mxu0  ;;  %vm8032_vm13 = vcmp.eq.s32.totalorder %v2420_v47, 1  ;;  %p6628_p13 = scmp.lt.s32.totalorder %s8438_s20, %s6626_s0 }
 0x256   : > { %v5461_v21 = vadd.f32 %v5460_v25, %v5459_v57  ;;  %v7819_v62 = vadd.f32 %v7769_v37, %v5458_v27  ;;  %v7831_v37 = vld [vmem:[%s8575_s10] ss:$0 sm:$0xff]  ;;  %vm5197_vm15 = vmpackc.low %vm8032_vm13, %vm8032_vm13  ;;  %s8584_s10 = sld [smem:[#allocation32_spill]] }
 0x258   : > { %v7822_v48 = vadd.f32 %v7772_v63, %v5461_v21 }
 0x25a   : > { %v5462_v60 = vpop.f32.mrb[64].mxu0 }
 0x25b   : > { %v5463_v30 = vpop.f32.mrb[65].mxu0 }
 0x25c   : > { %v5464_v12 = vadd.f32 %v5463_v30, %v5462_v60  ;;  %v5465_v34 = vpop.f32.mrb[66].mxu0  ;;  %s8443_s4 = scalar_lea.hbm %s8584_s10, %s4688_s8 }
 0x25d   : > { %v5466_v28 = vpop.f32.mrb[67].mxu0  ;;  %v5856_v2 = vpop.f32.mrb[56].mxu1 }
 0x25e   : > { %v5467_v5 = vadd.f32 %v5466_v28, %v5465_v34  ;;  %v7826_v45 = vadd.f32 %v7776_v54, %v5464_v12  ;;  %v6021_v11 = vadd.f32 %v6020_v8, %v5856_v2  ;;  %v2160_v6 = vpop.f32.mrb[57].mxu1 }
 0x25f   : > { %v6025_v54 = vadd.f32 %v6024_v31, %v2160_v6  ;;  %v5857_v15 = vpop.f32.mrb[58].mxu1 }
 0x260   : > { %v7834_v63 = vadd.f32 %v7782_v0, %v5467_v5  ;;  %v2268_v10 = vmul.f32 %v6021_v11, %v7831_v37  ;;  %v6029_v51 = vadd.f32 %v6028_v43, %v5857_v15  ;;  %v2163_v29 = vpop.f32.mrb[59].mxu1 }
 0x261   : > { %v2266_v0 = vmul.f32 %v6025_v54, %v7831_v37  ;;  %v6033_v56 = vadd.f32 %v6032_v46, %v2163_v29 }
 0x262   : > { %v5468_v26 = vpop.f32.mrb[68].mxu0  ;;  %v2295_v8 = vadd.f32 %v7840_v3, %v2268_v10  ;;  %v2269_v17 = vmul.f32 %v6029_v51, %v7831_v37 }
 0x263   : > { %v5469_v49 = vpop.f32.mrb[69].mxu0  ;;  %v2293_v31 = vadd.f32 %v7840_v3, %v2266_v0  ;;  %v2267_v43 = vmul.f32 %v6033_v56, %v7831_v37 }
 0x264   : > { %v5470_v44 = vadd.f32 %v5469_v49, %v5468_v26  ;;  %v5471_v59 = vpop.f32.mrb[70].mxu0  ;;  %v7855_v46 = vmax.f32 %v2295_v8, 0.0  ;;  %v2296_v36 = vadd.f32 %v7840_v3, %v2269_v17  ;;  %v6414_v17 = vld [vmem:[#allocation9] sm:$0xff]  }
 0x265   : > { %v5472_v33 = vpop.f32.mrb[71].mxu0  ;;  %v2313_v39 = vmax.f32 %v2293_v31, 0.0  ;;  %v2294_v19 = vadd.f32 %v7840_v3, %v2267_v43  ;;  %v5860_v35 = vpop.f32.mrb[0].mxu1 }
 0x266   : > { %v5473_v18 = vadd.f32 %v5472_v33, %v5471_v59  ;;  %v7853_v42 = vadd.f32 %v7789_v50, %v5470_v44  ;;  %v2545_v16 = vrot.slane %v7855_v46, 7  ;;  %v7867_v61 = vmax.f32 %v2296_v36, 0.0  ;;  %v2176_v52 = vpop.f32.mrb[1].mxu1 }
 0x267   : > { %v6036_v50 = vadd.f32 %v6035_v13, %v5860_v35  ;;  %v2605_v27 = vrot.slane %v7855_v46, 1  ;;  %v7873_v57 = vsel %vm7857_vm12, %v2313_v39, 0.0  ;;  %v2314_v25 = vmax.f32 %v2294_v19, 0.0  ;;  %v5861_v60 = vpop.f32.mrb[2].mxu1 }
 0x268   : > { %v7864_v53 = vadd.f32 %v7792_v32, %v5473_v18  ;;  %v6039_v21 = vadd.f32 %v7809_v7, %v2176_v52  ;;  %v2542_v32 = vrot.slane %v7873_v57, 7  ;;  %v2602_v12 = vrot.slane %v7873_v57, 1  ;;  %v2179_v28 = vpop.f32.mrb[3].mxu1 }
 0x269   : > { %v2546_v34 = vrot.slane %v7867_v61, 7  ;;  %v2272_v13 = vmul.f32 %v6036_v50, %v7831_v37  ;;  %v7882_v2 = vsel %vm7857_vm12, %v2314_v25, 0.0  ;;  %v7884_v11 = vpack.c.bf16 %v2314_v25, %v2313_v39 }
 0x26a   : > { %v5474_v30 = vpop.f32.mrb[72].mxu0  ;;  %v2270_v7 = vmul.f32 %v6039_v21, %v7831_v37  ;;  %v6042_v6 = vadd.f32 %v7816_v23, %v5861_v60  ;;  %v2543_v26 = vrot.slane %v7882_v2, 7  ;;  %v2603_v10 = vrot.slane %v7882_v2, 1 }
 0x26b   : > { %v5475_v5 = vpop.f32.mrb[73].mxu0  ;;  %v2547_v15 = vsel %vm588_vm2, %v2545_v16, %v2546_v34  ;;  %v2299_v51 = vadd.f32 %v7840_v3, %v2272_v13  ;;  %v6045_v56 = vadd.f32 %v7812_v14, %v2179_v28  ;;  %v7902_v59 = vpack.c.bf16 %v7867_v61, %v7855_v46  ;;  %v6417_v14 = vld [vmem:[#allocation9 + $0x48] sm:$0xff]  }
 0x26c   : > { %v5477_v54 = vpop.f32.mrb[74].mxu0  ;;  %v7892_v49 = vpack.c.bf16 %v2547_v15, %v2545_v16  ;;  %v2297_v0 = vadd.f32 %v7840_v3, %v2270_v7  ;;  %v2273_v38 = vmul.f32 %v6042_v6, %v7831_v37  ;;  %v2544_v23 = vsel %vm588_vm2, %v2542_v32, %v2543_v26  ;;  %v6421_v26 = vld [vmem:[#allocation9 + $0x50] sm:$0xff]  }
 0x26d   : > { %v5478_v29 = vpop.f32.mrb[75].mxu0  ;;  %v7898_v44 = vmax.f32 %v2299_v51, 0.0  ;;  %v5476_v8 = vadd.f32 %v5475_v5, %v5474_v30  ;;  %v7904_v33 = vpack.c.bf16 %v2544_v23, %v2542_v32  ;;  %v2271_v18 = vmul.f32 %v6045_v56, %v7831_v37  ;;  %v5864_v36 = vpop.f32.mrb[4].mxu1  ;;  %3022 = vmatprep.mubr.bf16.mxu0 %v7902_v59  ;;  %v6418_v5 = vld [vmem:[#allocation9 + $0x8] sm:$0xff]  }
 0x26e   : > { %v7906_v31 = vmax.f32 %v2297_v0, 0.0  ;;  %v2300_v43 = vadd.f32 %v7840_v3, %v2273_v38  ;;  %v6048_v19 = vadd.f32 %v7826_v45, %v5864_v36  ;;  %v2606_v46 = vrot.slane %v7867_v61, 1  ;;  %v2192_v35 = vpop.f32.mrb[5].mxu1  ;;  %5057 = vmatmul.mubr.msk.bf16.vlgmr.msra.gmra.mrb[84].mxu0 %vm7229_vm7, %v7892_v49 }
 0x26f   : > { %v2611_v39 = vrot.slane %v7898_v44, 1  ;;  %v5479_v16 = vadd.f32 %v5478_v29, %v5477_v54  ;;  %v2298_v25 = vadd.f32 %v7840_v3, %v2271_v18  ;;  %v6051_v21 = vadd.f32 %v7819_v62, %v2192_v35  ;;  %v5865_v60 = vpop.f32.mrb[6].mxu1  ;;  %5591 = vmatpush3.bf16.msra.mxu0 %v6414_v17  ;;  %v6422_v18 = vld [vmem:[#allocation9 + $0x10] sm:$0xff]  }
 0x270   : > { %v2608_v50 = vrot.slane %v7906_v31, 1  ;;  %v7915_v52 = vmax.f32 %v2300_v43, 0.0  ;;  %v2276_v45 = vmul.f32 %v6048_v19, %v7831_v37  ;;  %v2607_v61 = vsel %vm601_vm5, %v2605_v27, %v2606_v46  ;;  %v2195_v34 = vpop.f32.mrb[7].mxu1  ;;  %5592 = vmatprep.subr.bf16.mxu0 %v6417_v14 }
 0x271   : > { %v6054_v32 = vadd.f32 %v7834_v63, %v5865_v60  ;;  %v6059_v28 = vadd.f32 %v7795_v58, %v5476_v8  ;;  %v2318_v6 = vmax.f32 %v2298_v25, 0.0  ;;  %v7927_v54 = vpack.c.bf16 %v2606_v46, %v2607_v61  ;;  %v6425_v25 = vld [vmem:[#allocation9 + $0x58] sm:$0xff]  }
 0x272   : > { %v5480_v30 = vpop.f32.mrb[76].mxu0  ;;  %v2552_v7 = vrot.slane %v7915_v52, 7  ;;  %v2274_v62 = vmul.f32 %v6051_v21, %v7831_v37  ;;  %v2303_v27 = vadd.f32 %v7840_v3, %v2276_v45  ;;  %v6057_v51 = vadd.f32 %v7822_v48, %v2195_v34  ;;  %v6416_v45 = vld [vmem:[#allocation9 + $0x88] sm:$0xff]  }
 0x273   : > { %v5481_v13 = vpop.f32.mrb[77].mxu0  ;;  %v2277_v63 = vmul.f32 %v6054_v32, %v7831_v37  ;;  %v2549_v0 = vrot.slane %v2318_v6, 7  ;;  %v2609_v38 = vrot.slane %v2318_v6, 1  ;;  %5890 = vmatprep.mubr.msk.bf16.mxu1 %vm7241_vm8, %v7927_v54  ;;  %v7940_v23 = vpack.c.bf16 %v2318_v6, %v7906_v31  ;;  %5593 = vmatpush3.bf16.msra.mxu0 %v6418_v5 }
 0x274   : > { %v5483_v15 = vpop.f32.mrb[78].mxu0  ;;  %v7933_v29 = vadd.f32 %v5481_v13, %v5480_v30  ;;  %v2301_v56 = vadd.f32 %v7840_v3, %v2274_v62  ;;  %v7942_v8 = vmax.f32 %v2303_v27, 0.0  ;;  %v2275_v48 = vmul.f32 %v6057_v51, %v7831_v37  ;;  %5594 = vmatprep.subr.bf16.mxu0 %v6421_v26 }
 0x275   : > { %v5484_v58 = vpop.f32.mrb[79].mxu0  ;;  %v2304_v17 = vadd.f32 %v7840_v3, %v2277_v63  ;;  %v2548_v43 = vrot.slane %v7906_v31, 7  ;;  %v2610_v36 = vsel %vm601_vm5, %v2608_v50, %v2609_v38  ;;  %3030 = vmatprep.mubr.bf16.mxu0 %v7940_v23  ;;  %v5868_v19 = vpop.f32.mrb[8].mxu1  ;;  %v6065_v35 = vadd.f32 %v7798_v4, %v5479_v16 }
 0x276   : > { %v7948_v14 = vmax.f32 %v2301_v56, 0.0  ;;  %v7951_v46 = vadd.f32 %v5484_v58, %v5483_v15  ;;  %v7954_v21 = vpack.c.bf16 %v2609_v38, %v2610_v36  ;;  %v2617_v60 = vrot.slane %v7942_v8, 1  ;;  %v2208_v50 = vpop.f32.mrb[9].mxu1  ;;  %v6429_v38 = vld [vmem:[#allocation9 + $0x60] sm:$0xff]  }
 0x277   : > { %v7957_v31 = vmax.f32 %v2304_v17, 0.0  ;;  %v2302_v30 = vadd.f32 %v7840_v3, %v2275_v48  ;;  %v6060_v32 = vadd.f32 %v6059_v28, %v5868_v19  ;;  %v6063_v34 = vadd.f32 %v7853_v42, %v2208_v50  ;;  %v5869_v4 = vpop.f32.mrb[10].mxu1  ;;  %5595 = vmatpush3.bf16.msra.mxu0 %v6422_v18  ;;  %v6426_v28 = vld [vmem:[#allocation9 + $0x18] sm:$0xff]   ;;  %v6419_v18 = vld [vmem:[#allocation9 + $0x90] sm:$0xff]  }
 0x278   : > { %v2614_v61 = vrot.slane %v7948_v14, 1  ;;  %v2550_v13 = vsel %vm588_vm2, %v2548_v43, %v2549_v0  ;;  %5891 = vmatmul.mubr.msk.bf16.vlgmr.msra.gmra.mrb[60].mxu1 %vm7241_vm8, %v7954_v21  ;;  %v6066_v15 = vadd.f32 %v6065_v35, %v5869_v4  ;;  %v2211_v26 = vpop.f32.mrb[11].mxu1  ;;  %v7975_v51 = vpack.c.bf16 %v7915_v52, %v7898_v44  ;;  %5596 = vmatprep.subr.bf16.mxu0 %v6425_v25 }
 0x279   : > { %v2558_v5 = vrot.slane %v7957_v31, 7  ;;  %v7964_v6 = vmax.f32 %v2302_v30, 0.0  ;;  %v7966_v62 = vpack.c.bf16 %v2550_v13, %v2548_v43  ;;  %v2280_v42 = vmul.f32 %v6060_v32, %v7831_v37  ;;  %5907 = vmatpush3.bf16.msra.mxu1 %v7754_v20 }
 0x27a   : > { %v5486_v16 = vpop.f32.mrb[80].mxu0  ;;  %v2278_v63 = vmul.f32 %v6063_v34, %v7831_v37  ;;  %v2612_v58 = vrot.slane %v7915_v52, 1  ;;  %v2281_v17 = vmul.f32 %v6066_v15, %v7831_v37  ;;  %v6069_v48 = vadd.f32 %v7864_v53, %v2211_v26  ;;  %5908 = vmatprep.subr.bf16.mxu1 %v6416_v45  ;;  %v6430_v34 = vld [vmem:[#allocation9 + $0x20] sm:$0xff]  }
 0x27b   : > { %v5487_v27 = vpop.f32.mrb[81].mxu0  ;;  %v2555_v56 = vrot.slane %v7964_v6, 7  ;;  %5061 = vmatmul.mubr.msk.bf16.gmra.mrb[88].mxu0 %vm7229_vm7, %v7966_v62  ;;  %v2307_v19 = vadd.f32 %v7840_v3, %v2280_v42  ;;  %v6074_v25 = vadd.f32 %v7800_v1, %v7933_v29  ;;  %v2615_v1 = vrot.slane %v7964_v6, 1 }
 0x27c   : > { %v5489_v0 = vpop.f32.mrb[82].mxu0  ;;  %v5488_v43 = vadd.f32 %v5487_v27, %v5486_v16  ;;  %v2305_v20 = vadd.f32 %v7840_v3, %v2278_v63  ;;  %3038 = vmatprep.mubr.bf16.mxu0 %v7975_v51  ;;  %v2613_v35 = vsel %vm601_vm5, %v2611_v39, %v2612_v58  ;;  %v2308_v30 = vadd.f32 %v7840_v3, %v2281_v17 }
 0x27d   : > { %v5490_v36 = vpop.f32.mrb[83].mxu0  ;;  %v7994_v53 = vpack.c.bf16 %v2612_v58, %v2613_v35  ;;  %v2279_v50 = vmul.f32 %v6069_v48, %v7831_v37  ;;  %5597 = vmatpush3.bf16.msra.mxu0 %v6426_v28  ;;  %v7998_v13 = vmax.f32 %v2307_v19, 0.0  ;;  %5909 = vmatpush3.bf16.msra.mxu1 %v6416_v45  ;;  %v5872_v16 = vpop.f32.mrb[12].mxu1  ;;  %v2551_v39 = vrot.slane %v7898_v44, 7  ;;  %v6420_v28 = vld [vmem:[#allocation9 + $0x98] sm:$0xff]   ;;  %v6436_v19 = vld [vmem:[#allocation9 + $0x28] sm:$0xff]  }
 0x27e   : > { %v6071_v32 = vadd.f32 %v7804_v41, %v5488_v43  ;;  %v8000_v4 = vmax.f32 %v2305_v20, 0.0  ;;  %5598 = vmatprep.subr.bf16.mxu0 %v6429_v38  ;;  %v8004_v29 = vmax.f32 %v2308_v30, 0.0  ;;  %v2224_v26 = vpop.f32.mrb[13].mxu1  ;;  %5910 = vmatprep.subr.bf16.mxu1 %v6419_v18  ;;  %v5491_v27 = vadd.f32 %v5490_v36, %v5489_v0  ;;  %v6435_v38 = vld [vmem:[#allocation9 + $0x68] sm:$0xff]   ;;  %v6472_v30 = vld [vmem:[%s7094_s7 + $0x18] sm:$0xff]  }
 0x27f   : > { %5894 = vmatprep.mubr.msk.bf16.mxu1 %vm7241_vm8, %v7994_v53  ;;  %v2306_v41 = vadd.f32 %v7840_v3, %v2279_v50  ;;  %v2623_v45 = vrot.slane %v7998_v13, 1  ;;  %v6075_v42 = vadd.f32 %v6074_v25, %v2224_v26  ;;  %v2553_v63 = vsel %vm588_vm2, %v2551_v39, %v2552_v7  ;;  %v5873_v58 = vpop.f32.mrb[14].mxu1  ;;  %v6441_v25 = vld [vmem:[#allocation9 + $0x70] sm:$0xff]  }
 0x280   : > { %v6072_v15 = vadd.f32 %v6071_v32, %v5872_v16  ;;  %v2620_v44 = vrot.slane %v8000_v4, 1  ;;  %v2564_v17 = vrot.slane %v8004_v29, 7  ;;  %v8019_v0 = vpack.c.bf16 %v2553_v63, %v2551_v39  ;;  %v2227_v36 = vpop.f32.mrb[15].mxu1  ;;  %v6445_v63 = vld [vmem:[#allocation9 + $0x78] sm:$0xff]  }
 0x281   : > { %v8016_v48 = vmax.f32 %v2306_v41, 0.0  ;;  %5599 = vmatpush3.bf16.msra.mxu0 %v6430_v34  ;;  %v2282_v20 = vmul.f32 %v6075_v42, %v7831_v37  ;;  %v2616_v52 = vsel %vm601_vm5, %v2614_v61, %v2615_v1  ;;  %v6077_v7 = vadd.f32 %v7806_v24, %v5491_v27  ;;  %5911 = vmatpush3.bf16.msra.mxu1 %v6419_v18  ;;  %v6423_v18 = vld [vmem:[#allocation9 + $0xa0] sm:$0xff]  }
 0x282   : > { %v2284_v43 = vmul.f32 %v6072_v15, %v7831_v37  ;;  %v8028_v35 = vpack.c.bf16 %v7964_v6, %v7948_v14  ;;  %v8043_v24 = vpack.c.bf16 %v2615_v1, %v2616_v52  ;;  %v2618_v61 = vrot.slane %v7957_v31, 1  ;;  %5912 = vmatprep.subr.bf16.mxu1 %v6420_v28  ;;  %5600 = vmatprep.subr.bf16.mxu0 %v6435_v38 }
 0x283   : > { %v2561_v50 = vrot.slane %v8016_v48, 7  ;;  %5065 = vmatmul.mubr.msk.bf16.gmra.mrb[92].mxu0 %vm7229_vm7, %v8019_v0  ;;  %v2309_v47 = vadd.f32 %v7840_v3, %v2282_v20  ;;  %v6078_v34 = vadd.f32 %v6077_v7, %v5873_v58  ;;  %v6080_v16 = vadd.f32 %v7802_v40, %v7951_v46  ;;  %v6442_v40 = vld [vmem:[#allocation9 + $0x30] sm:$0xff]   ;;  %v6447_v7 = vld [vmem:[#allocation9 + $0x38] sm:$0xff]  }
 0x284   : > { %v8038_v32 = vadd.f32 %v7840_v3, %v2284_v43  ;;  %3046 = vmatprep.mubr.bf16.mxu0 %v8028_v35  ;;  %v2554_v39 = vrot.slane %v7948_v14, 7  ;;  %5895 = vmatmul.mubr.msk.bf16.gmra.mrb[64].mxu1 %vm7241_vm8, %v8043_v24  ;;  %v2619_v1 = vsel %vm601_vm5, %v2617_v60, %v2618_v61  ;;  %v2621_v15 = vrot.slane %v8016_v48, 1  ;;  %v6424_v43 = vld [vmem:[#allocation9 + $0xa8] sm:$0xff]  }
 0x285   : > { %v8061_v26 = vpack.c.bf16 %v7957_v31, %v7942_v8  ;;  %5601 = vmatpush3.bf16.msra.mxu0 %v6436_v19  ;;  %v8063_v14 = vmax.f32 %v2309_v47, 0.0  ;;  %v2285_v46 = vmul.f32 %v6078_v34, %v7831_v37  ;;  %v8066_v27 = vpack.c.bf16 %v2618_v61, %v2619_v1  ;;  %5913 = vmatpush3.bf16.msra.mxu1 %v6420_v28  ;;  %v6427_v31 = vld [vmem:[#allocation9 + $0xb0] sm:$0xff]   ;;  %v8111_v47 = vld [vmem:[#allocation11] sm:$0xff]  }
 0x286   : > { %v2331_v41 = vmax.f32 %v8038_v32, 0.0  ;;  %v6081_v42 = vadd.f32 %v6080_v16, %v2227_v36  ;;  %5602 = vmatprep.subr.bf16.mxu0 %v6441_v25  ;;  %v2556_v60 = vsel %vm588_vm2, %v2554_v39, %v2555_v56  ;;  %v2622_v58 = vsel %vm601_vm5, %v2620_v44, %v2621_v15  ;;  %5914 = vmatprep.subr.bf16.mxu1 %v6423_v18 }
 0x287   : > { %v2624_v38 = vrot.slane %v8004_v29, 1  ;;  %v2557_v19 = vrot.slane %v7942_v8, 7  ;;  %v2626_v20 = vrot.slane %v8063_v14, 1  ;;  %v2312_v52 = vadd.f32 %v7840_v3, %v2285_v46  ;;  %5898 = vmatprep.mubr.msk.bf16.mxu1 %vm7241_vm8, %v8066_v27 }
 0x288   : > { %v2283_v6 = vmul.f32 %v6081_v42, %v7831_v37  ;;  %v8080_v28 = vpack.c.bf16 %v2556_v60, %v2554_v39  ;;  %v8082_v56 = vpack.c.bf16 %v2621_v15, %v2622_v58  ;;  %v8090_v36 = vpack.c.bf16 %v8016_v48, %v8000_v4 }
 0x289   : > { %v2625_v44 = vsel %vm601_vm5, %v2623_v45, %v2624_v38  ;;  %v2559_v8 = vsel %vm588_vm2, %v2557_v19, %v2558_v5  ;;  %5603 = vmatpush3.bf16.msra.mxu0 %v6442_v40  ;;  %v2332_v25 = vmax.f32 %v2312_v52, 0.0  ;;  %5915 = vmatpush3.bf16.msra.mxu1 %v6423_v18  ;;  %v2604_v5 = vsel %vm601_vm5, %v2602_v12, %v2603_v10  ;;  %v6432_v52 = vld [vmem:[#allocation9 + $0x180] sm:$0xff]  }
 0x28a   : > { %v2310_v32 = vadd.f32 %v7840_v3, %v2283_v6  ;;  %v8093_v37 = vpack.c.bf16 %v2624_v38, %v2625_v44  ;;  %v8095_v61 = vpack.c.bf16 %v2559_v8, %v2557_v19  ;;  %5604 = vmatprep.subr.bf16.mxu0 %v6445_v63  ;;  %5916 = vmatprep.subr.bf16.mxu1 %v6424_v43  ;;  %v2560_v3 = vrot.slane %v8000_v4, 7  ;;  %v6431_v19 = vld [vmem:[#allocation9 + $0x1c0] sm:$0xff]   ;;  %v6433_v6 = vld [vmem:[#allocation9 + $0x1c8] sm:$0xff]   ;;  %v6437_v8 = vld [vmem:[#allocation9 + $0x1d0] sm:$0xff]  }
 0x28b   : > { %5069 = vmatmul.mubr.msk.bf16.gmra.mrb[96].mxu0 %vm7229_vm7, %v8080_v28  ;;  %v8108_v45 = vpack.c.bf16 %v8004_v29, %v7998_v13  ;;  %v2563_v18 = vrot.slane %v7998_v13, 7  ;;  %v8113_v34 = vpack.c.bf16 %v2332_v25, %v2331_v41  ;;  %v5146_v57 = vpack.c.bf16 %v2603_v10, %v2604_v5  ;;  %v6428_v29 = vld [vmem:[#allocation9 + $0xb8] sm:$0xff]   ;;  %v6434_v44 = vld [vmem:[#allocation9 + $0x188] sm:$0xff]  }
 0x28c   : > { %v2330_v16 = vmax.f32 %v2310_v32, 0.0  ;;  %3054 = vmatprep.mubr.bf16.mxu0 %v8061_v26  ;;  %v2566_v12 = vrot.slane %v8063_v14, 7  ;;  %5899 = vmatmul.mubr.msk.bf16.gmra.mrb[68].mxu1 %vm7241_vm8, %v8082_v56  ;;  %v2562_v13 = vsel %vm588_vm2, %v2560_v3, %v2561_v50  ;;  %v2520_v39 = vsel %vm8032_vm13, %v2331_v41, 0.0  ;;  %v6443_v32 = vld [vmem:[#allocation9 + $0x1e0] sm:$0xff]   ;;  %v6446_v5 = vld [vmem:[#allocation9 + $0x1e8] sm:$0xff]  }
 0x28d   : > { %v2565_v4 = vsel %vm588_vm2, %v2563_v18, %v2564_v17  ;;  %5605 = vmatpush3.bf16.msra.mxu0 %v6447_v7  ;;  %v2521_v2 = vsel %vm8032_vm13, %v2332_v25, 0.0  ;;  %5902 = vmatprep.mubr.msk.bf16.mxu1 %vm7241_vm8, %v8093_v37  ;;  %v8135_v1 = vpack.c.bf16 %v2562_v13, %v2560_v3  ;;  %v2569_v41 = vrot.slane %v2520_v39, 7  ;;  %v6438_v7 = vld [vmem:[#allocation9 + $0x190] sm:$0xff]   ;;  %v6439_v25 = vld [vmem:[#allocation9 + $0x1d8] sm:$0xff]   ;;  %v6454_v13 = vld [vmem:[#allocation9 + $0x200] sm:$0xff]  }
 0x28e   : > { %v2567_v10 = vrot.slane %v2330_v16, 7  ;;  %5917 = vmatpush3.bf16.msra.mxu1 %v6424_v43  ;;  %v2627_v48 = vrot.slane %v2330_v16, 1  ;;  %v8137_v50 = vpack.c.bf16 %v2565_v4, %v2563_v18  ;;  %v8140_v17 = vpack.c.bf16 %v2330_v16, %v8063_v14  ;;  %5970 = vmatprep.subr.bf16.mxu0 %v8111_v47  ;;  %v6449_v3 = vld [vmem:[#allocation9 + $0x1f0] sm:$0xff]   ;;  %v6455_v18 = vld [vmem:[#allocation11 + $0x8] sm:$0xff]  }
 0x28f   : > { %5918 = vmatprep.subr.bf16.mxu1 %v6427_v31  ;;  %v2570_v15 = vrot.slane %v2521_v2, 7  ;;  %v2629_v42 = vrot.slane %v2520_v39, 1  ;;  %v2630_v63 = vrot.slane %v2521_v2, 1  ;;  %v6450_v16 = vld [vmem:[#allocation9 + $0x1b0] sm:$0xff]   ;;  %v6463_v39 = vld [vmem:[#allocation11 + $0x28] sm:$0xff]   ;;  %v6462_v2 = vld [vmem:[#allocation9 + $0x220] sm:$0xff]  }
 0x290   : > { %v2628_v40 = vsel %vm601_vm5, %v2626_v20, %v2627_v48  ;;  %v2568_v46 = vsel %vm588_vm2, %v2566_v12, %v2567_v10  ;;  %v6458_v4 = vld [vmem:[#allocation9 + $0x210] sm:$0xff]   ;;  %v6467_v10 = vld [vmem:[#allocation11 + $0x38] sm:$0xff]  }
 0x291   : > { %v8145_v60 = vpack.c.bf16 %v2627_v48, %v2628_v40  ;;  %v8147_v58 = vpack.c.bf16 %v2568_v46, %v2566_v12  ;;  %v2571_v38 = vsel %vm588_vm2, %v2569_v41, %v2570_v15  ;;  %v2631_v14 = vsel %vm601_vm5, %v2629_v42, %v2630_v63  ;;  %v6452_v12 = vld [vmem:[#allocation9 + $0x1b8] sm:$0xff]  }
 0x292   : > { %5919 = vmatpush3.bf16.msra.mxu1 %v6427_v31  ;;  %v8150_v43 = vpack.c.bf16 %v2571_v38, %v2569_v41  ;;  %v8156_v20 = vpack.c.bf16 %v2630_v63, %v2631_v14  ;;  %v6444_v31 = vld [vmem:[#allocation9 + $0x1a0] sm:$0xff]  }
 0x293   : > { %5073 = vmatmul.mubr.msk.bf16.gmra.mrb[100].mxu0 %vm7229_vm7, %v8095_v61  ;;  %5920 = vmatprep.subr.bf16.mxu1 %v6428_v29 }
 0x294   : > { %3062 = vmatprep.mubr.bf16.mxu0 %v8090_v36  ;;  %5903 = vmatmul.mubr.msk.bf16.gmra.mrb[72].mxu1 %vm7241_vm8, %v8145_v60 }
 0x295   : > { %5922 = vmatprep.mubr.msk.bf16.mxu1 %vm7241_vm8, %v5146_v57  ;;  %v6457_v57 = vld [vmem:[#allocation11 + $0x10] sm:$0xff]  }
 0x296   : > { %5921 = vmatpush3.bf16.msra.mxu1 %v6428_v29 }
 0x297   : > { %5670 = vmatprep.subr.bf16.mxu1 %v6431_v19 }
 0x29b   : > { %5077 = vmatmul.mubr.msk.bf16.gmra.mrb[104].mxu0 %vm7229_vm7, %v8135_v1 }
 0x29c   : > { %3070 = vmatprep.mubr.bf16.mxu0 %v8108_v45  ;;  %5923 = vmatmul.mubr.msk.bf16.vlgmr.msra.gmra.mrb[60].mxu1 %vm7241_vm8, %v7927_v54  ;;  %v6440_v54 = vld [vmem:[#allocation9 + $0x198] sm:$0xff]  }
 0x29d   : > { %5926 = vmatprep.mubr.msk.bf16.mxu1 %vm7241_vm8, %v7954_v21  ;;  %5671 = vmatpush3.bf16.msra.mxu1 %v6432_v52 }
 0x29e   : > { %5672 = vmatprep.subr.bf16.mxu1 %v6433_v6 }
 0x2a1   : > { %5673 = vmatpush3.bf16.msra.mxu1 %v6434_v44 }
 0x2a2   : > { %5674 = vmatprep.subr.bf16.mxu1 %v6437_v8 }
 0x2a3   : > { %5081 = vmatmul.mubr.msk.bf16.gmra.mrb[108].mxu0 %vm7229_vm7, %v8137_v50 }
 0x2a4   : > { %3078 = vmatprep.mubr.bf16.mxu0 %v8140_v17  ;;  %5927 = vmatmul.mubr.msk.bf16.gmra.mrb[64].mxu1 %vm7241_vm8, %v7994_v53 }
 0x2a5   : > { %5930 = vmatprep.mubr.msk.bf16.mxu1 %vm7241_vm8, %v8043_v24  ;;  %5675 = vmatpush3.bf16.msra.mxu1 %v6438_v7 }
 0x2a6   : > { %5676 = vmatprep.subr.bf16.mxu1 %v6439_v25 }
 0x2a9   : > { %5677 = vmatpush3.bf16.msra.mxu1 %v6440_v54 }
 0x2aa   : > { %5678 = vmatprep.subr.bf16.mxu1 %v6443_v32 }
 0x2ab   : > { %5085 = vmatmul.mubr.msk.bf16.gmra.mrb[112].mxu0 %vm7229_vm7, %v8147_v58 }
 0x2ac   : > { %5112 = vmatprep.mubr.msk.bf16.mxu0 %vm5110_vm14, %v7884_v11  ;;  %5931 = vmatmul.mubr.msk.bf16.gmra.mrb[68].mxu1 %vm7241_vm8, %v8066_v27  ;;  %v6451_v11 = vld [vmem:[#allocation9 + $0x1f8] sm:$0xff]  }
 0x2ad   : > { %5934 = vmatprep.mubr.msk.bf16.mxu1 %vm7241_vm8, %v8082_v56  ;;  %5679 = vmatpush3.bf16.msra.mxu1 %v6444_v31 }
 0x2ae   : > { %5680 = vmatprep.subr.bf16.mxu1 %v6446_v5 }
 0x2b1   : > { %5681 = vmatpush3.bf16.msra.mxu1 %v6448_v55 }
 0x2b2   : > { %5682 = vmatprep.subr.bf16.mxu1 %v6449_v3 }
 0x2b3   : > { %5116 = vmatmul.mubr.msk.bf16.vlgmr.msra.gmra.mrb[116].mxu0 %vm7229_vm7, %v7904_v33  ;;  %v6459_v33 = vld [vmem:[#allocation11 + $0x18] sm:$0xff]  }
 0x2b4   : > { %3368 = vmatprep.mubr.bf16.mxu0 %v7902_v59  ;;  %5971 = vmatpush3.bf16.msra.mxu0 %v8111_v47  ;;  %v6456_v59 = vld [vmem:[#allocation9 + $0x208] sm:$0xff]   ;;  %v6461_v47 = vld [vmem:[#allocation11 + $0x20] sm:$0xff]  }
 0x2b5   : > { %5935 = vmatmul.mubr.msk.bf16.gmra.mrb[72].mxu1 %vm7241_vm8, %v8093_v37  ;;  %5972 = vmatprep.subr.bf16.mxu0 %v6455_v18 }
 0x2b6   : > { %5683 = vmatpush3.bf16.msra.mxu1 %v6450_v16  ;;  %3771 = vmatprep.mubr.bf16.mxu1 %v7940_v23 }
 0x2b7   : > { %5684 = vmatprep.subr.bf16.mxu1 %v6451_v11 }
 0x2b8   : > { %5973 = vmatpush3.bf16.msra.mxu0 %v6455_v18 }
 0x2b9   : > { %5974 = vmatprep.subr.bf16.mxu0 %v6457_v57 }
 0x2ba   : > { %5685 = vmatpush3.bf16.msra.mxu1 %v6452_v12 }
 0x2bb   : > { %5120 = vmatmul.mubr.msk.bf16.gmra.mrb[120].mxu0 %vm7229_vm7, %v7892_v49  ;;  %5938 = vmatprep.subr.bf16.mxu1 %v6454_v13  ;;  %v6460_v49 = vld [vmem:[#allocation9 + $0x218] sm:$0xff]  }
 0x2bc   : > { %3376 = vmatprep.mubr.bf16.mxu0 %v7940_v23  ;;  %5975 = vmatpush3.bf16.msra.mxu0 %v6457_v57  ;;  %v6465_v23 = vld [vmem:[#allocation11 + $0x30] sm:$0xff]  }
 0x2bd   : > { %5172 = vmatmul.mubr.msk.bf16.vlgmr.msra.gmra.mrb[76].mxu1 %vm7229_vm7, %v7966_v62  ;;  %5976 = vmatprep.subr.bf16.mxu0 %v6459_v33 }
 0x2be   : > { %3779 = vmatprep.mubr.bf16.mxu1 %v7975_v51  ;;  %5939 = vmatpush3.bf16.msra.mxu1 %v6454_v13 }
 0x2bf   : > { %5940 = vmatprep.subr.bf16.mxu1 %v6456_v59 }
 0x2c0   : > { %5977 = vmatpush3.bf16.msra.mxu0 %v6459_v33 }
 0x2c1   : > { %5978 = vmatprep.subr.bf16.mxu0 %v6461_v47 }
 0x2c2   : > { %5941 = vmatpush3.bf16.msra.mxu1 %v6456_v59 }
 0x2c3   : > { %5124 = vmatmul.mubr.msk.bf16.gmra.mrb[124].mxu0 %vm7229_vm7, %v7966_v62  ;;  %5942 = vmatprep.subr.bf16.mxu1 %v6458_v4  ;;  %v6464_v62 = vld [vmem:[#allocation9 + $0x228] sm:$0xff]  }
 0x2c4   : > { %3384 = vmatprep.mubr.bf16.mxu0 %v7975_v51  ;;  %5979 = vmatpush3.bf16.msra.mxu0 %v6461_v47  ;;  %v6466_v51 = vld [vmem:[#allocation9 + $0x230] sm:$0xff]  }
 0x2c5   : > { %5176 = vmatmul.mubr.msk.bf16.gmra.mrb[80].mxu1 %vm7229_vm7, %v8019_v0  ;;  %5980 = vmatprep.subr.bf16.mxu0 %v6463_v39 }
 0x2c6   : > { %3787 = vmatprep.mubr.bf16.mxu1 %v8028_v35  ;;  %5943 = vmatpush3.bf16.msra.mxu1 %v6458_v4 }
 0x2c7   : > { %5944 = vmatprep.subr.bf16.mxu1 %v6460_v49 }
 0x2c8   : > { %5981 = vmatpush3.bf16.msra.mxu0 %v6463_v39 }
 0x2c9   : > { %5982 = vmatprep.subr.bf16.mxu0 %v6465_v23 }
 0x2ca   : > { %5945 = vmatpush3.bf16.msra.mxu1 %v6460_v49 }
 0x2cb   : > { %5128 = vmatmul.mubr.msk.bf16.gmra.mrb[128].mxu0 %vm7229_vm7, %v8019_v0  ;;  %5946 = vmatprep.subr.bf16.mxu1 %v6462_v2  ;;  %v6468_v0 = vld [vmem:[#allocation9 + $0x238] sm:$0xff]  }
 0x2cc   : > { %3392 = vmatprep.mubr.bf16.mxu0 %v8028_v35  ;;  %5983 = vmatpush3.bf16.msra.mxu0 %v6465_v23  ;;  %v6469_v35 = vld [vmem:[%s7094_s7] sm:$0xff]  }
 0x2cd   : > { %5180 = vmatmul.mubr.msk.bf16.gmra.mrb[84].mxu1 %vm7229_vm7, %v8080_v28  ;;  %5984 = vmatprep.subr.bf16.mxu0 %v6467_v10 }
 0x2ce   : > { %3795 = vmatprep.mubr.bf16.mxu1 %v8061_v26  ;;  %5947 = vmatpush3.bf16.msra.mxu1 %v6462_v2 }
 0x2cf   : > { %5948 = vmatprep.subr.bf16.mxu1 %v6464_v62 }
 0x2d0   : > { %5985 = vmatpush3.bf16.msra.mxu0 %v6467_v10 }
 0x2d2   : > { %5949 = vmatpush3.bf16.msra.mxu1 %v6464_v62 }
 0x2d3   : > { %5132 = vmatmul.mubr.msk.bf16.gmra.mrb[132].mxu0 %vm7229_vm7, %v8080_v28  ;;  %5950 = vmatprep.subr.bf16.mxu1 %v6466_v51  ;;  %v6471_v28 = vld [vmem:[%s7094_s7 + $0x10] sm:$0xff]  }
 0x2d4   : > { %3400 = vmatprep.mubr.bf16.mxu0 %v8061_v26  ;;  %v6470_v26 = vld [vmem:[%s7094_s7 + $0x8] sm:$0xff]  }
 0x2d5   : > { %5184 = vmatmul.mubr.msk.bf16.gmra.mrb[88].mxu1 %vm7229_vm7, %v8095_v61 }
 0x2d6   : > { %3803 = vmatprep.mubr.bf16.mxu1 %v8090_v36  ;;  %5951 = vmatpush3.bf16.msra.mxu1 %v6466_v51 }
 0x2d7   : > { %5952 = vmatprep.subr.bf16.mxu1 %v6468_v0 }
 0x2da   : > { %5953 = vmatpush3.bf16.msra.mxu1 %v6468_v0 }
 0x2db   : > { %5136 = vmatmul.mubr.msk.bf16.gmra.mrb[136].mxu0 %vm7229_vm7, %v8095_v61  ;;  %v6474_v61 = vld [vmem:[%s7094_s7 + $0x28] sm:$0xff]  }
 0x2dc   : > { %3408 = vmatprep.mubr.bf16.mxu0 %v8090_v36  ;;  %v6473_v36 = vld [vmem:[%s7094_s7 + $0x20] sm:$0xff]  }
 0x2dd   : > { %5188 = vmatmul.mubr.msk.bf16.gmra.mrb[92].mxu1 %vm7229_vm7, %v8135_v1 }
 0x2de   : > { %3811 = vmatprep.mubr.bf16.mxu1 %v8108_v45 }
 0x2e3   : > { %5140 = vmatmul.mubr.msk.bf16.gmra.mrb[140].mxu0 %vm7229_vm7, %v8135_v1 }
 0x2e4   : > { %3416 = vmatprep.mubr.bf16.mxu0 %v8108_v45  ;;  %v6475_v45 = vld [vmem:[%s7094_s7 + $0x30] sm:$0xff]   ;;  %s6627_s7 = scalar_lea.vmem %s6626_s0, 2048 }
 0x2e5   : > { %5192 = vmatmul.mubr.msk.bf16.gmra.mrb[96].mxu1 %vm7229_vm7, %v8137_v50  ;;  %p6629_p0 = scmp.lt.s32.totalorder %s6627_s7, %s6621_s16 }
 0x2e6   : > { %3819 = vmatprep.mubr.bf16.mxu1 %v8140_v17 }
 0x2e7   : > { %p6630_p9 = por %p6629_p0, %p6628_p13 }
 0x2e9   : > { %p6631_p11 = pnand %p6630_p9, %p6624_p7 }
 0x2eb   : > { %5144 = vmatmul.mubr.msk.bf16.gmra.mrb[144].mxu0 %vm7229_vm7, %v8137_v50 }
 0x2ec   : > { %5986 = vmatprep.mubr.bf16.mxu0 %v6469_v35 }
 0x2ed   : > { %5196 = vmatmul.mubr.msk.bf16.gmra.mrb[100].mxu1 %vm7229_vm7, %v8147_v58 }
 0x2ee   : > { %5199 = vmatprep.mubr.msk.bf16.mxu1 %vm5197_vm15, %v8113_v34 }
 0x2f3   : > { %5987 = vmatmul.mubr.bf16.vlgmr.msra.gmra.mrb[148].mxu0 %v6470_v26 }
 0x2f4   : > { %5990 = vmatprep.mubr.bf16.mxu0 %v6471_v28 }
 0x2f5   : > { %5203 = vmatmul.mubr.msk.bf16.gmra.mrb[104].mxu1 %vm7229_vm7, %v8150_v43 }
 0x2f6   : > { %5954 = vmatprep.mubr.msk.bf16.mxu1 %vm7241_vm8, %v7954_v21 }
 0x2fb   : > { %5991 = vmatmul.mubr.bf16.gmra.mrb[152].mxu0 %v6472_v30 }
 0x2fc   : > { %5994 = vmatprep.mubr.bf16.mxu0 %v6473_v36 }
 0x2fd   : > { %5955 = vmatmul.mubr.msk.bf16.vlgmr.msra.gmra.mrb[60].mxu1 %vm7241_vm8, %v7994_v53 }
 0x2fe   : > { %5958 = vmatprep.mubr.msk.bf16.mxu1 %vm7241_vm8, %v8043_v24 }
 0x303   : > { %5995 = vmatmul.mubr.bf16.gmra.mrb[156].mxu0 %v6474_v61 }
 0x304   : > { %5998 = vmatprep.mubr.bf16.mxu0 %v6475_v45 }
 0x305   : > { %5959 = vmatmul.mubr.msk.bf16.gmra.mrb[64].mxu1 %vm7241_vm8, %v8066_v27 }
 0x306   : > { %5962 = vmatprep.mubr.msk.bf16.mxu1 %vm7241_vm8, %v8082_v56 }
 0x30b   : > { %5999 = vmatmul.mubr.bf16.gmra.mrb[160].mxu0 %v6476_v9 }
 0x30d   : > { %5963 = vmatmul.mubr.msk.bf16.gmra.mrb[68].mxu1 %vm7241_vm8, %v8093_v37 }
 0x30e   : > { %5966 = vmatprep.mubr.msk.bf16.mxu1 %vm7241_vm8, %v8145_v60 }
 0x315   : > { %5967 = vmatmul.mubr.msk.bf16.gmra.mrb[72].mxu1 %vm7241_vm8, %v8156_v20 }
 0x341   : > { %v5526_v21 = vpop.f32.mrb[84].mxu0 }
 0x342   : > { %v5527_v53 = vpop.f32.mrb[85].mxu0 }
 0x343   : > { %v5528_v24 = vadd.f32 %v5527_v53, %v5526_v21  ;;  %v5529_v27 = vpop.f32.mrb[86].mxu0 }
 0x344   : > { %v5530_v34 = vpop.f32.mrb[87].mxu0 }
 0x345   : > { %v5531_v56 = vadd.f32 %v5530_v34, %v5529_v27 }
 0x34e   : > { %v5532_v48 = vpop.f32.mrb[88].mxu0 }
 0x34f   : > { %v5533_v1 = vpop.f32.mrb[89].mxu0 }
 0x350   : > { %v5534_v50 = vadd.f32 %v5533_v1, %v5532_v48  ;;  %v5535_v29 = vpop.f32.mrb[90].mxu0 }
 0x351   : > { %v5536_v17 = vpop.f32.mrb[91].mxu0 }
 0x352   : > { %v5537_v37 = vadd.f32 %v5536_v17, %v5535_v29 }
 0x356   : > { %v5538_v41 = vpop.f32.mrb[92].mxu0 }
 0x357   : > { %v5539_v15 = vpop.f32.mrb[93].mxu0 }
 0x358   : > { %v8299_v40 = vadd.f32 %v5539_v15, %v5538_v41  ;;  %v5541_v46 = vpop.f32.mrb[94].mxu0 }
 0x359   : > { %v5542_v42 = vpop.f32.mrb[95].mxu0 }
 0x35a   : > { %v8301_v22 = vadd.f32 %v5542_v42, %v5541_v46 }
 0x35e   : > { %v5544_v63 = vpop.f32.mrb[96].mxu0 }
 0x35f   : > { %v5545_v60 = vpop.f32.mrb[97].mxu0 }
 0x360   : > { %v8303_v58 = vadd.f32 %v5545_v60, %v5544_v63  ;;  %v5547_v38 = vpop.f32.mrb[98].mxu0 }
 0x361   : > { %v5548_v43 = vpop.f32.mrb[99].mxu0 }
 0x362   : > { %v8305_v14 = vadd.f32 %v5548_v43, %v5547_v38 }
 0x366   : > { %v5550_v19 = vpop.f32.mrb[100].mxu0 }
 0x367   : > { %v5551_v20 = vpop.f32.mrb[101].mxu0 }
 0x368   : > { %v8307_v52 = vadd.f32 %v5551_v20, %v5550_v19  ;;  %v5553_v6 = vpop.f32.mrb[102].mxu0 }
 0x369   : > { %v5554_v44 = vpop.f32.mrb[103].mxu0 }
 0x36a   : > { %v8309_v8 = vadd.f32 %v5554_v44, %v5553_v6 }
 0x36e   : > { %v5556_v7 = vpop.f32.mrb[104].mxu0 }
 0x36f   : > { %v5557_v25 = vpop.f32.mrb[105].mxu0 }
 0x370   : > { %v8311_v54 = vadd.f32 %v5557_v25, %v5556_v7  ;;  %v5559_v32 = vpop.f32.mrb[106].mxu0 }
 0x371   : > { %v5560_v31 = vpop.f32.mrb[107].mxu0 }
 0x372   : > { %v8313_v5 = vadd.f32 %v5560_v31, %v5559_v32 }
 0x376   : > { %v5562_v55 = vpop.f32.mrb[108].mxu0 }
 0x377   : > { %v5563_v3 = vpop.f32.mrb[109].mxu0 }
 0x378   : > { %v8315_v18 = vadd.f32 %v5563_v3, %v5562_v55  ;;  %v5565_v16 = vpop.f32.mrb[110].mxu0 }
 0x379   : > { %v5566_v11 = vpop.f32.mrb[111].mxu0 }
 0x37a   : > { %v8317_v57 = vadd.f32 %v5566_v11, %v5565_v16 }
 0x37e   : > { %v5568_v12 = vpop.f32.mrb[112].mxu0 }
 0x37f   : > { %v5569_v13 = vpop.f32.mrb[113].mxu0 }
 0x380   : > { %v8319_v33 = vadd.f32 %v5569_v13, %v5568_v12  ;;  %v5571_v59 = vpop.f32.mrb[114].mxu0 }
 0x381   : > { %v5572_v47 = vpop.f32.mrb[115].mxu0 }
 0x382   : > { %v8321_v4 = vadd.f32 %v5572_v47, %v5571_v59 }
 0x386   : > { %v5606_v39 = vpop.f32.mrb[116].mxu0 }
 0x387   : > { %v5607_v49 = vpop.f32.mrb[117].mxu0 }
 0x388   : > { %v5608_v23 = vadd.f32 %v5607_v49, %v5606_v39  ;;  %v5609_v2 = vpop.f32.mrb[118].mxu0 }
 0x389   : > { %v5610_v10 = vpop.f32.mrb[119].mxu0 }
 0x38a   : > { %v6085_v62 = vadd.f32 %v5608_v23, %v5528_v24  ;;  %v5611_v51 = vadd.f32 %v5610_v10, %v5609_v2 }
 0x38c   : > { %v6091_v0 = vadd.f32 %v5611_v51, %v5531_v56 }
 0x38e   : > { %v5612_v35 = vpop.f32.mrb[120].mxu0 }
 0x38f   : > { %v5613_v26 = vpop.f32.mrb[121].mxu0 }
 0x390   : > { %v5686_v28 = vpop.f32.mrb[76].mxu1  ;;  %v5614_v30 = vadd.f32 %v5613_v26, %v5612_v35  ;;  %v5615_v36 = vpop.f32.mrb[122].mxu0 }
 0x391   : > { %v5687_v61 = vpop.f32.mrb[77].mxu1  ;;  %v5616_v45 = vpop.f32.mrb[123].mxu0 }
 0x392   : > { %v6082_v9 = vadd.f32 %v5614_v30, %v5534_v50  ;;  %v5688_v21 = vadd.f32 %v5687_v61, %v5686_v28  ;;  %v5689_v53 = vpop.f32.mrb[78].mxu1  ;;  %v5617_v27 = vadd.f32 %v5616_v45, %v5615_v36 }
 0x393   : > { %v5690_v34 = vpop.f32.mrb[79].mxu1 }
 0x394   : > { %v6088_v48 = vadd.f32 %v5617_v27, %v5537_v37  ;;  %v5691_v1 = vadd.f32 %v5690_v34, %v5689_v53  ;;  %v8323_v29 = vadd.f32 %v6085_v62, %v5688_v21 }
 0x396   : > { %v5618_v17 = vpop.f32.mrb[124].mxu0  ;;  %v8325_v24 = vadd.f32 %v6091_v0, %v5691_v1 }
 0x397   : > { %v5619_v56 = vpop.f32.mrb[125].mxu0 }
 0x398   : > { %v5692_v41 = vpop.f32.mrb[80].mxu1  ;;  %v5620_v15 = vadd.f32 %v5619_v56, %v5618_v17  ;;  %v5621_v46 = vpop.f32.mrb[126].mxu0 }
 0x399   : > { %v5693_v42 = vpop.f32.mrb[81].mxu1  ;;  %v5622_v63 = vpop.f32.mrb[127].mxu0 }
 0x39a   : > { %v6097_v60 = vadd.f32 %v5620_v15, %v8299_v40  ;;  %v5694_v50 = vadd.f32 %v5693_v42, %v5692_v41  ;;  %v5695_v38 = vpop.f32.mrb[82].mxu1  ;;  %v5623_v43 = vadd.f32 %v5622_v63, %v5621_v46 }
 0x39b   : > { %v5696_v19 = vpop.f32.mrb[83].mxu1 }
 0x39c   : > { %v6103_v37 = vadd.f32 %v5623_v43, %v8301_v22  ;;  %v5697_v20 = vadd.f32 %v5696_v19, %v5695_v38  ;;  %v8329_v6 = vadd.f32 %v6082_v9, %v5694_v50 }
 0x39e   : > { %v5624_v44 = vpop.f32.mrb[128].mxu0  ;;  %v8331_v7 = vadd.f32 %v6088_v48, %v5697_v20 }
 0x39f   : > { %v5625_v25 = vpop.f32.mrb[129].mxu0 }
 0x3a0   : > { %v5698_v32 = vpop.f32.mrb[84].mxu1  ;;  %v5626_v31 = vadd.f32 %v5625_v25, %v5624_v44  ;;  %v5627_v55 = vpop.f32.mrb[130].mxu0 }
 0x3a1   : > { %v5699_v3 = vpop.f32.mrb[85].mxu1  ;;  %v5628_v16 = vpop.f32.mrb[131].mxu0 }
 0x3a2   : > { %v6094_v40 = vadd.f32 %v5626_v31, %v8303_v58  ;;  %v5700_v11 = vadd.f32 %v5699_v3, %v5698_v32  ;;  %v5701_v12 = vpop.f32.mrb[86].mxu1  ;;  %v5629_v13 = vadd.f32 %v5628_v16, %v5627_v55 }
 0x3a3   : > { %v5702_v59 = vpop.f32.mrb[87].mxu1 }
 0x3a4   : > { %v6100_v22 = vadd.f32 %v5629_v13, %v8305_v14  ;;  %v5703_v47 = vadd.f32 %v5702_v59, %v5701_v12  ;;  %v8335_v39 = vadd.f32 %v6097_v60, %v5700_v11 }
 0x3a6   : > { %v5630_v49 = vpop.f32.mrb[132].mxu0  ;;  %v8337_v23 = vadd.f32 %v6103_v37, %v5703_v47 }
 0x3a7   : > { %v5631_v2 = vpop.f32.mrb[133].mxu0 }
 0x3a8   : > { %v5704_v10 = vpop.f32.mrb[88].mxu1  ;;  %v5632_v62 = vadd.f32 %v5631_v2, %v5630_v49  ;;  %v5633_v51 = vpop.f32.mrb[134].mxu0 }
 0x3a9   : > { %v5705_v0 = vpop.f32.mrb[89].mxu1  ;;  %v5634_v35 = vpop.f32.mrb[135].mxu0 }
 0x3aa   : > { %v6109_v58 = vadd.f32 %v5632_v62, %v8307_v52  ;;  %v5706_v26 = vadd.f32 %v5705_v0, %v5704_v10  ;;  %v5707_v28 = vpop.f32.mrb[90].mxu1  ;;  %v5635_v30 = vadd.f32 %v5634_v35, %v5633_v51 }
 0x3ab   : > { %v5708_v36 = vpop.f32.mrb[91].mxu1 }
 0x3ac   : > { %v6115_v14 = vadd.f32 %v5635_v30, %v8309_v8  ;;  %v5709_v61 = vadd.f32 %v5708_v36, %v5707_v28  ;;  %v8341_v45 = vadd.f32 %v6094_v40, %v5706_v26  ;;  %v8366_v36 = vld [vmem:[%s8581_s21] ss:$0 sm:$0xff] }
 0x3ae   : > { %v5636_v9 = vpop.f32.mrb[136].mxu0  ;;  %v8343_v21 = vadd.f32 %v6100_v22, %v5709_v61 }
 0x3af   : > { %v5637_v53 = vpop.f32.mrb[137].mxu0 }
 0x3b0   : > { %v5710_v27 = vpop.f32.mrb[92].mxu1  ;;  %v5638_v34 = vadd.f32 %v5637_v53, %v5636_v9  ;;  %v5639_v48 = vpop.f32.mrb[138].mxu0 }
 0x3b1   : > { %v5711_v1 = vpop.f32.mrb[93].mxu1  ;;  %v5640_v17 = vpop.f32.mrb[139].mxu0 }
 0x3b2   : > { %v6106_v52 = vadd.f32 %v5638_v34, %v8311_v54  ;;  %v5712_v56 = vadd.f32 %v5711_v1, %v5710_v27  ;;  %v5713_v41 = vpop.f32.mrb[94].mxu1  ;;  %v5641_v15 = vadd.f32 %v5640_v17, %v5639_v48  ;;  %v8372_v48 = vld [vmem:[%s8582_s27] ss:$0 sm:$0xff] }
 0x3b3   : > { %v5714_v46 = vpop.f32.mrb[95].mxu1 }
 0x3b4   : > { %v6112_v8 = vadd.f32 %v5641_v15, %v8313_v5  ;;  %v5715_v42 = vadd.f32 %v5714_v46, %v5713_v41  ;;  %v8347_v63 = vadd.f32 %v6109_v58, %v5712_v56 }
 0x3b6   : > { %v5642_v60 = vpop.f32.mrb[140].mxu0  ;;  %v8349_v50 = vadd.f32 %v6115_v14, %v5715_v42 }
 0x3b7   : > { %v5643_v38 = vpop.f32.mrb[141].mxu0 }
 0x3b8   : > { %v5716_v43 = vpop.f32.mrb[96].mxu1  ;;  %v5644_v19 = vadd.f32 %v5643_v38, %v5642_v60  ;;  %v5645_v37 = vpop.f32.mrb[142].mxu0 }
 0x3b9   : > { %v5717_v20 = vpop.f32.mrb[97].mxu1  ;;  %v5646_v44 = vpop.f32.mrb[143].mxu0 }
 0x3ba   : > { %v6121_v54 = vadd.f32 %v5644_v19, %v8315_v18  ;;  %v5718_v25 = vadd.f32 %v5717_v20, %v5716_v43  ;;  %v5719_v32 = vpop.f32.mrb[98].mxu1  ;;  %v5647_v31 = vadd.f32 %v5646_v44, %v5645_v37 }
 0x3bb   : > { %v5720_v55 = vpop.f32.mrb[99].mxu1 }
 0x3bc   : > { %v6127_v5 = vadd.f32 %v5647_v31, %v8317_v57  ;;  %v5721_v3 = vadd.f32 %v5720_v55, %v5719_v32  ;;  %v8353_v16 = vadd.f32 %v6106_v52, %v5718_v25 }
 0x3be   : > { %v5648_v40 = vpop.f32.mrb[144].mxu0  ;;  %v8355_v11 = vadd.f32 %v6112_v8, %v5721_v3 }
 0x3bf   : > { %v5649_v12 = vpop.f32.mrb[145].mxu0 }
 0x3c0   : > { %v5722_v13 = vpop.f32.mrb[100].mxu1  ;;  %v5650_v59 = vadd.f32 %v5649_v12, %v5648_v40  ;;  %v5651_v22 = vpop.f32.mrb[146].mxu0 }
 0x3c1   : > { %v5723_v47 = vpop.f32.mrb[101].mxu1  ;;  %v5652_v49 = vpop.f32.mrb[147].mxu0 }
 0x3c2   : > { %v6118_v18 = vadd.f32 %v5650_v59, %v8319_v33  ;;  %v5724_v2 = vadd.f32 %v5723_v47, %v5722_v13  ;;  %v5725_v10 = vpop.f32.mrb[102].mxu1  ;;  %v5653_v62 = vadd.f32 %v5652_v49, %v5651_v22 }
 0x3c3   : > { %v5726_v51 = vpop.f32.mrb[103].mxu1 }
 0x3c4   : > { %v6124_v57 = vadd.f32 %v5653_v62, %v8321_v4  ;;  %v5727_v0 = vadd.f32 %v5726_v51, %v5725_v10  ;;  %v8359_v35 = vadd.f32 %v6121_v54, %v5724_v2 }
 0x3c6   : > { %v5988_v58 = vpop.f32.mrb[148].mxu0  ;;  %v8361_v26 = vadd.f32 %v6127_v5, %v5727_v0 }
 0x3c7   : > { %v4111_v28 = vpop.f32.mrb[149].mxu0  ;;  %v4183_v4 = vmul.f32 %v5988_v58, %v8366_v36 }
 0x3c8   : > { %v5728_v30 = vpop.f32.mrb[104].mxu1  ;;  %v5989_v33 = vpop.f32.mrb[150].mxu0  ;;  %v4181_v1 = vmul.f32 %v8366_v36, %v4111_v28 }
 0x3c9   : > { %v5729_v14 = vpop.f32.mrb[105].mxu1  ;;  %v4114_v61 = vpop.f32.mrb[151].mxu0  ;;  %v4206_v41 = vadd.f32 %v8372_v48, %v4183_v4  ;;  %v4184_v15 = vmul.f32 %v5989_v33, %v8366_v36 }
 0x3ca   : > { %v5730_v9 = vadd.f32 %v5729_v14, %v5728_v30  ;;  %v5731_v53 = vpop.f32.mrb[106].mxu1  ;;  %v4204_v8 = vadd.f32 %v8372_v48, %v4181_v1  ;;  %v4182_v42 = vmul.f32 %v8366_v36, %v4114_v61 }
 0x3cb   : > { %v5732_v27 = vpop.f32.mrb[107].mxu1  ;;  %v4207_v54 = vadd.f32 %v8372_v48, %v4184_v15 }
 0x3cc   : > { %v5733_v34 = vadd.f32 %v5732_v27, %v5731_v53  ;;  %v8375_v17 = vadd.f32 %v6118_v18, %v5730_v9  ;;  %v4205_v5 = vadd.f32 %v8372_v48, %v4182_v42 }
 0x3ce   : > { %v5992_v52 = vpop.f32.mrb[152].mxu0  ;;  %v8377_v56 = vadd.f32 %v6124_v57, %v5733_v34 }
 0x3cf   : > { %v4127_v46 = vpop.f32.mrb[153].mxu0  ;;  %v4187_v55 = vmul.f32 %v5992_v52, %v8366_v36 }
 0x3d0   : > { %v5956_v60 = vpop.f32.mrb[60].mxu1  ;;  %v5993_v38 = vpop.f32.mrb[154].mxu0 }
 0x3d1   : > { %v6084_v43 = vadd.f32 %v8329_v6, %v5956_v60  ;;  %v3870_v19 = vpop.f32.mrb[61].mxu1  ;;  %v4130_v37 = vpop.f32.mrb[155].mxu0  ;;  %v4185_v6 = vmul.f32 %v8366_v36, %v4127_v46  ;;  %v4210_v22 = vadd.f32 %v8372_v48, %v4187_v55  ;;  %v4188_v47 = vmul.f32 %v5993_v38, %v8366_v36 }
 0x3d2   : > { %v6087_v20 = vadd.f32 %v8323_v29, %v3870_v19  ;;  %v5957_v44 = vpop.f32.mrb[62].mxu1  ;;  %v4186_v2 = vmul.f32 %v8366_v36, %v4130_v37 }
 0x3d3   : > { %v4222_v25 = vadd.f32 %v6084_v43, %v4206_v41  ;;  %v6090_v32 = vadd.f32 %v8331_v7, %v5957_v44  ;;  %v3873_v31 = vpop.f32.mrb[63].mxu1  ;;  %v4208_v18 = vadd.f32 %v8372_v48, %v4185_v6  ;;  %v4211_v28 = vadd.f32 %v8372_v48, %v4188_v47 }
 0x3d4   : > { %v4220_v3 = vadd.f32 %v6087_v20, %v4204_v8  ;;  %v6093_v40 = vadd.f32 %v8325_v24, %v3873_v31  ;;  %v4209_v9 = vadd.f32 %v8372_v48, %v4186_v2 }
 0x3d5   : > { %v4223_v12 = vadd.f32 %v6090_v32, %v4207_v54 }
 0x3d6   : > { %v4221_v13 = vadd.f32 %v6093_v40, %v4205_v5  ;;  %v5996_v29 = vpop.f32.mrb[156].mxu0 }
 0x3d7   : > { %v4765_v59 = vpack.c.bf16 %v4223_v12, %v4222_v25  ;;  %v4143_v7 = vpop.f32.mrb[157].mxu0  ;;  %v4191_v61 = vmul.f32 %v5996_v29, %v8366_v36 }
 0x3d8   : > { %v4760_v49 = vpack.c.bf16 %v4221_v13, %v4220_v3  ;;  %v5960_v10 = vpop.f32.mrb[64].mxu1  ;;  %v5997_v62 = vpop.f32.mrb[158].mxu0  ;;  %v4189_v27 = vmul.f32 %v8366_v36, %v4143_v7 }
 0x3d9   : > { %4807 = vst [vmem:[%s8397_s11 + $0x8] sm:$0xff] %v4765_v59   ;;  %v6096_v24 = vadd.f32 %v8341_v45, %v5960_v10  ;;  %v3886_v51 = vpop.f32.mrb[65].mxu1  ;;  %v4146_v57 = vpop.f32.mrb[159].mxu0  ;;  %v4214_v52 = vadd.f32 %v8372_v48, %v4191_v61 }
 0x3da   : > { %4761 = vst [vmem:[%s8397_s11] sm:$0xff] %v4760_v49   ;;  %v6099_v0 = vadd.f32 %v8335_v39, %v3886_v51  ;;  %v5961_v58 = vpop.f32.mrb[66].mxu1  ;;  %v4212_v46 = vadd.f32 %v8372_v48, %v4189_v27  ;;  %v4190_v8 = vmul.f32 %v8366_v36, %v4146_v57 }
 0x3db   : > { %v4226_v30 = vadd.f32 %v6096_v24, %v4210_v22  ;;  %v6102_v33 = vadd.f32 %v8343_v21, %v5961_v58  ;;  %v3889_v14 = vpop.f32.mrb[67].mxu1  ;;  %v4192_v21 = vmul.f32 %v5997_v62, %v8366_v36 }
 0x3dc   : > { %v4224_v53 = vadd.f32 %v6099_v0, %v4208_v18  ;;  %v6105_v45 = vadd.f32 %v8337_v23, %v3889_v14  ;;  %v4213_v31 = vadd.f32 %v8372_v48, %v4190_v8 }
 0x3dd   : > { %v4227_v4 = vadd.f32 %v6102_v33, %v4211_v28  ;;  %v4215_v20 = vadd.f32 %v8372_v48, %v4192_v21 }
 0x3de   : > { %v4225_v39 = vadd.f32 %v6105_v45, %v4209_v9  ;;  %v6000_v34 = vpop.f32.mrb[160].mxu0 }
 0x3df   : > { %v4775_v1 = vpack.c.bf16 %v4227_v4, %v4226_v30  ;;  %v4159_v41 = vpop.f32.mrb[161].mxu0  ;;  %v4195_v32 = vmul.f32 %v6000_v34, %v8366_v36 }
 0x3e0   : > { %v4770_v15 = vpack.c.bf16 %v4225_v39, %v4224_v53  ;;  %v5964_v42 = vpop.f32.mrb[68].mxu1  ;;  %v6001_v60 = vpop.f32.mrb[162].mxu0 }
 0x3e1   : > { %4809 = vst [vmem:[%s8397_s11 + $0x18] sm:$0xff] %v4775_v1   ;;  %v6108_v23 = vadd.f32 %v8353_v16, %v5964_v42  ;;  %v3902_v38 = vpop.f32.mrb[69].mxu1  ;;  %v4162_v43 = vpop.f32.mrb[163].mxu0  ;;  %v4218_v6 = vadd.f32 %v8372_v48, %v4195_v32  ;;  %v4196_v12 = vmul.f32 %v6001_v60, %v8366_v36 }
 0x3e2   : > { %4808 = vst [vmem:[%s8397_s11 + $0x10] sm:$0xff] %v4770_v15   ;;  %v6111_v19 = vadd.f32 %v8347_v63, %v3902_v38  ;;  %v5965_v37 = vpop.f32.mrb[70].mxu1  ;;  %v4193_v63 = vmul.f32 %v8366_v36, %v4159_v41  ;;  %v4194_v29 = vmul.f32 %v8366_v36, %v4162_v43 }
 0x3e3   : > { %v4230_v44 = vadd.f32 %v6108_v23, %v4214_v52  ;;  %v6114_v54 = vadd.f32 %v8355_v11, %v5965_v37  ;;  %v3905_v25 = vpop.f32.mrb[71].mxu1  ;;  %v4219_v49 = vadd.f32 %v8372_v48, %v4196_v12 }
 0x3e4   : > { %v4228_v16 = vadd.f32 %v6111_v19, %v4212_v46  ;;  %v6117_v55 = vadd.f32 %v8349_v50, %v3905_v25  ;;  %v4216_v13 = vadd.f32 %v8372_v48, %v4193_v63  ;;  %v4217_v10 = vadd.f32 %v8372_v48, %v4194_v29 }
 0x3e5   : > { %v4231_v5 = vadd.f32 %v6114_v54, %v4215_v20 }
 0x3e6   : > { %v4229_v3 = vadd.f32 %v6117_v55, %v4213_v31 }
 0x3e7   : > { %v4785_v40 = vpack.c.bf16 %v4231_v5, %v4230_v44 }
 0x3e8   : > { %v4780_v11 = vpack.c.bf16 %v4229_v3, %v4228_v16  ;;  %v5968_v59 = vpop.f32.mrb[72].mxu1 }
 0x3e9   : > { %4811 = vst [vmem:[%s8397_s11 + $0x28] sm:$0xff] %v4785_v40   ;;  %v6120_v50 = vadd.f32 %v8375_v17, %v5968_v59  ;;  %v3918_v22 = vpop.f32.mrb[73].mxu1 }
 0x3ea   : > { %4810 = vst [vmem:[%s8397_s11 + $0x20] sm:$0xff] %v4780_v11   ;;  %v6123_v47 = vadd.f32 %v8359_v35, %v3918_v22  ;;  %v5969_v7 = vpop.f32.mrb[74].mxu1 }
 0x3eb   : > { %v4234_v18 = vadd.f32 %v6120_v50, %v4218_v6  ;;  %v6126_v2 = vadd.f32 %v8377_v56, %v5969_v7  ;;  %v3921_v36 = vpop.f32.mrb[75].mxu1 }
 0x3ec   : > { %v4232_v62 = vadd.f32 %v6123_v47, %v4216_v13  ;;  %v6129_v17 = vadd.f32 %v8361_v26, %v3921_v36 }
 0x3ed   : > { %v4235_v24 = vadd.f32 %v6126_v2, %v4219_v49 }
 0x3ee   : > { %v4233_v35 = vadd.f32 %v6129_v17, %v4217_v10 }
 0x3ef   : > { %v4795_v51 = vpack.c.bf16 %v4235_v24, %v4234_v18 }
 0x3f0   : > { %v4790_v57 = vpack.c.bf16 %v4233_v35, %v4232_v62 }
 0x3f1   : > { %4813 = vst [vmem:[%s8397_s11 + $0x38] sm:$0xff] %v4795_v51  }
 0x3f2   : > { %4812 = vst [vmem:[%s8397_s11 + $0x30] sm:$0xff] %v4790_v57  }
 0x3f3   : > { %6634 = shalt.err (!%p6631_p11)
}
 0x3f4   : > { %s6635_s29 = scalar_lea.hbm %s8443_s4, 1024  ;;  %s6639_s25 = scalar_lea.hbm %s8584_s10, 4096 }
 0x3f5   : > { %p6636_p1 = scmp.ne.s32.totalorder %s8443_s4, %s6635_s29  ;;  %p6640_p12 = scmp.lt.u32.totalorder %s8443_s4, %s8584_s10 }
 0x3f6   : > { %p6641_p2 = scmp.lt.u32.totalorder %s6639_s25, %s6635_s29  ;;  %p6643_p10 = scmp.lt.u32.totalorder %s6635_s29, %s8443_s4 }
 0x3f7   : > { %p6637_p4 = pnand %p6636_p1, %p6975_p3 }
 0x3f8   : > { %p6642_p6 = por %p6641_p2, %p6640_p12 }
 0x3f9   : > { %p6638_p8 = pneg %p6637_p4 }
 0x3fa   : > { %p6644_p5 = por %p6643_p10, %p6642_p6 }
 0x3fc   : > { %p6645_p7 = pnand %p6644_p5, %p6638_p8 }
 0x3fe   : > { %6648 = shalt.err (!%p6645_p7)
}
 0x3ff   : > { %s6742_s15 = smov 64   ;;  %s6743_s3 = smov 4  }
 0x400   : > { %6214 = dma.vmem_to_hbm [thread:$0]  (%p6975_p3), %s8438_s20, 1024, %s8443_s4, %s4317_s14, %s6742_s15, %s6742_s15, %s6743_s3  }
 0x401 PF: > { %s8585_s6 = sld [smem:[#allocation18_spill]]  ;;  %s8586_s30 = sld [smem:[#allocation20_spill]] }
 0x402   : > { %p6244_p13 = scmp.ge.s32.totalorder %s6731_s24, 2 }
 0x407   : > { %s4348_s8 = sand.u32 1, %s8585_s6   ;;  %p8587_p0 = scmp.ne.s32.totalorder %s8586_s30, 0 }
 0x408   : > { %s4349_s5 = scalar_lea.sflag [#allocation5], %s4348_s8 }
 0x409   : > { %p6234_p9 = pnand %p6244_p13, %p8587_p0 }
 0x40b   : > { %6698 = dma.done.wait (!%p6234_p9), %s4349_s5, 1024  }
 0x40c   : > { %6700 = vsyncadd (!%p6234_p9), %s4349_s5, 4294966272  ;;  %s31_s24 = sadd.s32 1, %s6731_s24   ;;  %s8588_s13 = smov %s6995_s17 }
 0x40d   : > { %p28_p11 = scmp.ge.s32.totalorder %s31_s24, 6   ;;  %s8589_s9 = sld [smem:[#allocation21_spill]] }
 0x40e   : > { %s8590_s12 = sld [smem:[#allocation22_spill]]  ;;  %s8591_s17 = smov %s6707_s18 }
 0x40f   : > { %s8592_s18 = smov %s6711_s19  ;;  %s8593_s19 = smov %s8588_s13 }
 0x410   : > { %s8594_s20 = smov %s6723_s22  ;;  %s8595_s21 = smov %s6727_s23 }
 0x411   :  { %30 = sbr.rel (!%p28_p11) target bundleno = 21 (0x15), region = 138 }
 0x413   : > { %s8596_s22 = smov %s8589_s9 }
 0x414   : > { %s8597_s23 = smov %s8590_s12 }
 0x418   :  { %4354 = vsyncpa [#allocation4], 1 }
 0x419   :  { %4356 = vsyncpa [#allocation4 + $0x1], 1 }
 0x41a   :  { %4357 = vsyncpa [#allocation7], 1 }
 0x41b   :  { %4359 = vsyncpa [#allocation7 + $0x1], 1 }
 0x41c   :  { %4360 = vsyncpa [#allocation10], 1 }
 0x41d   :  { %4361 = vsyncpa [#allocation5], 1 }
 0x41e   :  { %4363 = vsyncpa [#allocation5 + $0x1], 1 }

</bundles_post_ra>
